<compile_context>
chip_gen: v6e
topology: v6e:2x2x1
jax: 0.10.0
libtpu: 0.0.40
codegen_flags: <defaults>
</compile_context>

<pallas_src>
import functools

import jax
import jax.numpy as jnp
from jax import lax
from jax.experimental import pallas as pl
from jax.experimental.pallas import tpu as pltpu

INPUT_SIZE = 192
HIDDEN_SIZE = 128
NUM_LAYERS = 2
FC_HIDDEN = 64
NUM_CLASSES = 3
SUBLANE = 8  # batch is padded to a full sublane tile

_VMEM_SPEC = pl.BlockSpec(memory_space=pltpu.MemorySpace.VMEM)


def _sigmoid(x):
  # One EUP op (tanh) instead of exp + reciprocal; mathematically exact.
  return 0.5 * jnp.tanh(0.5 * x) + 0.5


def _cell(gates, c_prev, hidden):
  """LSTM cell elementwise math in f32. gates: (B, 4H) pre-act, order i,f,g,o."""
  i = _sigmoid(gates[:, 0 * hidden:1 * hidden])
  f = _sigmoid(gates[:, 1 * hidden:2 * hidden])
  g = jnp.tanh(gates[:, 2 * hidden:3 * hidden])
  o = _sigmoid(gates[:, 3 * hidden:4 * hidden])
  c_new = f * c_prev + i * g
  h_new = o * jnp.tanh(c_new)
  return h_new, c_new


# ----------------------------------------------------------------------------
# Fused kernel: 2-layer BiLSTM + FC head, everything in VMEM.
# ----------------------------------------------------------------------------
def _fused_kernel(x_ref,
                  w_ih1_ref, w_hh1f_ref, w_hh1b_ref, b1_ref,
                  w_ih2f_ref, w_hh2f_ref, b2f_ref,
                  w_ih2b_ref, b2b_ref,
                  fc_w1_ref, fc_b1_ref, fc_w2_ref, fc_b2_ref,
                  out_ref,
                  gx1, gx2, hseq_f, hseq_b, h_f, c_f, h_b, c_b,
                  *, seq_len, batch, hidden):
  """All arrays whole-resident in VMEM (gridless single program).

  x_ref:      (T*B, D) bf16   time-major flattened input, row = t*B + b
  w_ih1_ref:  (D, 8H)  bf16   [W_ih1 fwd | W_ih1 bwd] fused along gate axis
  w_hh1*:     (H, 4H)  bf16
  b1_ref:     (1, 8H)  f32    [b fwd | b bwd], b = b_ih + b_hh
  w_ih2f/b:   (2H, 4H) bf16   rows 0:H act on fwd hidden, H:2H on bwd hidden
  fc_w1/fc_w2, fc_b1/fc_b2: FC head (w bf16, b f32)
  out_ref:    (B, 3)   f32
  gx1:        (T*B, 8H) f32   layer-1 fused input projection
  gx2:        (T*B, 4H) f32   layer-2 fwd input projection
  hseq_f/b:   (T*B, H) f32    layer-1 per-step hidden states
  h_f/c_f/h_b/c_b: (B, H) f32 recurrence carries (reused by layer 2 fwd)
  """
  f32 = jnp.float32
  bf16 = jnp.bfloat16
  T, B, H = seq_len, batch, hidden
  G = 4 * H

  # ---- Layer 1: one fused input projection for both directions (bias folded)
  x = x_ref[...]                                                  # (T*B, D) bf16
  gx1[...] = (jnp.dot(x, w_ih1_ref[...], preferred_element_type=f32)
              + b1_ref[...])

  h_f[...] = jnp.zeros_like(h_f)
  c_f[...] = jnp.zeros_like(c_f)
  h_b[...] = jnp.zeros_like(h_b)
  c_b[...] = jnp.zeros_like(c_b)

  # ---- Layer 1 recurrence: fwd and bwd interleaved in one loop -------------
  def l1_step(t, carry):
    # Forward direction consumes timestep t.
    rf = pl.multiple_of(t * B, B)
    gates_f = (gx1[pl.ds(rf, B), 0:G]
               + jnp.dot(h_f[...].astype(bf16), w_hh1f_ref[...],
                         preferred_element_type=f32))
    hf_new, cf_new = _cell(gates_f, c_f[...], H)
    h_f[...] = hf_new
    c_f[...] = cf_new
    hseq_f[pl.ds(rf, B), :] = hf_new
    # Backward direction consumes timestep T-1-t (in-kernel reversal).
    rb = pl.multiple_of((T - 1 - t) * B, B)
    gates_b = (gx1[pl.ds(rb, B), G:2 * G]
               + jnp.dot(h_b[...].astype(bf16), w_hh1b_ref[...],
                         preferred_element_type=f32))
    hb_new, cb_new = _cell(gates_b, c_b[...], H)
    h_b[...] = hb_new
    c_b[...] = cb_new
    hseq_b[pl.ds(rb, B), :] = hb_new
    return carry

  lax.fori_loop(0, T, l1_step, 0, unroll=min(T, 8))

  # ---- Layer 2 forward: hoisted input projection into its own buffer -------
  hs_f = hseq_f[...].astype(bf16)                                 # (T*B, H)
  hs_b = hseq_b[...].astype(bf16)                                 # (T*B, H)
  gx2[...] = (jnp.dot(hs_f, w_ih2f_ref[0:H, :], preferred_element_type=f32)
              + jnp.dot(hs_b, w_ih2f_ref[H:2 * H, :],
                        preferred_element_type=f32)
              + b2f_ref[...])

  h_f[...] = jnp.zeros_like(h_f)                                  # reuse as L2 carry
  c_f[...] = jnp.zeros_like(c_f)

  # Only the final forward state feeds the FC head -> no hseq writeback.
  def l2_step(t, carry):
    r = pl.multiple_of(t * B, B)
    gates = (gx2[pl.ds(r, B), :]
             + jnp.dot(h_f[...].astype(bf16), w_hh2f_ref[...],
                       preferred_element_type=f32))
    h_new, c_new = _cell(gates, c_f[...], H)
    h_f[...] = h_new
    c_f[...] = c_new
    return carry

  lax.fori_loop(0, T, l2_step, 0, unroll=min(T, 8))
  h2_fwd_last = h_f[...]                                          # (B, H) f32

  # ---- Layer 2 backward: only its t = T-1 output is needed.  That is the
  # backward RNN's *first* step (zero state, input = layer-1 output at T-1),
  # so there is no h @ W_hh term and no time loop.
  last = (T - 1) * B
  gates_b2 = (jnp.dot(hs_f[last:last + B, :], w_ih2b_ref[0:H, :],
                      preferred_element_type=f32)
              + jnp.dot(hs_b[last:last + B, :], w_ih2b_ref[H:2 * H, :],
                        preferred_element_type=f32)
              + b2b_ref[...])
  h2_bwd_last, _ = _cell(gates_b2, jnp.zeros((B, H), f32), H)

  # ---- FC head: Linear(2H,64) -> ReLU -> Dropout(eval: identity) -> Linear(64,3)
  h1 = (jnp.dot(h2_fwd_last.astype(bf16), fc_w1_ref[0:H, :],
                preferred_element_type=f32)
        + jnp.dot(h2_bwd_last.astype(bf16), fc_w1_ref[H:2 * H, :],
                  preferred_element_type=f32)
        + fc_b1_ref[...])
  h1 = jnp.maximum(h1, 0.0)
  out_ref[...] = (jnp.dot(h1.astype(bf16), fc_w2_ref[...],
                          preferred_element_type=f32)
                  + fc_b2_ref[...])


# ----------------------------------------------------------------------------
# Wrapper
# ----------------------------------------------------------------------------
def priority_detection_forward(x_btd, params):
  """Full model forward.  x_btd: (B, T, INPUT_SIZE) float32."""
  batch, seq_len, _ = x_btd.shape
  b_pad = ((batch + SUBLANE - 1) // SUBLANE) * SUBLANE
  if b_pad != batch:
    x_btd = jnp.pad(x_btd, ((0, b_pad - batch), (0, 0), (0, 0)))
  # Time-major flattened rows (row = t*B_pad + b), bf16 MXU operand.
  x_flat = jnp.transpose(x_btd, (1, 0, 2)).reshape(
      seq_len * b_pad, INPUT_SIZE).astype(jnp.bfloat16)

  l1f = params["lstm"][0]["fwd"]
  l1b = params["lstm"][0]["bwd"]
  l2f = params["lstm"][1]["fwd"]
  l2b = params["lstm"][1]["bwd"]
  fc = params["fc"]

  bf16 = jnp.bfloat16
  # Fused layer-1 input weights / biases: [fwd | bwd] along the gate axis.
  w_ih1 = jnp.concatenate([l1f["w_ih"], l1b["w_ih"]], axis=1).astype(bf16)
  b1 = jnp.concatenate([l1f["b"], l1b["b"]], axis=1)

  args = (
      x_flat, w_ih1,
      l1f["w_hh"].astype(bf16), l1b["w_hh"].astype(bf16), b1,
      l2f["w_ih"].astype(bf16), l2f["w_hh"].astype(bf16), l2f["b"],
      l2b["w_ih"].astype(bf16), l2b["b"],
      fc["w1"].astype(bf16), fc["b1"], fc["w2"].astype(bf16), fc["b2"],
  )

  tb = seq_len * b_pad
  H = HIDDEN_SIZE
  scratch = [
      pltpu.VMEM((tb, 8 * H), jnp.float32),   # gx1 (layer-1 fwd|bwd fused)
      pltpu.VMEM((tb, 4 * H), jnp.float32),   # gx2 (layer-2 fwd)
      pltpu.VMEM((tb, H), jnp.float32),       # hseq_f
      pltpu.VMEM((tb, H), jnp.float32),       # hseq_b
      pltpu.VMEM((b_pad, H), jnp.float32),    # h_f
      pltpu.VMEM((b_pad, H), jnp.float32),    # c_f
      pltpu.VMEM((b_pad, H), jnp.float32),    # h_b
      pltpu.VMEM((b_pad, H), jnp.float32),    # c_b
  ]

  # VMEM limit derived from the actual footprint (important on v7x's 64 MiB).
  arg_bytes = sum(int(a.size) * a.dtype.itemsize for a in args)
  scratch_bytes = 4 * (tb * 8 * H + tb * 4 * H + 2 * tb * H + 4 * b_pad * H)
  out_bytes = 4 * b_pad * NUM_CLASSES
  footprint = arg_bytes + scratch_bytes + out_bytes
  vmem_limit = int(min(max(int(1.5 * footprint) + (2 << 20), 8 << 20),
                       100 << 20))

  kernel = functools.partial(_fused_kernel, seq_len=seq_len, batch=b_pad,
                             hidden=HIDDEN_SIZE)
  out = pl.pallas_call(
      kernel,
      out_shape=jax.ShapeDtypeStruct((b_pad, NUM_CLASSES), jnp.float32),
      in_specs=[_VMEM_SPEC] * len(args),
      out_specs=_VMEM_SPEC,
      scratch_shapes=scratch,
      compiler_params=pltpu.CompilerParams(vmem_limit_bytes=vmem_limit),
  )(*args)
  return out[:batch]


# ----------------------------------------------------------------------------
# Deterministic parameter init (PyTorch-style uniform(-1/sqrt(H), 1/sqrt(H)))
# ----------------------------------------------------------------------------
def init_params(key):
  bound = 1.0 / jnp.sqrt(jnp.float32(HIDDEN_SIZE))

  def uniform(k, shape, b):
    return jax.random.uniform(k, shape, jnp.float32, -b, b)

  params = {"lstm": [], "fc": {}}
  for layer in range(NUM_LAYERS):
    d_in = INPUT_SIZE if layer == 0 else 2 * HIDDEN_SIZE
    layer_params = {}
    for direction in ("fwd", "bwd"):
      key, k1, k2, k3, k4 = jax.random.split(key, 5)
      layer_params[direction] = {
          "w_ih": uniform(k1, (d_in, 4 * HIDDEN_SIZE), bound),
          "w_hh": uniform(k2, (HIDDEN_SIZE, 4 * HIDDEN_SIZE), bound),
          # b = b_ih + b_hh folded together
          "b": uniform(k3, (1, 4 * HIDDEN_SIZE), bound)
               + uniform(k4, (1, 4 * HIDDEN_SIZE), bound),
      }
    params["lstm"].append(layer_params)

  key, k1, k2, k3, k4 = jax.random.split(key, 5)
  b1 = 1.0 / jnp.sqrt(jnp.float32(2 * HIDDEN_SIZE))
  b2 = 1.0 / jnp.sqrt(jnp.float32(FC_HIDDEN))
  params["fc"] = {
      "w1": uniform(k1, (2 * HIDDEN_SIZE, FC_HIDDEN), b1),
      "b1": uniform(k2, (1, FC_HIDDEN), b1),
      "w2": uniform(k3, (FC_HIDDEN, NUM_CLASSES), b2),
      "b2": uniform(k4, (1, NUM_CLASSES), b2),
  }
  return params


# ----------------------------------------------------------------------------
# Pure-JAX f32 reference (sanity check against the fused Pallas kernel)
# ----------------------------------------------------------------------------
def _lstm_layer_ref(x_tbd, w_ih, w_hh, b, hidden):
  batch = x_tbd.shape[1]

  def step(carry, x_t):
    h, c = carry
    gates = x_t @ w_ih + h @ w_hh + b
    i, f, g, o = jnp.split(gates, 4, axis=-1)
    c = jax.nn.sigmoid(f) * c + jax.nn.sigmoid(i) * jnp.tanh(g)
    h = jax.nn.sigmoid(o) * jnp.tanh(c)
    return (h, c), h

  init = (jnp.zeros((batch, hidden), jnp.float32),
          jnp.zeros((batch, hidden), jnp.float32))
  _, hs = lax.scan(step, init, x_tbd)
  return hs


def forward_ref(x_btd, params):
  layer_in = jnp.transpose(x_btd, (1, 0, 2))
  for layer in range(NUM_LAYERS):
    pf = params["lstm"][layer]["fwd"]
    pb = params["lstm"][layer]["bwd"]
    h_fwd = _lstm_layer_ref(layer_in, pf["w_ih"], pf["w_hh"], pf["b"],
                            HIDDEN_SIZE)
    h_bwd = jnp.flip(
        _lstm_layer_ref(jnp.flip(layer_in, 0), pb["w_ih"], pb["w_hh"], pb["b"],
                        HIDDEN_SIZE), 0)
    layer_in = jnp.concatenate([h_fwd, h_bwd], axis=-1)
  h_last = layer_in[-1]
  fc = params["fc"]
  h1 = jnp.maximum(h_last @ fc["w1"] + fc["b1"], 0.0)
  return h1 @ fc["w2"] + fc["b2"]


# ----------------------------------------------------------------------------
if __name__ == "__main__":
  BATCH, SEQ = 2, 8
  key = jax.random.PRNGKey(0)
  key, xkey = jax.random.split(key)
  x = jax.random.normal(xkey, (BATCH, SEQ, INPUT_SIZE), jnp.float32)
  params = init_params(key)

  out = jax.block_until_ready(priority_detection_forward(x, params))
  assert out.shape == (BATCH, NUM_CLASSES), out.shape

  ref = jax.block_until_ready(forward_ref(x, params))
  # bf16 MXU operands -> slightly looser tolerance vs. the pure-f32 reference.
  assert jnp.allclose(out, ref, atol=3e-2, rtol=3e-2), (out, ref)

  print("KERNEL_OK")
</pallas_src>

<mosaic_0001>
module attributes {stable_mosaic.version = 11 : i64} {
  func.func @_fused_kernel(%arg0: memref<64x192xbf16, #tpu.memory_space<vmem>>, %arg1: memref<192x1024xbf16, #tpu.memory_space<vmem>>, %arg2: memref<128x512xbf16, #tpu.memory_space<vmem>>, %arg3: memref<128x512xbf16, #tpu.memory_space<vmem>>, %arg4: memref<1x1024xf32, #tpu.memory_space<vmem>>, %arg5: memref<256x512xbf16, #tpu.memory_space<vmem>>, %arg6: memref<128x512xbf16, #tpu.memory_space<vmem>>, %arg7: memref<1x512xf32, #tpu.memory_space<vmem>>, %arg8: memref<256x512xbf16, #tpu.memory_space<vmem>>, %arg9: memref<1x512xf32, #tpu.memory_space<vmem>>, %arg10: memref<256x64xbf16, #tpu.memory_space<vmem>>, %arg11: memref<1x64xf32, #tpu.memory_space<vmem>>, %arg12: memref<64x3xbf16, #tpu.memory_space<vmem>>, %arg13: memref<1x3xf32, #tpu.memory_space<vmem>>, %arg14: memref<8x3xf32, #tpu.memory_space<vmem>>, %arg15: memref<64x1024xf32, #tpu.memory_space<vmem>>, %arg16: memref<64x512xf32, #tpu.memory_space<vmem>>, %arg17: memref<64x128xf32, #tpu.memory_space<vmem>>, %arg18: memref<64x128xf32, #tpu.memory_space<vmem>>, %arg19: memref<8x128xf32, #tpu.memory_space<vmem>>, %arg20: memref<8x128xf32, #tpu.memory_space<vmem>>, %arg21: memref<8x128xf32, #tpu.memory_space<vmem>>, %arg22: memref<8x128xf32, #tpu.memory_space<vmem>>) attributes {dimension_semantics = [], scalar_prefetch = 0 : i64, scratch_operands = 8 : i64, tpu.core_type = #tpu.core_type<tc>} {
    %c0 = arith.constant 0 : index
    %c0_0 = arith.constant 0 : index
    %0 = vector.load %arg0[%c0, %c0_0] : memref<64x192xbf16, #tpu.memory_space<vmem>>, vector<64x192xbf16>
    %c0_1 = arith.constant 0 : index
    %c0_2 = arith.constant 0 : index
    %1 = vector.load %arg1[%c0_1, %c0_2] : memref<192x1024xbf16, #tpu.memory_space<vmem>>, vector<192x1024xbf16>
    %cst = arith.constant dense<0.000000e+00> : vector<64x1024xf32>
    %2 = tpu.matmul %0, %1, %cst {dimension_numbers = #tpu.dot_dimension_numbers<[1], [0], [0], [1], [0, 0, 1, 1], [], []>} : vector<64x192xbf16>, vector<192x1024xbf16>, vector<64x1024xf32> -> vector<64x1024xf32>
    %c0_3 = arith.constant 0 : index
    %c0_4 = arith.constant 0 : index
    %3 = vector.load %arg4[%c0_3, %c0_4] : memref<1x1024xf32, #tpu.memory_space<vmem>>, vector<1x1024xf32>
    %4 = vector.broadcast %3 : vector<1x1024xf32> to vector<64x1024xf32>
    %5 = arith.addf %2, %4 : vector<64x1024xf32>
    %c0_5 = arith.constant 0 : index
    %c0_6 = arith.constant 0 : index
    %6 = vector.load %arg15[%c0_5, %c0_6] : memref<64x1024xf32, #tpu.memory_space<vmem>>, vector<64x1024xf32>
    tpu.vector_store %arg15[%c0_5, %c0_6], %5 {strides = array<i32>} : memref<64x1024xf32, #tpu.memory_space<vmem>>, vector<64x1024xf32>,
    %cst_7 = arith.constant 0.000000e+00 : f32
    %7 = vector.broadcast %cst_7 : f32 to vector<8x128xf32>
    %c0_8 = arith.constant 0 : index
    %c0_9 = arith.constant 0 : index
    %8 = vector.load %arg19[%c0_8, %c0_9] : memref<8x128xf32, #tpu.memory_space<vmem>>, vector<8x128xf32>
    tpu.vector_store %arg19[%c0_8, %c0_9], %7 {strides = array<i32>} : memref<8x128xf32, #tpu.memory_space<vmem>>, vector<8x128xf32>,
    %cst_10 = arith.constant 0.000000e+00 : f32
    %9 = vector.broadcast %cst_10 : f32 to vector<8x128xf32>
    %c0_11 = arith.constant 0 : index
    %c0_12 = arith.constant 0 : index
    %10 = vector.load %arg20[%c0_11, %c0_12] : memref<8x128xf32, #tpu.memory_space<vmem>>, vector<8x128xf32>
    tpu.vector_store %arg20[%c0_11, %c0_12], %9 {strides = array<i32>} : memref<8x128xf32, #tpu.memory_space<vmem>>, vector<8x128xf32>,
    %cst_13 = arith.constant 0.000000e+00 : f32
    %11 = vector.broadcast %cst_13 : f32 to vector<8x128xf32>
    %c0_14 = arith.constant 0 : index
    %c0_15 = arith.constant 0 : index
    %12 = vector.load %arg21[%c0_14, %c0_15] : memref<8x128xf32, #tpu.memory_space<vmem>>, vector<8x128xf32>
    tpu.vector_store %arg21[%c0_14, %c0_15], %11 {strides = array<i32>} : memref<8x128xf32, #tpu.memory_space<vmem>>, vector<8x128xf32>,
    %cst_16 = arith.constant 0.000000e+00 : f32
    %13 = vector.broadcast %cst_16 : f32 to vector<8x128xf32>
    %c0_17 = arith.constant 0 : index
    %c0_18 = arith.constant 0 : index
    %14 = vector.load %arg22[%c0_17, %c0_18] : memref<8x128xf32, #tpu.memory_space<vmem>>, vector<8x128xf32>
    tpu.vector_store %arg22[%c0_17, %c0_18], %13 {strides = array<i32>} : memref<8x128xf32, #tpu.memory_space<vmem>>, vector<8x128xf32>,
    %c0_i32 = arith.constant 0 : i32
    %c8_i32 = arith.constant 8 : i32
    %15 = arith.muli %c0_i32, %c8_i32 : i32
    %16 = tpu.assume_multiple %15, 8 : i32
    %17 = arith.index_cast %16 : i32 to index
    %c0_19 = arith.constant 0 : index
    %18 = vector.load %arg15[%17, %c0_19] : memref<64x1024xf32, #tpu.memory_space<vmem>>, vector<8x512xf32>
    %c0_20 = arith.constant 0 : index
    %c0_21 = arith.constant 0 : index
    %19 = vector.load %arg19[%c0_20, %c0_21] : memref<8x128xf32, #tpu.memory_space<vmem>>, vector<8x128xf32>
    %20 = arith.truncf %19 : vector<8x128xf32> to vector<8x128xbf16>
    %c0_22 = arith.constant 0 : index
    %c0_23 = arith.constant 0 : index
    %21 = vector.load %arg2[%c0_22, %c0_23] : memref<128x512xbf16, #tpu.memory_space<vmem>>, vector<128x512xbf16>
    %cst_24 = arith.constant dense<0.000000e+00> : vector<8x512xf32>
    %22 = tpu.matmul %20, %21, %cst_24 {dimension_numbers = #tpu.dot_dimension_numbers<[1], [0], [0], [1], [0, 0, 1, 1], [], []>} : vector<8x128xbf16>, vector<128x512xbf16>, vector<8x512xf32> -> vector<8x512xf32>
    %23 = arith.addf %18, %22 : vector<8x512xf32>
    %c0_25 = arith.constant 0 : index
    %c0_26 = arith.constant 0 : index
    %24 = vector.load %arg20[%c0_25, %c0_26] : memref<8x128xf32, #tpu.memory_space<vmem>>, vector<8x128xf32>
    %25 = vector.extract_strided_slice %23 {offsets = [0, 0], sizes = [8, 128], strides = [1, 1]} : vector<8x512xf32> to vector<8x128xf32>
    %cst_27 = arith.constant 5.000000e-01 : f32
    %26 = vector.broadcast %cst_27 : f32 to vector<8x128xf32>
    %27 = arith.mulf %26, %25 : vector<8x128xf32>
    %28 = math.tanh %27 : vector<8x128xf32>
    %cst_28 = arith.constant 5.000000e-01 : f32
    %29 = vector.broadcast %cst_28 : f32 to vector<8x128xf32>
    %30 = arith.mulf %29, %28 : vector<8x128xf32>
    %cst_29 = arith.constant 5.000000e-01 : f32
    %31 = vector.broadcast %cst_29 : f32 to vector<8x128xf32>
    %32 = arith.addf %30, %31 : vector<8x128xf32>
    %33 = vector.extract_strided_slice %23 {offsets = [0, 128], sizes = [8, 128], strides = [1, 1]} : vector<8x512xf32> to vector<8x128xf32>
    %cst_30 = arith.constant 5.000000e-01 : f32
    %34 = vector.broadcast %cst_30 : f32 to vector<8x128xf32>
    %35 = arith.mulf %34, %33 : vector<8x128xf32>
    %36 = math.tanh %35 : vector<8x128xf32>
    %cst_31 = arith.constant 5.000000e-01 : f32
    %37 = vector.broadcast %cst_31 : f32 to vector<8x128xf32>
    %38 = arith.mulf %37, %36 : vector<8x128xf32>
    %cst_32 = arith.constant 5.000000e-01 : f32
    %39 = vector.broadcast %cst_32 : f32 to vector<8x128xf32>
    %40 = arith.addf %38, %39 : vector<8x128xf32>
    %41 = vector.extract_strided_slice %23 {offsets = [0, 256], sizes = [8, 128], strides = [1, 1]} : vector<8x512xf32> to vector<8x128xf32>
    %42 = math.tanh %41 : vector<8x128xf32>
    %43 = vector.extract_strided_slice %23 {offsets = [0, 384], sizes = [8, 128], strides = [1, 1]} : vector<8x512xf32> to vector<8x128xf32>
    %cst_33 = arith.constant 5.000000e-01 : f32
    %44 = vector.broadcast %cst_33 : f32 to vector<8x128xf32>
    %45 = arith.mulf %44, %43 : vector<8x128xf32>
    %46 = math.tanh %45 : vector<8x128xf32>
    %cst_34 = arith.constant 5.000000e-01 : f32
    %47 = vector.broadcast %cst_34 : f32 to vector<8x128xf32>
    %48 = arith.mulf %47, %46 : vector<8x128xf32>
    %cst_35 = arith.constant 5.000000e-01 : f32
    %49 = vector.broadcast %cst_35 : f32 to vector<8x128xf32>
    %50 = arith.addf %48, %49 : vector<8x128xf32>
    %51 = arith.mulf %40, %24 : vector<8x128xf32>
    %52 = arith.mulf %32, %42 : vector<8x128xf32>
    %53 = arith.addf %51, %52 : vector<8x128xf32>
    %54 = math.tanh %53 : vector<8x128xf32>
    %55 = arith.mulf %50, %54 : vector<8x128xf32>
    %c0_36 = arith.constant 0 : index
    %c0_37 = arith.constant 0 : index
    %56 = vector.load %arg19[%c0_36, %c0_37] : memref<8x128xf32, #tpu.memory_space<vmem>>, vector<8x128xf32>
    tpu.vector_store %arg19[%c0_36, %c0_37], %55 {strides = array<i32>} : memref<8x128xf32, #tpu.memory_space<vmem>>, vector<8x128xf32>,
    %c0_38 = arith.constant 0 : index
    %c0_39 = arith.constant 0 : index
    %57 = vector.load %arg20[%c0_38, %c0_39] : memref<8x128xf32, #tpu.memory_space<vmem>>, vector<8x128xf32>
    tpu.vector_store %arg20[%c0_38, %c0_39], %53 {strides = array<i32>} : memref<8x128xf32, #tpu.memory_space<vmem>>, vector<8x128xf32>,
    %58 = arith.index_cast %16 : i32 to index
    %c0_40 = arith.constant 0 : index
    %59 = vector.load %arg17[%58, %c0_40] : memref<64x128xf32, #tpu.memory_space<vmem>>, vector<8x128xf32>
    tpu.vector_store %arg17[%58, %c0_40], %55 {strides = array<i32>} : memref<64x128xf32, #tpu.memory_space<vmem>>, vector<8x128xf32>,
    %c7_i32 = arith.constant 7 : i32
    %60 = arith.subi %c7_i32, %c0_i32 : i32
    %c8_i32_41 = arith.constant 8 : i32
    %61 = arith.muli %60, %c8_i32_41 : i32
    %62 = tpu.assume_multiple %61, 8 : i32
    %63 = arith.index_cast %62 : i32 to index
    %c512 = arith.constant 512 : index
    %64 = vector.load %arg15[%63, %c512] : memref<64x1024xf32, #tpu.memory_space<vmem>>, vector<8x512xf32>
    %c0_42 = arith.constant 0 : index
    %c0_43 = arith.constant 0 : index
    %65 = vector.load %arg21[%c0_42, %c0_43] : memref<8x128xf32, #tpu.memory_space<vmem>>, vector<8x128xf32>
    %66 = arith.truncf %65 : vector<8x128xf32> to vector<8x128xbf16>
    %c0_44 = arith.constant 0 : index
    %c0_45 = arith.constant 0 : index
    %67 = vector.load %arg3[%c0_44, %c0_45] : memref<128x512xbf16, #tpu.memory_space<vmem>>, vector<128x512xbf16>
    %cst_46 = arith.constant dense<0.000000e+00> : vector<8x512xf32>
    %68 = tpu.matmul %66, %67, %cst_46 {dimension_numbers = #tpu.dot_dimension_numbers<[1], [0], [0], [1], [0, 0, 1, 1], [], []>} : vector<8x128xbf16>, vector<128x512xbf16>, vector<8x512xf32> -> vector<8x512xf32>
    %69 = arith.addf %64, %68 : vector<8x512xf32>
    %c0_47 = arith.constant 0 : index
    %c0_48 = arith.constant 0 : index
    %70 = vector.load %arg22[%c0_47, %c0_48] : memref<8x128xf32, #tpu.memory_space<vmem>>, vector<8x128xf32>
    %71 = vector.extract_strided_slice %69 {offsets = [0, 0], sizes = [8, 128], strides = [1, 1]} : vector<8x512xf32> to vector<8x128xf32>
    %cst_49 = arith.constant 5.000000e-01 : f32
    %72 = vector.broadcast %cst_49 : f32 to vector<8x128xf32>
    %73 = arith.mulf %72, %71 : vector<8x128xf32>
    %74 = math.tanh %73 : vector<8x128xf32>
    %cst_50 = arith.constant 5.000000e-01 : f32
    %75 = vector.broadcast %cst_50 : f32 to vector<8x128xf32>
    %76 = arith.mulf %75, %74 : vector<8x128xf32>
    %cst_51 = arith.constant 5.000000e-01 : f32
    %77 = vector.broadcast %cst_51 : f32 to vector<8x128xf32>
    %78 = arith.addf %76, %77 : vector<8x128xf32>
    %79 = vector.extract_strided_slice %69 {offsets = [0, 128], sizes = [8, 128], strides = [1, 1]} : vector<8x512xf32> to vector<8x128xf32>
    %cst_52 = arith.constant 5.000000e-01 : f32
    %80 = vector.broadcast %cst_52 : f32 to vector<8x128xf32>
    %81 = arith.mulf %80, %79 : vector<8x128xf32>
    %82 = math.tanh %81 : vector<8x128xf32>
    %cst_53 = arith.constant 5.000000e-01 : f32
    %83 = vector.broadcast %cst_53 : f32 to vector<8x128xf32>
    %84 = arith.mulf %83, %82 : vector<8x128xf32>
    %cst_54 = arith.constant 5.000000e-01 : f32
    %85 = vector.broadcast %cst_54 : f32 to vector<8x128xf32>
    %86 = arith.addf %84, %85 : vector<8x128xf32>
    %87 = vector.extract_strided_slice %69 {offsets = [0, 256], sizes = [8, 128], strides = [1, 1]} : vector<8x512xf32> to vector<8x128xf32>
    %88 = math.tanh %87 : vector<8x128xf32>
    %89 = vector.extract_strided_slice %69 {offsets = [0, 384], sizes = [8, 128], strides = [1, 1]} : vector<8x512xf32> to vector<8x128xf32>
    %cst_55 = arith.constant 5.000000e-01 : f32
    %90 = vector.broadcast %cst_55 : f32 to vector<8x128xf32>
    %91 = arith.mulf %90, %89 : vector<8x128xf32>
    %92 = math.tanh %91 : vector<8x128xf32>
    %cst_56 = arith.constant 5.000000e-01 : f32
    %93 = vector.broadcast %cst_56 : f32 to vector<8x128xf32>
    %94 = arith.mulf %93, %92 : vector<8x128xf32>
    %cst_57 = arith.constant 5.000000e-01 : f32
    %95 = vector.broadcast %cst_57 : f32 to vector<8x128xf32>
    %96 = arith.addf %94, %95 : vector<8x128xf32>
    %97 = arith.mulf %86, %70 : vector<8x128xf32>
    %98 = arith.mulf %78, %88 : vector<8x128xf32>
    %99 = arith.addf %97, %98 : vector<8x128xf32>
    %100 = math.tanh %99 : vector<8x128xf32>
    %101 = arith.mulf %96, %100 : vector<8x128xf32>
    %c0_58 = arith.constant 0 : index
    %c0_59 = arith.constant 0 : index
    %102 = vector.load %arg21[%c0_58, %c0_59] : memref<8x128xf32, #tpu.memory_space<vmem>>, vector<8x128xf32>
    tpu.vector_store %arg21[%c0_58, %c0_59], %101 {strides = array<i32>} : memref<8x128xf32, #tpu.memory_space<vmem>>, vector<8x128xf32>,
    %c0_60 = arith.constant 0 : index
    %c0_61 = arith.constant 0 : index
    %103 = vector.load %arg22[%c0_60, %c0_61] : memref<8x128xf32, #tpu.memory_space<vmem>>, vector<8x128xf32>
    tpu.vector_store %arg22[%c0_60, %c0_61], %99 {strides = array<i32>} : memref<8x128xf32, #tpu.memory_space<vmem>>, vector<8x128xf32>,
    %104 = arith.index_cast %62 : i32 to index
    %c0_62 = arith.constant 0 : index
    %105 = vector.load %arg18[%104, %c0_62] : memref<64x128xf32, #tpu.memory_space<vmem>>, vector<8x128xf32>
    tpu.vector_store %arg18[%104, %c0_62], %101 {strides = array<i32>} : memref<64x128xf32, #tpu.memory_space<vmem>>, vector<8x128xf32>,
    %c1_i32 = arith.constant 1 : i32
    %c8_i32_63 = arith.constant 8 : i32
    %106 = arith.muli %c1_i32, %c8_i32_63 : i32
    %107 = tpu.assume_multiple %106, 8 : i32
    %108 = arith.index_cast %107 : i32 to index
    %c0_64 = arith.constant 0 : index
    %109 = vector.load %arg15[%108, %c0_64] : memref<64x1024xf32, #tpu.memory_space<vmem>>, vector<8x512xf32>
    %c0_65 = arith.constant 0 : index
    %c0_66 = arith.constant 0 : index
    %110 = vector.load %arg19[%c0_65, %c0_66] : memref<8x128xf32, #tpu.memory_space<vmem>>, vector<8x128xf32>
    %111 = arith.truncf %110 : vector<8x128xf32> to vector<8x128xbf16>
    %c0_67 = arith.constant 0 : index
    %c0_68 = arith.constant 0 : index
    %112 = vector.load %arg2[%c0_67, %c0_68] : memref<128x512xbf16, #tpu.memory_space<vmem>>, vector<128x512xbf16>
    %cst_69 = arith.constant dense<0.000000e+00> : vector<8x512xf32>
    %113 = tpu.matmul %111, %112, %cst_69 {dimension_numbers = #tpu.dot_dimension_numbers<[1], [0], [0], [1], [0, 0, 1, 1], [], []>} : vector<8x128xbf16>, vector<128x512xbf16>, vector<8x512xf32> -> vector<8x512xf32>
    %114 = arith.addf %109, %113 : vector<8x512xf32>
    %c0_70 = arith.constant 0 : index
    %c0_71 = arith.constant 0 : index
    %115 = vector.load %arg20[%c0_70, %c0_71] : memref<8x128xf32, #tpu.memory_space<vmem>>, vector<8x128xf32>
    %116 = vector.extract_strided_slice %114 {offsets = [0, 0], sizes = [8, 128], strides = [1, 1]} : vector<8x512xf32> to vector<8x128xf32>
    %cst_72 = arith.constant 5.000000e-01 : f32
    %117 = vector.broadcast %cst_72 : f32 to vector<8x128xf32>
    %118 = arith.mulf %117, %116 : vector<8x128xf32>
    %119 = math.tanh %118 : vector<8x128xf32>
    %cst_73 = arith.constant 5.000000e-01 : f32
    %120 = vector.broadcast %cst_73 : f32 to vector<8x128xf32>
    %121 = arith.mulf %120, %119 : vector<8x128xf32>
    %cst_74 = arith.constant 5.000000e-01 : f32
    %122 = vector.broadcast %cst_74 : f32 to vector<8x128xf32>
    %123 = arith.addf %121, %122 : vector<8x128xf32>
    %124 = vector.extract_strided_slice %114 {offsets = [0, 128], sizes = [8, 128], strides = [1, 1]} : vector<8x512xf32> to vector<8x128xf32>
    %cst_75 = arith.constant 5.000000e-01 : f32
    %125 = vector.broadcast %cst_75 : f32 to vector<8x128xf32>
    %126 = arith.mulf %125, %124 : vector<8x128xf32>
    %127 = math.tanh %126 : vector<8x128xf32>
    %cst_76 = arith.constant 5.000000e-01 : f32
    %128 = vector.broadcast %cst_76 : f32 to vector<8x128xf32>
    %129 = arith.mulf %128, %127 : vector<8x128xf32>
    %cst_77 = arith.constant 5.000000e-01 : f32
    %130 = vector.broadcast %cst_77 : f32 to vector<8x128xf32>
    %131 = arith.addf %129, %130 : vector<8x128xf32>
    %132 = vector.extract_strided_slice %114 {offsets = [0, 256], sizes = [8, 128], strides = [1, 1]} : vector<8x512xf32> to vector<8x128xf32>
    %133 = math.tanh %132 : vector<8x128xf32>
    %134 = vector.extract_strided_slice %114 {offsets = [0, 384], sizes = [8, 128], strides = [1, 1]} : vector<8x512xf32> to vector<8x128xf32>
    %cst_78 = arith.constant 5.000000e-01 : f32
    %135 = vector.broadcast %cst_78 : f32 to vector<8x128xf32>
    %136 = arith.mulf %135, %134 : vector<8x128xf32>
    %137 = math.tanh %136 : vector<8x128xf32>
    %cst_79 = arith.constant 5.000000e-01 : f32
    %138 = vector.broadcast %cst_79 : f32 to vector<8x128xf32>
    %139 = arith.mulf %138, %137 : vector<8x128xf32>
    %cst_80 = arith.constant 5.000000e-01 : f32
    %140 = vector.broadcast %cst_80 : f32 to vector<8x128xf32>
    %141 = arith.addf %139, %140 : vector<8x128xf32>
    %142 = arith.mulf %131, %115 : vector<8x128xf32>
    %143 = arith.mulf %123, %133 : vector<8x128xf32>
    %144 = arith.addf %142, %143 : vector<8x128xf32>
    %145 = math.tanh %144 : vector<8x128xf32>
    %146 = arith.mulf %141, %145 : vector<8x128xf32>
    %c0_81 = arith.constant 0 : index
    %c0_82 = arith.constant 0 : index
    %147 = vector.load %arg19[%c0_81, %c0_82] : memref<8x128xf32, #tpu.memory_space<vmem>>, vector<8x128xf32>
    tpu.vector_store %arg19[%c0_81, %c0_82], %146 {strides = array<i32>} : memref<8x128xf32, #tpu.memory_space<vmem>>, vector<8x128xf32>,
    %c0_83 = arith.constant 0 : index
    %c0_84 = arith.constant 0 : index
    %148 = vector.load %arg20[%c0_83, %c0_84] : memref<8x128xf32, #tpu.memory_space<vmem>>, vector<8x128xf32>
    tpu.vector_store %arg20[%c0_83, %c0_84], %144 {strides = array<i32>} : memref<8x128xf32, #tpu.memory_space<vmem>>, vector<8x128xf32>,
    %149 = arith.index_cast %107 : i32 to index
    %c0_85 = arith.constant 0 : index
    %150 = vector.load %arg17[%149, %c0_85] : memref<64x128xf32, #tpu.memory_space<vmem>>, vector<8x128xf32>
    tpu.vector_store %arg17[%149, %c0_85], %146 {strides = array<i32>} : memref<64x128xf32, #tpu.memory_space<vmem>>, vector<8x128xf32>,
    %c7_i32_86 = arith.constant 7 : i32
    %151 = arith.subi %c7_i32_86, %c1_i32 : i32
    %c8_i32_87 = arith.constant 8 : i32
    %152 = arith.muli %151, %c8_i32_87 : i32
    %153 = tpu.assume_multiple %152, 8 : i32
    %154 = arith.index_cast %153 : i32 to index
    %c512_88 = arith.constant 512 : index
    %155 = vector.load %arg15[%154, %c512_88] : memref<64x1024xf32, #tpu.memory_space<vmem>>, vector<8x512xf32>
    %c0_89 = arith.constant 0 : index
    %c0_90 = arith.constant 0 : index
    %156 = vector.load %arg21[%c0_89, %c0_90] : memref<8x128xf32, #tpu.memory_space<vmem>>, vector<8x128xf32>
    %157 = arith.truncf %156 : vector<8x128xf32> to vector<8x128xbf16>
    %c0_91 = arith.constant 0 : index
    %c0_92 = arith.constant 0 : index
    %158 = vector.load %arg3[%c0_91, %c0_92] : memref<128x512xbf16, #tpu.memory_space<vmem>>, vector<128x512xbf16>
    %cst_93 = arith.constant dense<0.000000e+00> : vector<8x512xf32>
    %159 = tpu.matmul %157, %158, %cst_93 {dimension_numbers = #tpu.dot_dimension_numbers<[1], [0], [0], [1], [0, 0, 1, 1], [], []>} : vector<8x128xbf16>, vector<128x512xbf16>, vector<8x512xf32> -> vector<8x512xf32>
    %160 = arith.addf %155, %159 : vector<8x512xf32>
    %c0_94 = arith.constant 0 : index
    %c0_95 = arith.constant 0 : index
    %161 = vector.load %arg22[%c0_94, %c0_95] : memref<8x128xf32, #tpu.memory_space<vmem>>, vector<8x128xf32>
    %162 = vector.extract_strided_slice %160 {offsets = [0, 0], sizes = [8, 128], strides = [1, 1]} : vector<8x512xf32> to vector<8x128xf32>
    %cst_96 = arith.constant 5.000000e-01 : f32
    %163 = vector.broadcast %cst_96 : f32 to vector<8x128xf32>
    %164 = arith.mulf %163, %162 : vector<8x128xf32>
    %165 = math.tanh %164 : vector<8x128xf32>
    %cst_97 = arith.constant 5.000000e-01 : f32
    %166 = vector.broadcast %cst_97 : f32 to vector<8x128xf32>
    %167 = arith.mulf %166, %165 : vector<8x128xf32>
    %cst_98 = arith.constant 5.000000e-01 : f32
    %168 = vector.broadcast %cst_98 : f32 to vector<8x128xf32>
    %169 = arith.addf %167, %168 : vector<8x128xf32>
    %170 = vector.extract_strided_slice %160 {offsets = [0, 128], sizes = [8, 128], strides = [1, 1]} : vector<8x512xf32> to vector<8x128xf32>
    %cst_99 = arith.constant 5.000000e-01 : f32
    %171 = vector.broadcast %cst_99 : f32 to vector<8x128xf32>
    %172 = arith.mulf %171, %170 : vector<8x128xf32>
    %173 = math.tanh %172 : vector<8x128xf32>
    %cst_100 = arith.constant 5.000000e-01 : f32
    %174 = vector.broadcast %cst_100 : f32 to vector<8x128xf32>
    %175 = arith.mulf %174, %173 : vector<8x128xf32>
    %cst_101 = arith.constant 5.000000e-01 : f32
    %176 = vector.broadcast %cst_101 : f32 to vector<8x128xf32>
    %177 = arith.addf %175, %176 : vector<8x128xf32>
    %178 = vector.extract_strided_slice %160 {offsets = [0, 256], sizes = [8, 128], strides = [1, 1]} : vector<8x512xf32> to vector<8x128xf32>
    %179 = math.tanh %178 : vector<8x128xf32>
    %180 = vector.extract_strided_slice %160 {offsets = [0, 384], sizes = [8, 128], strides = [1, 1]} : vector<8x512xf32> to vector<8x128xf32>
    %cst_102 = arith.constant 5.000000e-01 : f32
    %181 = vector.broadcast %cst_102 : f32 to vector<8x128xf32>
    %182 = arith.mulf %181, %180 : vector<8x128xf32>
    %183 = math.tanh %182 : vector<8x128xf32>
    %cst_103 = arith.constant 5.000000e-01 : f32
    %184 = vector.broadcast %cst_103 : f32 to vector<8x128xf32>
    %185 = arith.mulf %184, %183 : vector<8x128xf32>
    %cst_104 = arith.constant 5.000000e-01 : f32
    %186 = vector.broadcast %cst_104 : f32 to vector<8x128xf32>
    %187 = arith.addf %185, %186 : vector<8x128xf32>
    %188 = arith.mulf %177, %161 : vector<8x128xf32>
    %189 = arith.mulf %169, %179 : vector<8x128xf32>
    %190 = arith.addf %188, %189 : vector<8x128xf32>
    %191 = math.tanh %190 : vector<8x128xf32>
    %192 = arith.mulf %187, %191 : vector<8x128xf32>
    %c0_105 = arith.constant 0 : index
    %c0_106 = arith.constant 0 : index
    %193 = vector.load %arg21[%c0_105, %c0_106] : memref<8x128xf32, #tpu.memory_space<vmem>>, vector<8x128xf32>
    tpu.vector_store %arg21[%c0_105, %c0_106], %192 {strides = array<i32>} : memref<8x128xf32, #tpu.memory_space<vmem>>, vector<8x128xf32>,
    %c0_107 = arith.constant 0 : index
    %c0_108 = arith.constant 0 : index
    %194 = vector.load %arg22[%c0_107, %c0_108] : memref<8x128xf32, #tpu.memory_space<vmem>>, vector<8x128xf32>
    tpu.vector_store %arg22[%c0_107, %c0_108], %190 {strides = array<i32>} : memref<8x128xf32, #tpu.memory_space<vmem>>, vector<8x128xf32>,
    %195 = arith.index_cast %153 : i32 to index
    %c0_109 = arith.constant 0 : index
    %196 = vector.load %arg18[%195, %c0_109] : memref<64x128xf32, #tpu.memory_space<vmem>>, vector<8x128xf32>
    tpu.vector_store %arg18[%195, %c0_109], %192 {strides = array<i32>} : memref<64x128xf32, #tpu.memory_space<vmem>>, vector<8x128xf32>,
    %c2_i32 = arith.constant 2 : i32
    %c8_i32_110 = arith.constant 8 : i32
    %197 = arith.muli %c2_i32, %c8_i32_110 : i32
    %198 = tpu.assume_multiple %197, 8 : i32
    %199 = arith.index_cast %198 : i32 to index
    %c0_111 = arith.constant 0 : index
    %200 = vector.load %arg15[%199, %c0_111] : memref<64x1024xf32, #tpu.memory_space<vmem>>, vector<8x512xf32>
    %c0_112 = arith.constant 0 : index
    %c0_113 = arith.constant 0 : index
    %201 = vector.load %arg19[%c0_112, %c0_113] : memref<8x128xf32, #tpu.memory_space<vmem>>, vector<8x128xf32>
    %202 = arith.truncf %201 : vector<8x128xf32> to vector<8x128xbf16>
    %c0_114 = arith.constant 0 : index
    %c0_115 = arith.constant 0 : index
    %203 = vector.load %arg2[%c0_114, %c0_115] : memref<128x512xbf16, #tpu.memory_space<vmem>>, vector<128x512xbf16>
    %cst_116 = arith.constant dense<0.000000e+00> : vector<8x512xf32>
    %204 = tpu.matmul %202, %203, %cst_116 {dimension_numbers = #tpu.dot_dimension_numbers<[1], [0], [0], [1], [0, 0, 1, 1], [], []>} : vector<8x128xbf16>, vector<128x512xbf16>, vector<8x512xf32> -> vector<8x512xf32>
    %205 = arith.addf %200, %204 : vector<8x512xf32>
    %c0_117 = arith.constant 0 : index
    %c0_118 = arith.constant 0 : index
    %206 = vector.load %arg20[%c0_117, %c0_118] : memref<8x128xf32, #tpu.memory_space<vmem>>, vector<8x128xf32>
    %207 = vector.extract_strided_slice %205 {offsets = [0, 0], sizes = [8, 128], strides = [1, 1]} : vector<8x512xf32> to vector<8x128xf32>
    %cst_119 = arith.constant 5.000000e-01 : f32
    %208 = vector.broadcast %cst_119 : f32 to vector<8x128xf32>
    %209 = arith.mulf %208, %207 : vector<8x128xf32>
    %210 = math.tanh %209 : vector<8x128xf32>
    %cst_120 = arith.constant 5.000000e-01 : f32
    %211 = vector.broadcast %cst_120 : f32 to vector<8x128xf32>
    %212 = arith.mulf %211, %210 : vector<8x128xf32>
    %cst_121 = arith.constant 5.000000e-01 : f32
    %213 = vector.broadcast %cst_121 : f32 to vector<8x128xf32>
    %214 = arith.addf %212, %213 : vector<8x128xf32>
    %215 = vector.extract_strided_slice %205 {offsets = [0, 128], sizes = [8, 128], strides = [1, 1]} : vector<8x512xf32> to vector<8x128xf32>
    %cst_122 = arith.constant 5.000000e-01 : f32
    %216 = vector.broadcast %cst_122 : f32 to vector<8x128xf32>
    %217 = arith.mulf %216, %215 : vector<8x128xf32>
    %218 = math.tanh %217 : vector<8x128xf32>
    %cst_123 = arith.constant 5.000000e-01 : f32
    %219 = vector.broadcast %cst_123 : f32 to vector<8x128xf32>
    %220 = arith.mulf %219, %218 : vector<8x128xf32>
    %cst_124 = arith.constant 5.000000e-01 : f32
    %221 = vector.broadcast %cst_124 : f32 to vector<8x128xf32>
    %222 = arith.addf %220, %221 : vector<8x128xf32>
    %223 = vector.extract_strided_slice %205 {offsets = [0, 256], sizes = [8, 128], strides = [1, 1]} : vector<8x512xf32> to vector<8x128xf32>
    %224 = math.tanh %223 : vector<8x128xf32>
    %225 = vector.extract_strided_slice %205 {offsets = [0, 384], sizes = [8, 128], strides = [1, 1]} : vector<8x512xf32> to vector<8x128xf32>
    %cst_125 = arith.constant 5.000000e-01 : f32
    %226 = vector.broadcast %cst_125 : f32 to vector<8x128xf32>
    %227 = arith.mulf %226, %225 : vector<8x128xf32>
    %228 = math.tanh %227 : vector<8x128xf32>
    %cst_126 = arith.constant 5.000000e-01 : f32
    %229 = vector.broadcast %cst_126 : f32 to vector<8x128xf32>
    %230 = arith.mulf %229, %228 : vector<8x128xf32>
    %cst_127 = arith.constant 5.000000e-01 : f32
    %231 = vector.broadcast %cst_127 : f32 to vector<8x128xf32>
    %232 = arith.addf %230, %231 : vector<8x128xf32>
    %233 = arith.mulf %222, %206 : vector<8x128xf32>
    %234 = arith.mulf %214, %224 : vector<8x128xf32>
    %235 = arith.addf %233, %234 : vector<8x128xf32>
    %236 = math.tanh %235 : vector<8x128xf32>
    %237 = arith.mulf %232, %236 : vector<8x128xf32>
    %c0_128 = arith.constant 0 : index
    %c0_129 = arith.constant 0 : index
    %238 = vector.load %arg19[%c0_128, %c0_129] : memref<8x128xf32, #tpu.memory_space<vmem>>, vector<8x128xf32>
    tpu.vector_store %arg19[%c0_128, %c0_129], %237 {strides = array<i32>} : memref<8x128xf32, #tpu.memory_space<vmem>>, vector<8x128xf32>,
    %c0_130 = arith.constant 0 : index
    %c0_131 = arith.constant 0 : index
    %239 = vector.load %arg20[%c0_130, %c0_131] : memref<8x128xf32, #tpu.memory_space<vmem>>, vector<8x128xf32>
    tpu.vector_store %arg20[%c0_130, %c0_131], %235 {strides = array<i32>} : memref<8x128xf32, #tpu.memory_space<vmem>>, vector<8x128xf32>,
    %240 = arith.index_cast %198 : i32 to index
    %c0_132 = arith.constant 0 : index
    %241 = vector.load %arg17[%240, %c0_132] : memref<64x128xf32, #tpu.memory_space<vmem>>, vector<8x128xf32>
    tpu.vector_store %arg17[%240, %c0_132], %237 {strides = array<i32>} : memref<64x128xf32, #tpu.memory_space<vmem>>, vector<8x128xf32>,
    %c7_i32_133 = arith.constant 7 : i32
    %242 = arith.subi %c7_i32_133, %c2_i32 : i32
    %c8_i32_134 = arith.constant 8 : i32
    %243 = arith.muli %242, %c8_i32_134 : i32
    %244 = tpu.assume_multiple %243, 8 : i32
    %245 = arith.index_cast %244 : i32 to index
    %c512_135 = arith.constant 512 : index
    %246 = vector.load %arg15[%245, %c512_135] : memref<64x1024xf32, #tpu.memory_space<vmem>>, vector<8x512xf32>
    %c0_136 = arith.constant 0 : index
    %c0_137 = arith.constant 0 : index
    %247 = vector.load %arg21[%c0_136, %c0_137] : memref<8x128xf32, #tpu.memory_space<vmem>>, vector<8x128xf32>
    %248 = arith.truncf %247 : vector<8x128xf32> to vector<8x128xbf16>
    %c0_138 = arith.constant 0 : index
    %c0_139 = arith.constant 0 : index
    %249 = vector.load %arg3[%c0_138, %c0_139] : memref<128x512xbf16, #tpu.memory_space<vmem>>, vector<128x512xbf16>
    %cst_140 = arith.constant dense<0.000000e+00> : vector<8x512xf32>
    %250 = tpu.matmul %248, %249, %cst_140 {dimension_numbers = #tpu.dot_dimension_numbers<[1], [0], [0], [1], [0, 0, 1, 1], [], []>} : vector<8x128xbf16>, vector<128x512xbf16>, vector<8x512xf32> -> vector<8x512xf32>
    %251 = arith.addf %246, %250 : vector<8x512xf32>
    %c0_141 = arith.constant 0 : index
    %c0_142 = arith.constant 0 : index
    %252 = vector.load %arg22[%c0_141, %c0_142] : memref<8x128xf32, #tpu.memory_space<vmem>>, vector<8x128xf32>
    %253 = vector.extract_strided_slice %251 {offsets = [0, 0], sizes = [8, 128], strides = [1, 1]} : vector<8x512xf32> to vector<8x128xf32>
    %cst_143 = arith.constant 5.000000e-01 : f32
    %254 = vector.broadcast %cst_143 : f32 to vector<8x128xf32>
    %255 = arith.mulf %254, %253 : vector<8x128xf32>
    %256 = math.tanh %255 : vector<8x128xf32>
    %cst_144 = arith.constant 5.000000e-01 : f32
    %257 = vector.broadcast %cst_144 : f32 to vector<8x128xf32>
    %258 = arith.mulf %257, %256 : vector<8x128xf32>
    %cst_145 = arith.constant 5.000000e-01 : f32
    %259 = vector.broadcast %cst_145 : f32 to vector<8x128xf32>
    %260 = arith.addf %258, %259 : vector<8x128xf32>
    %261 = vector.extract_strided_slice %251 {offsets = [0, 128], sizes = [8, 128], strides = [1, 1]} : vector<8x512xf32> to vector<8x128xf32>
    %cst_146 = arith.constant 5.000000e-01 : f32
    %262 = vector.broadcast %cst_146 : f32 to vector<8x128xf32>
    %263 = arith.mulf %262, %261 : vector<8x128xf32>
    %264 = math.tanh %263 : vector<8x128xf32>
    %cst_147 = arith.constant 5.000000e-01 : f32
    %265 = vector.broadcast %cst_147 : f32 to vector<8x128xf32>
    %266 = arith.mulf %265, %264 : vector<8x128xf32>
    %cst_148 = arith.constant 5.000000e-01 : f32
    %267 = vector.broadcast %cst_148 : f32 to vector<8x128xf32>
    %268 = arith.addf %266, %267 : vector<8x128xf32>
    %269 = vector.extract_strided_slice %251 {offsets = [0, 256], sizes = [8, 128], strides = [1, 1]} : vector<8x512xf32> to vector<8x128xf32>
    %270 = math.tanh %269 : vector<8x128xf32>
    %271 = vector.extract_strided_slice %251 {offsets = [0, 384], sizes = [8, 128], strides = [1, 1]} : vector<8x512xf32> to vector<8x128xf32>
    %cst_149 = arith.constant 5.000000e-01 : f32
    %272 = vector.broadcast %cst_149 : f32 to vector<8x128xf32>
    %273 = arith.mulf %272, %271 : vector<8x128xf32>
    %274 = math.tanh %273 : vector<8x128xf32>
    %cst_150 = arith.constant 5.000000e-01 : f32
    %275 = vector.broadcast %cst_150 : f32 to vector<8x128xf32>
    %276 = arith.mulf %275, %274 : vector<8x128xf32>
    %cst_151 = arith.constant 5.000000e-01 : f32
    %277 = vector.broadcast %cst_151 : f32 to vector<8x128xf32>
    %278 = arith.addf %276, %277 : vector<8x128xf32>
    %279 = arith.mulf %268, %252 : vector<8x128xf32>
    %280 = arith.mulf %260, %270 : vector<8x128xf32>
    %281 = arith.addf %279, %280 : vector<8x128xf32>
    %282 = math.tanh %281 : vector<8x128xf32>
    %283 = arith.mulf %278, %282 : vector<8x128xf32>
    %c0_152 = arith.constant 0 : index
    %c0_153 = arith.constant 0 : index
    %284 = vector.load %arg21[%c0_152, %c0_153] : memref<8x128xf32, #tpu.memory_space<vmem>>, vector<8x128xf32>
    tpu.vector_store %arg21[%c0_152, %c0_153], %283 {strides = array<i32>} : memref<8x128xf32, #tpu.memory_space<vmem>>, vector<8x128xf32>,
    %c0_154 = arith.constant 0 : index
    %c0_155 = arith.constant 0 : index
    %285 = vector.load %arg22[%c0_154, %c0_155] : memref<8x128xf32, #tpu.memory_space<vmem>>, vector<8x128xf32>
    tpu.vector_store %arg22[%c0_154, %c0_155], %281 {strides = array<i32>} : memref<8x128xf32, #tpu.memory_space<vmem>>, vector<8x128xf32>,
    %286 = arith.index_cast %244 : i32 to index
    %c0_156 = arith.constant 0 : index
    %287 = vector.load %arg18[%286, %c0_156] : memref<64x128xf32, #tpu.memory_space<vmem>>, vector<8x128xf32>
    tpu.vector_store %arg18[%286, %c0_156], %283 {strides = array<i32>} : memref<64x128xf32, #tpu.memory_space<vmem>>, vector<8x128xf32>,
    %c3_i32 = arith.constant 3 : i32
    %c8_i32_157 = arith.constant 8 : i32
    %288 = arith.muli %c3_i32, %c8_i32_157 : i32
    %289 = tpu.assume_multiple %288, 8 : i32
    %290 = arith.index_cast %289 : i32 to index
    %c0_158 = arith.constant 0 : index
    %291 = vector.load %arg15[%290, %c0_158] : memref<64x1024xf32, #tpu.memory_space<vmem>>, vector<8x512xf32>
    %c0_159 = arith.constant 0 : index
    %c0_160 = arith.constant 0 : index
    %292 = vector.load %arg19[%c0_159, %c0_160] : memref<8x128xf32, #tpu.memory_space<vmem>>, vector<8x128xf32>
    %293 = arith.truncf %292 : vector<8x128xf32> to vector<8x128xbf16>
    %c0_161 = arith.constant 0 : index
    %c0_162 = arith.constant 0 : index
    %294 = vector.load %arg2[%c0_161, %c0_162] : memref<128x512xbf16, #tpu.memory_space<vmem>>, vector<128x512xbf16>
    %cst_163 = arith.constant dense<0.000000e+00> : vector<8x512xf32>
    %295 = tpu.matmul %293, %294, %cst_163 {dimension_numbers = #tpu.dot_dimension_numbers<[1], [0], [0], [1], [0, 0, 1, 1], [], []>} : vector<8x128xbf16>, vector<128x512xbf16>, vector<8x512xf32> -> vector<8x512xf32>
    %296 = arith.addf %291, %295 : vector<8x512xf32>
    %c0_164 = arith.constant 0 : index
    %c0_165 = arith.constant 0 : index
    %297 = vector.load %arg20[%c0_164, %c0_165] : memref<8x128xf32, #tpu.memory_space<vmem>>, vector<8x128xf32>
    %298 = vector.extract_strided_slice %296 {offsets = [0, 0], sizes = [8, 128], strides = [1, 1]} : vector<8x512xf32> to vector<8x128xf32>
    %cst_166 = arith.constant 5.000000e-01 : f32
    %299 = vector.broadcast %cst_166 : f32 to vector<8x128xf32>
    %300 = arith.mulf %299, %298 : vector<8x128xf32>
    %301 = math.tanh %300 : vector<8x128xf32>
    %cst_167 = arith.constant 5.000000e-01 : f32
    %302 = vector.broadcast %cst_167 : f32 to vector<8x128xf32>
    %303 = arith.mulf %302, %301 : vector<8x128xf32>
    %cst_168 = arith.constant 5.000000e-01 : f32
    %304 = vector.broadcast %cst_168 : f32 to vector<8x128xf32>
    %305 = arith.addf %303, %304 : vector<8x128xf32>
    %306 = vector.extract_strided_slice %296 {offsets = [0, 128], sizes = [8, 128], strides = [1, 1]} : vector<8x512xf32> to vector<8x128xf32>
    %cst_169 = arith.constant 5.000000e-01 : f32
    %307 = vector.broadcast %cst_169 : f32 to vector<8x128xf32>
    %308 = arith.mulf %307, %306 : vector<8x128xf32>
    %309 = math.tanh %308 : vector<8x128xf32>
    %cst_170 = arith.constant 5.000000e-01 : f32
    %310 = vector.broadcast %cst_170 : f32 to vector<8x128xf32>
    %311 = arith.mulf %310, %309 : vector<8x128xf32>
    %cst_171 = arith.constant 5.000000e-01 : f32
    %312 = vector.broadcast %cst_171 : f32 to vector<8x128xf32>
    %313 = arith.addf %311, %312 : vector<8x128xf32>
    %314 = vector.extract_strided_slice %296 {offsets = [0, 256], sizes = [8, 128], strides = [1, 1]} : vector<8x512xf32> to vector<8x128xf32>
    %315 = math.tanh %314 : vector<8x128xf32>
    %316 = vector.extract_strided_slice %296 {offsets = [0, 384], sizes = [8, 128], strides = [1, 1]} : vector<8x512xf32> to vector<8x128xf32>
    %cst_172 = arith.constant 5.000000e-01 : f32
    %317 = vector.broadcast %cst_172 : f32 to vector<8x128xf32>
    %318 = arith.mulf %317, %316 : vector<8x128xf32>
    %319 = math.tanh %318 : vector<8x128xf32>
    %cst_173 = arith.constant 5.000000e-01 : f32
    %320 = vector.broadcast %cst_173 : f32 to vector<8x128xf32>
    %321 = arith.mulf %320, %319 : vector<8x128xf32>
    %cst_174 = arith.constant 5.000000e-01 : f32
    %322 = vector.broadcast %cst_174 : f32 to vector<8x128xf32>
    %323 = arith.addf %321, %322 : vector<8x128xf32>
    %324 = arith.mulf %313, %297 : vector<8x128xf32>
    %325 = arith.mulf %305, %315 : vector<8x128xf32>
    %326 = arith.addf %324, %325 : vector<8x128xf32>
    %327 = math.tanh %326 : vector<8x128xf32>
    %328 = arith.mulf %323, %327 : vector<8x128xf32>
    %c0_175 = arith.constant 0 : index
    %c0_176 = arith.constant 0 : index
    %329 = vector.load %arg19[%c0_175, %c0_176] : memref<8x128xf32, #tpu.memory_space<vmem>>, vector<8x128xf32>
    tpu.vector_store %arg19[%c0_175, %c0_176], %328 {strides = array<i32>} : memref<8x128xf32, #tpu.memory_space<vmem>>, vector<8x128xf32>,
    %c0_177 = arith.constant 0 : index
    %c0_178 = arith.constant 0 : index
    %330 = vector.load %arg20[%c0_177, %c0_178] : memref<8x128xf32, #tpu.memory_space<vmem>>, vector<8x128xf32>
    tpu.vector_store %arg20[%c0_177, %c0_178], %326 {strides = array<i32>} : memref<8x128xf32, #tpu.memory_space<vmem>>, vector<8x128xf32>,
    %331 = arith.index_cast %289 : i32 to index
    %c0_179 = arith.constant 0 : index
    %332 = vector.load %arg17[%331, %c0_179] : memref<64x128xf32, #tpu.memory_space<vmem>>, vector<8x128xf32>
    tpu.vector_store %arg17[%331, %c0_179], %328 {strides = array<i32>} : memref<64x128xf32, #tpu.memory_space<vmem>>, vector<8x128xf32>,
    %c7_i32_180 = arith.constant 7 : i32
    %333 = arith.subi %c7_i32_180, %c3_i32 : i32
    %c8_i32_181 = arith.constant 8 : i32
    %334 = arith.muli %333, %c8_i32_181 : i32
    %335 = tpu.assume_multiple %334, 8 : i32
    %336 = arith.index_cast %335 : i32 to index
    %c512_182 = arith.constant 512 : index
    %337 = vector.load %arg15[%336, %c512_182] : memref<64x1024xf32, #tpu.memory_space<vmem>>, vector<8x512xf32>
    %c0_183 = arith.constant 0 : index
    %c0_184 = arith.constant 0 : index
    %338 = vector.load %arg21[%c0_183, %c0_184] : memref<8x128xf32, #tpu.memory_space<vmem>>, vector<8x128xf32>
    %339 = arith.truncf %338 : vector<8x128xf32> to vector<8x128xbf16>
    %c0_185 = arith.constant 0 : index
    %c0_186 = arith.constant 0 : index
    %340 = vector.load %arg3[%c0_185, %c0_186] : memref<128x512xbf16, #tpu.memory_space<vmem>>, vector<128x512xbf16>
    %cst_187 = arith.constant dense<0.000000e+00> : vector<8x512xf32>
    %341 = tpu.matmul %339, %340, %cst_187 {dimension_numbers = #tpu.dot_dimension_numbers<[1], [0], [0], [1], [0, 0, 1, 1], [], []>} : vector<8x128xbf16>, vector<128x512xbf16>, vector<8x512xf32> -> vector<8x512xf32>
    %342 = arith.addf %337, %341 : vector<8x512xf32>
    %c0_188 = arith.constant 0 : index
    %c0_189 = arith.constant 0 : index
    %343 = vector.load %arg22[%c0_188, %c0_189] : memref<8x128xf32, #tpu.memory_space<vmem>>, vector<8x128xf32>
    %344 = vector.extract_strided_slice %342 {offsets = [0, 0], sizes = [8, 128], strides = [1, 1]} : vector<8x512xf32> to vector<8x128xf32>
    %cst_190 = arith.constant 5.000000e-01 : f32
    %345 = vector.broadcast %cst_190 : f32 to vector<8x128xf32>
    %346 = arith.mulf %345, %344 : vector<8x128xf32>
    %347 = math.tanh %346 : vector<8x128xf32>
    %cst_191 = arith.constant 5.000000e-01 : f32
    %348 = vector.broadcast %cst_191 : f32 to vector<8x128xf32>
    %349 = arith.mulf %348, %347 : vector<8x128xf32>
    %cst_192 = arith.constant 5.000000e-01 : f32
    %350 = vector.broadcast %cst_192 : f32 to vector<8x128xf32>
    %351 = arith.addf %349, %350 : vector<8x128xf32>
    %352 = vector.extract_strided_slice %342 {offsets = [0, 128], sizes = [8, 128], strides = [1, 1]} : vector<8x512xf32> to vector<8x128xf32>
    %cst_193 = arith.constant 5.000000e-01 : f32
    %353 = vector.broadcast %cst_193 : f32 to vector<8x128xf32>
    %354 = arith.mulf %353, %352 : vector<8x128xf32>
    %355 = math.tanh %354 : vector<8x128xf32>
    %cst_194 = arith.constant 5.000000e-01 : f32
    %356 = vector.broadcast %cst_194 : f32 to vector<8x128xf32>
    %357 = arith.mulf %356, %355 : vector<8x128xf32>
    %cst_195 = arith.constant 5.000000e-01 : f32
    %358 = vector.broadcast %cst_195 : f32 to vector<8x128xf32>
    %359 = arith.addf %357, %358 : vector<8x128xf32>
    %360 = vector.extract_strided_slice %342 {offsets = [0, 256], sizes = [8, 128], strides = [1, 1]} : vector<8x512xf32> to vector<8x128xf32>
    %361 = math.tanh %360 : vector<8x128xf32>
    %362 = vector.extract_strided_slice %342 {offsets = [0, 384], sizes = [8, 128], strides = [1, 1]} : vector<8x512xf32> to vector<8x128xf32>
    %cst_196 = arith.constant 5.000000e-01 : f32
    %363 = vector.broadcast %cst_196 : f32 to vector<8x128xf32>
    %364 = arith.mulf %363, %362 : vector<8x128xf32>
    %365 = math.tanh %364 : vector<8x128xf32>
    %cst_197 = arith.constant 5.000000e-01 : f32
    %366 = vector.broadcast %cst_197 : f32 to vector<8x128xf32>
    %367 = arith.mulf %366, %365 : vector<8x128xf32>
    %cst_198 = arith.constant 5.000000e-01 : f32
    %368 = vector.broadcast %cst_198 : f32 to vector<8x128xf32>
    %369 = arith.addf %367, %368 : vector<8x128xf32>
    %370 = arith.mulf %359, %343 : vector<8x128xf32>
    %371 = arith.mulf %351, %361 : vector<8x128xf32>
    %372 = arith.addf %370, %371 : vector<8x128xf32>
    %373 = math.tanh %372 : vector<8x128xf32>
    %374 = arith.mulf %369, %373 : vector<8x128xf32>
    %c0_199 = arith.constant 0 : index
    %c0_200 = arith.constant 0 : index
    %375 = vector.load %arg21[%c0_199, %c0_200] : memref<8x128xf32, #tpu.memory_space<vmem>>, vector<8x128xf32>
    tpu.vector_store %arg21[%c0_199, %c0_200], %374 {strides = array<i32>} : memref<8x128xf32, #tpu.memory_space<vmem>>, vector<8x128xf32>,
    %c0_201 = arith.constant 0 : index
    %c0_202 = arith.constant 0 : index
    %376 = vector.load %arg22[%c0_201, %c0_202] : memref<8x128xf32, #tpu.memory_space<vmem>>, vector<8x128xf32>
    tpu.vector_store %arg22[%c0_201, %c0_202], %372 {strides = array<i32>} : memref<8x128xf32, #tpu.memory_space<vmem>>, vector<8x128xf32>,
    %377 = arith.index_cast %335 : i32 to index
    %c0_203 = arith.constant 0 : index
    %378 = vector.load %arg18[%377, %c0_203] : memref<64x128xf32, #tpu.memory_space<vmem>>, vector<8x128xf32>
    tpu.vector_store %arg18[%377, %c0_203], %374 {strides = array<i32>} : memref<64x128xf32, #tpu.memory_space<vmem>>, vector<8x128xf32>,
    %c4_i32 = arith.constant 4 : i32
    %c8_i32_204 = arith.constant 8 : i32
    %379 = arith.muli %c4_i32, %c8_i32_204 : i32
    %380 = tpu.assume_multiple %379, 8 : i32
    %381 = arith.index_cast %380 : i32 to index
    %c0_205 = arith.constant 0 : index
    %382 = vector.load %arg15[%381, %c0_205] : memref<64x1024xf32, #tpu.memory_space<vmem>>, vector<8x512xf32>
    %c0_206 = arith.constant 0 : index
    %c0_207 = arith.constant 0 : index
    %383 = vector.load %arg19[%c0_206, %c0_207] : memref<8x128xf32, #tpu.memory_space<vmem>>, vector<8x128xf32>
    %384 = arith.truncf %383 : vector<8x128xf32> to vector<8x128xbf16>
    %c0_208 = arith.constant 0 : index
    %c0_209 = arith.constant 0 : index
    %385 = vector.load %arg2[%c0_208, %c0_209] : memref<128x512xbf16, #tpu.memory_space<vmem>>, vector<128x512xbf16>
    %cst_210 = arith.constant dense<0.000000e+00> : vector<8x512xf32>
    %386 = tpu.matmul %384, %385, %cst_210 {dimension_numbers = #tpu.dot_dimension_numbers<[1], [0], [0], [1], [0, 0, 1, 1], [], []>} : vector<8x128xbf16>, vector<128x512xbf16>, vector<8x512xf32> -> vector<8x512xf32>
    %387 = arith.addf %382, %386 : vector<8x512xf32>
    %c0_211 = arith.constant 0 : index
    %c0_212 = arith.constant 0 : index
    %388 = vector.load %arg20[%c0_211, %c0_212] : memref<8x128xf32, #tpu.memory_space<vmem>>, vector<8x128xf32>
    %389 = vector.extract_strided_slice %387 {offsets = [0, 0], sizes = [8, 128], strides = [1, 1]} : vector<8x512xf32> to vector<8x128xf32>
    %cst_213 = arith.constant 5.000000e-01 : f32
    %390 = vector.broadcast %cst_213 : f32 to vector<8x128xf32>
    %391 = arith.mulf %390, %389 : vector<8x128xf32>
    %392 = math.tanh %391 : vector<8x128xf32>
    %cst_214 = arith.constant 5.000000e-01 : f32
    %393 = vector.broadcast %cst_214 : f32 to vector<8x128xf32>
    %394 = arith.mulf %393, %392 : vector<8x128xf32>
    %cst_215 = arith.constant 5.000000e-01 : f32
    %395 = vector.broadcast %cst_215 : f32 to vector<8x128xf32>
    %396 = arith.addf %394, %395 : vector<8x128xf32>
    %397 = vector.extract_strided_slice %387 {offsets = [0, 128], sizes = [8, 128], strides = [1, 1]} : vector<8x512xf32> to vector<8x128xf32>
    %cst_216 = arith.constant 5.000000e-01 : f32
    %398 = vector.broadcast %cst_216 : f32 to vector<8x128xf32>
    %399 = arith.mulf %398, %397 : vector<8x128xf32>
    %400 = math.tanh %399 : vector<8x128xf32>
    %cst_217 = arith.constant 5.000000e-01 : f32
    %401 = vector.broadcast %cst_217 : f32 to vector<8x128xf32>
    %402 = arith.mulf %401, %400 : vector<8x128xf32>
    %cst_218 = arith.constant 5.000000e-01 : f32
    %403 = vector.broadcast %cst_218 : f32 to vector<8x128xf32>
    %404 = arith.addf %402, %403 : vector<8x128xf32>
    %405 = vector.extract_strided_slice %387 {offsets = [0, 256], sizes = [8, 128], strides = [1, 1]} : vector<8x512xf32> to vector<8x128xf32>
    %406 = math.tanh %405 : vector<8x128xf32>
    %407 = vector.extract_strided_slice %387 {offsets = [0, 384], sizes = [8, 128], strides = [1, 1]} : vector<8x512xf32> to vector<8x128xf32>
    %cst_219 = arith.constant 5.000000e-01 : f32
    %408 = vector.broadcast %cst_219 : f32 to vector<8x128xf32>
    %409 = arith.mulf %408, %407 : vector<8x128xf32>
    %410 = math.tanh %409 : vector<8x128xf32>
    %cst_220 = arith.constant 5.000000e-01 : f32
    %411 = vector.broadcast %cst_220 : f32 to vector<8x128xf32>
    %412 = arith.mulf %411, %410 : vector<8x128xf32>
    %cst_221 = arith.constant 5.000000e-01 : f32
    %413 = vector.broadcast %cst_221 : f32 to vector<8x128xf32>
    %414 = arith.addf %412, %413 : vector<8x128xf32>
    %415 = arith.mulf %404, %388 : vector<8x128xf32>
    %416 = arith.mulf %396, %406 : vector<8x128xf32>
    %417 = arith.addf %415, %416 : vector<8x128xf32>
    %418 = math.tanh %417 : vector<8x128xf32>
    %419 = arith.mulf %414, %418 : vector<8x128xf32>
    %c0_222 = arith.constant 0 : index
    %c0_223 = arith.constant 0 : index
    %420 = vector.load %arg19[%c0_222, %c0_223] : memref<8x128xf32, #tpu.memory_space<vmem>>, vector<8x128xf32>
    tpu.vector_store %arg19[%c0_222, %c0_223], %419 {strides = array<i32>} : memref<8x128xf32, #tpu.memory_space<vmem>>, vector<8x128xf32>,
    %c0_224 = arith.constant 0 : index
    %c0_225 = arith.constant 0 : index
    %421 = vector.load %arg20[%c0_224, %c0_225] : memref<8x128xf32, #tpu.memory_space<vmem>>, vector<8x128xf32>
    tpu.vector_store %arg20[%c0_224, %c0_225], %417 {strides = array<i32>} : memref<8x128xf32, #tpu.memory_space<vmem>>, vector<8x128xf32>,
    %422 = arith.index_cast %380 : i32 to index
    %c0_226 = arith.constant 0 : index
    %423 = vector.load %arg17[%422, %c0_226] : memref<64x128xf32, #tpu.memory_space<vmem>>, vector<8x128xf32>
    tpu.vector_store %arg17[%422, %c0_226], %419 {strides = array<i32>} : memref<64x128xf32, #tpu.memory_space<vmem>>, vector<8x128xf32>,
    %c7_i32_227 = arith.constant 7 : i32
    %424 = arith.subi %c7_i32_227, %c4_i32 : i32
    %c8_i32_228 = arith.constant 8 : i32
    %425 = arith.muli %424, %c8_i32_228 : i32
    %426 = tpu.assume_multiple %425, 8 : i32
    %427 = arith.index_cast %426 : i32 to index
    %c512_229 = arith.constant 512 : index
    %428 = vector.load %arg15[%427, %c512_229] : memref<64x1024xf32, #tpu.memory_space<vmem>>, vector<8x512xf32>
    %c0_230 = arith.constant 0 : index
    %c0_231 = arith.constant 0 : index
    %429 = vector.load %arg21[%c0_230, %c0_231] : memref<8x128xf32, #tpu.memory_space<vmem>>, vector<8x128xf32>
    %430 = arith.truncf %429 : vector<8x128xf32> to vector<8x128xbf16>
    %c0_232 = arith.constant 0 : index
    %c0_233 = arith.constant 0 : index
    %431 = vector.load %arg3[%c0_232, %c0_233] : memref<128x512xbf16, #tpu.memory_space<vmem>>, vector<128x512xbf16>
    %cst_234 = arith.constant dense<0.000000e+00> : vector<8x512xf32>
    %432 = tpu.matmul %430, %431, %cst_234 {dimension_numbers = #tpu.dot_dimension_numbers<[1], [0], [0], [1], [0, 0, 1, 1], [], []>} : vector<8x128xbf16>, vector<128x512xbf16>, vector<8x512xf32> -> vector<8x512xf32>
    %433 = arith.addf %428, %432 : vector<8x512xf32>
    %c0_235 = arith.constant 0 : index
    %c0_236 = arith.constant 0 : index
    %434 = vector.load %arg22[%c0_235, %c0_236] : memref<8x128xf32, #tpu.memory_space<vmem>>, vector<8x128xf32>
    %435 = vector.extract_strided_slice %433 {offsets = [0, 0], sizes = [8, 128], strides = [1, 1]} : vector<8x512xf32> to vector<8x128xf32>
    %cst_237 = arith.constant 5.000000e-01 : f32
    %436 = vector.broadcast %cst_237 : f32 to vector<8x128xf32>
    %437 = arith.mulf %436, %435 : vector<8x128xf32>
    %438 = math.tanh %437 : vector<8x128xf32>
    %cst_238 = arith.constant 5.000000e-01 : f32
    %439 = vector.broadcast %cst_238 : f32 to vector<8x128xf32>
    %440 = arith.mulf %439, %438 : vector<8x128xf32>
    %cst_239 = arith.constant 5.000000e-01 : f32
    %441 = vector.broadcast %cst_239 : f32 to vector<8x128xf32>
    %442 = arith.addf %440, %441 : vector<8x128xf32>
    %443 = vector.extract_strided_slice %433 {offsets = [0, 128], sizes = [8, 128], strides = [1, 1]} : vector<8x512xf32> to vector<8x128xf32>
    %cst_240 = arith.constant 5.000000e-01 : f32
    %444 = vector.broadcast %cst_240 : f32 to vector<8x128xf32>
    %445 = arith.mulf %444, %443 : vector<8x128xf32>
    %446 = math.tanh %445 : vector<8x128xf32>
    %cst_241 = arith.constant 5.000000e-01 : f32
    %447 = vector.broadcast %cst_241 : f32 to vector<8x128xf32>
    %448 = arith.mulf %447, %446 : vector<8x128xf32>
    %cst_242 = arith.constant 5.000000e-01 : f32
    %449 = vector.broadcast %cst_242 : f32 to vector<8x128xf32>
    %450 = arith.addf %448, %449 : vector<8x128xf32>
    %451 = vector.extract_strided_slice %433 {offsets = [0, 256], sizes = [8, 128], strides = [1, 1]} : vector<8x512xf32> to vector<8x128xf32>
    %452 = math.tanh %451 : vector<8x128xf32>
    %453 = vector.extract_strided_slice %433 {offsets = [0, 384], sizes = [8, 128], strides = [1, 1]} : vector<8x512xf32> to vector<8x128xf32>
    %cst_243 = arith.constant 5.000000e-01 : f32
    %454 = vector.broadcast %cst_243 : f32 to vector<8x128xf32>
    %455 = arith.mulf %454, %453 : vector<8x128xf32>
    %456 = math.tanh %455 : vector<8x128xf32>
    %cst_244 = arith.constant 5.000000e-01 : f32
    %457 = vector.broadcast %cst_244 : f32 to vector<8x128xf32>
    %458 = arith.mulf %457, %456 : vector<8x128xf32>
    %cst_245 = arith.constant 5.000000e-01 : f32
    %459 = vector.broadcast %cst_245 : f32 to vector<8x128xf32>
    %460 = arith.addf %458, %459 : vector<8x128xf32>
    %461 = arith.mulf %450, %434 : vector<8x128xf32>
    %462 = arith.mulf %442, %452 : vector<8x128xf32>
    %463 = arith.addf %461, %462 : vector<8x128xf32>
    %464 = math.tanh %463 : vector<8x128xf32>
    %465 = arith.mulf %460, %464 : vector<8x128xf32>
    %c0_246 = arith.constant 0 : index
    %c0_247 = arith.constant 0 : index
    %466 = vector.load %arg21[%c0_246, %c0_247] : memref<8x128xf32, #tpu.memory_space<vmem>>, vector<8x128xf32>
    tpu.vector_store %arg21[%c0_246, %c0_247], %465 {strides = array<i32>} : memref<8x128xf32, #tpu.memory_space<vmem>>, vector<8x128xf32>,
    %c0_248 = arith.constant 0 : index
    %c0_249 = arith.constant 0 : index
    %467 = vector.load %arg22[%c0_248, %c0_249] : memref<8x128xf32, #tpu.memory_space<vmem>>, vector<8x128xf32>
    tpu.vector_store %arg22[%c0_248, %c0_249], %463 {strides = array<i32>} : memref<8x128xf32, #tpu.memory_space<vmem>>, vector<8x128xf32>,
    %468 = arith.index_cast %426 : i32 to index
    %c0_250 = arith.constant 0 : index
    %469 = vector.load %arg18[%468, %c0_250] : memref<64x128xf32, #tpu.memory_space<vmem>>, vector<8x128xf32>
    tpu.vector_store %arg18[%468, %c0_250], %465 {strides = array<i32>} : memref<64x128xf32, #tpu.memory_space<vmem>>, vector<8x128xf32>,
    %c5_i32 = arith.constant 5 : i32
    %c8_i32_251 = arith.constant 8 : i32
    %470 = arith.muli %c5_i32, %c8_i32_251 : i32
    %471 = tpu.assume_multiple %470, 8 : i32
    %472 = arith.index_cast %471 : i32 to index
    %c0_252 = arith.constant 0 : index
    %473 = vector.load %arg15[%472, %c0_252] : memref<64x1024xf32, #tpu.memory_space<vmem>>, vector<8x512xf32>
    %c0_253 = arith.constant 0 : index
    %c0_254 = arith.constant 0 : index
    %474 = vector.load %arg19[%c0_253, %c0_254] : memref<8x128xf32, #tpu.memory_space<vmem>>, vector<8x128xf32>
    %475 = arith.truncf %474 : vector<8x128xf32> to vector<8x128xbf16>
    %c0_255 = arith.constant 0 : index
    %c0_256 = arith.constant 0 : index
    %476 = vector.load %arg2[%c0_255, %c0_256] : memref<128x512xbf16, #tpu.memory_space<vmem>>, vector<128x512xbf16>
    %cst_257 = arith.constant dense<0.000000e+00> : vector<8x512xf32>
    %477 = tpu.matmul %475, %476, %cst_257 {dimension_numbers = #tpu.dot_dimension_numbers<[1], [0], [0], [1], [0, 0, 1, 1], [], []>} : vector<8x128xbf16>, vector<128x512xbf16>, vector<8x512xf32> -> vector<8x512xf32>
    %478 = arith.addf %473, %477 : vector<8x512xf32>
    %c0_258 = arith.constant 0 : index
    %c0_259 = arith.constant 0 : index
    %479 = vector.load %arg20[%c0_258, %c0_259] : memref<8x128xf32, #tpu.memory_space<vmem>>, vector<8x128xf32>
    %480 = vector.extract_strided_slice %478 {offsets = [0, 0], sizes = [8, 128], strides = [1, 1]} : vector<8x512xf32> to vector<8x128xf32>
    %cst_260 = arith.constant 5.000000e-01 : f32
    %481 = vector.broadcast %cst_260 : f32 to vector<8x128xf32>
    %482 = arith.mulf %481, %480 : vector<8x128xf32>
    %483 = math.tanh %482 : vector<8x128xf32>
    %cst_261 = arith.constant 5.000000e-01 : f32
    %484 = vector.broadcast %cst_261 : f32 to vector<8x128xf32>
    %485 = arith.mulf %484, %483 : vector<8x128xf32>
    %cst_262 = arith.constant 5.000000e-01 : f32
    %486 = vector.broadcast %cst_262 : f32 to vector<8x128xf32>
    %487 = arith.addf %485, %486 : vector<8x128xf32>
    %488 = vector.extract_strided_slice %478 {offsets = [0, 128], sizes = [8, 128], strides = [1, 1]} : vector<8x512xf32> to vector<8x128xf32>
    %cst_263 = arith.constant 5.000000e-01 : f32
    %489 = vector.broadcast %cst_263 : f32 to vector<8x128xf32>
    %490 = arith.mulf %489, %488 : vector<8x128xf32>
    %491 = math.tanh %490 : vector<8x128xf32>
    %cst_264 = arith.constant 5.000000e-01 : f32
    %492 = vector.broadcast %cst_264 : f32 to vector<8x128xf32>
    %493 = arith.mulf %492, %491 : vector<8x128xf32>
    %cst_265 = arith.constant 5.000000e-01 : f32
    %494 = vector.broadcast %cst_265 : f32 to vector<8x128xf32>
    %495 = arith.addf %493, %494 : vector<8x128xf32>
    %496 = vector.extract_strided_slice %478 {offsets = [0, 256], sizes = [8, 128], strides = [1, 1]} : vector<8x512xf32> to vector<8x128xf32>
    %497 = math.tanh %496 : vector<8x128xf32>
    %498 = vector.extract_strided_slice %478 {offsets = [0, 384], sizes = [8, 128], strides = [1, 1]} : vector<8x512xf32> to vector<8x128xf32>
    %cst_266 = arith.constant 5.000000e-01 : f32
    %499 = vector.broadcast %cst_266 : f32 to vector<8x128xf32>
    %500 = arith.mulf %499, %498 : vector<8x128xf32>
    %501 = math.tanh %500 : vector<8x128xf32>
    %cst_267 = arith.constant 5.000000e-01 : f32
    %502 = vector.broadcast %cst_267 : f32 to vector<8x128xf32>
    %503 = arith.mulf %502, %501 : vector<8x128xf32>
    %cst_268 = arith.constant 5.000000e-01 : f32
    %504 = vector.broadcast %cst_268 : f32 to vector<8x128xf32>
    %505 = arith.addf %503, %504 : vector<8x128xf32>
    %506 = arith.mulf %495, %479 : vector<8x128xf32>
    %507 = arith.mulf %487, %497 : vector<8x128xf32>
    %508 = arith.addf %506, %507 : vector<8x128xf32>
    %509 = math.tanh %508 : vector<8x128xf32>
    %510 = arith.mulf %505, %509 : vector<8x128xf32>
    %c0_269 = arith.constant 0 : index
    %c0_270 = arith.constant 0 : index
    %511 = vector.load %arg19[%c0_269, %c0_270] : memref<8x128xf32, #tpu.memory_space<vmem>>, vector<8x128xf32>
    tpu.vector_store %arg19[%c0_269, %c0_270], %510 {strides = array<i32>} : memref<8x128xf32, #tpu.memory_space<vmem>>, vector<8x128xf32>,
    %c0_271 = arith.constant 0 : index
    %c0_272 = arith.constant 0 : index
    %512 = vector.load %arg20[%c0_271, %c0_272] : memref<8x128xf32, #tpu.memory_space<vmem>>, vector<8x128xf32>
    tpu.vector_store %arg20[%c0_271, %c0_272], %508 {strides = array<i32>} : memref<8x128xf32, #tpu.memory_space<vmem>>, vector<8x128xf32>,
    %513 = arith.index_cast %471 : i32 to index
    %c0_273 = arith.constant 0 : index
    %514 = vector.load %arg17[%513, %c0_273] : memref<64x128xf32, #tpu.memory_space<vmem>>, vector<8x128xf32>
    tpu.vector_store %arg17[%513, %c0_273], %510 {strides = array<i32>} : memref<64x128xf32, #tpu.memory_space<vmem>>, vector<8x128xf32>,
    %c7_i32_274 = arith.constant 7 : i32
    %515 = arith.subi %c7_i32_274, %c5_i32 : i32
    %c8_i32_275 = arith.constant 8 : i32
    %516 = arith.muli %515, %c8_i32_275 : i32
    %517 = tpu.assume_multiple %516, 8 : i32
    %518 = arith.index_cast %517 : i32 to index
    %c512_276 = arith.constant 512 : index
    %519 = vector.load %arg15[%518, %c512_276] : memref<64x1024xf32, #tpu.memory_space<vmem>>, vector<8x512xf32>
    %c0_277 = arith.constant 0 : index
    %c0_278 = arith.constant 0 : index
    %520 = vector.load %arg21[%c0_277, %c0_278] : memref<8x128xf32, #tpu.memory_space<vmem>>, vector<8x128xf32>
    %521 = arith.truncf %520 : vector<8x128xf32> to vector<8x128xbf16>
    %c0_279 = arith.constant 0 : index
    %c0_280 = arith.constant 0 : index
    %522 = vector.load %arg3[%c0_279, %c0_280] : memref<128x512xbf16, #tpu.memory_space<vmem>>, vector<128x512xbf16>
    %cst_281 = arith.constant dense<0.000000e+00> : vector<8x512xf32>
    %523 = tpu.matmul %521, %522, %cst_281 {dimension_numbers = #tpu.dot_dimension_numbers<[1], [0], [0], [1], [0, 0, 1, 1], [], []>} : vector<8x128xbf16>, vector<128x512xbf16>, vector<8x512xf32> -> vector<8x512xf32>
    %524 = arith.addf %519, %523 : vector<8x512xf32>
    %c0_282 = arith.constant 0 : index
    %c0_283 = arith.constant 0 : index
    %525 = vector.load %arg22[%c0_282, %c0_283] : memref<8x128xf32, #tpu.memory_space<vmem>>, vector<8x128xf32>
    %526 = vector.extract_strided_slice %524 {offsets = [0, 0], sizes = [8, 128], strides = [1, 1]} : vector<8x512xf32> to vector<8x128xf32>
    %cst_284 = arith.constant 5.000000e-01 : f32
    %527 = vector.broadcast %cst_284 : f32 to vector<8x128xf32>
    %528 = arith.mulf %527, %526 : vector<8x128xf32>
    %529 = math.tanh %528 : vector<8x128xf32>
    %cst_285 = arith.constant 5.000000e-01 : f32
    %530 = vector.broadcast %cst_285 : f32 to vector<8x128xf32>
    %531 = arith.mulf %530, %529 : vector<8x128xf32>
    %cst_286 = arith.constant 5.000000e-01 : f32
    %532 = vector.broadcast %cst_286 : f32 to vector<8x128xf32>
    %533 = arith.addf %531, %532 : vector<8x128xf32>
    %534 = vector.extract_strided_slice %524 {offsets = [0, 128], sizes = [8, 128], strides = [1, 1]} : vector<8x512xf32> to vector<8x128xf32>
    %cst_287 = arith.constant 5.000000e-01 : f32
    %535 = vector.broadcast %cst_287 : f32 to vector<8x128xf32>
    %536 = arith.mulf %535, %534 : vector<8x128xf32>
    %537 = math.tanh %536 : vector<8x128xf32>
    %cst_288 = arith.constant 5.000000e-01 : f32
    %538 = vector.broadcast %cst_288 : f32 to vector<8x128xf32>
    %539 = arith.mulf %538, %537 : vector<8x128xf32>
    %cst_289 = arith.constant 5.000000e-01 : f32
    %540 = vector.broadcast %cst_289 : f32 to vector<8x128xf32>
    %541 = arith.addf %539, %540 : vector<8x128xf32>
    %542 = vector.extract_strided_slice %524 {offsets = [0, 256], sizes = [8, 128], strides = [1, 1]} : vector<8x512xf32> to vector<8x128xf32>
    %543 = math.tanh %542 : vector<8x128xf32>
    %544 = vector.extract_strided_slice %524 {offsets = [0, 384], sizes = [8, 128], strides = [1, 1]} : vector<8x512xf32> to vector<8x128xf32>
    %cst_290 = arith.constant 5.000000e-01 : f32
    %545 = vector.broadcast %cst_290 : f32 to vector<8x128xf32>
    %546 = arith.mulf %545, %544 : vector<8x128xf32>
    %547 = math.tanh %546 : vector<8x128xf32>
    %cst_291 = arith.constant 5.000000e-01 : f32
    %548 = vector.broadcast %cst_291 : f32 to vector<8x128xf32>
    %549 = arith.mulf %548, %547 : vector<8x128xf32>
    %cst_292 = arith.constant 5.000000e-01 : f32
    %550 = vector.broadcast %cst_292 : f32 to vector<8x128xf32>
    %551 = arith.addf %549, %550 : vector<8x128xf32>
    %552 = arith.mulf %541, %525 : vector<8x128xf32>
    %553 = arith.mulf %533, %543 : vector<8x128xf32>
    %554 = arith.addf %552, %553 : vector<8x128xf32>
    %555 = math.tanh %554 : vector<8x128xf32>
    %556 = arith.mulf %551, %555 : vector<8x128xf32>
    %c0_293 = arith.constant 0 : index
    %c0_294 = arith.constant 0 : index
    %557 = vector.load %arg21[%c0_293, %c0_294] : memref<8x128xf32, #tpu.memory_space<vmem>>, vector<8x128xf32>
    tpu.vector_store %arg21[%c0_293, %c0_294], %556 {strides = array<i32>} : memref<8x128xf32, #tpu.memory_space<vmem>>, vector<8x128xf32>,
    %c0_295 = arith.constant 0 : index
    %c0_296 = arith.constant 0 : index
    %558 = vector.load %arg22[%c0_295, %c0_296] : memref<8x128xf32, #tpu.memory_space<vmem>>, vector<8x128xf32>
    tpu.vector_store %arg22[%c0_295, %c0_296], %554 {strides = array<i32>} : memref<8x128xf32, #tpu.memory_space<vmem>>, vector<8x128xf32>,
    %559 = arith.index_cast %517 : i32 to index
    %c0_297 = arith.constant 0 : index
    %560 = vector.load %arg18[%559, %c0_297] : memref<64x128xf32, #tpu.memory_space<vmem>>, vector<8x128xf32>
    tpu.vector_store %arg18[%559, %c0_297], %556 {strides = array<i32>} : memref<64x128xf32, #tpu.memory_space<vmem>>, vector<8x128xf32>,
    %c6_i32 = arith.constant 6 : i32
    %c8_i32_298 = arith.constant 8 : i32
    %561 = arith.muli %c6_i32, %c8_i32_298 : i32
    %562 = tpu.assume_multiple %561, 8 : i32
    %563 = arith.index_cast %562 : i32 to index
    %c0_299 = arith.constant 0 : index
    %564 = vector.load %arg15[%563, %c0_299] : memref<64x1024xf32, #tpu.memory_space<vmem>>, vector<8x512xf32>
    %c0_300 = arith.constant 0 : index
    %c0_301 = arith.constant 0 : index
    %565 = vector.load %arg19[%c0_300, %c0_301] : memref<8x128xf32, #tpu.memory_space<vmem>>, vector<8x128xf32>
    %566 = arith.truncf %565 : vector<8x128xf32> to vector<8x128xbf16>
    %c0_302 = arith.constant 0 : index
    %c0_303 = arith.constant 0 : index
    %567 = vector.load %arg2[%c0_302, %c0_303] : memref<128x512xbf16, #tpu.memory_space<vmem>>, vector<128x512xbf16>
    %cst_304 = arith.constant dense<0.000000e+00> : vector<8x512xf32>
    %568 = tpu.matmul %566, %567, %cst_304 {dimension_numbers = #tpu.dot_dimension_numbers<[1], [0], [0], [1], [0, 0, 1, 1], [], []>} : vector<8x128xbf16>, vector<128x512xbf16>, vector<8x512xf32> -> vector<8x512xf32>
    %569 = arith.addf %564, %568 : vector<8x512xf32>
    %c0_305 = arith.constant 0 : index
    %c0_306 = arith.constant 0 : index
    %570 = vector.load %arg20[%c0_305, %c0_306] : memref<8x128xf32, #tpu.memory_space<vmem>>, vector<8x128xf32>
    %571 = vector.extract_strided_slice %569 {offsets = [0, 0], sizes = [8, 128], strides = [1, 1]} : vector<8x512xf32> to vector<8x128xf32>
    %cst_307 = arith.constant 5.000000e-01 : f32
    %572 = vector.broadcast %cst_307 : f32 to vector<8x128xf32>
    %573 = arith.mulf %572, %571 : vector<8x128xf32>
    %574 = math.tanh %573 : vector<8x128xf32>
    %cst_308 = arith.constant 5.000000e-01 : f32
    %575 = vector.broadcast %cst_308 : f32 to vector<8x128xf32>
    %576 = arith.mulf %575, %574 : vector<8x128xf32>
    %cst_309 = arith.constant 5.000000e-01 : f32
    %577 = vector.broadcast %cst_309 : f32 to vector<8x128xf32>
    %578 = arith.addf %576, %577 : vector<8x128xf32>
    %579 = vector.extract_strided_slice %569 {offsets = [0, 128], sizes = [8, 128], strides = [1, 1]} : vector<8x512xf32> to vector<8x128xf32>
    %cst_310 = arith.constant 5.000000e-01 : f32
    %580 = vector.broadcast %cst_310 : f32 to vector<8x128xf32>
    %581 = arith.mulf %580, %579 : vector<8x128xf32>
    %582 = math.tanh %581 : vector<8x128xf32>
    %cst_311 = arith.constant 5.000000e-01 : f32
    %583 = vector.broadcast %cst_311 : f32 to vector<8x128xf32>
    %584 = arith.mulf %583, %582 : vector<8x128xf32>
    %cst_312 = arith.constant 5.000000e-01 : f32
    %585 = vector.broadcast %cst_312 : f32 to vector<8x128xf32>
    %586 = arith.addf %584, %585 : vector<8x128xf32>
    %587 = vector.extract_strided_slice %569 {offsets = [0, 256], sizes = [8, 128], strides = [1, 1]} : vector<8x512xf32> to vector<8x128xf32>
    %588 = math.tanh %587 : vector<8x128xf32>
    %589 = vector.extract_strided_slice %569 {offsets = [0, 384], sizes = [8, 128], strides = [1, 1]} : vector<8x512xf32> to vector<8x128xf32>
    %cst_313 = arith.constant 5.000000e-01 : f32
    %590 = vector.broadcast %cst_313 : f32 to vector<8x128xf32>
    %591 = arith.mulf %590, %589 : vector<8x128xf32>
    %592 = math.tanh %591 : vector<8x128xf32>
    %cst_314 = arith.constant 5.000000e-01 : f32
    %593 = vector.broadcast %cst_314 : f32 to vector<8x128xf32>
    %594 = arith.mulf %593, %592 : vector<8x128xf32>
    %cst_315 = arith.constant 5.000000e-01 : f32
    %595 = vector.broadcast %cst_315 : f32 to vector<8x128xf32>
    %596 = arith.addf %594, %595 : vector<8x128xf32>
    %597 = arith.mulf %586, %570 : vector<8x128xf32>
    %598 = arith.mulf %578, %588 : vector<8x128xf32>
    %599 = arith.addf %597, %598 : vector<8x128xf32>
    %600 = math.tanh %599 : vector<8x128xf32>
    %601 = arith.mulf %596, %600 : vector<8x128xf32>
    %c0_316 = arith.constant 0 : index
    %c0_317 = arith.constant 0 : index
    %602 = vector.load %arg19[%c0_316, %c0_317] : memref<8x128xf32, #tpu.memory_space<vmem>>, vector<8x128xf32>
    tpu.vector_store %arg19[%c0_316, %c0_317], %601 {strides = array<i32>} : memref<8x128xf32, #tpu.memory_space<vmem>>, vector<8x128xf32>,
    %c0_318 = arith.constant 0 : index
    %c0_319 = arith.constant 0 : index
    %603 = vector.load %arg20[%c0_318, %c0_319] : memref<8x128xf32, #tpu.memory_space<vmem>>, vector<8x128xf32>
    tpu.vector_store %arg20[%c0_318, %c0_319], %599 {strides = array<i32>} : memref<8x128xf32, #tpu.memory_space<vmem>>, vector<8x128xf32>,
    %604 = arith.index_cast %562 : i32 to index
    %c0_320 = arith.constant 0 : index
    %605 = vector.load %arg17[%604, %c0_320] : memref<64x128xf32, #tpu.memory_space<vmem>>, vector<8x128xf32>
    tpu.vector_store %arg17[%604, %c0_320], %601 {strides = array<i32>} : memref<64x128xf32, #tpu.memory_space<vmem>>, vector<8x128xf32>,
    %c7_i32_321 = arith.constant 7 : i32
    %606 = arith.subi %c7_i32_321, %c6_i32 : i32
    %c8_i32_322 = arith.constant 8 : i32
    %607 = arith.muli %606, %c8_i32_322 : i32
    %608 = tpu.assume_multiple %607, 8 : i32
    %609 = arith.index_cast %608 : i32 to index
    %c512_323 = arith.constant 512 : index
    %610 = vector.load %arg15[%609, %c512_323] : memref<64x1024xf32, #tpu.memory_space<vmem>>, vector<8x512xf32>
    %c0_324 = arith.constant 0 : index
    %c0_325 = arith.constant 0 : index
    %611 = vector.load %arg21[%c0_324, %c0_325] : memref<8x128xf32, #tpu.memory_space<vmem>>, vector<8x128xf32>
    %612 = arith.truncf %611 : vector<8x128xf32> to vector<8x128xbf16>
    %c0_326 = arith.constant 0 : index
    %c0_327 = arith.constant 0 : index
    %613 = vector.load %arg3[%c0_326, %c0_327] : memref<128x512xbf16, #tpu.memory_space<vmem>>, vector<128x512xbf16>
    %cst_328 = arith.constant dense<0.000000e+00> : vector<8x512xf32>
    %614 = tpu.matmul %612, %613, %cst_328 {dimension_numbers = #tpu.dot_dimension_numbers<[1], [0], [0], [1], [0, 0, 1, 1], [], []>} : vector<8x128xbf16>, vector<128x512xbf16>, vector<8x512xf32> -> vector<8x512xf32>
    %615 = arith.addf %610, %614 : vector<8x512xf32>
    %c0_329 = arith.constant 0 : index
    %c0_330 = arith.constant 0 : index
    %616 = vector.load %arg22[%c0_329, %c0_330] : memref<8x128xf32, #tpu.memory_space<vmem>>, vector<8x128xf32>
    %617 = vector.extract_strided_slice %615 {offsets = [0, 0], sizes = [8, 128], strides = [1, 1]} : vector<8x512xf32> to vector<8x128xf32>
    %cst_331 = arith.constant 5.000000e-01 : f32
    %618 = vector.broadcast %cst_331 : f32 to vector<8x128xf32>
    %619 = arith.mulf %618, %617 : vector<8x128xf32>
    %620 = math.tanh %619 : vector<8x128xf32>
    %cst_332 = arith.constant 5.000000e-01 : f32
    %621 = vector.broadcast %cst_332 : f32 to vector<8x128xf32>
    %622 = arith.mulf %621, %620 : vector<8x128xf32>
    %cst_333 = arith.constant 5.000000e-01 : f32
    %623 = vector.broadcast %cst_333 : f32 to vector<8x128xf32>
    %624 = arith.addf %622, %623 : vector<8x128xf32>
    %625 = vector.extract_strided_slice %615 {offsets = [0, 128], sizes = [8, 128], strides = [1, 1]} : vector<8x512xf32> to vector<8x128xf32>
    %cst_334 = arith.constant 5.000000e-01 : f32
    %626 = vector.broadcast %cst_334 : f32 to vector<8x128xf32>
    %627 = arith.mulf %626, %625 : vector<8x128xf32>
    %628 = math.tanh %627 : vector<8x128xf32>
    %cst_335 = arith.constant 5.000000e-01 : f32
    %629 = vector.broadcast %cst_335 : f32 to vector<8x128xf32>
    %630 = arith.mulf %629, %628 : vector<8x128xf32>
    %cst_336 = arith.constant 5.000000e-01 : f32
    %631 = vector.broadcast %cst_336 : f32 to vector<8x128xf32>
    %632 = arith.addf %630, %631 : vector<8x128xf32>
    %633 = vector.extract_strided_slice %615 {offsets = [0, 256], sizes = [8, 128], strides = [1, 1]} : vector<8x512xf32> to vector<8x128xf32>
    %634 = math.tanh %633 : vector<8x128xf32>
    %635 = vector.extract_strided_slice %615 {offsets = [0, 384], sizes = [8, 128], strides = [1, 1]} : vector<8x512xf32> to vector<8x128xf32>
    %cst_337 = arith.constant 5.000000e-01 : f32
    %636 = vector.broadcast %cst_337 : f32 to vector<8x128xf32>
    %637 = arith.mulf %636, %635 : vector<8x128xf32>
    %638 = math.tanh %637 : vector<8x128xf32>
    %cst_338 = arith.constant 5.000000e-01 : f32
    %639 = vector.broadcast %cst_338 : f32 to vector<8x128xf32>
    %640 = arith.mulf %639, %638 : vector<8x128xf32>
    %cst_339 = arith.constant 5.000000e-01 : f32
    %641 = vector.broadcast %cst_339 : f32 to vector<8x128xf32>
    %642 = arith.addf %640, %641 : vector<8x128xf32>
    %643 = arith.mulf %632, %616 : vector<8x128xf32>
    %644 = arith.mulf %624, %634 : vector<8x128xf32>
    %645 = arith.addf %643, %644 : vector<8x128xf32>
    %646 = math.tanh %645 : vector<8x128xf32>
    %647 = arith.mulf %642, %646 : vector<8x128xf32>
    %c0_340 = arith.constant 0 : index
    %c0_341 = arith.constant 0 : index
    %648 = vector.load %arg21[%c0_340, %c0_341] : memref<8x128xf32, #tpu.memory_space<vmem>>, vector<8x128xf32>
    tpu.vector_store %arg21[%c0_340, %c0_341], %647 {strides = array<i32>} : memref<8x128xf32, #tpu.memory_space<vmem>>, vector<8x128xf32>,
    %c0_342 = arith.constant 0 : index
    %c0_343 = arith.constant 0 : index
    %649 = vector.load %arg22[%c0_342, %c0_343] : memref<8x128xf32, #tpu.memory_space<vmem>>, vector<8x128xf32>
    tpu.vector_store %arg22[%c0_342, %c0_343], %645 {strides = array<i32>} : memref<8x128xf32, #tpu.memory_space<vmem>>, vector<8x128xf32>,
    %650 = arith.index_cast %608 : i32 to index
    %c0_344 = arith.constant 0 : index
    %651 = vector.load %arg18[%650, %c0_344] : memref<64x128xf32, #tpu.memory_space<vmem>>, vector<8x128xf32>
    tpu.vector_store %arg18[%650, %c0_344], %647 {strides = array<i32>} : memref<64x128xf32, #tpu.memory_space<vmem>>, vector<8x128xf32>,
    %c7_i32_345 = arith.constant 7 : i32
    %c8_i32_346 = arith.constant 8 : i32
    %652 = arith.muli %c7_i32_345, %c8_i32_346 : i32
    %653 = tpu.assume_multiple %652, 8 : i32
    %654 = arith.index_cast %653 : i32 to index
    %c0_347 = arith.constant 0 : index
    %655 = vector.load %arg15[%654, %c0_347] : memref<64x1024xf32, #tpu.memory_space<vmem>>, vector<8x512xf32>
    %c0_348 = arith.constant 0 : index
    %c0_349 = arith.constant 0 : index
    %656 = vector.load %arg19[%c0_348, %c0_349] : memref<8x128xf32, #tpu.memory_space<vmem>>, vector<8x128xf32>
    %657 = arith.truncf %656 : vector<8x128xf32> to vector<8x128xbf16>
    %c0_350 = arith.constant 0 : index
    %c0_351 = arith.constant 0 : index
    %658 = vector.load %arg2[%c0_350, %c0_351] : memref<128x512xbf16, #tpu.memory_space<vmem>>, vector<128x512xbf16>
    %cst_352 = arith.constant dense<0.000000e+00> : vector<8x512xf32>
    %659 = tpu.matmul %657, %658, %cst_352 {dimension_numbers = #tpu.dot_dimension_numbers<[1], [0], [0], [1], [0, 0, 1, 1], [], []>} : vector<8x128xbf16>, vector<128x512xbf16>, vector<8x512xf32> -> vector<8x512xf32>
    %660 = arith.addf %655, %659 : vector<8x512xf32>
    %c0_353 = arith.constant 0 : index
    %c0_354 = arith.constant 0 : index
    %661 = vector.load %arg20[%c0_353, %c0_354] : memref<8x128xf32, #tpu.memory_space<vmem>>, vector<8x128xf32>
    %662 = vector.extract_strided_slice %660 {offsets = [0, 0], sizes = [8, 128], strides = [1, 1]} : vector<8x512xf32> to vector<8x128xf32>
    %cst_355 = arith.constant 5.000000e-01 : f32
    %663 = vector.broadcast %cst_355 : f32 to vector<8x128xf32>
    %664 = arith.mulf %663, %662 : vector<8x128xf32>
    %665 = math.tanh %664 : vector<8x128xf32>
    %cst_356 = arith.constant 5.000000e-01 : f32
    %666 = vector.broadcast %cst_356 : f32 to vector<8x128xf32>
    %667 = arith.mulf %666, %665 : vector<8x128xf32>
    %cst_357 = arith.constant 5.000000e-01 : f32
    %668 = vector.broadcast %cst_357 : f32 to vector<8x128xf32>
    %669 = arith.addf %667, %668 : vector<8x128xf32>
    %670 = vector.extract_strided_slice %660 {offsets = [0, 128], sizes = [8, 128], strides = [1, 1]} : vector<8x512xf32> to vector<8x128xf32>
    %cst_358 = arith.constant 5.000000e-01 : f32
    %671 = vector.broadcast %cst_358 : f32 to vector<8x128xf32>
    %672 = arith.mulf %671, %670 : vector<8x128xf32>
    %673 = math.tanh %672 : vector<8x128xf32>
    %cst_359 = arith.constant 5.000000e-01 : f32
    %674 = vector.broadcast %cst_359 : f32 to vector<8x128xf32>
    %675 = arith.mulf %674, %673 : vector<8x128xf32>
    %cst_360 = arith.constant 5.000000e-01 : f32
    %676 = vector.broadcast %cst_360 : f32 to vector<8x128xf32>
    %677 = arith.addf %675, %676 : vector<8x128xf32>
    %678 = vector.extract_strided_slice %660 {offsets = [0, 256], sizes = [8, 128], strides = [1, 1]} : vector<8x512xf32> to vector<8x128xf32>
    %679 = math.tanh %678 : vector<8x128xf32>
    %680 = vector.extract_strided_slice %660 {offsets = [0, 384], sizes = [8, 128], strides = [1, 1]} : vector<8x512xf32> to vector<8x128xf32>
    %cst_361 = arith.constant 5.000000e-01 : f32
    %681 = vector.broadcast %cst_361 : f32 to vector<8x128xf32>
    %682 = arith.mulf %681, %680 : vector<8x128xf32>
    %683 = math.tanh %682 : vector<8x128xf32>
    %cst_362 = arith.constant 5.000000e-01 : f32
    %684 = vector.broadcast %cst_362 : f32 to vector<8x128xf32>
    %685 = arith.mulf %684, %683 : vector<8x128xf32>
    %cst_363 = arith.constant 5.000000e-01 : f32
    %686 = vector.broadcast %cst_363 : f32 to vector<8x128xf32>
    %687 = arith.addf %685, %686 : vector<8x128xf32>
    %688 = arith.mulf %677, %661 : vector<8x128xf32>
    %689 = arith.mulf %669, %679 : vector<8x128xf32>
    %690 = arith.addf %688, %689 : vector<8x128xf32>
    %691 = math.tanh %690 : vector<8x128xf32>
    %692 = arith.mulf %687, %691 : vector<8x128xf32>
    %c0_364 = arith.constant 0 : index
    %c0_365 = arith.constant 0 : index
    %693 = vector.load %arg19[%c0_364, %c0_365] : memref<8x128xf32, #tpu.memory_space<vmem>>, vector<8x128xf32>
    tpu.vector_store %arg19[%c0_364, %c0_365], %692 {strides = array<i32>} : memref<8x128xf32, #tpu.memory_space<vmem>>, vector<8x128xf32>,
    %c0_366 = arith.constant 0 : index
    %c0_367 = arith.constant 0 : index
    %694 = vector.load %arg20[%c0_366, %c0_367] : memref<8x128xf32, #tpu.memory_space<vmem>>, vector<8x128xf32>
    tpu.vector_store %arg20[%c0_366, %c0_367], %690 {strides = array<i32>} : memref<8x128xf32, #tpu.memory_space<vmem>>, vector<8x128xf32>,
    %695 = arith.index_cast %653 : i32 to index
    %c0_368 = arith.constant 0 : index
    %696 = vector.load %arg17[%695, %c0_368] : memref<64x128xf32, #tpu.memory_space<vmem>>, vector<8x128xf32>
    tpu.vector_store %arg17[%695, %c0_368], %692 {strides = array<i32>} : memref<64x128xf32, #tpu.memory_space<vmem>>, vector<8x128xf32>,
    %c7_i32_369 = arith.constant 7 : i32
    %697 = arith.subi %c7_i32_369, %c7_i32_345 : i32
    %c8_i32_370 = arith.constant 8 : i32
    %698 = arith.muli %697, %c8_i32_370 : i32
    %699 = tpu.assume_multiple %698, 8 : i32
    %700 = arith.index_cast %699 : i32 to index
    %c512_371 = arith.constant 512 : index
    %701 = vector.load %arg15[%700, %c512_371] : memref<64x1024xf32, #tpu.memory_space<vmem>>, vector<8x512xf32>
    %c0_372 = arith.constant 0 : index
    %c0_373 = arith.constant 0 : index
    %702 = vector.load %arg21[%c0_372, %c0_373] : memref<8x128xf32, #tpu.memory_space<vmem>>, vector<8x128xf32>
    %703 = arith.truncf %702 : vector<8x128xf32> to vector<8x128xbf16>
    %c0_374 = arith.constant 0 : index
    %c0_375 = arith.constant 0 : index
    %704 = vector.load %arg3[%c0_374, %c0_375] : memref<128x512xbf16, #tpu.memory_space<vmem>>, vector<128x512xbf16>
    %cst_376 = arith.constant dense<0.000000e+00> : vector<8x512xf32>
    %705 = tpu.matmul %703, %704, %cst_376 {dimension_numbers = #tpu.dot_dimension_numbers<[1], [0], [0], [1], [0, 0, 1, 1], [], []>} : vector<8x128xbf16>, vector<128x512xbf16>, vector<8x512xf32> -> vector<8x512xf32>
    %706 = arith.addf %701, %705 : vector<8x512xf32>
    %c0_377 = arith.constant 0 : index
    %c0_378 = arith.constant 0 : index
    %707 = vector.load %arg22[%c0_377, %c0_378] : memref<8x128xf32, #tpu.memory_space<vmem>>, vector<8x128xf32>
    %708 = vector.extract_strided_slice %706 {offsets = [0, 0], sizes = [8, 128], strides = [1, 1]} : vector<8x512xf32> to vector<8x128xf32>
    %cst_379 = arith.constant 5.000000e-01 : f32
    %709 = vector.broadcast %cst_379 : f32 to vector<8x128xf32>
    %710 = arith.mulf %709, %708 : vector<8x128xf32>
    %711 = math.tanh %710 : vector<8x128xf32>
    %cst_380 = arith.constant 5.000000e-01 : f32
    %712 = vector.broadcast %cst_380 : f32 to vector<8x128xf32>
    %713 = arith.mulf %712, %711 : vector<8x128xf32>
    %cst_381 = arith.constant 5.000000e-01 : f32
    %714 = vector.broadcast %cst_381 : f32 to vector<8x128xf32>
    %715 = arith.addf %713, %714 : vector<8x128xf32>
    %716 = vector.extract_strided_slice %706 {offsets = [0, 128], sizes = [8, 128], strides = [1, 1]} : vector<8x512xf32> to vector<8x128xf32>
    %cst_382 = arith.constant 5.000000e-01 : f32
    %717 = vector.broadcast %cst_382 : f32 to vector<8x128xf32>
    %718 = arith.mulf %717, %716 : vector<8x128xf32>
    %719 = math.tanh %718 : vector<8x128xf32>
    %cst_383 = arith.constant 5.000000e-01 : f32
    %720 = vector.broadcast %cst_383 : f32 to vector<8x128xf32>
    %721 = arith.mulf %720, %719 : vector<8x128xf32>
    %cst_384 = arith.constant 5.000000e-01 : f32
    %722 = vector.broadcast %cst_384 : f32 to vector<8x128xf32>
    %723 = arith.addf %721, %722 : vector<8x128xf32>
    %724 = vector.extract_strided_slice %706 {offsets = [0, 256], sizes = [8, 128], strides = [1, 1]} : vector<8x512xf32> to vector<8x128xf32>
    %725 = math.tanh %724 : vector<8x128xf32>
    %726 = vector.extract_strided_slice %706 {offsets = [0, 384], sizes = [8, 128], strides = [1, 1]} : vector<8x512xf32> to vector<8x128xf32>
    %cst_385 = arith.constant 5.000000e-01 : f32
    %727 = vector.broadcast %cst_385 : f32 to vector<8x128xf32>
    %728 = arith.mulf %727, %726 : vector<8x128xf32>
    %729 = math.tanh %728 : vector<8x128xf32>
    %cst_386 = arith.constant 5.000000e-01 : f32
    %730 = vector.broadcast %cst_386 : f32 to vector<8x128xf32>
    %731 = arith.mulf %730, %729 : vector<8x128xf32>
    %cst_387 = arith.constant 5.000000e-01 : f32
    %732 = vector.broadcast %cst_387 : f32 to vector<8x128xf32>
    %733 = arith.addf %731, %732 : vector<8x128xf32>
    %734 = arith.mulf %723, %707 : vector<8x128xf32>
    %735 = arith.mulf %715, %725 : vector<8x128xf32>
    %736 = arith.addf %734, %735 : vector<8x128xf32>
    %737 = math.tanh %736 : vector<8x128xf32>
    %738 = arith.mulf %733, %737 : vector<8x128xf32>
    %c0_388 = arith.constant 0 : index
    %c0_389 = arith.constant 0 : index
    %739 = vector.load %arg21[%c0_388, %c0_389] : memref<8x128xf32, #tpu.memory_space<vmem>>, vector<8x128xf32>
    tpu.vector_store %arg21[%c0_388, %c0_389], %738 {strides = array<i32>} : memref<8x128xf32, #tpu.memory_space<vmem>>, vector<8x128xf32>,
    %c0_390 = arith.constant 0 : index
    %c0_391 = arith.constant 0 : index
    %740 = vector.load %arg22[%c0_390, %c0_391] : memref<8x128xf32, #tpu.memory_space<vmem>>, vector<8x128xf32>
    tpu.vector_store %arg22[%c0_390, %c0_391], %736 {strides = array<i32>} : memref<8x128xf32, #tpu.memory_space<vmem>>, vector<8x128xf32>,
    %741 = arith.index_cast %699 : i32 to index
    %c0_392 = arith.constant 0 : index
    %742 = vector.load %arg18[%741, %c0_392] : memref<64x128xf32, #tpu.memory_space<vmem>>, vector<8x128xf32>
    tpu.vector_store %arg18[%741, %c0_392], %738 {strides = array<i32>} : memref<64x128xf32, #tpu.memory_space<vmem>>, vector<8x128xf32>,
    %c8_i32_393 = arith.constant 8 : i32
    %c0_394 = arith.constant 0 : index
    %c0_395 = arith.constant 0 : index
    %743 = vector.load %arg17[%c0_394, %c0_395] : memref<64x128xf32, #tpu.memory_space<vmem>>, vector<64x128xf32>
    %744 = arith.truncf %743 : vector<64x128xf32> to vector<64x128xbf16>
    %c0_396 = arith.constant 0 : index
    %c0_397 = arith.constant 0 : index
    %745 = vector.load %arg18[%c0_396, %c0_397] : memref<64x128xf32, #tpu.memory_space<vmem>>, vector<64x128xf32>
    %746 = arith.truncf %745 : vector<64x128xf32> to vector<64x128xbf16>
    %c0_398 = arith.constant 0 : index
    %c0_399 = arith.constant 0 : index
    %747 = vector.load %arg5[%c0_398, %c0_399] : memref<256x512xbf16, #tpu.memory_space<vmem>>, vector<128x512xbf16>
    %cst_400 = arith.constant dense<0.000000e+00> : vector<64x512xf32>
    %748 = tpu.matmul %744, %747, %cst_400 {dimension_numbers = #tpu.dot_dimension_numbers<[1], [0], [0], [1], [0, 0, 1, 1], [], []>} : vector<64x128xbf16>, vector<128x512xbf16>, vector<64x512xf32> -> vector<64x512xf32>
    %c128 = arith.constant 128 : index
    %c0_401 = arith.constant 0 : index
    %749 = vector.load %arg5[%c128, %c0_401] : memref<256x512xbf16, #tpu.memory_space<vmem>>, vector<128x512xbf16>
    %cst_402 = arith.constant dense<0.000000e+00> : vector<64x512xf32>
    %750 = tpu.matmul %746, %749, %cst_402 {dimension_numbers = #tpu.dot_dimension_numbers<[1], [0], [0], [1], [0, 0, 1, 1], [], []>} : vector<64x128xbf16>, vector<128x512xbf16>, vector<64x512xf32> -> vector<64x512xf32>
    %751 = arith.addf %748, %750 : vector<64x512xf32>
    %c0_403 = arith.constant 0 : index
    %c0_404 = arith.constant 0 : index
    %752 = vector.load %arg7[%c0_403, %c0_404] : memref<1x512xf32, #tpu.memory_space<vmem>>, vector<1x512xf32>
    %753 = vector.broadcast %752 : vector<1x512xf32> to vector<64x512xf32>
    %754 = arith.addf %751, %753 : vector<64x512xf32>
    %c0_405 = arith.constant 0 : index
    %c0_406 = arith.constant 0 : index
    %755 = vector.load %arg16[%c0_405, %c0_406] : memref<64x512xf32, #tpu.memory_space<vmem>>, vector<64x512xf32>
    tpu.vector_store %arg16[%c0_405, %c0_406], %754 {strides = array<i32>} : memref<64x512xf32, #tpu.memory_space<vmem>>, vector<64x512xf32>,
    %cst_407 = arith.constant 0.000000e+00 : f32
    %756 = vector.broadcast %cst_407 : f32 to vector<8x128xf32>
    %c0_408 = arith.constant 0 : index
    %c0_409 = arith.constant 0 : index
    %757 = vector.load %arg19[%c0_408, %c0_409] : memref<8x128xf32, #tpu.memory_space<vmem>>, vector<8x128xf32>
    tpu.vector_store %arg19[%c0_408, %c0_409], %756 {strides = array<i32>} : memref<8x128xf32, #tpu.memory_space<vmem>>, vector<8x128xf32>,
    %cst_410 = arith.constant 0.000000e+00 : f32
    %758 = vector.broadcast %cst_410 : f32 to vector<8x128xf32>
    %c0_411 = arith.constant 0 : index
    %c0_412 = arith.constant 0 : index
    %759 = vector.load %arg20[%c0_411, %c0_412] : memref<8x128xf32, #tpu.memory_space<vmem>>, vector<8x128xf32>
    tpu.vector_store %arg20[%c0_411, %c0_412], %758 {strides = array<i32>} : memref<8x128xf32, #tpu.memory_space<vmem>>, vector<8x128xf32>,
    %c0_i32_413 = arith.constant 0 : i32
    %c8_i32_414 = arith.constant 8 : i32
    %760 = arith.muli %c0_i32_413, %c8_i32_414 : i32
    %761 = tpu.assume_multiple %760, 8 : i32
    %762 = arith.index_cast %761 : i32 to index
    %c0_415 = arith.constant 0 : index
    %763 = vector.load %arg16[%762, %c0_415] : memref<64x512xf32, #tpu.memory_space<vmem>>, vector<8x512xf32>
    %c0_416 = arith.constant 0 : index
    %c0_417 = arith.constant 0 : index
    %764 = vector.load %arg19[%c0_416, %c0_417] : memref<8x128xf32, #tpu.memory_space<vmem>>, vector<8x128xf32>
    %765 = arith.truncf %764 : vector<8x128xf32> to vector<8x128xbf16>
    %c0_418 = arith.constant 0 : index
    %c0_419 = arith.constant 0 : index
    %766 = vector.load %arg6[%c0_418, %c0_419] : memref<128x512xbf16, #tpu.memory_space<vmem>>, vector<128x512xbf16>
    %cst_420 = arith.constant dense<0.000000e+00> : vector<8x512xf32>
    %767 = tpu.matmul %765, %766, %cst_420 {dimension_numbers = #tpu.dot_dimension_numbers<[1], [0], [0], [1], [0, 0, 1, 1], [], []>} : vector<8x128xbf16>, vector<128x512xbf16>, vector<8x512xf32> -> vector<8x512xf32>
    %768 = arith.addf %763, %767 : vector<8x512xf32>
    %c0_421 = arith.constant 0 : index
    %c0_422 = arith.constant 0 : index
    %769 = vector.load %arg20[%c0_421, %c0_422] : memref<8x128xf32, #tpu.memory_space<vmem>>, vector<8x128xf32>
    %770 = vector.extract_strided_slice %768 {offsets = [0, 0], sizes = [8, 128], strides = [1, 1]} : vector<8x512xf32> to vector<8x128xf32>
    %cst_423 = arith.constant 5.000000e-01 : f32
    %771 = vector.broadcast %cst_423 : f32 to vector<8x128xf32>
    %772 = arith.mulf %771, %770 : vector<8x128xf32>
    %773 = math.tanh %772 : vector<8x128xf32>
    %cst_424 = arith.constant 5.000000e-01 : f32
    %774 = vector.broadcast %cst_424 : f32 to vector<8x128xf32>
    %775 = arith.mulf %774, %773 : vector<8x128xf32>
    %cst_425 = arith.constant 5.000000e-01 : f32
    %776 = vector.broadcast %cst_425 : f32 to vector<8x128xf32>
    %777 = arith.addf %775, %776 : vector<8x128xf32>
    %778 = vector.extract_strided_slice %768 {offsets = [0, 128], sizes = [8, 128], strides = [1, 1]} : vector<8x512xf32> to vector<8x128xf32>
    %cst_426 = arith.constant 5.000000e-01 : f32
    %779 = vector.broadcast %cst_426 : f32 to vector<8x128xf32>
    %780 = arith.mulf %779, %778 : vector<8x128xf32>
    %781 = math.tanh %780 : vector<8x128xf32>
    %cst_427 = arith.constant 5.000000e-01 : f32
    %782 = vector.broadcast %cst_427 : f32 to vector<8x128xf32>
    %783 = arith.mulf %782, %781 : vector<8x128xf32>
    %cst_428 = arith.constant 5.000000e-01 : f32
    %784 = vector.broadcast %cst_428 : f32 to vector<8x128xf32>
    %785 = arith.addf %783, %784 : vector<8x128xf32>
    %786 = vector.extract_strided_slice %768 {offsets = [0, 256], sizes = [8, 128], strides = [1, 1]} : vector<8x512xf32> to vector<8x128xf32>
    %787 = math.tanh %786 : vector<8x128xf32>
    %788 = vector.extract_strided_slice %768 {offsets = [0, 384], sizes = [8, 128], strides = [1, 1]} : vector<8x512xf32> to vector<8x128xf32>
    %cst_429 = arith.constant 5.000000e-01 : f32
    %789 = vector.broadcast %cst_429 : f32 to vector<8x128xf32>
    %790 = arith.mulf %789, %788 : vector<8x128xf32>
    %791 = math.tanh %790 : vector<8x128xf32>
    %cst_430 = arith.constant 5.000000e-01 : f32
    %792 = vector.broadcast %cst_430 : f32 to vector<8x128xf32>
    %793 = arith.mulf %792, %791 : vector<8x128xf32>
    %cst_431 = arith.constant 5.000000e-01 : f32
    %794 = vector.broadcast %cst_431 : f32 to vector<8x128xf32>
    %795 = arith.addf %793, %794 : vector<8x128xf32>
    %796 = arith.mulf %785, %769 : vector<8x128xf32>
    %797 = arith.mulf %777, %787 : vector<8x128xf32>
    %798 = arith.addf %796, %797 : vector<8x128xf32>
    %799 = math.tanh %798 : vector<8x128xf32>
    %800 = arith.mulf %795, %799 : vector<8x128xf32>
    %c0_432 = arith.constant 0 : index
    %c0_433 = arith.constant 0 : index
    %801 = vector.load %arg19[%c0_432, %c0_433] : memref<8x128xf32, #tpu.memory_space<vmem>>, vector<8x128xf32>
    tpu.vector_store %arg19[%c0_432, %c0_433], %800 {strides = array<i32>} : memref<8x128xf32, #tpu.memory_space<vmem>>, vector<8x128xf32>,
    %c0_434 = arith.constant 0 : index
    %c0_435 = arith.constant 0 : index
    %802 = vector.load %arg20[%c0_434, %c0_435] : memref<8x128xf32, #tpu.memory_space<vmem>>, vector<8x128xf32>
    tpu.vector_store %arg20[%c0_434, %c0_435], %798 {strides = array<i32>} : memref<8x128xf32, #tpu.memory_space<vmem>>, vector<8x128xf32>,
    %c1_i32_436 = arith.constant 1 : i32
    %c8_i32_437 = arith.constant 8 : i32
    %803 = arith.muli %c1_i32_436, %c8_i32_437 : i32
    %804 = tpu.assume_multiple %803, 8 : i32
    %805 = arith.index_cast %804 : i32 to index
    %c0_438 = arith.constant 0 : index
    %806 = vector.load %arg16[%805, %c0_438] : memref<64x512xf32, #tpu.memory_space<vmem>>, vector<8x512xf32>
    %c0_439 = arith.constant 0 : index
    %c0_440 = arith.constant 0 : index
    %807 = vector.load %arg19[%c0_439, %c0_440] : memref<8x128xf32, #tpu.memory_space<vmem>>, vector<8x128xf32>
    %808 = arith.truncf %807 : vector<8x128xf32> to vector<8x128xbf16>
    %c0_441 = arith.constant 0 : index
    %c0_442 = arith.constant 0 : index
    %809 = vector.load %arg6[%c0_441, %c0_442] : memref<128x512xbf16, #tpu.memory_space<vmem>>, vector<128x512xbf16>
    %cst_443 = arith.constant dense<0.000000e+00> : vector<8x512xf32>
    %810 = tpu.matmul %808, %809, %cst_443 {dimension_numbers = #tpu.dot_dimension_numbers<[1], [0], [0], [1], [0, 0, 1, 1], [], []>} : vector<8x128xbf16>, vector<128x512xbf16>, vector<8x512xf32> -> vector<8x512xf32>
    %811 = arith.addf %806, %810 : vector<8x512xf32>
    %c0_444 = arith.constant 0 : index
    %c0_445 = arith.constant 0 : index
    %812 = vector.load %arg20[%c0_444, %c0_445] : memref<8x128xf32, #tpu.memory_space<vmem>>, vector<8x128xf32>
    %813 = vector.extract_strided_slice %811 {offsets = [0, 0], sizes = [8, 128], strides = [1, 1]} : vector<8x512xf32> to vector<8x128xf32>
    %cst_446 = arith.constant 5.000000e-01 : f32
    %814 = vector.broadcast %cst_446 : f32 to vector<8x128xf32>
    %815 = arith.mulf %814, %813 : vector<8x128xf32>
    %816 = math.tanh %815 : vector<8x128xf32>
    %cst_447 = arith.constant 5.000000e-01 : f32
    %817 = vector.broadcast %cst_447 : f32 to vector<8x128xf32>
    %818 = arith.mulf %817, %816 : vector<8x128xf32>
    %cst_448 = arith.constant 5.000000e-01 : f32
    %819 = vector.broadcast %cst_448 : f32 to vector<8x128xf32>
    %820 = arith.addf %818, %819 : vector<8x128xf32>
    %821 = vector.extract_strided_slice %811 {offsets = [0, 128], sizes = [8, 128], strides = [1, 1]} : vector<8x512xf32> to vector<8x128xf32>
    %cst_449 = arith.constant 5.000000e-01 : f32
    %822 = vector.broadcast %cst_449 : f32 to vector<8x128xf32>
    %823 = arith.mulf %822, %821 : vector<8x128xf32>
    %824 = math.tanh %823 : vector<8x128xf32>
    %cst_450 = arith.constant 5.000000e-01 : f32
    %825 = vector.broadcast %cst_450 : f32 to vector<8x128xf32>
    %826 = arith.mulf %825, %824 : vector<8x128xf32>
    %cst_451 = arith.constant 5.000000e-01 : f32
    %827 = vector.broadcast %cst_451 : f32 to vector<8x128xf32>
    %828 = arith.addf %826, %827 : vector<8x128xf32>
    %829 = vector.extract_strided_slice %811 {offsets = [0, 256], sizes = [8, 128], strides = [1, 1]} : vector<8x512xf32> to vector<8x128xf32>
    %830 = math.tanh %829 : vector<8x128xf32>
    %831 = vector.extract_strided_slice %811 {offsets = [0, 384], sizes = [8, 128], strides = [1, 1]} : vector<8x512xf32> to vector<8x128xf32>
    %cst_452 = arith.constant 5.000000e-01 : f32
    %832 = vector.broadcast %cst_452 : f32 to vector<8x128xf32>
    %833 = arith.mulf %832, %831 : vector<8x128xf32>
    %834 = math.tanh %833 : vector<8x128xf32>
    %cst_453 = arith.constant 5.000000e-01 : f32
    %835 = vector.broadcast %cst_453 : f32 to vector<8x128xf32>
    %836 = arith.mulf %835, %834 : vector<8x128xf32>
    %cst_454 = arith.constant 5.000000e-01 : f32
    %837 = vector.broadcast %cst_454 : f32 to vector<8x128xf32>
    %838 = arith.addf %836, %837 : vector<8x128xf32>
    %839 = arith.mulf %828, %812 : vector<8x128xf32>
    %840 = arith.mulf %820, %830 : vector<8x128xf32>
    %841 = arith.addf %839, %840 : vector<8x128xf32>
    %842 = math.tanh %841 : vector<8x128xf32>
    %843 = arith.mulf %838, %842 : vector<8x128xf32>
    %c0_455 = arith.constant 0 : index
    %c0_456 = arith.constant 0 : index
    %844 = vector.load %arg19[%c0_455, %c0_456] : memref<8x128xf32, #tpu.memory_space<vmem>>, vector<8x128xf32>
    tpu.vector_store %arg19[%c0_455, %c0_456], %843 {strides = array<i32>} : memref<8x128xf32, #tpu.memory_space<vmem>>, vector<8x128xf32>,
    %c0_457 = arith.constant 0 : index
    %c0_458 = arith.constant 0 : index
    %845 = vector.load %arg20[%c0_457, %c0_458] : memref<8x128xf32, #tpu.memory_space<vmem>>, vector<8x128xf32>
    tpu.vector_store %arg20[%c0_457, %c0_458], %841 {strides = array<i32>} : memref<8x128xf32, #tpu.memory_space<vmem>>, vector<8x128xf32>,
    %c2_i32_459 = arith.constant 2 : i32
    %c8_i32_460 = arith.constant 8 : i32
    %846 = arith.muli %c2_i32_459, %c8_i32_460 : i32
    %847 = tpu.assume_multiple %846, 8 : i32
    %848 = arith.index_cast %847 : i32 to index
    %c0_461 = arith.constant 0 : index
    %849 = vector.load %arg16[%848, %c0_461] : memref<64x512xf32, #tpu.memory_space<vmem>>, vector<8x512xf32>
    %c0_462 = arith.constant 0 : index
    %c0_463 = arith.constant 0 : index
    %850 = vector.load %arg19[%c0_462, %c0_463] : memref<8x128xf32, #tpu.memory_space<vmem>>, vector<8x128xf32>
    %851 = arith.truncf %850 : vector<8x128xf32> to vector<8x128xbf16>
    %c0_464 = arith.constant 0 : index
    %c0_465 = arith.constant 0 : index
    %852 = vector.load %arg6[%c0_464, %c0_465] : memref<128x512xbf16, #tpu.memory_space<vmem>>, vector<128x512xbf16>
    %cst_466 = arith.constant dense<0.000000e+00> : vector<8x512xf32>
    %853 = tpu.matmul %851, %852, %cst_466 {dimension_numbers = #tpu.dot_dimension_numbers<[1], [0], [0], [1], [0, 0, 1, 1], [], []>} : vector<8x128xbf16>, vector<128x512xbf16>, vector<8x512xf32> -> vector<8x512xf32>
    %854 = arith.addf %849, %853 : vector<8x512xf32>
    %c0_467 = arith.constant 0 : index
    %c0_468 = arith.constant 0 : index
    %855 = vector.load %arg20[%c0_467, %c0_468] : memref<8x128xf32, #tpu.memory_space<vmem>>, vector<8x128xf32>
    %856 = vector.extract_strided_slice %854 {offsets = [0, 0], sizes = [8, 128], strides = [1, 1]} : vector<8x512xf32> to vector<8x128xf32>
    %cst_469 = arith.constant 5.000000e-01 : f32
    %857 = vector.broadcast %cst_469 : f32 to vector<8x128xf32>
    %858 = arith.mulf %857, %856 : vector<8x128xf32>
    %859 = math.tanh %858 : vector<8x128xf32>
    %cst_470 = arith.constant 5.000000e-01 : f32
    %860 = vector.broadcast %cst_470 : f32 to vector<8x128xf32>
    %861 = arith.mulf %860, %859 : vector<8x128xf32>
    %cst_471 = arith.constant 5.000000e-01 : f32
    %862 = vector.broadcast %cst_471 : f32 to vector<8x128xf32>
    %863 = arith.addf %861, %862 : vector<8x128xf32>
    %864 = vector.extract_strided_slice %854 {offsets = [0, 128], sizes = [8, 128], strides = [1, 1]} : vector<8x512xf32> to vector<8x128xf32>
    %cst_472 = arith.constant 5.000000e-01 : f32
    %865 = vector.broadcast %cst_472 : f32 to vector<8x128xf32>
    %866 = arith.mulf %865, %864 : vector<8x128xf32>
    %867 = math.tanh %866 : vector<8x128xf32>
    %cst_473 = arith.constant 5.000000e-01 : f32
    %868 = vector.broadcast %cst_473 : f32 to vector<8x128xf32>
    %869 = arith.mulf %868, %867 : vector<8x128xf32>
    %cst_474 = arith.constant 5.000000e-01 : f32
    %870 = vector.broadcast %cst_474 : f32 to vector<8x128xf32>
    %871 = arith.addf %869, %870 : vector<8x128xf32>
    %872 = vector.extract_strided_slice %854 {offsets = [0, 256], sizes = [8, 128], strides = [1, 1]} : vector<8x512xf32> to vector<8x128xf32>
    %873 = math.tanh %872 : vector<8x128xf32>
    %874 = vector.extract_strided_slice %854 {offsets = [0, 384], sizes = [8, 128], strides = [1, 1]} : vector<8x512xf32> to vector<8x128xf32>
    %cst_475 = arith.constant 5.000000e-01 : f32
    %875 = vector.broadcast %cst_475 : f32 to vector<8x128xf32>
    %876 = arith.mulf %875, %874 : vector<8x128xf32>
    %877 = math.tanh %876 : vector<8x128xf32>
    %cst_476 = arith.constant 5.000000e-01 : f32
    %878 = vector.broadcast %cst_476 : f32 to vector<8x128xf32>
    %879 = arith.mulf %878, %877 : vector<8x128xf32>
    %cst_477 = arith.constant 5.000000e-01 : f32
    %880 = vector.broadcast %cst_477 : f32 to vector<8x128xf32>
    %881 = arith.addf %879, %880 : vector<8x128xf32>
    %882 = arith.mulf %871, %855 : vector<8x128xf32>
    %883 = arith.mulf %863, %873 : vector<8x128xf32>
    %884 = arith.addf %882, %883 : vector<8x128xf32>
    %885 = math.tanh %884 : vector<8x128xf32>
    %886 = arith.mulf %881, %885 : vector<8x128xf32>
    %c0_478 = arith.constant 0 : index
    %c0_479 = arith.constant 0 : index
    %887 = vector.load %arg19[%c0_478, %c0_479] : memref<8x128xf32, #tpu.memory_space<vmem>>, vector<8x128xf32>
    tpu.vector_store %arg19[%c0_478, %c0_479], %886 {strides = array<i32>} : memref<8x128xf32, #tpu.memory_space<vmem>>, vector<8x128xf32>,
    %c0_480 = arith.constant 0 : index
    %c0_481 = arith.constant 0 : index
    %888 = vector.load %arg20[%c0_480, %c0_481] : memref<8x128xf32, #tpu.memory_space<vmem>>, vector<8x128xf32>
    tpu.vector_store %arg20[%c0_480, %c0_481], %884 {strides = array<i32>} : memref<8x128xf32, #tpu.memory_space<vmem>>, vector<8x128xf32>,
    %c3_i32_482 = arith.constant 3 : i32
    %c8_i32_483 = arith.constant 8 : i32
    %889 = arith.muli %c3_i32_482, %c8_i32_483 : i32
    %890 = tpu.assume_multiple %889, 8 : i32
    %891 = arith.index_cast %890 : i32 to index
    %c0_484 = arith.constant 0 : index
    %892 = vector.load %arg16[%891, %c0_484] : memref<64x512xf32, #tpu.memory_space<vmem>>, vector<8x512xf32>
    %c0_485 = arith.constant 0 : index
    %c0_486 = arith.constant 0 : index
    %893 = vector.load %arg19[%c0_485, %c0_486] : memref<8x128xf32, #tpu.memory_space<vmem>>, vector<8x128xf32>
    %894 = arith.truncf %893 : vector<8x128xf32> to vector<8x128xbf16>
    %c0_487 = arith.constant 0 : index
    %c0_488 = arith.constant 0 : index
    %895 = vector.load %arg6[%c0_487, %c0_488] : memref<128x512xbf16, #tpu.memory_space<vmem>>, vector<128x512xbf16>
    %cst_489 = arith.constant dense<0.000000e+00> : vector<8x512xf32>
    %896 = tpu.matmul %894, %895, %cst_489 {dimension_numbers = #tpu.dot_dimension_numbers<[1], [0], [0], [1], [0, 0, 1, 1], [], []>} : vector<8x128xbf16>, vector<128x512xbf16>, vector<8x512xf32> -> vector<8x512xf32>
    %897 = arith.addf %892, %896 : vector<8x512xf32>
    %c0_490 = arith.constant 0 : index
    %c0_491 = arith.constant 0 : index
    %898 = vector.load %arg20[%c0_490, %c0_491] : memref<8x128xf32, #tpu.memory_space<vmem>>, vector<8x128xf32>
    %899 = vector.extract_strided_slice %897 {offsets = [0, 0], sizes = [8, 128], strides = [1, 1]} : vector<8x512xf32> to vector<8x128xf32>
    %cst_492 = arith.constant 5.000000e-01 : f32
    %900 = vector.broadcast %cst_492 : f32 to vector<8x128xf32>
    %901 = arith.mulf %900, %899 : vector<8x128xf32>
    %902 = math.tanh %901 : vector<8x128xf32>
    %cst_493 = arith.constant 5.000000e-01 : f32
    %903 = vector.broadcast %cst_493 : f32 to vector<8x128xf32>
    %904 = arith.mulf %903, %902 : vector<8x128xf32>
    %cst_494 = arith.constant 5.000000e-01 : f32
    %905 = vector.broadcast %cst_494 : f32 to vector<8x128xf32>
    %906 = arith.addf %904, %905 : vector<8x128xf32>
    %907 = vector.extract_strided_slice %897 {offsets = [0, 128], sizes = [8, 128], strides = [1, 1]} : vector<8x512xf32> to vector<8x128xf32>
    %cst_495 = arith.constant 5.000000e-01 : f32
    %908 = vector.broadcast %cst_495 : f32 to vector<8x128xf32>
    %909 = arith.mulf %908, %907 : vector<8x128xf32>
    %910 = math.tanh %909 : vector<8x128xf32>
    %cst_496 = arith.constant 5.000000e-01 : f32
    %911 = vector.broadcast %cst_496 : f32 to vector<8x128xf32>
    %912 = arith.mulf %911, %910 : vector<8x128xf32>
    %cst_497 = arith.constant 5.000000e-01 : f32
    %913 = vector.broadcast %cst_497 : f32 to vector<8x128xf32>
    %914 = arith.addf %912, %913 : vector<8x128xf32>
    %915 = vector.extract_strided_slice %897 {offsets = [0, 256], sizes = [8, 128], strides = [1, 1]} : vector<8x512xf32> to vector<8x128xf32>
    %916 = math.tanh %915 : vector<8x128xf32>
    %917 = vector.extract_strided_slice %897 {offsets = [0, 384], sizes = [8, 128], strides = [1, 1]} : vector<8x512xf32> to vector<8x128xf32>
    %cst_498 = arith.constant 5.000000e-01 : f32
    %918 = vector.broadcast %cst_498 : f32 to vector<8x128xf32>
    %919 = arith.mulf %918, %917 : vector<8x128xf32>
    %920 = math.tanh %919 : vector<8x128xf32>
    %cst_499 = arith.constant 5.000000e-01 : f32
    %921 = vector.broadcast %cst_499 : f32 to vector<8x128xf32>
    %922 = arith.mulf %921, %920 : vector<8x128xf32>
    %cst_500 = arith.constant 5.000000e-01 : f32
    %923 = vector.broadcast %cst_500 : f32 to vector<8x128xf32>
    %924 = arith.addf %922, %923 : vector<8x128xf32>
    %925 = arith.mulf %914, %898 : vector<8x128xf32>
    %926 = arith.mulf %906, %916 : vector<8x128xf32>
    %927 = arith.addf %925, %926 : vector<8x128xf32>
    %928 = math.tanh %927 : vector<8x128xf32>
    %929 = arith.mulf %924, %928 : vector<8x128xf32>
    %c0_501 = arith.constant 0 : index
    %c0_502 = arith.constant 0 : index
    %930 = vector.load %arg19[%c0_501, %c0_502] : memref<8x128xf32, #tpu.memory_space<vmem>>, vector<8x128xf32>
    tpu.vector_store %arg19[%c0_501, %c0_502], %929 {strides = array<i32>} : memref<8x128xf32, #tpu.memory_space<vmem>>, vector<8x128xf32>,
    %c0_503 = arith.constant 0 : index
    %c0_504 = arith.constant 0 : index
    %931 = vector.load %arg20[%c0_503, %c0_504] : memref<8x128xf32, #tpu.memory_space<vmem>>, vector<8x128xf32>
    tpu.vector_store %arg20[%c0_503, %c0_504], %927 {strides = array<i32>} : memref<8x128xf32, #tpu.memory_space<vmem>>, vector<8x128xf32>,
    %c4_i32_505 = arith.constant 4 : i32
    %c8_i32_506 = arith.constant 8 : i32
    %932 = arith.muli %c4_i32_505, %c8_i32_506 : i32
    %933 = tpu.assume_multiple %932, 8 : i32
    %934 = arith.index_cast %933 : i32 to index
    %c0_507 = arith.constant 0 : index
    %935 = vector.load %arg16[%934, %c0_507] : memref<64x512xf32, #tpu.memory_space<vmem>>, vector<8x512xf32>
    %c0_508 = arith.constant 0 : index
    %c0_509 = arith.constant 0 : index
    %936 = vector.load %arg19[%c0_508, %c0_509] : memref<8x128xf32, #tpu.memory_space<vmem>>, vector<8x128xf32>
    %937 = arith.truncf %936 : vector<8x128xf32> to vector<8x128xbf16>
    %c0_510 = arith.constant 0 : index
    %c0_511 = arith.constant 0 : index
    %938 = vector.load %arg6[%c0_510, %c0_511] : memref<128x512xbf16, #tpu.memory_space<vmem>>, vector<128x512xbf16>
    %cst_512 = arith.constant dense<0.000000e+00> : vector<8x512xf32>
    %939 = tpu.matmul %937, %938, %cst_512 {dimension_numbers = #tpu.dot_dimension_numbers<[1], [0], [0], [1], [0, 0, 1, 1], [], []>} : vector<8x128xbf16>, vector<128x512xbf16>, vector<8x512xf32> -> vector<8x512xf32>
    %940 = arith.addf %935, %939 : vector<8x512xf32>
    %c0_513 = arith.constant 0 : index
    %c0_514 = arith.constant 0 : index
    %941 = vector.load %arg20[%c0_513, %c0_514] : memref<8x128xf32, #tpu.memory_space<vmem>>, vector<8x128xf32>
    %942 = vector.extract_strided_slice %940 {offsets = [0, 0], sizes = [8, 128], strides = [1, 1]} : vector<8x512xf32> to vector<8x128xf32>
    %cst_515 = arith.constant 5.000000e-01 : f32
    %943 = vector.broadcast %cst_515 : f32 to vector<8x128xf32>
    %944 = arith.mulf %943, %942 : vector<8x128xf32>
    %945 = math.tanh %944 : vector<8x128xf32>
    %cst_516 = arith.constant 5.000000e-01 : f32
    %946 = vector.broadcast %cst_516 : f32 to vector<8x128xf32>
    %947 = arith.mulf %946, %945 : vector<8x128xf32>
    %cst_517 = arith.constant 5.000000e-01 : f32
    %948 = vector.broadcast %cst_517 : f32 to vector<8x128xf32>
    %949 = arith.addf %947, %948 : vector<8x128xf32>
    %950 = vector.extract_strided_slice %940 {offsets = [0, 128], sizes = [8, 128], strides = [1, 1]} : vector<8x512xf32> to vector<8x128xf32>
    %cst_518 = arith.constant 5.000000e-01 : f32
    %951 = vector.broadcast %cst_518 : f32 to vector<8x128xf32>
    %952 = arith.mulf %951, %950 : vector<8x128xf32>
    %953 = math.tanh %952 : vector<8x128xf32>
    %cst_519 = arith.constant 5.000000e-01 : f32
    %954 = vector.broadcast %cst_519 : f32 to vector<8x128xf32>
    %955 = arith.mulf %954, %953 : vector<8x128xf32>
    %cst_520 = arith.constant 5.000000e-01 : f32
    %956 = vector.broadcast %cst_520 : f32 to vector<8x128xf32>
    %957 = arith.addf %955, %956 : vector<8x128xf32>
    %958 = vector.extract_strided_slice %940 {offsets = [0, 256], sizes = [8, 128], strides = [1, 1]} : vector<8x512xf32> to vector<8x128xf32>
    %959 = math.tanh %958 : vector<8x128xf32>
    %960 = vector.extract_strided_slice %940 {offsets = [0, 384], sizes = [8, 128], strides = [1, 1]} : vector<8x512xf32> to vector<8x128xf32>
    %cst_521 = arith.constant 5.000000e-01 : f32
    %961 = vector.broadcast %cst_521 : f32 to vector<8x128xf32>
    %962 = arith.mulf %961, %960 : vector<8x128xf32>
    %963 = math.tanh %962 : vector<8x128xf32>
    %cst_522 = arith.constant 5.000000e-01 : f32
    %964 = vector.broadcast %cst_522 : f32 to vector<8x128xf32>
    %965 = arith.mulf %964, %963 : vector<8x128xf32>
    %cst_523 = arith.constant 5.000000e-01 : f32
    %966 = vector.broadcast %cst_523 : f32 to vector<8x128xf32>
    %967 = arith.addf %965, %966 : vector<8x128xf32>
    %968 = arith.mulf %957, %941 : vector<8x128xf32>
    %969 = arith.mulf %949, %959 : vector<8x128xf32>
    %970 = arith.addf %968, %969 : vector<8x128xf32>
    %971 = math.tanh %970 : vector<8x128xf32>
    %972 = arith.mulf %967, %971 : vector<8x128xf32>
    %c0_524 = arith.constant 0 : index
    %c0_525 = arith.constant 0 : index
    %973 = vector.load %arg19[%c0_524, %c0_525] : memref<8x128xf32, #tpu.memory_space<vmem>>, vector<8x128xf32>
    tpu.vector_store %arg19[%c0_524, %c0_525], %972 {strides = array<i32>} : memref<8x128xf32, #tpu.memory_space<vmem>>, vector<8x128xf32>,
    %c0_526 = arith.constant 0 : index
    %c0_527 = arith.constant 0 : index
    %974 = vector.load %arg20[%c0_526, %c0_527] : memref<8x128xf32, #tpu.memory_space<vmem>>, vector<8x128xf32>
    tpu.vector_store %arg20[%c0_526, %c0_527], %970 {strides = array<i32>} : memref<8x128xf32, #tpu.memory_space<vmem>>, vector<8x128xf32>,
    %c5_i32_528 = arith.constant 5 : i32
    %c8_i32_529 = arith.constant 8 : i32
    %975 = arith.muli %c5_i32_528, %c8_i32_529 : i32
    %976 = tpu.assume_multiple %975, 8 : i32
    %977 = arith.index_cast %976 : i32 to index
    %c0_530 = arith.constant 0 : index
    %978 = vector.load %arg16[%977, %c0_530] : memref<64x512xf32, #tpu.memory_space<vmem>>, vector<8x512xf32>
    %c0_531 = arith.constant 0 : index
    %c0_532 = arith.constant 0 : index
    %979 = vector.load %arg19[%c0_531, %c0_532] : memref<8x128xf32, #tpu.memory_space<vmem>>, vector<8x128xf32>
    %980 = arith.truncf %979 : vector<8x128xf32> to vector<8x128xbf16>
    %c0_533 = arith.constant 0 : index
    %c0_534 = arith.constant 0 : index
    %981 = vector.load %arg6[%c0_533, %c0_534] : memref<128x512xbf16, #tpu.memory_space<vmem>>, vector<128x512xbf16>
    %cst_535 = arith.constant dense<0.000000e+00> : vector<8x512xf32>
    %982 = tpu.matmul %980, %981, %cst_535 {dimension_numbers = #tpu.dot_dimension_numbers<[1], [0], [0], [1], [0, 0, 1, 1], [], []>} : vector<8x128xbf16>, vector<128x512xbf16>, vector<8x512xf32> -> vector<8x512xf32>
    %983 = arith.addf %978, %982 : vector<8x512xf32>
    %c0_536 = arith.constant 0 : index
    %c0_537 = arith.constant 0 : index
    %984 = vector.load %arg20[%c0_536, %c0_537] : memref<8x128xf32, #tpu.memory_space<vmem>>, vector<8x128xf32>
    %985 = vector.extract_strided_slice %983 {offsets = [0, 0], sizes = [8, 128], strides = [1, 1]} : vector<8x512xf32> to vector<8x128xf32>
    %cst_538 = arith.constant 5.000000e-01 : f32
    %986 = vector.broadcast %cst_538 : f32 to vector<8x128xf32>
    %987 = arith.mulf %986, %985 : vector<8x128xf32>
    %988 = math.tanh %987 : vector<8x128xf32>
    %cst_539 = arith.constant 5.000000e-01 : f32
    %989 = vector.broadcast %cst_539 : f32 to vector<8x128xf32>
    %990 = arith.mulf %989, %988 : vector<8x128xf32>
    %cst_540 = arith.constant 5.000000e-01 : f32
    %991 = vector.broadcast %cst_540 : f32 to vector<8x128xf32>
    %992 = arith.addf %990, %991 : vector<8x128xf32>
    %993 = vector.extract_strided_slice %983 {offsets = [0, 128], sizes = [8, 128], strides = [1, 1]} : vector<8x512xf32> to vector<8x128xf32>
    %cst_541 = arith.constant 5.000000e-01 : f32
    %994 = vector.broadcast %cst_541 : f32 to vector<8x128xf32>
    %995 = arith.mulf %994, %993 : vector<8x128xf32>
    %996 = math.tanh %995 : vector<8x128xf32>
    %cst_542 = arith.constant 5.000000e-01 : f32
    %997 = vector.broadcast %cst_542 : f32 to vector<8x128xf32>
    %998 = arith.mulf %997, %996 : vector<8x128xf32>
    %cst_543 = arith.constant 5.000000e-01 : f32
    %999 = vector.broadcast %cst_543 : f32 to vector<8x128xf32>
    %1000 = arith.addf %998, %999 : vector<8x128xf32>
    %1001 = vector.extract_strided_slice %983 {offsets = [0, 256], sizes = [8, 128], strides = [1, 1]} : vector<8x512xf32> to vector<8x128xf32>
    %1002 = math.tanh %1001 : vector<8x128xf32>
    %1003 = vector.extract_strided_slice %983 {offsets = [0, 384], sizes = [8, 128], strides = [1, 1]} : vector<8x512xf32> to vector<8x128xf32>
    %cst_544 = arith.constant 5.000000e-01 : f32
    %1004 = vector.broadcast %cst_544 : f32 to vector<8x128xf32>
    %1005 = arith.mulf %1004, %1003 : vector<8x128xf32>
    %1006 = math.tanh %1005 : vector<8x128xf32>
    %cst_545 = arith.constant 5.000000e-01 : f32
    %1007 = vector.broadcast %cst_545 : f32 to vector<8x128xf32>
    %1008 = arith.mulf %1007, %1006 : vector<8x128xf32>
    %cst_546 = arith.constant 5.000000e-01 : f32
    %1009 = vector.broadcast %cst_546 : f32 to vector<8x128xf32>
    %1010 = arith.addf %1008, %1009 : vector<8x128xf32>
    %1011 = arith.mulf %1000, %984 : vector<8x128xf32>
    %1012 = arith.mulf %992, %1002 : vector<8x128xf32>
    %1013 = arith.addf %1011, %1012 : vector<8x128xf32>
    %1014 = math.tanh %1013 : vector<8x128xf32>
    %1015 = arith.mulf %1010, %1014 : vector<8x128xf32>
    %c0_547 = arith.constant 0 : index
    %c0_548 = arith.constant 0 : index
    %1016 = vector.load %arg19[%c0_547, %c0_548] : memref<8x128xf32, #tpu.memory_space<vmem>>, vector<8x128xf32>
    tpu.vector_store %arg19[%c0_547, %c0_548], %1015 {strides = array<i32>} : memref<8x128xf32, #tpu.memory_space<vmem>>, vector<8x128xf32>,
    %c0_549 = arith.constant 0 : index
    %c0_550 = arith.constant 0 : index
    %1017 = vector.load %arg20[%c0_549, %c0_550] : memref<8x128xf32, #tpu.memory_space<vmem>>, vector<8x128xf32>
    tpu.vector_store %arg20[%c0_549, %c0_550], %1013 {strides = array<i32>} : memref<8x128xf32, #tpu.memory_space<vmem>>, vector<8x128xf32>,
    %c6_i32_551 = arith.constant 6 : i32
    %c8_i32_552 = arith.constant 8 : i32
    %1018 = arith.muli %c6_i32_551, %c8_i32_552 : i32
    %1019 = tpu.assume_multiple %1018, 8 : i32
    %1020 = arith.index_cast %1019 : i32 to index
    %c0_553 = arith.constant 0 : index
    %1021 = vector.load %arg16[%1020, %c0_553] : memref<64x512xf32, #tpu.memory_space<vmem>>, vector<8x512xf32>
    %c0_554 = arith.constant 0 : index
    %c0_555 = arith.constant 0 : index
    %1022 = vector.load %arg19[%c0_554, %c0_555] : memref<8x128xf32, #tpu.memory_space<vmem>>, vector<8x128xf32>
    %1023 = arith.truncf %1022 : vector<8x128xf32> to vector<8x128xbf16>
    %c0_556 = arith.constant 0 : index
    %c0_557 = arith.constant 0 : index
    %1024 = vector.load %arg6[%c0_556, %c0_557] : memref<128x512xbf16, #tpu.memory_space<vmem>>, vector<128x512xbf16>
    %cst_558 = arith.constant dense<0.000000e+00> : vector<8x512xf32>
    %1025 = tpu.matmul %1023, %1024, %cst_558 {dimension_numbers = #tpu.dot_dimension_numbers<[1], [0], [0], [1], [0, 0, 1, 1], [], []>} : vector<8x128xbf16>, vector<128x512xbf16>, vector<8x512xf32> -> vector<8x512xf32>
    %1026 = arith.addf %1021, %1025 : vector<8x512xf32>
    %c0_559 = arith.constant 0 : index
    %c0_560 = arith.constant 0 : index
    %1027 = vector.load %arg20[%c0_559, %c0_560] : memref<8x128xf32, #tpu.memory_space<vmem>>, vector<8x128xf32>
    %1028 = vector.extract_strided_slice %1026 {offsets = [0, 0], sizes = [8, 128], strides = [1, 1]} : vector<8x512xf32> to vector<8x128xf32>
    %cst_561 = arith.constant 5.000000e-01 : f32
    %1029 = vector.broadcast %cst_561 : f32 to vector<8x128xf32>
    %1030 = arith.mulf %1029, %1028 : vector<8x128xf32>
    %1031 = math.tanh %1030 : vector<8x128xf32>
    %cst_562 = arith.constant 5.000000e-01 : f32
    %1032 = vector.broadcast %cst_562 : f32 to vector<8x128xf32>
    %1033 = arith.mulf %1032, %1031 : vector<8x128xf32>
    %cst_563 = arith.constant 5.000000e-01 : f32
    %1034 = vector.broadcast %cst_563 : f32 to vector<8x128xf32>
    %1035 = arith.addf %1033, %1034 : vector<8x128xf32>
    %1036 = vector.extract_strided_slice %1026 {offsets = [0, 128], sizes = [8, 128], strides = [1, 1]} : vector<8x512xf32> to vector<8x128xf32>
    %cst_564 = arith.constant 5.000000e-01 : f32
    %1037 = vector.broadcast %cst_564 : f32 to vector<8x128xf32>
    %1038 = arith.mulf %1037, %1036 : vector<8x128xf32>
    %1039 = math.tanh %1038 : vector<8x128xf32>
    %cst_565 = arith.constant 5.000000e-01 : f32
    %1040 = vector.broadcast %cst_565 : f32 to vector<8x128xf32>
    %1041 = arith.mulf %1040, %1039 : vector<8x128xf32>
    %cst_566 = arith.constant 5.000000e-01 : f32
    %1042 = vector.broadcast %cst_566 : f32 to vector<8x128xf32>
    %1043 = arith.addf %1041, %1042 : vector<8x128xf32>
    %1044 = vector.extract_strided_slice %1026 {offsets = [0, 256], sizes = [8, 128], strides = [1, 1]} : vector<8x512xf32> to vector<8x128xf32>
    %1045 = math.tanh %1044 : vector<8x128xf32>
    %1046 = vector.extract_strided_slice %1026 {offsets = [0, 384], sizes = [8, 128], strides = [1, 1]} : vector<8x512xf32> to vector<8x128xf32>
    %cst_567 = arith.constant 5.000000e-01 : f32
    %1047 = vector.broadcast %cst_567 : f32 to vector<8x128xf32>
    %1048 = arith.mulf %1047, %1046 : vector<8x128xf32>
    %1049 = math.tanh %1048 : vector<8x128xf32>
    %cst_568 = arith.constant 5.000000e-01 : f32
    %1050 = vector.broadcast %cst_568 : f32 to vector<8x128xf32>
    %1051 = arith.mulf %1050, %1049 : vector<8x128xf32>
    %cst_569 = arith.constant 5.000000e-01 : f32
    %1052 = vector.broadcast %cst_569 : f32 to vector<8x128xf32>
    %1053 = arith.addf %1051, %1052 : vector<8x128xf32>
    %1054 = arith.mulf %1043, %1027 : vector<8x128xf32>
    %1055 = arith.mulf %1035, %1045 : vector<8x128xf32>
    %1056 = arith.addf %1054, %1055 : vector<8x128xf32>
    %1057 = math.tanh %1056 : vector<8x128xf32>
    %1058 = arith.mulf %1053, %1057 : vector<8x128xf32>
    %c0_570 = arith.constant 0 : index
    %c0_571 = arith.constant 0 : index
    %1059 = vector.load %arg19[%c0_570, %c0_571] : memref<8x128xf32, #tpu.memory_space<vmem>>, vector<8x128xf32>
    tpu.vector_store %arg19[%c0_570, %c0_571], %1058 {strides = array<i32>} : memref<8x128xf32, #tpu.memory_space<vmem>>, vector<8x128xf32>,
    %c0_572 = arith.constant 0 : index
    %c0_573 = arith.constant 0 : index
    %1060 = vector.load %arg20[%c0_572, %c0_573] : memref<8x128xf32, #tpu.memory_space<vmem>>, vector<8x128xf32>
    tpu.vector_store %arg20[%c0_572, %c0_573], %1056 {strides = array<i32>} : memref<8x128xf32, #tpu.memory_space<vmem>>, vector<8x128xf32>,
    %c7_i32_574 = arith.constant 7 : i32
    %c8_i32_575 = arith.constant 8 : i32
    %1061 = arith.muli %c7_i32_574, %c8_i32_575 : i32
    %1062 = tpu.assume_multiple %1061, 8 : i32
    %1063 = arith.index_cast %1062 : i32 to index
    %c0_576 = arith.constant 0 : index
    %1064 = vector.load %arg16[%1063, %c0_576] : memref<64x512xf32, #tpu.memory_space<vmem>>, vector<8x512xf32>
    %c0_577 = arith.constant 0 : index
    %c0_578 = arith.constant 0 : index
    %1065 = vector.load %arg19[%c0_577, %c0_578] : memref<8x128xf32, #tpu.memory_space<vmem>>, vector<8x128xf32>
    %1066 = arith.truncf %1065 : vector<8x128xf32> to vector<8x128xbf16>
    %c0_579 = arith.constant 0 : index
    %c0_580 = arith.constant 0 : index
    %1067 = vector.load %arg6[%c0_579, %c0_580] : memref<128x512xbf16, #tpu.memory_space<vmem>>, vector<128x512xbf16>
    %cst_581 = arith.constant dense<0.000000e+00> : vector<8x512xf32>
    %1068 = tpu.matmul %1066, %1067, %cst_581 {dimension_numbers = #tpu.dot_dimension_numbers<[1], [0], [0], [1], [0, 0, 1, 1], [], []>} : vector<8x128xbf16>, vector<128x512xbf16>, vector<8x512xf32> -> vector<8x512xf32>
    %1069 = arith.addf %1064, %1068 : vector<8x512xf32>
    %c0_582 = arith.constant 0 : index
    %c0_583 = arith.constant 0 : index
    %1070 = vector.load %arg20[%c0_582, %c0_583] : memref<8x128xf32, #tpu.memory_space<vmem>>, vector<8x128xf32>
    %1071 = vector.extract_strided_slice %1069 {offsets = [0, 0], sizes = [8, 128], strides = [1, 1]} : vector<8x512xf32> to vector<8x128xf32>
    %cst_584 = arith.constant 5.000000e-01 : f32
    %1072 = vector.broadcast %cst_584 : f32 to vector<8x128xf32>
    %1073 = arith.mulf %1072, %1071 : vector<8x128xf32>
    %1074 = math.tanh %1073 : vector<8x128xf32>
    %cst_585 = arith.constant 5.000000e-01 : f32
    %1075 = vector.broadcast %cst_585 : f32 to vector<8x128xf32>
    %1076 = arith.mulf %1075, %1074 : vector<8x128xf32>
    %cst_586 = arith.constant 5.000000e-01 : f32
    %1077 = vector.broadcast %cst_586 : f32 to vector<8x128xf32>
    %1078 = arith.addf %1076, %1077 : vector<8x128xf32>
    %1079 = vector.extract_strided_slice %1069 {offsets = [0, 128], sizes = [8, 128], strides = [1, 1]} : vector<8x512xf32> to vector<8x128xf32>
    %cst_587 = arith.constant 5.000000e-01 : f32
    %1080 = vector.broadcast %cst_587 : f32 to vector<8x128xf32>
    %1081 = arith.mulf %1080, %1079 : vector<8x128xf32>
    %1082 = math.tanh %1081 : vector<8x128xf32>
    %cst_588 = arith.constant 5.000000e-01 : f32
    %1083 = vector.broadcast %cst_588 : f32 to vector<8x128xf32>
    %1084 = arith.mulf %1083, %1082 : vector<8x128xf32>
    %cst_589 = arith.constant 5.000000e-01 : f32
    %1085 = vector.broadcast %cst_589 : f32 to vector<8x128xf32>
    %1086 = arith.addf %1084, %1085 : vector<8x128xf32>
    %1087 = vector.extract_strided_slice %1069 {offsets = [0, 256], sizes = [8, 128], strides = [1, 1]} : vector<8x512xf32> to vector<8x128xf32>
    %1088 = math.tanh %1087 : vector<8x128xf32>
    %1089 = vector.extract_strided_slice %1069 {offsets = [0, 384], sizes = [8, 128], strides = [1, 1]} : vector<8x512xf32> to vector<8x128xf32>
    %cst_590 = arith.constant 5.000000e-01 : f32
    %1090 = vector.broadcast %cst_590 : f32 to vector<8x128xf32>
    %1091 = arith.mulf %1090, %1089 : vector<8x128xf32>
    %1092 = math.tanh %1091 : vector<8x128xf32>
    %cst_591 = arith.constant 5.000000e-01 : f32
    %1093 = vector.broadcast %cst_591 : f32 to vector<8x128xf32>
    %1094 = arith.mulf %1093, %1092 : vector<8x128xf32>
    %cst_592 = arith.constant 5.000000e-01 : f32
    %1095 = vector.broadcast %cst_592 : f32 to vector<8x128xf32>
    %1096 = arith.addf %1094, %1095 : vector<8x128xf32>
    %1097 = arith.mulf %1086, %1070 : vector<8x128xf32>
    %1098 = arith.mulf %1078, %1088 : vector<8x128xf32>
    %1099 = arith.addf %1097, %1098 : vector<8x128xf32>
    %1100 = math.tanh %1099 : vector<8x128xf32>
    %1101 = arith.mulf %1096, %1100 : vector<8x128xf32>
    %c0_593 = arith.constant 0 : index
    %c0_594 = arith.constant 0 : index
    %1102 = vector.load %arg19[%c0_593, %c0_594] : memref<8x128xf32, #tpu.memory_space<vmem>>, vector<8x128xf32>
    tpu.vector_store %arg19[%c0_593, %c0_594], %1101 {strides = array<i32>} : memref<8x128xf32, #tpu.memory_space<vmem>>, vector<8x128xf32>,
    %c0_595 = arith.constant 0 : index
    %c0_596 = arith.constant 0 : index
    %1103 = vector.load %arg20[%c0_595, %c0_596] : memref<8x128xf32, #tpu.memory_space<vmem>>, vector<8x128xf32>
    tpu.vector_store %arg20[%c0_595, %c0_596], %1099 {strides = array<i32>} : memref<8x128xf32, #tpu.memory_space<vmem>>, vector<8x128xf32>,
    %c8_i32_597 = arith.constant 8 : i32
    %c0_598 = arith.constant 0 : index
    %c0_599 = arith.constant 0 : index
    %1104 = vector.load %arg19[%c0_598, %c0_599] : memref<8x128xf32, #tpu.memory_space<vmem>>, vector<8x128xf32>
    %1105 = vector.extract_strided_slice %744 {offsets = [56, 0], sizes = [8, 128], strides = [1, 1]} : vector<64x128xbf16> to vector<8x128xbf16>
    %c0_600 = arith.constant 0 : index
    %c0_601 = arith.constant 0 : index
    %1106 = vector.load %arg8[%c0_600, %c0_601] : memref<256x512xbf16, #tpu.memory_space<vmem>>, vector<128x512xbf16>
    %cst_602 = arith.constant dense<0.000000e+00> : vector<8x512xf32>
    %1107 = tpu.matmul %1105, %1106, %cst_602 {dimension_numbers = #tpu.dot_dimension_numbers<[1], [0], [0], [1], [0, 0, 1, 1], [], []>} : vector<8x128xbf16>, vector<128x512xbf16>, vector<8x512xf32> -> vector<8x512xf32>
    %1108 = vector.extract_strided_slice %746 {offsets = [56, 0], sizes = [8, 128], strides = [1, 1]} : vector<64x128xbf16> to vector<8x128xbf16>
    %c128_603 = arith.constant 128 : index
    %c0_604 = arith.constant 0 : index
    %1109 = vector.load %arg8[%c128_603, %c0_604] : memref<256x512xbf16, #tpu.memory_space<vmem>>, vector<128x512xbf16>
    %cst_605 = arith.constant dense<0.000000e+00> : vector<8x512xf32>
    %1110 = tpu.matmul %1108, %1109, %cst_605 {dimension_numbers = #tpu.dot_dimension_numbers<[1], [0], [0], [1], [0, 0, 1, 1], [], []>} : vector<8x128xbf16>, vector<128x512xbf16>, vector<8x512xf32> -> vector<8x512xf32>
    %1111 = arith.addf %1107, %1110 : vector<8x512xf32>
    %c0_606 = arith.constant 0 : index
    %c0_607 = arith.constant 0 : index
    %1112 = vector.load %arg9[%c0_606, %c0_607] : memref<1x512xf32, #tpu.memory_space<vmem>>, vector<1x512xf32>
    %1113 = vector.broadcast %1112 : vector<1x512xf32> to vector<8x512xf32>
    %1114 = arith.addf %1111, %1113 : vector<8x512xf32>
    %cst_608 = arith.constant 0.000000e+00 : f32
    %1115 = vector.broadcast %cst_608 : f32 to vector<8x128xf32>
    %1116 = vector.extract_strided_slice %1114 {offsets = [0, 0], sizes = [8, 128], strides = [1, 1]} : vector<8x512xf32> to vector<8x128xf32>
    %cst_609 = arith.constant 5.000000e-01 : f32
    %1117 = vector.broadcast %cst_609 : f32 to vector<8x128xf32>
    %1118 = arith.mulf %1117, %1116 : vector<8x128xf32>
    %1119 = math.tanh %1118 : vector<8x128xf32>
    %cst_610 = arith.constant 5.000000e-01 : f32
    %1120 = vector.broadcast %cst_610 : f32 to vector<8x128xf32>
    %1121 = arith.mulf %1120, %1119 : vector<8x128xf32>
    %cst_611 = arith.constant 5.000000e-01 : f32
    %1122 = vector.broadcast %cst_611 : f32 to vector<8x128xf32>
    %1123 = arith.addf %1121, %1122 : vector<8x128xf32>
    %1124 = vector.extract_strided_slice %1114 {offsets = [0, 128], sizes = [8, 128], strides = [1, 1]} : vector<8x512xf32> to vector<8x128xf32>
    %cst_612 = arith.constant 5.000000e-01 : f32
    %1125 = vector.broadcast %cst_612 : f32 to vector<8x128xf32>
    %1126 = arith.mulf %1125, %1124 : vector<8x128xf32>
    %1127 = math.tanh %1126 : vector<8x128xf32>
    %cst_613 = arith.constant 5.000000e-01 : f32
    %1128 = vector.broadcast %cst_613 : f32 to vector<8x128xf32>
    %1129 = arith.mulf %1128, %1127 : vector<8x128xf32>
    %cst_614 = arith.constant 5.000000e-01 : f32
    %1130 = vector.broadcast %cst_614 : f32 to vector<8x128xf32>
    %1131 = arith.addf %1129, %1130 : vector<8x128xf32>
    %1132 = vector.extract_strided_slice %1114 {offsets = [0, 256], sizes = [8, 128], strides = [1, 1]} : vector<8x512xf32> to vector<8x128xf32>
    %1133 = math.tanh %1132 : vector<8x128xf32>
    %1134 = vector.extract_strided_slice %1114 {offsets = [0, 384], sizes = [8, 128], strides = [1, 1]} : vector<8x512xf32> to vector<8x128xf32>
    %cst_615 = arith.constant 5.000000e-01 : f32
    %1135 = vector.broadcast %cst_615 : f32 to vector<8x128xf32>
    %1136 = arith.mulf %1135, %1134 : vector<8x128xf32>
    %1137 = math.tanh %1136 : vector<8x128xf32>
    %cst_616 = arith.constant 5.000000e-01 : f32
    %1138 = vector.broadcast %cst_616 : f32 to vector<8x128xf32>
    %1139 = arith.mulf %1138, %1137 : vector<8x128xf32>
    %cst_617 = arith.constant 5.000000e-01 : f32
    %1140 = vector.broadcast %cst_617 : f32 to vector<8x128xf32>
    %1141 = arith.addf %1139, %1140 : vector<8x128xf32>
    %1142 = arith.mulf %1131, %1115 : vector<8x128xf32>
    %1143 = arith.mulf %1123, %1133 : vector<8x128xf32>
    %1144 = arith.addf %1142, %1143 : vector<8x128xf32>
    %1145 = math.tanh %1144 : vector<8x128xf32>
    %1146 = arith.mulf %1141, %1145 : vector<8x128xf32>
    %1147 = arith.truncf %1104 : vector<8x128xf32> to vector<8x128xbf16>
    %c0_618 = arith.constant 0 : index
    %c0_619 = arith.constant 0 : index
    %1148 = vector.load %arg10[%c0_618, %c0_619] : memref<256x64xbf16, #tpu.memory_space<vmem>>, vector<128x64xbf16>
    %cst_620 = arith.constant dense<0.000000e+00> : vector<8x64xf32>
    %1149 = tpu.matmul %1147, %1148, %cst_620 {dimension_numbers = #tpu.dot_dimension_numbers<[1], [0], [0], [1], [0, 0, 1, 1], [], []>} : vector<8x128xbf16>, vector<128x64xbf16>, vector<8x64xf32> -> vector<8x64xf32>
    %1150 = arith.truncf %1146 : vector<8x128xf32> to vector<8x128xbf16>
    %c128_621 = arith.constant 128 : index
    %c0_622 = arith.constant 0 : index
    %1151 = vector.load %arg10[%c128_621, %c0_622] : memref<256x64xbf16, #tpu.memory_space<vmem>>, vector<128x64xbf16>
    %cst_623 = arith.constant dense<0.000000e+00> : vector<8x64xf32>
    %1152 = tpu.matmul %1150, %1151, %cst_623 {dimension_numbers = #tpu.dot_dimension_numbers<[1], [0], [0], [1], [0, 0, 1, 1], [], []>} : vector<8x128xbf16>, vector<128x64xbf16>, vector<8x64xf32> -> vector<8x64xf32>
    %1153 = arith.addf %1149, %1152 : vector<8x64xf32>
    %c0_624 = arith.constant 0 : index
    %c0_625 = arith.constant 0 : index
    %1154 = vector.load %arg11[%c0_624, %c0_625] : memref<1x64xf32, #tpu.memory_space<vmem>>, vector<1x64xf32>
    %1155 = vector.broadcast %1154 : vector<1x64xf32> to vector<8x64xf32>
    %1156 = arith.addf %1153, %1155 : vector<8x64xf32>
    %cst_626 = arith.constant 0.000000e+00 : f32
    %1157 = vector.broadcast %cst_626 : f32 to vector<8x64xf32>
    %1158 = arith.maximumf %1156, %1157 : vector<8x64xf32>
    %1159 = arith.truncf %1158 : vector<8x64xf32> to vector<8x64xbf16>
    %c0_627 = arith.constant 0 : index
    %c0_628 = arith.constant 0 : index
    %1160 = vector.load %arg12[%c0_627, %c0_628] : memref<64x3xbf16, #tpu.memory_space<vmem>>, vector<64x3xbf16>
    %cst_629 = arith.constant dense<0.000000e+00> : vector<8x3xf32>
    %1161 = tpu.matmul %1159, %1160, %cst_629 {dimension_numbers = #tpu.dot_dimension_numbers<[1], [0], [0], [1], [0, 0, 1, 1], [], []>} : vector<8x64xbf16>, vector<64x3xbf16>, vector<8x3xf32> -> vector<8x3xf32>
    %c0_630 = arith.constant 0 : index
    %c0_631 = arith.constant 0 : index
    %1162 = vector.load %arg13[%c0_630, %c0_631] : memref<1x3xf32, #tpu.memory_space<vmem>>, vector<1x3xf32>
    %1163 = vector.broadcast %1162 : vector<1x3xf32> to vector<8x3xf32>
    %1164 = arith.addf %1161, %1163 : vector<8x3xf32>
    %c0_632 = arith.constant 0 : index
    %c0_633 = arith.constant 0 : index
    %1165 = vector.load %arg14[%c0_632, %c0_633] : memref<8x3xf32, #tpu.memory_space<vmem>>, vector<8x3xf32>
    tpu.vector_store %arg14[%c0_632, %c0_633], %1164 {strides = array<i32>} : memref<8x3xf32, #tpu.memory_space<vmem>>, vector<8x3xf32>,
    return
  }
}

</mosaic_0001>

<bundles_post_ra>
// kernel: tpu_custom_call.1
= control target key start
LH: loop header
LB: loop body
LE: loop exit
PB: predicated region body
PF: predicated region fallthrough
CT: control target
= control target key end

     0   :  { %19 = vsyncpa [#allocation11], 0  ;;  %s14868_s0 = inlined_call_operand.vmem [shape: bf16[64,192], index: 0, kind: input, shape index: {}]   ;;  %s14869_s1 = inlined_call_operand.hbm [shape: bf16[192,1024], index: 1, kind: input, shape index: {}]   ;;  %s14870_s2 = inlined_call_operand.hbm [shape: bf16[128,512], index: 2, kind: input, shape index: {}]   ;;  %s14871_s3 = inlined_call_operand.hbm [shape: bf16[128,512], index: 3, kind: input, shape index: {}]   ;;  %s14872_s4 = inlined_call_operand.vmem [shape: f32[1,1024], index: 4, kind: input, shape index: {}]   ;;  %s14873_s5 = inlined_call_operand.hbm [shape: bf16[256,512], index: 5, kind: input, shape index: {}]   ;;  %s14874_s6 = inlined_call_operand.hbm [shape: bf16[128,512], index: 6, kind: input, shape index: {}]   ;;  %s14875_s7 = inlined_call_operand.vmem [shape: f32[1,512], index: 7, kind: input, shape index: {}]   ;;  %s14876_s8 = inlined_call_operand.hbm [shape: bf16[256,512], index: 8, kind: input, shape index: {}]   ;;  %s14877_s9 = inlined_call_operand.vmem [shape: f32[1,512], index: 9, kind: input, shape index: {}]   ;;  %s14878_s10 = inlined_call_operand.vmem [shape: bf16[256,64], index: 10, kind: input, shape index: {}]   ;;  %s14879_s11 = inlined_call_operand.vmem [shape: f32[1,64], index: 11, kind: input, shape index: {}]   ;;  %s14880_s12 = inlined_call_operand.vmem [shape: bf16[64,3], index: 12, kind: input, shape index: {}]   ;;  %s14881_s13 = inlined_call_operand.vmem [shape: f32[1,3], index: 13, kind: input, shape index: {}]   ;;  %s14882_s14 = inlined_call_operand.vmem [shape: f32[8,3], index: 14, kind: output, shape index: {}]  }
   0x1   :  { %20 = vsyncpa [#allocation13], 0 }
   0x2   :  { %21 = vsyncpa [#allocation16], 0 }
   0x3   :  { %22 = vsyncpa [#allocation19], 0  ;;  %s12540_s29 = smov [#allocation12]  }
   0x4   :  { %s42_s30 = sshll.u32 %s12540_s29, 4  ;;  %s43_s30 = int_to_ptr.vmem [resolvable:$true] %s42_s30 }
   0x5   :  { %s12420_s15 = scalar_lea.vmem %s43_s30, 4096  ;;  %p12425_p1 = scmp.lt.s32.totalorder %s43_s30, %s43_s30 }
   0x6   :  { %p12421_p0 = scmp.ne.s32.totalorder %s43_s30, %s12420_s15  ;;  %p12426_p2 = scmp.lt.s32.totalorder %s12420_s15, %s12420_s15 }
   0x8   :  { %p12427_p3 = por %p12426_p2, %p12425_p1 }
   0xa   :  { %p12428_p4 = pnand %p12427_p3, %p12421_p0 }
   0xc   :  { %12431 = shalt.err (!%p12428_p4)
}
   0xd   :  { %s12541_s16 = smov 256   ;;  %s12542_s17 = smov 16  }
   0xe   :  { %48 = dma.hbm_to_vmem [thread:$0]  %s14870_s2, 4096, %s43_s30, [#allocation13], %s12541_s16, %s12541_s16, %s12542_s17  }
   0xf   :  { %s12543_s20 = smov [#allocation15]   ;;  %s12544_s22 = smov [#allocation10]  }
  0x10   :  { %s68_s21 = sshll.u32 %s12543_s20, 4  ;;  %s30_s23 = sshll.u32 %s12544_s22, 4  ;;  %s69_s21 = int_to_ptr.vmem [resolvable:$true] %s68_s21  ;;  %s31_s23 = int_to_ptr.vmem [resolvable:$true] %s30_s23 }
  0x11   :  { %s12440_s24 = scalar_lea.vmem %s69_s21, 8192  ;;  %p12445_p6 = scmp.lt.s32.totalorder %s69_s21, %s69_s21 }
  0x12   :  { %p12441_p5 = scmp.ne.s32.totalorder %s69_s21, %s12440_s24  ;;  %p12446_p7 = scmp.lt.s32.totalorder %s12440_s24, %s12440_s24 }
  0x14   :  { %p12447_p8 = por %p12446_p7, %p12445_p6 }
  0x16   :  { %p12448_p9 = pnand %p12447_p8, %p12441_p5 }
  0x18   :  { %12451 = shalt.err (!%p12448_p9)
}
  0x19   :  { %74 = dma.hbm_to_vmem [thread:$0]  %s14873_s5, 8192, %s69_s21, [#allocation16], %s12541_s16, %s12541_s16, %s12542_s17  }
  0x1a   :  { %s12460_s2 = scalar_lea.vmem %s31_s23, 12288  ;;  %p12465_p11 = scmp.lt.s32.totalorder %s31_s23, %s31_s23 }
  0x1b   :  { %p12461_p10 = scmp.ne.s32.totalorder %s31_s23, %s12460_s2  ;;  %p12466_p12 = scmp.lt.s32.totalorder %s12460_s2, %s12460_s2 }
  0x1d   :  { %p12467_p13 = por %p12466_p12, %p12465_p11 }
  0x1f   :  { %p12468_p0 = pnand %p12467_p13, %p12461_p10 }
  0x21   :  { %12471 = shalt.err (!%p12468_p0)
}
  0x22   :  { %s12545_s27 = smov 512   ;;  %s12546_s28 = smov 32  }
  0x23   :  { %36 = dma.hbm_to_vmem [thread:$0]  %s14869_s1, 12288, %s31_s23, [#allocation11], %s12545_s27, %s12545_s27, %s12546_s28  }
  0x24   :  { %s12547_s15 = smov [#allocation14]   ;;  %s12548_s19 = smov [#allocation17]  }
  0x25   :  { %s54_s18 = sshll.u32 %s12547_s15, 4  ;;  %s80_s20 = sshll.u32 %s12548_s19, 4  ;;  %s55_s18 = int_to_ptr.vmem [resolvable:$true] %s54_s18  ;;  %s81_s20 = int_to_ptr.vmem [resolvable:$true] %s80_s20 }
  0x26   :  { %s12480_s5 = scalar_lea.vmem %s55_s18, 4096  ;;  %p12485_p2 = scmp.lt.s32.totalorder %s55_s18, %s55_s18 }
  0x27   :  { %p12481_p1 = scmp.ne.s32.totalorder %s55_s18, %s12480_s5  ;;  %p12486_p3 = scmp.lt.s32.totalorder %s12480_s5, %s12480_s5 }
  0x29   :  { %p12487_p4 = por %p12486_p3, %p12485_p2 }
  0x2b   :  { %p12488_p5 = pnand %p12487_p4, %p12481_p1 }
  0x2d   :  { %12491 = shalt.err (!%p12488_p5)
}
  0x2e   :  { %60 = dma.hbm_to_vmem [thread:$0]  %s14871_s3, 4096, %s55_s18, [#allocation13], %s12541_s16, %s12541_s16, %s12542_s17  }
  0x2f   :  { %s12500_s1 = scalar_lea.vmem %s81_s20, 4096  ;;  %p12505_p7 = scmp.lt.s32.totalorder %s81_s20, %s81_s20 }
  0x30   :  { %p12501_p6 = scmp.ne.s32.totalorder %s81_s20, %s12500_s1  ;;  %p12506_p8 = scmp.lt.s32.totalorder %s12500_s1, %s12500_s1 }
  0x32   :  { %p12507_p9 = por %p12506_p8, %p12505_p7 }
  0x34   :  { %p12508_p10 = pnand %p12507_p9, %p12501_p6 }
  0x36   :  { %12511 = shalt.err (!%p12508_p10)
}
  0x37   :  { %86 = dma.hbm_to_vmem [thread:$0]  %s14874_s6, 4096, %s81_s20, [#allocation16], %s12541_s16, %s12541_s16, %s12542_s17  }
  0x38   :  { %s12549_s25 = smov [#allocation18]  }
  0x39   :  { %s94_s26 = sshll.u32 %s12549_s25, 4  ;;  %s95_s26 = int_to_ptr.vmem [resolvable:$true] %s94_s26 }
  0x3a   :  { %s12520_s2 = scalar_lea.vmem %s95_s26, 8192  ;;  %p12525_p12 = scmp.lt.s32.totalorder %s95_s26, %s95_s26 }
  0x3b   :  { %p12521_p11 = scmp.ne.s32.totalorder %s95_s26, %s12520_s2  ;;  %p12526_p13 = scmp.lt.s32.totalorder %s12520_s2, %s12520_s2 }
  0x3d   :  { %p12527_p0 = por %p12526_p13, %p12525_p12 }
  0x3f   :  { %p12528_p1 = pnand %p12527_p0, %p12521_p11 }
  0x41   :  { %12531 = shalt.err (!%p12528_p1)
}
  0x42   :  { %100 = dma.hbm_to_vmem [thread:$0]  %s14876_s8, 8192, %s95_s26, [#allocation19], %s12541_s16, %s12541_s16, %s12542_s17  }
  0x43   :  { %12532 = dma.done.wait [#allocation11], 12288  }
  0x44   :  { %12533 = vsyncadd [#allocation11], 4294955008 }
  0x45   :  { %12534 = dma.done.wait [#allocation13], 8192  }
  0x46   :  { %12535 = vsyncadd [#allocation13], 4294959104 }
  0x47   :  { %12536 = dma.done.wait [#allocation16], 12288  }
  0x48   :  { %12537 = vsyncadd [#allocation16], 4294955008 }
  0x49   :  { %12538 = dma.done.wait [#allocation19], 8192  }
  0x4a   :  { %12539 = vsyncadd [#allocation19], 4294959104  ;;  %v194_v0 = vld [vmem:[#allocation10 + $0x1c0] sm:$0xff]  ;;  %v195_v2 = vld [vmem:[#allocation10 + $0x1c8] sm:$0xff]  ;;  %vm792_vm0 = vcmask 523264   ;;  %vm12553_vm1 = vmmov 0  }
  0x4b   :  { %v198_v1 = vld [vmem:[#allocation10 + $0x1e0] sm:$0xff]  ;;  %v199_v4 = vld [vmem:[#allocation10 + $0x1e8] sm:$0xff]  ;;  %vm10252_vm2 = vcmask 23552  }
  0x4c   :  { %v10341_v3 = vcombine.high %v194_v0, %v198_v1  ;;  %v10340_v5 = vcombine.low %v194_v0, %v198_v1  ;;  %v186_v6 = vld [vmem:[#allocation10 + $0x180] sm:$0xff]  ;;  %v10343_v8 = vcombine.high %v195_v2, %v199_v4  ;;  %v10342_v9 = vcombine.low %v195_v2, %v199_v4  ;;  %v187_v11 = vld [vmem:[#allocation10 + $0x188] sm:$0xff] }
  0x4d   :  { %v190_v7 = vld [vmem:[#allocation10 + $0x1a0] sm:$0xff]  ;;  %v191_v12 = vld [vmem:[#allocation10 + $0x1a8] sm:$0xff] }
  0x4e   :  { %v10333_v10 = vcombine.high %v186_v6, %v190_v7  ;;  %v178_v13 = vld [vmem:[#allocation10 + $0x140] sm:$0xff]  ;;  %805 = vmatprep.subr.bf16.mxu0 %v10341_v3  ;;  %v10335_v14 = vcombine.high %v187_v11, %v191_v12  ;;  %v179_v16 = vld [vmem:[#allocation10 + $0x148] sm:$0xff]  ;;  %878 = vmatprep.subr.bf16.mxu1 %v10343_v8  ;;  %v10332_v18 = vcombine.low %v186_v6, %v190_v7 }
  0x4f   :  { %v182_v15 = vld [vmem:[#allocation10 + $0x160] sm:$0xff]  ;;  %v183_v17 = vld [vmem:[#allocation10 + $0x168] sm:$0xff]  ;;  %806 = vmatpush1.bf16.msra.mxu0 %v10340_v5  ;;  %879 = vmatpush1.bf16.msra.mxu1 %v10342_v9  ;;  %v10334_v19 = vcombine.low %v187_v11, %v191_v12 }
  0x50   :  { %807 = vmatprep.subr.bf16.mxu0 %v10333_v10  ;;  %v10325_v20 = vcombine.high %v178_v13, %v182_v15  ;;  %880 = vmatprep.subr.bf16.mxu1 %v10335_v14  ;;  %v10327_v21 = vcombine.high %v179_v16, %v183_v17  ;;  %v170_v22 = vld [vmem:[#allocation10 + $0x100] sm:$0xff]  ;;  %v171_v24 = vld [vmem:[#allocation10 + $0x108] sm:$0xff]  ;;  %v10324_v26 = vcombine.low %v178_v13, %v182_v15 }
  0x51   :  { %v174_v23 = vld [vmem:[#allocation10 + $0x120] sm:$0xff]  ;;  %v175_v25 = vld [vmem:[#allocation10 + $0x128] sm:$0xff]  ;;  %v10326_v27 = vcombine.low %v179_v16, %v183_v17 }
  0x52   :  { %v10317_v28 = vcombine.high %v170_v22, %v174_v23  ;;  %v10319_v29 = vcombine.high %v171_v24, %v175_v25  ;;  %v162_v30 = vld [vmem:[#allocation10 + $0xc0] sm:$0xff]  ;;  %v163_v32 = vld [vmem:[#allocation10 + $0xc8] sm:$0xff]  ;;  %v10316_v34 = vcombine.low %v170_v22, %v174_v23  ;;  %v10318_v35 = vcombine.low %v171_v24, %v175_v25 }
  0x53   :  { %808 = vmatpush1.bf16.msra.mxu0 %v10332_v18  ;;  %881 = vmatpush1.bf16.msra.mxu1 %v10334_v19  ;;  %v166_v31 = vld [vmem:[#allocation10 + $0xe0] sm:$0xff]  ;;  %v167_v33 = vld [vmem:[#allocation10 + $0xe8] sm:$0xff] }
  0x54   :  { %809 = vmatprep.subr.bf16.mxu0 %v10325_v20  ;;  %882 = vmatprep.subr.bf16.mxu1 %v10327_v21  ;;  %v10309_v36 = vcombine.high %v162_v30, %v166_v31  ;;  %v10311_v37 = vcombine.high %v163_v32, %v167_v33  ;;  %v154_v38 = vld [vmem:[#allocation10 + $0x80] sm:$0xff]  ;;  %v155_v40 = vld [vmem:[#allocation10 + $0x88] sm:$0xff]  ;;  %v10308_v42 = vcombine.low %v162_v30, %v166_v31  ;;  %v196_v31 = vld [vmem:[#allocation10 + $0x1d0] sm:$0xff] }
  0x55   :  { %v158_v39 = vld [vmem:[#allocation10 + $0xa0] sm:$0xff]  ;;  %v159_v41 = vld [vmem:[#allocation10 + $0xa8] sm:$0xff]  ;;  %v10310_v44 = vcombine.low %v163_v32, %v167_v33  ;;  %v200_v32 = vld [vmem:[#allocation10 + $0x1f0] sm:$0xff] }
  0x56   :  { %v12665_v43 = vld [vmem:[%s14868_s0 + $0x4] ss:$8 sps:$4 sm:$0xff]   ;;  %v10301_v45 = vcombine.high %v154_v38, %v158_v39  ;;  %v10303_v46 = vcombine.high %v155_v40, %v159_v41  ;;  %v10300_v51 = vcombine.low %v154_v38, %v158_v39  ;;  %v10302_v52 = vcombine.low %v155_v40, %v159_v41  ;;  %v197_v33 = vld [vmem:[#allocation10 + $0x1d8] sm:$0xff]  ;;  %v188_v40 = vld [vmem:[#allocation10 + $0x190] sm:$0xff] }
  0x57   :  { %810 = vmatpush1.bf16.msra.mxu0 %v10324_v26  ;;  %883 = vmatpush1.bf16.msra.mxu1 %v10326_v27  ;;  %v146_v47 = vld [vmem:[#allocation10 + $0x40] sm:$0xff]  ;;  %v147_v49 = vld [vmem:[#allocation10 + $0x48] sm:$0xff]  ;;  %v10345_v38 = vcombine.high %v196_v31, %v200_v32  ;;  %v192_v41 = vld [vmem:[#allocation10 + $0x1b0] sm:$0xff] }
  0x58   :  { %811 = vmatprep.subr.bf16.mxu0 %v10317_v28  ;;  %884 = vmatprep.subr.bf16.mxu1 %v10319_v29  ;;  %v150_v48 = vld [vmem:[#allocation10 + $0x60] sm:$0xff]  ;;  %v151_v50 = vld [vmem:[#allocation10 + $0x68] sm:$0xff] }
  0x59   :  { %10380 = vmatprep.mubr.msk.bf16.mxu0 %vm792_vm0, %v12665_v43  ;;  %10384 = vmatprep.mubr.msk.bf16.mxu1 %vm792_vm0, %v12665_v43  ;;  %v10293_v53 = vcombine.high %v146_v47, %v150_v48  ;;  %v10295_v54 = vcombine.high %v147_v49, %v151_v50  ;;  %v138_v55 = vld [vmem:[#allocation10] sm:$0xff]  ;;  %v139_v57 = vld [vmem:[#allocation10 + $0x8] sm:$0xff]  ;;  %v10292_v59 = vcombine.low %v146_v47, %v150_v48  ;;  %v180_v48 = vld [vmem:[#allocation10 + $0x150] sm:$0xff] }
  0x5a   :  { %v142_v56 = vld [vmem:[#allocation10 + $0x20] sm:$0xff]  ;;  %v143_v58 = vld [vmem:[#allocation10 + $0x28] sm:$0xff]  ;;  %v10294_v60 = vcombine.low %v147_v49, %v151_v50  ;;  %v10337_v47 = vcombine.high %v188_v40, %v192_v41  ;;  %v184_v50 = vld [vmem:[#allocation10 + $0x170] sm:$0xff] }
  0x5b   :  { %812 = vmatpush1.bf16.msra.mxu0 %v10316_v34  ;;  %885 = vmatpush1.bf16.msra.mxu1 %v10318_v35  ;;  %v10285_v61 = vcombine.high %v138_v55, %v142_v56  ;;  %v10287_v62 = vcombine.high %v139_v57, %v143_v58  ;;  %v226_v63 = vld [vmem:[#allocation10 + $0x2c0] sm:$0xff]  ;;  %v227_v1 = vld [vmem:[#allocation10 + $0x2c8] sm:$0xff]  ;;  %v10284_v3 = vcombine.low %v138_v55, %v142_v56  ;;  %v201_v34 = vld [vmem:[#allocation10 + $0x1f8] sm:$0xff] }
  0x5c   :  { %813 = vmatprep.subr.bf16.mxu0 %v10309_v36  ;;  %886 = vmatprep.subr.bf16.mxu1 %v10311_v37  ;;  %v230_v0 = vld [vmem:[#allocation10 + $0x2e0] sm:$0xff]  ;;  %v231_v2 = vld [vmem:[#allocation10 + $0x2e8] sm:$0xff]  ;;  %v10286_v4 = vcombine.low %v139_v57, %v143_v58  ;;  %v10347_v39 = vcombine.high %v197_v33, %v201_v34  ;;  %v10329_v56 = vcombine.high %v180_v48, %v184_v50  ;;  %v172_v57 = vld [vmem:[#allocation10 + $0x110] sm:$0xff] }
  0x5d   :  { %v10373_v5 = vcombine.high %v226_v63, %v230_v0  ;;  %v10375_v6 = vcombine.high %v227_v1, %v231_v2  ;;  %v218_v7 = vld [vmem:[#allocation10 + $0x280] sm:$0xff]  ;;  %v219_v9 = vld [vmem:[#allocation10 + $0x288] sm:$0xff]  ;;  %v10372_v11 = vcombine.low %v226_v63, %v230_v0  ;;  %v10374_v12 = vcombine.low %v227_v1, %v231_v2  ;;  %v164_v2 = vld [vmem:[#allocation10 + $0xd0] sm:$0xff] }
  0x5e   :  { %v222_v8 = vld [vmem:[#allocation10 + $0x2a0] sm:$0xff]  ;;  %v223_v10 = vld [vmem:[#allocation10 + $0x2a8] sm:$0xff]  ;;  %v10328_v63 = vcombine.low %v180_v48, %v184_v50  ;;  %v224_v50 = vld [vmem:[#allocation10 + $0x2b0] sm:$0xff] }
  0x5f   :  { %814 = vmatpush1.bf16.msra.mxu0 %v10308_v42  ;;  %887 = vmatpush1.bf16.msra.mxu1 %v10310_v44  ;;  %v10365_v13 = vcombine.high %v218_v7, %v222_v8  ;;  %v10367_v14 = vcombine.high %v219_v9, %v223_v10  ;;  %v210_v15 = vld [vmem:[#allocation10 + $0x240] sm:$0xff]  ;;  %v211_v17 = vld [vmem:[#allocation10 + $0x248] sm:$0xff]  ;;  %v10364_v19 = vcombine.low %v218_v7, %v222_v8  ;;  %v189_v42 = vld [vmem:[#allocation10 + $0x198] sm:$0xff] }
  0x60   :  { %815 = vmatprep.subr.bf16.mxu0 %v10301_v45  ;;  %888 = vmatprep.subr.bf16.mxu1 %v10303_v46  ;;  %v214_v16 = vld [vmem:[#allocation10 + $0x260] sm:$0xff]  ;;  %v215_v18 = vld [vmem:[#allocation10 + $0x268] sm:$0xff]  ;;  %v10366_v20 = vcombine.low %v219_v9, %v223_v10  ;;  %v193_v44 = vld [vmem:[#allocation10 + $0x1b8] sm:$0xff]  ;;  %v10344_v45 = vcombine.low %v196_v31, %v200_v32  ;;  %v10346_v46 = vcombine.low %v197_v33, %v201_v34 }
  0x61   :  { %v10357_v21 = vcombine.high %v210_v15, %v214_v16  ;;  %v10359_v22 = vcombine.high %v211_v17, %v215_v18  ;;  %v202_v23 = vld [vmem:[#allocation10 + $0x200] sm:$0xff]  ;;  %v203_v25 = vld [vmem:[#allocation10 + $0x208] sm:$0xff]  ;;  %v10356_v27 = vcombine.low %v210_v15, %v214_v16  ;;  %v10358_v28 = vcombine.low %v211_v17, %v215_v18  ;;  %v169_v7 = vld [vmem:[#allocation10 + $0xf8] sm:$0xff] }
  0x62   :  { %v206_v24 = vld [vmem:[#allocation10 + $0x220] sm:$0xff]  ;;  %v207_v26 = vld [vmem:[#allocation10 + $0x228] sm:$0xff]  ;;  %v10339_v49 = vcombine.high %v189_v42, %v193_v44  ;;  %v10338_v55 = vcombine.low %v189_v42, %v193_v44  ;;  %v161_v15 = vld [vmem:[#allocation10 + $0xb8] sm:$0xff] }
  0x63   :  { %816 = vmatpush1.bf16.msra.mxu0 %v10300_v51  ;;  %889 = vmatpush1.bf16.msra.mxu1 %v10302_v52  ;;  %v10349_v29 = vcombine.high %v202_v23, %v206_v24  ;;  %v10351_v30 = vcombine.high %v203_v25, %v207_v26  ;;  %v10348_v35 = vcombine.low %v202_v23, %v206_v24  ;;  %v12674_v37 = vld [vmem:[%s14868_s0] ss:$8 sps:$4 sm:$0xff]   ;;  %v12679_v51 = vld [vmem:[%s14868_s0 + $0x14] ss:$8 sps:$4 sm:$0xff]   ;;  %v12720_v34 = vld [vmem:[%s14868_s0 + $0x30] ss:$8 sps:$4 sm:$0xff]  }
  0x64   :  { %817 = vmatprep.subr.bf16.mxu0 %v10293_v53  ;;  %890 = vmatprep.subr.bf16.mxu1 %v10295_v54  ;;  %v10350_v36 = vcombine.low %v203_v25, %v207_v26  ;;  %v181_v52 = vld [vmem:[#allocation10 + $0x158] sm:$0xff]  ;;  %v10336_v54 = vcombine.low %v188_v40, %v192_v41  ;;  %v12704_v16 = vld [vmem:[%s14868_s0 + $0x20] ss:$8 sps:$4 sm:$0xff]   ;;  %v144_v31 = vld [vmem:[#allocation10 + $0x30] sm:$0xff] }
  0x65   :  { %v185_v53 = vld [vmem:[#allocation10 + $0x178] sm:$0xff]  ;;  %v228_v40 = vld [vmem:[#allocation10 + $0x2d0] sm:$0xff] }
  0x66   :  { %v10331_v58 = vcombine.high %v181_v52, %v185_v53  ;;  %v10330_v0 = vcombine.low %v181_v52, %v185_v53  ;;  %v12711_v23 = vld [vmem:[%s14868_s0 + $0x34] ss:$8 sps:$4 sm:$0xff]  }
  0x67   :  { %818 = vmatpush1.bf16.msra.mxu0 %v10292_v59  ;;  %891 = vmatpush1.bf16.msra.mxu1 %v10294_v60  ;;  %v176_v59 = vld [vmem:[#allocation10 + $0x130] sm:$0xff]  ;;  %v173_v60 = vld [vmem:[#allocation10 + $0x118] sm:$0xff] }
  0x68   :  { %819 = vmatprep.subr.bf16.mxu0 %v10285_v61  ;;  %892 = vmatprep.subr.bf16.mxu1 %v10287_v62  ;;  %v177_v61 = vld [vmem:[#allocation10 + $0x138] sm:$0xff]  ;;  %v10321_v1 = vcombine.high %v172_v57, %v176_v59  ;;  %v10320_v8 = vcombine.low %v172_v57, %v176_v59  ;;  %v232_v41 = vld [vmem:[#allocation10 + $0x2f0] sm:$0xff] }
  0x69   :  { %v12688_v62 = vld [vmem:[%s14868_s0 + $0x10] ss:$8 sps:$4 sm:$0xff]   ;;  %v10322_v9 = vcombine.low %v173_v60, %v177_v61 }
  0x6a   :  { %v149_v24 = vld [vmem:[#allocation10 + $0x58] sm:$0xff] }
  0x6b   :  { %820 = vmatpush1.bf16.msra.mxu0 %v10284_v3  ;;  %893 = vmatpush1.bf16.msra.mxu1 %v10286_v4  ;;  %v10323_v3 = vcombine.high %v173_v60, %v177_v61  ;;  %v168_v4 = vld [vmem:[#allocation10 + $0xf0] sm:$0xff]  ;;  %v153_v25 = vld [vmem:[#allocation10 + $0x78] sm:$0xff] }
  0x6c   :  { %829 = vmatprep.subr.bf16.mxu0 %v10373_v5  ;;  %902 = vmatprep.subr.bf16.mxu1 %v10375_v6  ;;  %v12695_v5 = vld [vmem:[%s14868_s0 + $0x24] ss:$8 sps:$4 sm:$0xff]   ;;  %v165_v6 = vld [vmem:[#allocation10 + $0xd8] sm:$0xff]  ;;  %v10313_v10 = vcombine.high %v164_v2, %v168_v4  ;;  %v10312_v17 = vcombine.low %v164_v2, %v168_v4 }
  0x6d   :  { %v10314_v18 = vcombine.low %v165_v6, %v169_v7  ;;  %v141_v32 = vld [vmem:[#allocation10 + $0x18] sm:$0xff] }
  0x6e   :  { %v145_v33 = vld [vmem:[#allocation10 + $0x38] sm:$0xff] }
  0x6f   :  { %830 = vmatpush2.bf16.msra.mxu0 %v10372_v11  ;;  %903 = vmatpush2.bf16.msra.mxu1 %v10374_v12  ;;  %v156_v11 = vld [vmem:[#allocation10 + $0x90] sm:$0xff]  ;;  %v10315_v12 = vcombine.high %v165_v6, %v169_v7  ;;  %v229_v42 = vld [vmem:[#allocation10 + $0x2d8] sm:$0xff] }
  0x70   :  { %831 = vmatprep.subr.bf16.mxu0 %v10365_v13  ;;  %904 = vmatprep.subr.bf16.mxu1 %v10367_v14  ;;  %v160_v13 = vld [vmem:[#allocation10 + $0xb0] sm:$0xff]  ;;  %v157_v14 = vld [vmem:[#allocation10 + $0x98] sm:$0xff] }
  0x71   :  { %v10304_v26 = vcombine.low %v156_v11, %v160_v13  ;;  %v233_v44 = vld [vmem:[#allocation10 + $0x2f8] sm:$0xff] }
  0x72   :  { %v10379_v48 = vcombine.high %v229_v42, %v233_v44  ;;  %v221_v52 = vld [vmem:[#allocation10 + $0x298] sm:$0xff]  ;;  %v10378_v57 = vcombine.low %v229_v42, %v233_v44  ;;  %v12834_v42 = vld [vmem:[#allocation12] ss:$16 sps:$4 sm:$0xff]  }
  0x73   :  { %832 = vmatpush2.bf16.msra.mxu0 %v10364_v19  ;;  %905 = vmatpush2.bf16.msra.mxu1 %v10366_v20  ;;  %v10305_v19 = vcombine.high %v156_v11, %v160_v13  ;;  %v148_v20 = vld [vmem:[#allocation10 + $0x50] sm:$0xff]  ;;  %v225_v53 = vld [vmem:[#allocation10 + $0x2b8] sm:$0xff] }
  0x74   :  { %833 = vmatprep.subr.bf16.mxu0 %v10357_v21  ;;  %906 = vmatprep.subr.bf16.mxu1 %v10359_v22  ;;  %v10307_v21 = vcombine.high %v157_v14, %v161_v15  ;;  %v152_v22 = vld [vmem:[#allocation10 + $0x70] sm:$0xff]  ;;  %v213_v59 = vld [vmem:[#allocation10 + $0x258] sm:$0xff]  ;;  %v10371_v61 = vcombine.high %v221_v52, %v225_v53  ;;  %v10370_v2 = vcombine.low %v221_v52, %v225_v53  ;;  %v14883_v52 = vmov 0.0|0.0  }
  0x75   :  { %v217_v60 = vld [vmem:[#allocation10 + $0x278] sm:$0xff]  ;;  %v12730_v11 = vld [vmem:[#allocation12 + $0xe4] ss:$16 sps:$4 sm:$0xff]  }
  0x76   :  { %v209_v4 = vld [vmem:[#allocation10 + $0x238] sm:$0xff]  ;;  %v10363_v6 = vcombine.high %v213_v59, %v217_v60 }
  0x77   :  { %834 = vmatpush2.bf16.msra.mxu0 %v10356_v27  ;;  %907 = vmatpush2.bf16.msra.mxu1 %v10358_v28  ;;  %v10306_v27 = vcombine.low %v157_v14, %v161_v15  ;;  %v10297_v28 = vcombine.high %v148_v20, %v152_v22  ;;  %v12732_v13 = vld [vmem:[#allocation12 + $0xec] ss:$16 sps:$4 sm:$0xff]   ;;  %v12734_v15 = vld [vmem:[#allocation12 + $0xe0] ss:$16 sps:$4 sm:$0xff]   ;;  %v12837_v44 = vld [vmem:[#allocation12 + $0x8] ss:$16 sps:$4 sm:$0xff]  }
  0x78   :  { %835 = vmatprep.subr.bf16.mxu0 %v10349_v29  ;;  %908 = vmatprep.subr.bf16.mxu1 %v10351_v30  ;;  %v140_v29 = vld [vmem:[#allocation10 + $0x10] sm:$0xff]  ;;  %v10299_v30 = vcombine.high %v149_v24, %v153_v25  ;;  %v11473_v53 = vld [vmem:[#allocation14 + $0xc8] ss:$16 sps:$4 sm:$0xff]  }
  0x7b   :  { %836 = vmatpush2.bf16.msra.mxu0 %v10348_v35  ;;  %909 = vmatpush2.bf16.msra.mxu1 %v10350_v36  ;;  %v10296_v35 = vcombine.low %v148_v20, %v152_v22  ;;  %v10298_v36 = vcombine.low %v149_v24, %v153_v25  ;;  %v12744_v20 = vld [vmem:[#allocation12 + $0xc0] ss:$16 sps:$4 sm:$0xff]   ;;  %v12749_v22 = vld [vmem:[#allocation12 + $0xa4] ss:$16 sps:$4 sm:$0xff]   ;;  %v12753_v24 = vld [vmem:[#allocation12 + $0xac] ss:$16 sps:$4 sm:$0xff]  }
  0x7c   :  { %951 = vmatprep.subr.bf16.mxu0 %v10345_v38  ;;  %1024 = vmatprep.subr.bf16.mxu1 %v10347_v39  ;;  %v10289_v38 = vcombine.high %v140_v29, %v144_v31  ;;  %v10291_v39 = vcombine.high %v141_v32, %v145_v33  ;;  %v12760_v25 = vld [vmem:[#allocation12 + $0xa0] ss:$16 sps:$4 sm:$0xff]  }
  0x7e   :  { %838 = vmatmul.mubr.bf16.vlgmr.msra.gmra.mxu0 %v12674_v37  ;;  %911 = vmatmul.mubr.bf16.vlgmr.msra.gmra.mxu1 %v12674_v37 }
  0x7f   :  { %952 = vmatpush1.bf16.msra.mxu0 %v10344_v45  ;;  %1025 = vmatpush1.bf16.msra.mxu1 %v10346_v46  ;;  %v10288_v45 = vcombine.low %v140_v29, %v144_v31  ;;  %v10290_v46 = vcombine.low %v141_v32, %v145_v33  ;;  %v12777_v29 = vld [vmem:[#allocation12 + $0x88] ss:$16 sps:$4 sm:$0xff]   ;;  %v12790_v31 = vld [vmem:[#allocation12 + $0x60] ss:$16 sps:$4 sm:$0xff]   ;;  %v12799_v33 = vld [vmem:[#allocation12 + $0x4c] ss:$16 sps:$4 sm:$0xff]  }
  0x80   :  { %953 = vmatprep.subr.bf16.mxu0 %v10337_v47  ;;  %1026 = vmatprep.subr.bf16.mxu1 %v10339_v49  ;;  %v10377_v47 = vcombine.high %v228_v40, %v232_v41  ;;  %v220_v49 = vld [vmem:[#allocation10 + $0x290] sm:$0xff]  ;;  %v12794_v32 = vld [vmem:[#allocation12 + $0x68] ss:$16 sps:$4 sm:$0xff]  }
  0x81   :  { %10381 = vmatprep.mubr.msk.bf16.mxu0 %vm792_vm0, %v12679_v51  ;;  %10385 = vmatprep.mubr.msk.bf16.mxu1 %vm792_vm0, %v12679_v51 }
  0x83   :  { %954 = vmatpush1.bf16.msra.mxu0 %v10336_v54  ;;  %1027 = vmatpush1.bf16.msra.mxu1 %v10338_v55  ;;  %v10376_v54 = vcombine.low %v228_v40, %v232_v41  ;;  %v212_v55 = vld [vmem:[#allocation10 + $0x250] sm:$0xff]  ;;  %v12824_v40 = vld [vmem:[#allocation12 + $0x28] ss:$16 sps:$4 sm:$0xff]   ;;  %v12829_v41 = vld [vmem:[#allocation12 + $0xc] ss:$16 sps:$4 sm:$0xff]  }
  0x84   :  { %955 = vmatprep.subr.bf16.mxu0 %v10329_v56  ;;  %1028 = vmatprep.subr.bf16.mxu1 %v10331_v58  ;;  %v216_v56 = vld [vmem:[#allocation10 + $0x270] sm:$0xff]  ;;  %v10369_v58 = vcombine.high %v220_v49, %v224_v50 }
  0x85   :  { %v10360_v7 = vcombine.low %v212_v55, %v216_v56 }
  0x86   :  { %848 = vmatmul.mubr.bf16.gmra.mxu0 %v12688_v62  ;;  %921 = vmatmul.mubr.bf16.gmra.mxu1 %v12688_v62 }
  0x87   :  { %956 = vmatpush1.bf16.msra.mxu0 %v10328_v63  ;;  %1029 = vmatpush1.bf16.msra.mxu1 %v10330_v0  ;;  %v10368_v63 = vcombine.low %v220_v49, %v224_v50  ;;  %v204_v0 = vld [vmem:[#allocation10 + $0x210] sm:$0xff] }
  0x88   :  { %957 = vmatprep.subr.bf16.mxu0 %v10321_v1  ;;  %1030 = vmatprep.subr.bf16.mxu1 %v10323_v3  ;;  %v208_v1 = vld [vmem:[#allocation10 + $0x230] sm:$0xff]  ;;  %v205_v3 = vld [vmem:[#allocation10 + $0x218] sm:$0xff] }
  0x89   :  { %10382 = vmatprep.mubr.msk.bf16.mxu0 %vm792_vm0, %v12695_v5  ;;  %10386 = vmatprep.mubr.msk.bf16.mxu1 %vm792_vm0, %v12695_v5  ;;  %v10354_v14 = vcombine.low %v205_v3, %v209_v4  ;;  %v11472_v49 = vld [vmem:[#allocation14 + $0xc4] ss:$16 sps:$4 sm:$0xff]   ;;  %v11470_v50 = vld [vmem:[#allocation14 + $0xc0] ss:$16 sps:$4 sm:$0xff]  }
  0x8b   :  { %958 = vmatpush1.bf16.msra.mxu0 %v10320_v8  ;;  %1031 = vmatpush1.bf16.msra.mxu1 %v10322_v9  ;;  %v10362_v8 = vcombine.low %v213_v59, %v217_v60  ;;  %v10353_v9 = vcombine.high %v204_v0, %v208_v1  ;;  %v11487_v59 = vld [vmem:[#allocation14 + $0x8c] ss:$16 sps:$4 sm:$0xff]   ;;  %v11482_v60 = vld [vmem:[#allocation14 + $0x80] ss:$16 sps:$4 sm:$0xff]  }
  0x8c   :  { %959 = vmatprep.subr.bf16.mxu0 %v10313_v10  ;;  %1032 = vmatprep.subr.bf16.mxu1 %v10315_v12  ;;  %v10355_v10 = vcombine.high %v205_v3, %v209_v4  ;;  %v10352_v12 = vcombine.low %v204_v0, %v208_v1  ;;  %v11493_v0 = vld [vmem:[#allocation14 + $0x6c] ss:$16 sps:$4 sm:$0xff]   ;;  %v11488_v1 = vld [vmem:[#allocation14 + $0x60] ss:$16 sps:$4 sm:$0xff]  }
  0x8d   :  { %v11499_v3 = vld [vmem:[#allocation14 + $0x4c] ss:$16 sps:$4 sm:$0xff]   ;;  %v11494_v4 = vld [vmem:[#allocation14 + $0x40] ss:$16 sps:$4 sm:$0xff]  }
  0x8e   :  { %858 = vmatmul.mubr.bf16.gmra.mxu0 %v12704_v16  ;;  %931 = vmatmul.mubr.bf16.gmra.mxu1 %v12704_v16 }
  0x8f   :  { %960 = vmatpush1.bf16.msra.mxu0 %v10312_v17  ;;  %1033 = vmatpush1.bf16.msra.mxu1 %v10314_v18  ;;  %v12736_v17 = vld [vmem:[#allocation12 + $0xe8] ss:$16 sps:$4 sm:$0xff]   ;;  %v12738_v18 = vld [vmem:[#allocation12 + $0xc4] ss:$16 sps:$4 sm:$0xff]  }
  0x90   :  { %961 = vmatprep.subr.bf16.mxu0 %v10305_v19  ;;  %1034 = vmatprep.subr.bf16.mxu1 %v10307_v21  ;;  %v12740_v19 = vld [vmem:[#allocation12 + $0xcc] ss:$16 sps:$4 sm:$0xff]   ;;  %v12747_v21 = vld [vmem:[#allocation12 + $0xc8] ss:$16 sps:$4 sm:$0xff]  }
  0x91   :  { %10383 = vmatprep.mubr.msk.bf16.mxu0 %vm792_vm0, %v12711_v23  ;;  %10387 = vmatprep.mubr.msk.bf16.mxu1 %vm792_vm0, %v12711_v23 }
  0x93   :  { %962 = vmatpush1.bf16.msra.mxu0 %v10304_v26  ;;  %1035 = vmatpush1.bf16.msra.mxu1 %v10306_v27  ;;  %v12764_v26 = vld [vmem:[#allocation12 + $0xa8] ss:$16 sps:$4 sm:$0xff]   ;;  %v12769_v27 = vld [vmem:[#allocation12 + $0x8c] ss:$16 sps:$4 sm:$0xff]  }
  0x94   :  { %963 = vmatprep.subr.bf16.mxu0 %v10297_v28  ;;  %1036 = vmatprep.subr.bf16.mxu1 %v10299_v30  ;;  %v12774_v28 = vld [vmem:[#allocation12 + $0x80] ss:$16 sps:$4 sm:$0xff]   ;;  %v12783_v30 = vld [vmem:[#allocation12 + $0x6c] ss:$16 sps:$4 sm:$0xff]  }
  0x96   :  { %868 = vmatmul.mubr.bf16.gmra.mxu0 %v12720_v34  ;;  %941 = vmatmul.mubr.bf16.gmra.mxu1 %v12720_v34 }
  0x97   :  { %964 = vmatpush1.bf16.msra.mxu0 %v10296_v35  ;;  %1037 = vmatpush1.bf16.msra.mxu1 %v10298_v36  ;;  %v12804_v35 = vld [vmem:[#allocation12 + $0x40] ss:$16 sps:$4 sm:$0xff]   ;;  %v12807_v36 = vld [vmem:[#allocation12 + $0x48] ss:$16 sps:$4 sm:$0xff]  }
  0x98   :  { %965 = vmatprep.subr.bf16.mxu0 %v10289_v38  ;;  %1038 = vmatprep.subr.bf16.mxu1 %v10291_v39  ;;  %v12813_v38 = vld [vmem:[#allocation12 + $0x2c] ss:$16 sps:$4 sm:$0xff]   ;;  %v12820_v39 = vld [vmem:[#allocation12 + $0x20] ss:$16 sps:$4 sm:$0xff]  }
  0x99   :  { %10388 = vmatprep.mubr.msk.bf16.mxu0 %vm792_vm0, %v12665_v43  ;;  %10392 = vmatprep.mubr.msk.bf16.mxu1 %vm792_vm0, %v12665_v43  ;;  %v10361_v43 = vcombine.high %v212_v55, %v216_v56  ;;  %v11481_v55 = vld [vmem:[#allocation14 + $0xac] ss:$16 sps:$4 sm:$0xff]   ;;  %v11476_v56 = vld [vmem:[#allocation14 + $0xa0] ss:$16 sps:$4 sm:$0xff]  }
  0x9b   :  { %966 = vmatpush1.bf16.msra.mxu0 %v10288_v45  ;;  %1039 = vmatpush1.bf16.msra.mxu1 %v10290_v46  ;;  %v12843_v45 = vld [vmem:[#allocation14 + $0xec] ss:$16 sps:$4 sm:$0xff]   ;;  %v14885_v46 = vmov 0  }
  0x9c   :  { %975 = vmatprep.subr.bf16.mxu0 %v10377_v47  ;;  %1048 = vmatprep.subr.bf16.mxu1 %v10379_v48  ;;  %v11464_v47 = vld [vmem:[#allocation14 + $0xe0] ss:$16 sps:$4 sm:$0xff]   ;;  %v11467_v48 = vld [vmem:[#allocation14 + $0xe8] ss:$16 sps:$4 sm:$0xff]  }
  0x9f   :  { %976 = vmatpush2.bf16.msra.mxu0 %v10376_v54  ;;  %1049 = vmatpush2.bf16.msra.mxu1 %v10378_v57  ;;  %v11478_v54 = vld [vmem:[#allocation14 + $0xa4] ss:$16 sps:$4 sm:$0xff]   ;;  %v11479_v57 = vld [vmem:[#allocation14 + $0xa8] ss:$16 sps:$4 sm:$0xff]  }
  0xa0   :  { %977 = vmatprep.subr.bf16.mxu0 %v10369_v58  ;;  %1050 = vmatprep.subr.bf16.mxu1 %v10371_v61  ;;  %v11484_v58 = vld [vmem:[#allocation14 + $0x84] ss:$16 sps:$4 sm:$0xff]   ;;  %v11485_v61 = vld [vmem:[#allocation14 + $0x88] ss:$16 sps:$4 sm:$0xff]  }
  0xa3   :  { %978 = vmatpush2.bf16.msra.mxu0 %v10368_v63  ;;  %1051 = vmatpush2.bf16.msra.mxu1 %v10370_v2  ;;  %v11490_v63 = vld [vmem:[#allocation14 + $0x64] ss:$16 sps:$4 sm:$0xff]   ;;  %v11491_v2 = vld [vmem:[#allocation14 + $0x68] ss:$16 sps:$4 sm:$0xff]  }
  0xa4   :  { %979 = vmatprep.subr.bf16.mxu0 %v10361_v43  ;;  %1052 = vmatprep.subr.bf16.mxu1 %v10363_v6  ;;  %v11496_v43 = vld [vmem:[#allocation14 + $0x44] ss:$16 sps:$4 sm:$0xff]   ;;  %v11497_v6 = vld [vmem:[#allocation14 + $0x48] ss:$16 sps:$4 sm:$0xff]  }
  0xa7   :  { %980 = vmatpush2.bf16.msra.mxu0 %v10360_v7  ;;  %1053 = vmatpush2.bf16.msra.mxu1 %v10362_v8  ;;  %v11502_v7 = vld [vmem:[#allocation14 + $0x24] ss:$16 sps:$4 sm:$0xff]   ;;  %v11505_v8 = vld [vmem:[#allocation14 + $0x2c] ss:$16 sps:$4 sm:$0xff]  }
  0xa8   :  { %981 = vmatprep.subr.bf16.mxu0 %v10353_v9  ;;  %1054 = vmatprep.subr.bf16.mxu1 %v10355_v10  ;;  %v11500_v9 = vld [vmem:[#allocation14 + $0x20] ss:$16 sps:$4 sm:$0xff]   ;;  %v11503_v10 = vld [vmem:[#allocation14 + $0x28] ss:$16 sps:$4 sm:$0xff]  }
  0xab   :  { %982 = vmatpush2.bf16.msra.mxu0 %v10352_v12  ;;  %1055 = vmatpush2.bf16.msra.mxu1 %v10354_v14  ;;  %v11508_v12 = vld [vmem:[#allocation14 + $0x4] ss:$16 sps:$4 sm:$0xff]   ;;  %v12858_v14 = vld [vmem:[#allocation14 + $0xc] ss:$16 sps:$4 sm:$0xff]  }
  0xac   :  { %1366 = vmatprep.subr.bf16.mxu0 %v12730_v11  ;;  %1407 = vmatprep.subr.bf16.mxu1 %v12732_v13 }
  0xae   :  { %984 = vmatmul.mubr.bf16.vlgmr.msra.gmra.mxu0 %v12674_v37  ;;  %1057 = vmatmul.mubr.bf16.vlgmr.msra.gmra.mxu1 %v12674_v37  ;;  %v12766_v37 = vld [vmem:[#allocation12 + $0x84] ss:$16 sps:$4 sm:$0xff]  }
  0xaf   :  { %1367 = vmatpush1.bf16.msra.mxu0 %v12734_v15  ;;  %1408 = vmatpush1.bf16.msra.mxu1 %v12736_v17 }
  0xb0   :  { %1368 = vmatprep.subr.bf16.mxu0 %v12738_v18  ;;  %1409 = vmatprep.subr.bf16.mxu1 %v12740_v19 }
  0xb1   :  { %10389 = vmatprep.mubr.msk.bf16.mxu0 %vm792_vm0, %v12679_v51  ;;  %10393 = vmatprep.mubr.msk.bf16.mxu1 %vm792_vm0, %v12679_v51  ;;  %v12779_v51 = vld [vmem:[#allocation12 + $0x64] ss:$16 sps:$4 sm:$0xff]  }
  0xb3   :  { %1369 = vmatpush1.bf16.msra.mxu0 %v12744_v20  ;;  %1410 = vmatpush1.bf16.msra.mxu1 %v12747_v21 }
  0xb4   :  { %1370 = vmatprep.subr.bf16.mxu0 %v12749_v22  ;;  %1411 = vmatprep.subr.bf16.mxu1 %v12753_v24 }
  0xb6   :  { %994 = vmatmul.mubr.bf16.gmra.mxu0 %v12688_v62  ;;  %1067 = vmatmul.mubr.bf16.gmra.mxu1 %v12688_v62  ;;  %v12796_v62 = vld [vmem:[#allocation12 + $0x44] ss:$16 sps:$4 sm:$0xff]  }
  0xb7   :  { %1371 = vmatpush1.bf16.msra.mxu0 %v12760_v25  ;;  %1412 = vmatpush1.bf16.msra.mxu1 %v12764_v26 }
  0xb8   :  { %1372 = vmatprep.subr.bf16.mxu0 %v12766_v37  ;;  %1413 = vmatprep.subr.bf16.mxu1 %v12769_v27 }
  0xb9   :  { %10390 = vmatprep.mubr.msk.bf16.mxu0 %vm792_vm0, %v12695_v5  ;;  %10394 = vmatprep.mubr.msk.bf16.mxu1 %vm792_vm0, %v12695_v5  ;;  %v12809_v5 = vld [vmem:[#allocation12 + $0x24] ss:$16 sps:$4 sm:$0xff]  }
  0xbb   :  { %1373 = vmatpush1.bf16.msra.mxu0 %v12774_v28  ;;  %1414 = vmatpush1.bf16.msra.mxu1 %v12777_v29 }
  0xbc   :  { %1374 = vmatprep.subr.bf16.mxu0 %v12779_v51  ;;  %1415 = vmatprep.subr.bf16.mxu1 %v12783_v30 }
  0xbe   :  { %1004 = vmatmul.mubr.bf16.gmra.mxu0 %v12704_v16  ;;  %1077 = vmatmul.mubr.bf16.gmra.mxu1 %v12704_v16  ;;  %v12826_v16 = vld [vmem:[#allocation12 + $0x4] ss:$16 sps:$4 sm:$0xff]  }
  0xbf   :  { %1375 = vmatpush1.bf16.msra.mxu0 %v12790_v31  ;;  %1416 = vmatpush1.bf16.msra.mxu1 %v12794_v32 }
  0xc0   :  { %1376 = vmatprep.subr.bf16.mxu0 %v12796_v62  ;;  %1417 = vmatprep.subr.bf16.mxu1 %v12799_v33 }
  0xc1   :  { %10391 = vmatprep.mubr.msk.bf16.mxu0 %vm792_vm0, %v12711_v23  ;;  %10395 = vmatprep.mubr.msk.bf16.mxu1 %vm792_vm0, %v12711_v23  ;;  %v12839_v23 = vld [vmem:[#allocation14 + $0xe4] ss:$16 sps:$4 sm:$0xff]  }
  0xc3   :  { %1377 = vmatpush1.bf16.msra.mxu0 %v12804_v35  ;;  %1418 = vmatpush1.bf16.msra.mxu1 %v12807_v36 }
  0xc4   :  { %1378 = vmatprep.subr.bf16.mxu0 %v12809_v5  ;;  %1419 = vmatprep.subr.bf16.mxu1 %v12813_v38 }
  0xc6   :  { %1014 = vmatmul.mubr.bf16.gmra.mxu0 %v12720_v34  ;;  %1087 = vmatmul.mubr.bf16.gmra.mxu1 %v12720_v34  ;;  %v11475_v34 = vld [vmem:[#allocation14 + $0xcc] ss:$16 sps:$4 sm:$0xff]  }
  0xc7   :  { %1379 = vmatpush1.bf16.msra.mxu0 %v12820_v39  ;;  %1420 = vmatpush1.bf16.msra.mxu1 %v12824_v40 }
  0xc8   :  { %1380 = vmatprep.subr.bf16.mxu0 %v12826_v16  ;;  %1421 = vmatprep.subr.bf16.mxu1 %v12829_v41 }
  0xc9   :  { %1398 = vmatprep.mubr.bf16.mxu0 %v14885_v46  ;;  %1439 = vmatprep.mubr.bf16.mxu1 %v14885_v46 }
  0xcb   :  { %1381 = vmatpush1.bf16.msra.mxu0 %v12834_v42  ;;  %1422 = vmatpush1.bf16.msra.mxu1 %v12837_v44 }
  0xcc   :  { %1675 = vmatprep.subr.bf16.mxu0 %v12839_v23  ;;  %1716 = vmatprep.subr.bf16.mxu1 %v12843_v45 }
  0xce   :  { %1399 = vmatmul.mubr.bf16.vlgmr.msra.gmra.mxu0 %v14883_v52  ;;  %1440 = vmatmul.mubr.bf16.vlgmr.msra.gmra.mxu1 %v14883_v52 }
  0xcf   :  { %1676 = vmatpush1.bf16.msra.mxu0 %v11464_v47  ;;  %1717 = vmatpush1.bf16.msra.mxu1 %v11467_v48  ;;  %v12860_v47 = vld [vmem:[#allocation14] ss:$16 sps:$4 sm:$0xff]   ;;  %v12862_v48 = vld [vmem:[#allocation14 + $0x8] ss:$16 sps:$4 sm:$0xff]  }
  0xd0   :  { %1677 = vmatprep.subr.bf16.mxu0 %v11472_v49  ;;  %1718 = vmatprep.subr.bf16.mxu1 %v11475_v34 }
  0xd1   :  { %1707 = vmatprep.mubr.bf16.mxu0 %v14885_v46  ;;  %1748 = vmatprep.mubr.bf16.mxu1 %v14885_v46 }
  0xd3   :  { %1678 = vmatpush1.bf16.msra.mxu0 %v11470_v50  ;;  %1719 = vmatpush1.bf16.msra.mxu1 %v11473_v53 }
  0xd4   :  { %1679 = vmatprep.subr.bf16.mxu0 %v11478_v54  ;;  %1720 = vmatprep.subr.bf16.mxu1 %v11481_v55 }
  0xd7   :  { %1680 = vmatpush1.bf16.msra.mxu0 %v11476_v56  ;;  %1721 = vmatpush1.bf16.msra.mxu1 %v11479_v57 }
  0xd8   :  { %1681 = vmatprep.subr.bf16.mxu0 %v11484_v58  ;;  %1722 = vmatprep.subr.bf16.mxu1 %v11487_v59 }
  0xdb   :  { %1682 = vmatpush1.bf16.msra.mxu0 %v11482_v60  ;;  %1723 = vmatpush1.bf16.msra.mxu1 %v11485_v61 }
  0xdc   :  { %1683 = vmatprep.subr.bf16.mxu0 %v11490_v63  ;;  %1724 = vmatprep.subr.bf16.mxu1 %v11493_v0 }
  0xdf   :  { %1684 = vmatpush1.bf16.msra.mxu0 %v11488_v1  ;;  %1725 = vmatpush1.bf16.msra.mxu1 %v11491_v2 }
  0xe0   :  { %1685 = vmatprep.subr.bf16.mxu0 %v11496_v43  ;;  %1726 = vmatprep.subr.bf16.mxu1 %v11499_v3 }
  0xe3   :  { %1686 = vmatpush1.bf16.msra.mxu0 %v11494_v4  ;;  %1727 = vmatpush1.bf16.msra.mxu1 %v11497_v6 }
  0xe4   :  { %1687 = vmatprep.subr.bf16.mxu0 %v11502_v7  ;;  %1728 = vmatprep.subr.bf16.mxu1 %v11505_v8 }
  0xe7   :  { %1688 = vmatpush1.bf16.msra.mxu0 %v11500_v9  ;;  %1729 = vmatpush1.bf16.msra.mxu1 %v11503_v10 }
  0xe8   :  { %1689 = vmatprep.subr.bf16.mxu0 %v11508_v12  ;;  %1730 = vmatprep.subr.bf16.mxu1 %v12858_v14 }
  0xeb   :  { %1690 = vmatpush1.bf16.msra.mxu0 %v12860_v47  ;;  %1731 = vmatpush1.bf16.msra.mxu1 %v12862_v48 }
  0xec   :  { %1985 = vmatprep.subr.bf16.mxu0 %v12730_v11  ;;  %2026 = vmatprep.subr.bf16.mxu1 %v12732_v13  ;;  %v236_v11 = vlaneseq }
  0xee   :  { %1708 = vmatmul.mubr.bf16.vlgmr.msra.gmra.mxu0 %v14883_v52  ;;  %1749 = vmatmul.mubr.bf16.vlgmr.msra.gmra.mxu1 %v14883_v52  ;;  %v12905_v13 = vshrl.u32 %v236_v11, 7 }
  0xef   :  { %1986 = vmatpush1.bf16.msra.mxu0 %v12734_v15  ;;  %2027 = vmatpush1.bf16.msra.mxu1 %v12736_v17 }
  0xf0   :  { %1987 = vmatprep.subr.bf16.mxu0 %v12738_v18  ;;  %2028 = vmatprep.subr.bf16.mxu1 %v12740_v19  ;;  %v12908_v15 = vsub.s32 2, %v12905_v13  ;;  %v12911_v17 = vsub.s32 0, %v12905_v13  ;;  %v12916_v18 = vld [vmem:[%s14872_s4] sm:$0xff] }
  0xf1   :  { %2017 = vmatprep.mubr.bf16.mxu0 %v14885_v46  ;;  %2058 = vmatprep.mubr.bf16.mxu1 %v14885_v46 }
  0xf2   :  { %14980 = vst [vmem:[#allocation24_spill] sm:$0xff] %v12908_v15  ;;  %14981 = vst [vmem:[#allocation25_spill] sm:$0xff] %v12911_v17 }
  0xf3   :  { %1988 = vmatpush1.bf16.msra.mxu0 %v12744_v20  ;;  %2029 = vmatpush1.bf16.msra.mxu1 %v12747_v21 }
  0xf4   :  { %1989 = vmatprep.subr.bf16.mxu0 %v12749_v22  ;;  %2030 = vmatprep.subr.bf16.mxu1 %v12753_v24  ;;  %v12926_v22 = vrot.slane %v12916_v18, %v12908_v15  ;;  %v12930_v24 = vrot.slane %v12916_v18, %v12911_v17 }
  0xf7   :  { %1990 = vmatpush1.bf16.msra.mxu0 %v12760_v25  ;;  %2031 = vmatpush1.bf16.msra.mxu1 %v12764_v26 }
  0xf8   :  { %1991 = vmatprep.subr.bf16.mxu0 %v12766_v37  ;;  %2032 = vmatprep.subr.bf16.mxu1 %v12769_v27  ;;  %v12935_v37 = vsub.s32 1, %v12905_v13 }
  0xfa   :  { %14982 = vst [vmem:[#allocation26_spill] sm:$0xff] %v12935_v37 }
  0xfb   :  { %1992 = vmatpush1.bf16.msra.mxu0 %v12774_v28  ;;  %2033 = vmatpush1.bf16.msra.mxu1 %v12777_v29  ;;  %v12941_v29 = vsub.s32 3, %v12905_v13 }
  0xfc   :  { %1993 = vmatprep.subr.bf16.mxu0 %v12779_v51  ;;  %2034 = vmatprep.subr.bf16.mxu1 %v12783_v30 }
  0xfd   :  { %14983 = vst [vmem:[#allocation27_spill] sm:$0xff] %v12941_v29 }
  0xff   :  { %1994 = vmatpush1.bf16.msra.mxu0 %v12790_v31  ;;  %2035 = vmatpush1.bf16.msra.mxu1 %v12794_v32 }
 0x100   :  { %1995 = vmatprep.subr.bf16.mxu0 %v12796_v62  ;;  %2036 = vmatprep.subr.bf16.mxu1 %v12799_v33  ;;  %v12952_v62 = vrot.slane %v12916_v18, %v12935_v37 }
 0x102   :  { %14984 = vst [vmem:[#allocation28_spill] sm:$0xff] %v12952_v62 }
 0x103   :  { %1996 = vmatpush1.bf16.msra.mxu0 %v12804_v35  ;;  %2037 = vmatpush1.bf16.msra.mxu1 %v12807_v36  ;;  %v12959_v36 = vrot.slane %v12916_v18, %v12941_v29 }
 0x104   :  { %1997 = vmatprep.subr.bf16.mxu0 %v12809_v5  ;;  %2038 = vmatprep.subr.bf16.mxu1 %v12813_v38 }
 0x105   :  { %14985 = vst [vmem:[#allocation29_spill] sm:$0xff] %v12959_v36 }
 0x107   :  { %1998 = vmatpush1.bf16.msra.mxu0 %v12820_v39  ;;  %2039 = vmatpush1.bf16.msra.mxu1 %v12824_v40 }
 0x108   :  { %1999 = vmatprep.subr.bf16.mxu0 %v12826_v16  ;;  %2040 = vmatprep.subr.bf16.mxu1 %v12829_v41 }
 0x10b   :  { %2000 = vmatpush1.bf16.msra.mxu0 %v12834_v42  ;;  %2041 = vmatpush1.bf16.msra.mxu1 %v12837_v44 }
 0x10c   :  { %2295 = vmatprep.subr.bf16.mxu0 %v12839_v23  ;;  %2336 = vmatprep.subr.bf16.mxu1 %v12843_v45 }
 0x13e   :  { %v12918_v19 = vpop.f32.mrf.mxu0  ;;  %v12920_v20 = vpop.f32.mrf.mxu1 }
 0x140   :  { %v12922_v21 = vpop.f32.mrf.mxu0  ;;  %v12932_v25 = vpop.f32.mrf.mxu1 }
 0x142   :  { %v843_v26 = vpop.f32.mrf.mxu0  ;;  %v916_v28 = vpop.f32.mrf.mxu1 }
 0x143   :  { %v12938_v27 = vadd.f32 %v843_v26, %v12930_v24  ;;  %v12946_v30 = vadd.f32 %v916_v28, %v12926_v22  ;;  %v254_v28 = vsub.s32 4, %v12905_v13 }
 0x144   :  { %v12943_v51 = vpop.f32.mrf.mxu0  ;;  %v12948_v31 = vpop.f32.mrf.mxu1 }
 0x146   :  { %v849_v32 = vpop.f32.mrf.mxu0  ;;  %v922_v35 = vpop.f32.mrf.mxu1 }
 0x147   :  { %v12955_v33 = vadd.f32 %v849_v32, %v12930_v24  ;;  %v12962_v38 = vadd.f32 %v922_v35, %v12926_v22  ;;  %v262_v32 = vsub.s32 6, %v12905_v13  ;;  %v258_v35 = vsub.s32 5, %v12905_v13 }
 0x148   :  { %v851_v5 = vpop.f32.mrf.mxu0  ;;  %v924_v40 = vpop.f32.mrf.mxu1 }
 0x149   :  { %14986 = vst [vmem:[#allocation30_spill] sm:$0xff] %v12962_v38  ;;  %v12965_v39 = vadd.f32 %v851_v5, %v12952_v62  ;;  %v12968_v41 = vadd.f32 %v924_v40, %v12959_v36  ;;  %v266_v5 = vsub.s32 7, %v12905_v13  ;;  %v919_v38 = vadd.f32 %v12948_v31, %v12959_v36 }
 0x14a   :  { %v853_v16 = vpop.f32.mrf.mxu0  ;;  %v926_v44 = vpop.f32.mrf.mxu1 }
 0x14b   :  { %14987 = vst [vmem:[#allocation31_spill] sm:$0xff] %v12965_v39  ;;  %14988 = vst [vmem:[#allocation32_spill] sm:$0xff] %v12968_v41  ;;  %v12971_v42 = vadd.f32 %v853_v16, %v12930_v24  ;;  %v12976_v45 = vadd.f32 %v926_v44, %v12926_v22  ;;  %v13027_v16 = vrot.slane %v12916_v18, %v254_v28 }
 0x14c   :  { %v12973_v23 = vpop.f32.mrf.mxu0  ;;  %v12978_v49 = vpop.f32.mrf.mxu1 }
 0x14d   :  { %14989 = vst [vmem:[#allocation33_spill] sm:$0xff] %v12971_v42  ;;  %14990 = vst [vmem:[#allocation34_spill] sm:$0xff] %v12973_v23 }
 0x14e   :  { %14991 = vst [vmem:[#allocation35_spill] sm:$0xff] %v12976_v45  ;;  %14992 = vst [vmem:[#allocation36_spill] sm:$0xff] %v12978_v49  ;;  %v859_v34 = vpop.f32.mrf.mxu0  ;;  %v932_v53 = vpop.f32.mrf.mxu1 }
 0x14f   :  { %v12981_v50 = vadd.f32 %v859_v34, %v12930_v24  ;;  %v12984_v55 = vadd.f32 %v932_v53, %v12926_v22  ;;  %v13032_v34 = vrot.slane %v12916_v18, %v262_v32  ;;  %v13035_v53 = vrot.slane %v12916_v18, %v258_v35 }
 0x150   :  { %v861_v54 = vpop.f32.mrf.mxu0  ;;  %v934_v57 = vpop.f32.mrf.mxu1 }
 0x151   :  { %14993 = vst [vmem:[#allocation37_spill] sm:$0xff] %v12981_v50  ;;  %14994 = vst [vmem:[#allocation38_spill] sm:$0xff] %v12984_v55  ;;  %v12987_v56 = vadd.f32 %v861_v54, %v12952_v62  ;;  %v12990_v59 = vadd.f32 %v934_v57, %v12959_v36  ;;  %v13038_v57 = vrot.slane %v12916_v18, %v266_v5  ;;  %v13239_v55 = vld [vmem:[#allocation12] ss:$16 sps:$4 sm:$0xff]   ;;  %v13247_v50 = vld [vmem:[#allocation14 + $0xe4] ss:$16 sps:$4 sm:$0xff]  }
 0x152   :  { %v863_v58 = vpop.f32.mrf.mxu0  ;;  %v936_v61 = vpop.f32.mrf.mxu1  ;;  %15009 = vst [vmem:[#allocation53_spill] sm:$0xff] %v13035_v53 }
 0x153   :  { %14995 = vst [vmem:[#allocation39_spill] sm:$0xff] %v12987_v56  ;;  %14996 = vst [vmem:[#allocation40_spill] sm:$0xff] %v12990_v59  ;;  %v12993_v60 = vadd.f32 %v863_v58, %v12930_v24  ;;  %v12998_v0 = vadd.f32 %v936_v61, %v12926_v22  ;;  %v13237_v59 = vld [vmem:[#allocation12 + $0xc] ss:$16 sps:$4 sm:$0xff]   ;;  %v13241_v56 = vld [vmem:[#allocation12 + $0x8] ss:$16 sps:$4 sm:$0xff]  }
 0x154   :  { %v12995_v63 = vpop.f32.mrf.mxu0  ;;  %v13000_v1 = vpop.f32.mrf.mxu1  ;;  %15010 = vst [vmem:[#allocation54_spill] sm:$0xff] %v13038_v57 }
 0x155   :  { %14997 = vst [vmem:[#allocation41_spill] sm:$0xff] %v12993_v60  ;;  %14998 = vst [vmem:[#allocation42_spill] sm:$0xff] %v12995_v63 }
 0x156   :  { %14999 = vst [vmem:[#allocation43_spill] sm:$0xff] %v12998_v0  ;;  %15000 = vst [vmem:[#allocation44_spill] sm:$0xff] %v13000_v1  ;;  %v869_v2 = vpop.f32.mrf.mxu0  ;;  %v942_v3 = vpop.f32.mrf.mxu1 }
 0x157   :  { %v13003_v43 = vadd.f32 %v869_v2, %v12930_v24  ;;  %v13006_v6 = vadd.f32 %v942_v3, %v12926_v22 }
 0x158   :  { %v871_v4 = vpop.f32.mrf.mxu0  ;;  %v944_v8 = vpop.f32.mrf.mxu1 }
 0x159   :  { %15001 = vst [vmem:[#allocation45_spill] sm:$0xff] %v13003_v43  ;;  %15002 = vst [vmem:[#allocation46_spill] sm:$0xff] %v13006_v6  ;;  %v13009_v7 = vadd.f32 %v871_v4, %v12952_v62  ;;  %v13012_v10 = vadd.f32 %v944_v8, %v12959_v36 }
 0x15a   :  { %v873_v9 = vpop.f32.mrf.mxu0  ;;  %v946_v11 = vpop.f32.mrf.mxu1 }
 0x15b   :  { %15003 = vst [vmem:[#allocation47_spill] sm:$0xff] %v13009_v7  ;;  %15004 = vst [vmem:[#allocation48_spill] sm:$0xff] %v13012_v10  ;;  %v13015_v12 = vadd.f32 %v873_v9, %v12930_v24  ;;  %v13018_v26 = vadd.f32 %v946_v11, %v12926_v22  ;;  %v840_v7 = vadd.f32 %v12918_v19, %v12930_v24 }
 0x15c   :  { %v13024_v40 = vpop.f32.mrf.mxu1  ;;  %v13029_v44 = vpop.f32.mrf.mxu0 }
 0x15d   :  { %15005 = vst [vmem:[#allocation49_spill] sm:$0xff] %v13015_v12  ;;  %15006 = vst [vmem:[#allocation50_spill] sm:$0xff] %v13018_v26 }
 0x15e   :  { %15007 = vst [vmem:[#allocation51_spill] sm:$0xff] %v13024_v40  ;;  %15008 = vst [vmem:[#allocation52_spill] sm:$0xff] %v13029_v44 }
 0x16e   :  { %v985_v54 = vpop.f32.mrf.mxu0  ;;  %v1058_v13 = vpop.f32.mrf.mxu1 }
 0x16f   :  { %v13041_v58 = vadd.f32 %v985_v54, %v13027_v16  ;;  %v13044_v61 = vadd.f32 %v1058_v13, %v13032_v34 }
 0x170   :  { %v987_v2 = vpop.f32.mrf.mxu0  ;;  %v1060_v4 = vpop.f32.mrf.mxu1 }
 0x171   :  { %15011 = vst [vmem:[#allocation55_spill] sm:$0xff] %v13041_v58  ;;  %15012 = vst [vmem:[#allocation56_spill] sm:$0xff] %v13044_v61  ;;  %v13047_v3 = vadd.f32 %v987_v2, %v13035_v53  ;;  %v13050_v8 = vadd.f32 %v1060_v4, %v13038_v57 }
 0x172   :  { %v989_v9 = vpop.f32.mrf.mxu0  ;;  %v1062_v18 = vpop.f32.mrf.mxu1 }
 0x173   :  { %15013 = vst [vmem:[#allocation57_spill] sm:$0xff] %v13047_v3  ;;  %15014 = vst [vmem:[#allocation58_spill] sm:$0xff] %v13050_v8  ;;  %v13053_v11 = vadd.f32 %v989_v9, %v13027_v16  ;;  %v13056_v28 = vadd.f32 %v1062_v18, %v13032_v34 }
 0x174   :  { %v13058_v32 = vpop.f32.mrf.mxu0  ;;  %v13060_v35 = vpop.f32.mrf.mxu1 }
 0x175   :  { %15015 = vst [vmem:[#allocation59_spill] sm:$0xff] %v13053_v11  ;;  %15016 = vst [vmem:[#allocation60_spill] sm:$0xff] %v13056_v28 }
 0x176   :  { %15017 = vst [vmem:[#allocation61_spill] sm:$0xff] %v13058_v32  ;;  %15018 = vst [vmem:[#allocation62_spill] sm:$0xff] %v13060_v35  ;;  %v995_v5 = vpop.f32.mrf.mxu0  ;;  %v1068_v13 = vpop.f32.mrf.mxu1 }
 0x177   :  { %v13063_v54 = vadd.f32 %v995_v5, %v13027_v16  ;;  %v13066_v2 = vadd.f32 %v1068_v13, %v13032_v34 }
 0x178   :  { %v997_v4 = vpop.f32.mrf.mxu0  ;;  %v1070_v52 = vpop.f32.mrf.mxu1 }
 0x179   :  { %15019 = vst [vmem:[#allocation63_spill] sm:$0xff] %v13063_v54  ;;  %15020 = vst [vmem:[#allocation64_spill] sm:$0xff] %v13066_v2  ;;  %v13069_v9 = vadd.f32 %v997_v4, %v13035_v53  ;;  %v13072_v18 = vadd.f32 %v1070_v52, %v13038_v57 }
 0x17a   :  { %v999_v46 = vpop.f32.mrf.mxu0  ;;  %v1072_v37 = vpop.f32.mrf.mxu1 }
 0x17b   :  { %15021 = vst [vmem:[#allocation65_spill] sm:$0xff] %v13069_v9  ;;  %15022 = vst [vmem:[#allocation66_spill] sm:$0xff] %v13072_v18  ;;  %v13075_v29 = vadd.f32 %v999_v46, %v13027_v16  ;;  %v13078_v5 = vadd.f32 %v1072_v37, %v13032_v34 }
 0x17c   :  { %v13080_v15 = vpop.f32.mrf.mxu0  ;;  %v13082_v13 = vpop.f32.mrf.mxu1 }
 0x17d   :  { %15023 = vst [vmem:[#allocation67_spill] sm:$0xff] %v13075_v29  ;;  %15024 = vst [vmem:[#allocation68_spill] sm:$0xff] %v13078_v5 }
 0x17e   :  { %15025 = vst [vmem:[#allocation69_spill] sm:$0xff] %v13080_v15  ;;  %15026 = vst [vmem:[#allocation70_spill] sm:$0xff] %v13082_v13  ;;  %v1005_v17 = vpop.f32.mrf.mxu0  ;;  %v1078_v8 = vpop.f32.mrf.mxu1  ;;  %v13235_v15 = vld [vmem:[#allocation12 + $0x4] ss:$16 sps:$4 sm:$0xff]  }
 0x17f   :  { %v13085_v4 = vadd.f32 %v1005_v17, %v13027_v16  ;;  %v13088_v52 = vadd.f32 %v1078_v8, %v13032_v34 }
 0x180   :  { %v1007_v61 = vpop.f32.mrf.mxu0  ;;  %v1080_v3 = vpop.f32.mrf.mxu1 }
 0x181   :  { %15027 = vst [vmem:[#allocation71_spill] sm:$0xff] %v13085_v4  ;;  %15028 = vst [vmem:[#allocation72_spill] sm:$0xff] %v13088_v52  ;;  %v13091_v46 = vadd.f32 %v1007_v61, %v13035_v53  ;;  %v13094_v37 = vadd.f32 %v1080_v3, %v13038_v57  ;;  %v846_v4 = vadd.f32 %v12943_v51, %v12952_v62 }
 0x182   :  { %v1009_v58 = vpop.f32.mrf.mxu0  ;;  %v1082_v12 = vpop.f32.mrf.mxu1 }
 0x183   :  { %15029 = vst [vmem:[#allocation73_spill] sm:$0xff] %v13091_v46  ;;  %15030 = vst [vmem:[#allocation74_spill] sm:$0xff] %v13094_v37  ;;  %v13097_v26 = vadd.f32 %v1009_v58, %v13027_v16  ;;  %v13100_v17 = vadd.f32 %v1082_v12, %v13032_v34  ;;  %v13249_v37 = vld [vmem:[#allocation14 + $0xec] ss:$16 sps:$4 sm:$0xff]  }
 0x184   :  { %v13102_v40 = vpop.f32.mrf.mxu0  ;;  %v13104_v8 = vpop.f32.mrf.mxu1 }
 0x185   :  { %15031 = vst [vmem:[#allocation75_spill] sm:$0xff] %v13097_v26  ;;  %15032 = vst [vmem:[#allocation76_spill] sm:$0xff] %v13100_v17 }
 0x186   :  { %15033 = vst [vmem:[#allocation77_spill] sm:$0xff] %v13102_v40  ;;  %15034 = vst [vmem:[#allocation78_spill] sm:$0xff] %v13104_v8  ;;  %v1015_v44 = vpop.f32.mrf.mxu0  ;;  %v1088_v35 = vpop.f32.mrf.mxu1 }
 0x187   :  { %v13107_v61 = vadd.f32 %v1015_v44, %v13027_v16  ;;  %v13110_v3 = vadd.f32 %v1088_v35, %v13032_v34  ;;  %v842_v35 = vadd.f32 %v12922_v21, %v12952_v62  ;;  %v915_v21 = vadd.f32 %v12932_v25, %v12959_v36  ;;  %v13347_v36 = vld [vmem:[#allocation14 + $0x20] ss:$16 sps:$4 sm:$0xff]  }
 0x188   :  { %v1017_v28 = vpop.f32.mrf.mxu0  ;;  %v1090_v11 = vpop.f32.mrf.mxu1  ;;  %15047 = vst [vmem:[#allocation90_spill] sm:$0xff] %v13347_v36 }
 0x189   :  { %v13113_v58 = vadd.f32 %v1017_v28, %v13035_v53  ;;  %v13116_v12 = vadd.f32 %v1090_v11, %v13038_v57  ;;  %v913_v28 = vadd.f32 %v12920_v20, %v12926_v22 }
 0x18a   :  { %v1019_v32 = vpop.f32.mrf.mxu0  ;;  %v1092_v10 = vpop.f32.mrf.mxu1 }
 0x18c   :  { %v1021_v6 = vpop.f32.mrf.mxu0  ;;  %v1094_v44 = vpop.f32.mrf.mxu1 }
 0x18d   :  { %v1022_v25 = vadd.f32 %v1021_v6, %v13035_v53 }
 0x18e   :  { %v1400_v43 = vpop.f32.mrf.mxu0  ;;  %v1441_v2 = vpop.f32.mrf.mxu1 }
 0x18f   :  { %v1448_v18 = vadd.f32 %v1400_v43, %v840_v7  ;;  %v1450_v60 = vadd.f32 %v1441_v2, %v913_v28 }
 0x190   :  { %v1402_v9 = vpop.f32.mrf.mxu0  ;;  %v1443_v1 = vpop.f32.mrf.mxu1 }
 0x191   :  { %v1453_v54 = vmul.f32 0.5, %v1448_v18  ;;  %v1449_v11 = vadd.f32 %v1402_v9, %v842_v35  ;;  %v1451_v43 = vadd.f32 %v1443_v1, %v915_v21  ;;  %v1093_v21 = vadd.f32 %v1092_v10, %v13032_v34  ;;  %v12385_v10 = vld [vmem:[#allocation14 + $0xe0] ss:$16 sps:$4 sm:$0xff]   ;;  %v12386_v34 = vld [vmem:[#allocation14 + $0xe8] ss:$16 sps:$4 sm:$0xff]  }
 0x192   :  { %v1404_v0 = vpop.f32.mrf.mxu0  ;;  %v1445_v13 = vpop.f32.mrf.mxu1 }
 0x193   :  { %12135 = vtanh.f32 %v1453_v54  ;;  %v1457_v63 = vmul.f32 0.5, %v1449_v11  ;;  %v1462_v7 = vmul.f32 0.5, %v1451_v43 }
 0x194   :  { %v1405_v19 = vpop.f32.mrf.mxu0  ;;  %v1446_v24 = vpop.f32.mrf.mxu1 }
 0x195   :  { %12137 = vtanh.f32 %v1457_v63 }
 0x196   :  { %12139 = vtanh.f32 %v1450_v60  ;;  %v1020_v60 = vadd.f32 %v1019_v32, %v13027_v16 }
 0x197   :  { %12141 = vtanh.f32 %v1462_v7 }
 0x1a0   :  { %v12136_v5 = vpop.eup %12135 }
 0x1a1   :  { %v1455_v29 = vmul.f32 0.5, %v12136_v5 }
 0x1a2   :  { %v12138_v20 = vpop.eup %12137 }
 0x1a3   :  { %v1456_v22 = vadd.f32 0.5, %v1455_v29  ;;  %v1459_v9 = vmul.f32 0.5, %v12138_v20  ;;  %v12140_v0 = vpop.eup %12139 }
 0x1a4   :  { %v12142_v5 = vpop.eup %12141 }
 0x1a5   :  { %v1460_v54 = vadd.f32 0.5, %v1459_v9  ;;  %v1467_v2 = vmul.f32 %v12140_v0, %v1456_v22  ;;  %v1464_v43 = vmul.f32 0.5, %v12142_v5  ;;  %v1095_v0 = vadd.f32 %v1094_v44, %v13038_v57 }
 0x1a6   :  { %v15036_v44 = vmov 0  }
 0x1a7   :  { %v1466_v18 = vmul.f32 0.0, %v1460_v54  ;;  %v1465_v32 = vadd.f32 0.5, %v1464_v43 }
 0x1a9   :  { %v13126_v13 = vadd.f32 %v1467_v2, %v1466_v18 }
 0x1ab   :  { %12143 = vtanh.f32 %v13126_v13 }
 0x1ae   :  { %v1709_v63 = vpop.f32.mrf.mxu0  ;;  %v1750_v35 = vpop.f32.mrf.mxu1 }
 0x1af   :  { %v1757_v1 = vadd.f32 %v1709_v63, %v1020_v60  ;;  %v1759_v9 = vadd.f32 %v1750_v35, %v1093_v21  ;;  %v12387_v63 = vld [vmem:[#allocation14 + $0xc4] ss:$16 sps:$4 sm:$0xff]   ;;  %v12392_v21 = vld [vmem:[#allocation14 + $0xac] ss:$16 sps:$4 sm:$0xff]  }
 0x1b0   :  { %v1711_v28 = vpop.f32.mrf.mxu0  ;;  %v1752_v19 = vpop.f32.mrf.mxu1 }
 0x1b1   :  { %v1762_v29 = vmul.f32 0.5, %v1757_v1  ;;  %v1758_v11 = vadd.f32 %v1711_v28, %v1022_v25  ;;  %v1760_v2 = vadd.f32 %v1752_v19, %v1095_v0  ;;  %v12388_v25 = vld [vmem:[#allocation14 + $0xcc] ss:$16 sps:$4 sm:$0xff]   ;;  %v12389_v28 = vld [vmem:[#allocation14 + $0xc0] ss:$16 sps:$4 sm:$0xff]  }
 0x1b2   :  { %v1713_v24 = vpop.f32.mrf.mxu0  ;;  %v1754_v20 = vpop.f32.mrf.mxu1 }
 0x1b3   :  { %12145 = vtanh.f32 %v1762_v29  ;;  %v1766_v7 = vmul.f32 0.5, %v1758_v11  ;;  %v1771_v60 = vmul.f32 0.5, %v1760_v2  ;;  %v12390_v29 = vld [vmem:[#allocation14 + $0xc8] ss:$16 sps:$4 sm:$0xff]   ;;  %v12391_v24 = vld [vmem:[#allocation14 + $0xa4] ss:$16 sps:$4 sm:$0xff]  }
 0x1b4   :  { %v1714_v22 = vpop.f32.mrf.mxu0  ;;  %v1755_v16 = vpop.f32.mrf.mxu1  ;;  %v12393_v20 = vld [vmem:[#allocation14 + $0xa0] ss:$16 sps:$4 sm:$0xff]  }
 0x1b5   :  { %12147 = vtanh.f32 %v1766_v7  ;;  %v12394_v22 = vld [vmem:[#allocation14 + $0xa8] ss:$16 sps:$4 sm:$0xff]   ;;  %v12397_v2 = vld [vmem:[#allocation14 + $0x80] ss:$16 sps:$4 sm:$0xff]  }
 0x1b6   :  { %12149 = vtanh.f32 %v1759_v9 }
 0x1b7   :  { %12151 = vtanh.f32 %v1771_v60  ;;  %v12401_v60 = vld [vmem:[#allocation14 + $0x60] ss:$16 sps:$4 sm:$0xff]  }
 0x1b8   :  { %v12144_v6 = vpop.eup %12143 }
 0x1b9   :  { %v13133_v54 = vmul.f32 %v12144_v6, %v1465_v32  ;;  %v12395_v32 = vld [vmem:[#allocation14 + $0x84] ss:$16 sps:$4 sm:$0xff]   ;;  %v12396_v6 = vld [vmem:[#allocation14 + $0x8c] ss:$16 sps:$4 sm:$0xff]  }
 0x1bb   :  { %15035 = vst [vmem:[#allocation79_spill] sm:$0xff] %v13133_v54  ;;  %v1792_v18 = vpack.c.bf16 %v13133_v54, %v13133_v54  ;;  %v13227_v54 = vld [vmem:[#allocation12 + $0x20] ss:$16 sps:$4 sm:$0xff]  }
 0x1bd   :  { %2018 = vmatmul.mubr.bf16.vlgmr.msra.gmra.mxu0 %v1792_v18  ;;  %2059 = vmatmul.mubr.bf16.vlgmr.msra.gmra.mxu1 %v1792_v18  ;;  %v12398_v18 = vld [vmem:[#allocation14 + $0x88] ss:$16 sps:$4 sm:$0xff]  }
 0x1be   :  { %2296 = vmatpush1.bf16.msra.mxu0 %v12385_v10  ;;  %2337 = vmatpush1.bf16.msra.mxu1 %v12386_v34  ;;  %v12399_v10 = vld [vmem:[#allocation14 + $0x64] ss:$16 sps:$4 sm:$0xff]   ;;  %v12400_v34 = vld [vmem:[#allocation14 + $0x6c] ss:$16 sps:$4 sm:$0xff]  }
 0x1bf   :  { %2297 = vmatprep.subr.bf16.mxu0 %v12387_v63  ;;  %2338 = vmatprep.subr.bf16.mxu1 %v12388_v25  ;;  %v12402_v63 = vld [vmem:[#allocation14 + $0x68] ss:$16 sps:$4 sm:$0xff]   ;;  %v12403_v25 = vld [vmem:[#allocation14 + $0x44] ss:$16 sps:$4 sm:$0xff]  }
 0x1c0   :  { %v12146_v1 = vpop.eup %12145  ;;  %2327 = vmatprep.mubr.bf16.mxu0 %v15036_v44  ;;  %2368 = vmatprep.mubr.bf16.mxu1 %v15036_v44 }
 0x1c1   :  { %v1764_v35 = vmul.f32 0.5, %v12146_v1  ;;  %v12404_v1 = vld [vmem:[#allocation14 + $0x4c] ss:$16 sps:$4 sm:$0xff]  }
 0x1c2   :  { %v12148_v5 = vpop.eup %12147  ;;  %2298 = vmatpush1.bf16.msra.mxu0 %v12389_v28  ;;  %2339 = vmatpush1.bf16.msra.mxu1 %v12390_v29  ;;  %v12406_v28 = vld [vmem:[#allocation14 + $0x48] ss:$16 sps:$4 sm:$0xff]  }
 0x1c3   :  { %v1765_v11 = vadd.f32 0.5, %v1764_v35  ;;  %v1768_v19 = vmul.f32 0.5, %v12148_v5  ;;  %2299 = vmatprep.subr.bf16.mxu0 %v12391_v24  ;;  %2340 = vmatprep.subr.bf16.mxu1 %v12392_v21  ;;  %v12150_v7 = vpop.eup %12149  ;;  %v12405_v5 = vld [vmem:[#allocation14 + $0x40] ss:$16 sps:$4 sm:$0xff]   ;;  %v12410_v21 = vld [vmem:[#allocation14 + $0x28] ss:$16 sps:$4 sm:$0xff]  }
 0x1c4   :  { %v12152_v35 = vpop.eup %12151  ;;  %v12409_v24 = vld [vmem:[#allocation14 + $0x20] ss:$16 sps:$4 sm:$0xff]  }
 0x1c5   :  { %v1769_v43 = vadd.f32 0.5, %v1768_v19  ;;  %v1776_v16 = vmul.f32 %v12150_v7, %v1765_v11  ;;  %v1773_v29 = vmul.f32 0.5, %v12152_v35  ;;  %v12407_v11 = vld [vmem:[#allocation14 + $0x24] ss:$16 sps:$4 sm:$0xff]   ;;  %v12408_v19 = vld [vmem:[#allocation14 + $0x2c] ss:$16 sps:$4 sm:$0xff]  }
 0x1c6   :  { %2300 = vmatpush1.bf16.msra.mxu0 %v12393_v20  ;;  %2341 = vmatpush1.bf16.msra.mxu1 %v12394_v22  ;;  %v12411_v7 = vld [vmem:[#allocation14 + $0x4] ss:$16 sps:$4 sm:$0xff]   ;;  %v13191_v35 = vld [vmem:[#allocation12 + $0x80] ss:$16 sps:$4 sm:$0xff]  }
 0x1c7   :  { %v1775_v9 = vmul.f32 0.0, %v1769_v43  ;;  %2301 = vmatprep.subr.bf16.mxu0 %v12395_v32  ;;  %2342 = vmatprep.subr.bf16.mxu1 %v12396_v6  ;;  %v1774_v43 = vadd.f32 0.5, %v1773_v29  ;;  %v13153_v32 = vld [vmem:[#allocation12 + $0xec] ss:$16 sps:$4 sm:$0xff]   ;;  %v13157_v6 = vld [vmem:[#allocation12 + $0xe8] ss:$16 sps:$4 sm:$0xff]  }
 0x1c8   :  { %v13201_v29 = vld [vmem:[#allocation12 + $0x6c] ss:$16 sps:$4 sm:$0xff]  }
 0x1c9   :  { %v13139_v0 = vadd.f32 %v1776_v16, %v1775_v9  ;;  %v13151_v16 = vld [vmem:[#allocation12 + $0xe4] ss:$16 sps:$4 sm:$0xff]  }
 0x1ca   :  { %2302 = vmatpush1.bf16.msra.mxu0 %v12397_v2  ;;  %2343 = vmatpush1.bf16.msra.mxu1 %v12398_v18  ;;  %v13167_v2 = vld [vmem:[#allocation12 + $0xc0] ss:$16 sps:$4 sm:$0xff]   ;;  %v13169_v18 = vld [vmem:[#allocation12 + $0xc8] ss:$16 sps:$4 sm:$0xff]  }
 0x1cb   :  { %12153 = vtanh.f32 %v13139_v0  ;;  %2303 = vmatprep.subr.bf16.mxu0 %v12399_v10  ;;  %2344 = vmatprep.subr.bf16.mxu1 %v12400_v34  ;;  %v13175_v10 = vld [vmem:[#allocation12 + $0xa4] ss:$16 sps:$4 sm:$0xff]   ;;  %v13177_v34 = vld [vmem:[#allocation12 + $0xac] ss:$16 sps:$4 sm:$0xff]  }
 0x1ce   :  { %2304 = vmatpush1.bf16.msra.mxu0 %v12401_v60  ;;  %2345 = vmatpush1.bf16.msra.mxu1 %v12402_v63  ;;  %v13179_v60 = vld [vmem:[#allocation12 + $0xa0] ss:$16 sps:$4 sm:$0xff]   ;;  %v13181_v63 = vld [vmem:[#allocation12 + $0xa8] ss:$16 sps:$4 sm:$0xff]  }
 0x1cf   :  { %2305 = vmatprep.subr.bf16.mxu0 %v12403_v25  ;;  %2346 = vmatprep.subr.bf16.mxu1 %v12404_v1  ;;  %v13187_v25 = vld [vmem:[#allocation12 + $0x84] ss:$16 sps:$4 sm:$0xff]   ;;  %v13189_v1 = vld [vmem:[#allocation12 + $0x8c] ss:$16 sps:$4 sm:$0xff]  }
 0x1d2   :  { %2306 = vmatpush1.bf16.msra.mxu0 %v12405_v5  ;;  %2347 = vmatpush1.bf16.msra.mxu1 %v12406_v28  ;;  %v13193_v5 = vld [vmem:[#allocation12 + $0x88] ss:$16 sps:$4 sm:$0xff]   ;;  %v13199_v28 = vld [vmem:[#allocation12 + $0x64] ss:$16 sps:$4 sm:$0xff]  }
 0x1d3   :  { %2307 = vmatprep.subr.bf16.mxu0 %v12407_v11  ;;  %2348 = vmatprep.subr.bf16.mxu1 %v12408_v19  ;;  %v13203_v11 = vld [vmem:[#allocation12 + $0x60] ss:$16 sps:$4 sm:$0xff]   ;;  %v13205_v19 = vld [vmem:[#allocation12 + $0x68] ss:$16 sps:$4 sm:$0xff]  }
 0x1d6   :  { %2308 = vmatpush1.bf16.msra.mxu0 %v12409_v24  ;;  %2349 = vmatpush1.bf16.msra.mxu1 %v12410_v21  ;;  %v13211_v24 = vld [vmem:[#allocation12 + $0x44] ss:$16 sps:$4 sm:$0xff]   ;;  %v13213_v21 = vld [vmem:[#allocation12 + $0x4c] ss:$16 sps:$4 sm:$0xff]  }
 0x1d7   :  { %2309 = vmatprep.subr.bf16.mxu0 %v12411_v7  ;;  %2350 = vmatprep.subr.bf16.mxu1 %v12858_v14  ;;  %v13155_v14 = vld [vmem:[#allocation12 + $0xe0] ss:$16 sps:$4 sm:$0xff]   ;;  %v13217_v7 = vld [vmem:[#allocation12 + $0x48] ss:$16 sps:$4 sm:$0xff]  }
 0x1d8   :  { %v12154_v20 = vpop.eup %12153 }
 0x1d9   :  { %v13143_v22 = vmul.f32 %v12154_v20, %v1774_v43  ;;  %v13215_v43 = vld [vmem:[#allocation12 + $0x40] ss:$16 sps:$4 sm:$0xff]   ;;  %v13223_v20 = vld [vmem:[#allocation12 + $0x24] ss:$16 sps:$4 sm:$0xff]  }
 0x1da   :  { %2310 = vmatpush1.bf16.msra.mxu0 %v12860_v47  ;;  %2351 = vmatpush1.bf16.msra.mxu1 %v12862_v48  ;;  %v13163_v47 = vld [vmem:[#allocation12 + $0xc4] ss:$16 sps:$4 sm:$0xff]   ;;  %v13165_v48 = vld [vmem:[#allocation12 + $0xcc] ss:$16 sps:$4 sm:$0xff]  }
 0x1db   :  { %15037 = vst [vmem:[#allocation80_spill] sm:$0xff] %v13143_v22  ;;  %v2102_v9 = vpack.c.bf16 %v13143_v22, %v13143_v22  ;;  %2605 = vmatprep.subr.bf16.mxu0 %v13151_v16  ;;  %2646 = vmatprep.subr.bf16.mxu1 %v13153_v32  ;;  %v13229_v22 = vld [vmem:[#allocation12 + $0x28] ss:$16 sps:$4 sm:$0xff]  }
 0x1dd   :  { %2328 = vmatmul.mubr.bf16.vlgmr.msra.gmra.mxu0 %v2102_v9  ;;  %2369 = vmatmul.mubr.bf16.vlgmr.msra.gmra.mxu1 %v2102_v9  ;;  %v13225_v9 = vld [vmem:[#allocation12 + $0x2c] ss:$16 sps:$4 sm:$0xff]  }
 0x1de   :  { %2637 = vmatprep.mubr.bf16.mxu0 %v15036_v44  ;;  %2678 = vmatprep.mubr.bf16.mxu1 %v15036_v44 }
 0x1df   :  { %2606 = vmatpush1.bf16.msra.mxu0 %v13155_v14  ;;  %2647 = vmatpush1.bf16.msra.mxu1 %v13157_v6 }
 0x1e0   :  { %2607 = vmatprep.subr.bf16.mxu0 %v13163_v47  ;;  %2648 = vmatprep.subr.bf16.mxu1 %v13165_v48 }
 0x1e3   :  { %2608 = vmatpush1.bf16.msra.mxu0 %v13167_v2  ;;  %2649 = vmatpush1.bf16.msra.mxu1 %v13169_v18 }
 0x1e4   :  { %2609 = vmatprep.subr.bf16.mxu0 %v13175_v10  ;;  %2650 = vmatprep.subr.bf16.mxu1 %v13177_v34 }
 0x1e7   :  { %2610 = vmatpush1.bf16.msra.mxu0 %v13179_v60  ;;  %2651 = vmatpush1.bf16.msra.mxu1 %v13181_v63 }
 0x1e8   :  { %2611 = vmatprep.subr.bf16.mxu0 %v13187_v25  ;;  %2652 = vmatprep.subr.bf16.mxu1 %v13189_v1 }
 0x1eb   :  { %2612 = vmatpush1.bf16.msra.mxu0 %v13191_v35  ;;  %2653 = vmatpush1.bf16.msra.mxu1 %v13193_v5 }
 0x1ec   :  { %2613 = vmatprep.subr.bf16.mxu0 %v13199_v28  ;;  %2654 = vmatprep.subr.bf16.mxu1 %v13201_v29 }
 0x1ef   :  { %2614 = vmatpush1.bf16.msra.mxu0 %v13203_v11  ;;  %2655 = vmatpush1.bf16.msra.mxu1 %v13205_v19 }
 0x1f0   :  { %2615 = vmatprep.subr.bf16.mxu0 %v13211_v24  ;;  %2656 = vmatprep.subr.bf16.mxu1 %v13213_v21 }
 0x1f3   :  { %2616 = vmatpush1.bf16.msra.mxu0 %v13215_v43  ;;  %2657 = vmatpush1.bf16.msra.mxu1 %v13217_v7 }
 0x1f4   :  { %2617 = vmatprep.subr.bf16.mxu0 %v13223_v20  ;;  %2658 = vmatprep.subr.bf16.mxu1 %v13225_v9 }
 0x1f7   :  { %2618 = vmatpush1.bf16.msra.mxu0 %v13227_v54  ;;  %2659 = vmatpush1.bf16.msra.mxu1 %v13229_v22 }
 0x1f8   :  { %2619 = vmatprep.subr.bf16.mxu0 %v13235_v15  ;;  %2660 = vmatprep.subr.bf16.mxu1 %v13237_v59 }
 0x1fb   :  { %2620 = vmatpush1.bf16.msra.mxu0 %v13239_v55  ;;  %2661 = vmatpush1.bf16.msra.mxu1 %v13241_v56 }
 0x1fc   :  { %2915 = vmatprep.subr.bf16.mxu0 %v13247_v50  ;;  %2956 = vmatprep.subr.bf16.mxu1 %v13249_v37 }
 0x27d   :  { %v2019_v52 = vpop.f32.mrf.mxu0  ;;  %v2060_v46 = vpop.f32.mrf.mxu1 }
 0x27e   :  { %v2067_v49 = vadd.f32 %v2019_v52, %v12938_v27  ;;  %v2069_v26 = vadd.f32 %v2060_v46, %v12946_v30 }
 0x27f   :  { %v2021_v45 = vpop.f32.mrf.mxu0  ;;  %v2062_v42 = vpop.f32.mrf.mxu1 }
 0x280   :  { %v2072_v23 = vmul.f32 0.5, %v2067_v49  ;;  %v2068_v8 = vadd.f32 %v2021_v45, %v846_v4  ;;  %v2070_v51 = vadd.f32 %v2062_v42, %v919_v38 }
 0x281   :  { %v2023_v57 = vpop.f32.mrf.mxu0  ;;  %v2064_v17 = vpop.f32.mrf.mxu1 }
 0x282   :  { %12155 = vtanh.f32 %v2072_v23  ;;  %v2076_v40 = vmul.f32 0.5, %v2068_v8  ;;  %v2081_v62 = vmul.f32 0.5, %v2070_v51 }
 0x283   :  { %v2024_v53 = vpop.f32.mrf.mxu0  ;;  %v2065_v41 = vpop.f32.mrf.mxu1 }
 0x284   :  { %12157 = vtanh.f32 %v2076_v40 }
 0x285   :  { %12159 = vtanh.f32 %v2069_v26 }
 0x286   :  { %12161 = vtanh.f32 %v2081_v62 }
 0x28f   :  { %v12156_v27 = vpop.eup %12155 }
 0x290   :  { %v2074_v52 = vmul.f32 0.5, %v12156_v27 }
 0x291   :  { %v12158_v39 = vpop.eup %12157 }
 0x292   :  { %v2075_v49 = vadd.f32 0.5, %v2074_v52  ;;  %v2078_v45 = vmul.f32 0.5, %v12158_v39  ;;  %v12160_v57 = vpop.eup %12159 }
 0x293   :  { %v12162_v38 = vpop.eup %12161 }
 0x294   :  { %v2079_v23 = vadd.f32 0.5, %v2078_v45  ;;  %v2086_v4 = vmul.f32 %v12160_v57, %v2075_v49  ;;  %v2083_v8 = vmul.f32 0.5, %v12162_v38  ;;  %v13268_v57 = vld [vmem:[#allocation14 + $0xe0] ss:$16 sps:$4 sm:$0xff]   ;;  %v13289_v38 = vld [vmem:[#allocation14 + $0xac] ss:$16 sps:$4 sm:$0xff]  }
 0x296   :  { %v2085_v30 = vmul.f32 %v2079_v23, %v13126_v13  ;;  %v2084_v49 = vadd.f32 0.5, %v2083_v8  ;;  %v13270_v23 = vld [vmem:[#allocation14 + $0xe8] ss:$16 sps:$4 sm:$0xff]  }
 0x298   :  { %v13260_v53 = vadd.f32 %v2086_v4, %v2085_v30  ;;  %v13275_v30 = vld [vmem:[#allocation14 + $0xc4] ss:$16 sps:$4 sm:$0xff]  }
 0x29a   :  { %12163 = vtanh.f32 %v13260_v53 }
 0x29d   :  { %v2329_v41 = vpop.f32.mrf.mxu0  ;;  %v2370_v26 = vpop.f32.mrf.mxu1 }
 0x29e   :  { %v2377_v31 = vadd.f32 %v2329_v41, %v13107_v61  ;;  %v2379_v13 = vadd.f32 %v2370_v26, %v13110_v3  ;;  %v13277_v3 = vld [vmem:[#allocation14 + $0xcc] ss:$16 sps:$4 sm:$0xff]   ;;  %v13281_v41 = vld [vmem:[#allocation14 + $0xc0] ss:$16 sps:$4 sm:$0xff]   ;;  %v13283_v26 = vld [vmem:[#allocation14 + $0xc8] ss:$16 sps:$4 sm:$0xff]  }
 0x29f   :  { %v2331_v42 = vpop.f32.mrf.mxu0  ;;  %v2372_v40 = vpop.f32.mrf.mxu1 }
 0x2a0   :  { %v2382_v46 = vmul.f32 0.5, %v2377_v31  ;;  %v2378_v39 = vadd.f32 %v2331_v42, %v13113_v58  ;;  %v2380_v58 = vadd.f32 %v2372_v40, %v13116_v12  ;;  %v13287_v12 = vld [vmem:[#allocation14 + $0xa4] ss:$16 sps:$4 sm:$0xff]  }
 0x2a1   :  { %v2333_v62 = vpop.f32.mrf.mxu0  ;;  %v2374_v17 = vpop.f32.mrf.mxu1 }
 0x2a2   :  { %12165 = vtanh.f32 %v2382_v46  ;;  %v2386_v51 = vmul.f32 0.5, %v2378_v39  ;;  %v2391_v31 = vmul.f32 0.5, %v2380_v58  ;;  %v13295_v39 = vld [vmem:[#allocation14 + $0xa0] ss:$16 sps:$4 sm:$0xff]   ;;  %v13297_v62 = vld [vmem:[#allocation14 + $0xa8] ss:$16 sps:$4 sm:$0xff]  }
 0x2a3   :  { %v2334_v27 = vpop.f32.mrf.mxu0  ;;  %v2375_v52 = vpop.f32.mrf.mxu1  ;;  %v13309_v58 = vld [vmem:[#allocation14 + $0x88] ss:$16 sps:$4 sm:$0xff]  }
 0x2a4   :  { %12167 = vtanh.f32 %v2386_v51  ;;  %v13303_v51 = vld [vmem:[#allocation14 + $0x8c] ss:$16 sps:$4 sm:$0xff]  }
 0x2a5   :  { %12169 = vtanh.f32 %v2379_v13  ;;  %v13301_v13 = vld [vmem:[#allocation14 + $0x84] ss:$16 sps:$4 sm:$0xff]  }
 0x2a6   :  { %12171 = vtanh.f32 %v2391_v31  ;;  %v13314_v31 = vld [vmem:[#allocation14 + $0x64] ss:$16 sps:$4 sm:$0xff]  }
 0x2a7   :  { %v12164_v45 = vpop.eup %12163 }
 0x2a8   :  { %v13266_v61 = vmul.f32 %v12164_v45, %v2084_v49  ;;  %v13307_v45 = vld [vmem:[#allocation14 + $0x80] ss:$16 sps:$4 sm:$0xff]  }
 0x2aa   :  { %15038 = vst [vmem:[#allocation81_spill] sm:$0xff] %v13266_v61  ;;  %v2412_v4 = vpack.c.bf16 %v13266_v61, %v13266_v61 }
 0x2ac   :  { %2638 = vmatmul.mubr.bf16.vlgmr.msra.gmra.mxu0 %v2412_v4  ;;  %2679 = vmatmul.mubr.bf16.vlgmr.msra.gmra.mxu1 %v2412_v4 }
 0x2ad   :  { %2916 = vmatpush1.bf16.msra.mxu0 %v13268_v57  ;;  %2957 = vmatpush1.bf16.msra.mxu1 %v13270_v23 }
 0x2ae   :  { %2917 = vmatprep.subr.bf16.mxu0 %v13275_v30  ;;  %2958 = vmatprep.subr.bf16.mxu1 %v13277_v3 }
 0x2af   :  { %v12166_v42 = vpop.eup %12165  ;;  %2947 = vmatprep.mubr.bf16.mxu0 %v15036_v44  ;;  %2988 = vmatprep.mubr.bf16.mxu1 %v15036_v44 }
 0x2b0   :  { %v2384_v40 = vmul.f32 0.5, %v12166_v42  ;;  %v13316_v42 = vld [vmem:[#allocation14 + $0x6c] ss:$16 sps:$4 sm:$0xff]  }
 0x2b1   :  { %v12168_v46 = vpop.eup %12167  ;;  %2918 = vmatpush1.bf16.msra.mxu0 %v13281_v41  ;;  %2959 = vmatpush1.bf16.msra.mxu1 %v13283_v26  ;;  %15039 = vst [vmem:[#allocation82_spill] sm:$0xff] %v13316_v42 }
 0x2b2   :  { %v2385_v17 = vadd.f32 0.5, %v2384_v40  ;;  %v2388_v8 = vmul.f32 0.5, %v12168_v46  ;;  %2919 = vmatprep.subr.bf16.mxu0 %v13287_v12  ;;  %2960 = vmatprep.subr.bf16.mxu1 %v13289_v38  ;;  %v12170_v27 = vpop.eup %12169  ;;  %v13322_v46 = vld [vmem:[#allocation14 + $0x60] ss:$16 sps:$4 sm:$0xff]  }
 0x2b3   :  { %15040 = vst [vmem:[#allocation83_spill] sm:$0xff] %v13322_v46  ;;  %v12172_v61 = vpop.eup %12171 }
 0x2b4   :  { %v2389_v52 = vadd.f32 0.5, %v2388_v8  ;;  %v2396_v49 = vmul.f32 %v12170_v27, %v2385_v17  ;;  %v13324_v17 = vld [vmem:[#allocation14 + $0x68] ss:$16 sps:$4 sm:$0xff]   ;;  %v13331_v8 = vld [vmem:[#allocation14 + $0x4c] ss:$16 sps:$4 sm:$0xff]  }
 0x2b5   :  { %2920 = vmatpush1.bf16.msra.mxu0 %v13295_v39  ;;  %2961 = vmatpush1.bf16.msra.mxu1 %v13297_v62  ;;  %15041 = vst [vmem:[#allocation84_spill] sm:$0xff] %v13324_v17  ;;  %15043 = vst [vmem:[#allocation86_spill] sm:$0xff] %v13331_v8  ;;  %v13335_v27 = vld [vmem:[#allocation14 + $0x40] ss:$16 sps:$4 sm:$0xff]  }
 0x2b6   :  { %v2395_v4 = vmul.f32 %v2389_v52, %v13139_v0  ;;  %2921 = vmatprep.subr.bf16.mxu0 %v13301_v13  ;;  %2962 = vmatprep.subr.bf16.mxu1 %v13303_v51  ;;  %v13329_v0 = vld [vmem:[#allocation14 + $0x44] ss:$16 sps:$4 sm:$0xff]   ;;  %15044 = vst [vmem:[#allocation87_spill] sm:$0xff] %v13335_v27  ;;  %v13337_v52 = vld [vmem:[#allocation14 + $0x48] ss:$16 sps:$4 sm:$0xff]  }
 0x2b7   :  { %15042 = vst [vmem:[#allocation85_spill] sm:$0xff] %v13329_v0  ;;  %15045 = vst [vmem:[#allocation88_spill] sm:$0xff] %v13337_v52 }
 0x2b8   :  { %v13318_v40 = vadd.f32 %v2396_v49, %v2395_v4  ;;  %v13341_v49 = vld [vmem:[#allocation14 + $0x24] ss:$16 sps:$4 sm:$0xff]   ;;  %v13343_v4 = vld [vmem:[#allocation14 + $0x2c] ss:$16 sps:$4 sm:$0xff]  }
 0x2b9   :  { %2922 = vmatpush1.bf16.msra.mxu0 %v13307_v45  ;;  %2963 = vmatpush1.bf16.msra.mxu1 %v13309_v58  ;;  %15046 = vst [vmem:[#allocation89_spill] sm:$0xff] %v13341_v49 }
 0x2ba   :  { %12173 = vtanh.f32 %v13318_v40  ;;  %2923 = vmatprep.subr.bf16.mxu0 %v13314_v31  ;;  %2964 = vmatprep.subr.bf16.mxu1 %v13316_v42 }
 0x2bd   :  { %2924 = vmatpush1.bf16.msra.mxu0 %v13322_v46  ;;  %2965 = vmatpush1.bf16.msra.mxu1 %v13324_v17  ;;  %v13349_v17 = vld [vmem:[#allocation14 + $0x28] ss:$16 sps:$4 sm:$0xff]   ;;  %v2393_v46 = vmul.f32 0.5, %v12172_v61 }
 0x2be   :  { %2925 = vmatprep.subr.bf16.mxu0 %v13329_v0  ;;  %2966 = vmatprep.subr.bf16.mxu1 %v13331_v8  ;;  %v13353_v0 = vld [vmem:[#allocation14 + $0x4] ss:$16 sps:$4 sm:$0xff]   ;;  %v13355_v8 = vld [vmem:[#allocation14 + $0xc] ss:$16 sps:$4 sm:$0xff]  }
 0x2bf   :  { %v2394_v42 = vadd.f32 0.5, %v2393_v46 }
 0x2c1   :  { %2926 = vmatpush1.bf16.msra.mxu0 %v13335_v27  ;;  %2967 = vmatpush1.bf16.msra.mxu1 %v13337_v52  ;;  %v13359_v27 = vld [vmem:[#allocation14] ss:$16 sps:$4 sm:$0xff]   ;;  %v13361_v52 = vld [vmem:[#allocation14 + $0x8] ss:$16 sps:$4 sm:$0xff]  }
 0x2c2   :  { %2927 = vmatprep.subr.bf16.mxu0 %v13341_v49  ;;  %2968 = vmatprep.subr.bf16.mxu1 %v13343_v4 }
 0x2c5   :  { %2928 = vmatpush1.bf16.msra.mxu0 %v13347_v36  ;;  %2969 = vmatpush1.bf16.msra.mxu1 %v13349_v17 }
 0x2c6   :  { %2929 = vmatprep.subr.bf16.mxu0 %v13353_v0  ;;  %2970 = vmatprep.subr.bf16.mxu1 %v13355_v8 }
 0x2c7   :  { %v12174_v61 = vpop.eup %12173 }
 0x2c8   :  { %v13365_v49 = vmul.f32 %v12174_v61, %v2394_v42 }
 0x2c9   :  { %2930 = vmatpush1.bf16.msra.mxu0 %v13359_v27  ;;  %2971 = vmatpush1.bf16.msra.mxu1 %v13361_v52 }
 0x2ca   :  { %15048 = vst [vmem:[#allocation91_spill] sm:$0xff] %v13365_v49  ;;  %v2722_v36 = vpack.c.bf16 %v13365_v49, %v13365_v49  ;;  %3225 = vmatprep.subr.bf16.mxu0 %v13151_v16  ;;  %3266 = vmatprep.subr.bf16.mxu1 %v13153_v32  ;;  %v13632_v49 = vld [vmem:[#allocation14 + $0x6c] ss:$16 sps:$4 sm:$0xff]  }
 0x2cc   :  { %2948 = vmatmul.mubr.bf16.vlgmr.msra.gmra.mxu0 %v2722_v36  ;;  %2989 = vmatmul.mubr.bf16.vlgmr.msra.gmra.mxu1 %v2722_v36 }
 0x2cd   :  { %3226 = vmatpush1.bf16.msra.mxu0 %v13155_v14  ;;  %3267 = vmatpush1.bf16.msra.mxu1 %v13157_v6 }
 0x2ce   :  { %3227 = vmatprep.subr.bf16.mxu0 %v13163_v47  ;;  %3268 = vmatprep.subr.bf16.mxu1 %v13165_v48 }
 0x2cf   :  { %3257 = vmatprep.mubr.bf16.mxu0 %v15036_v44  ;;  %3298 = vmatprep.mubr.bf16.mxu1 %v15036_v44 }
 0x2d1   :  { %3228 = vmatpush1.bf16.msra.mxu0 %v13167_v2  ;;  %3269 = vmatpush1.bf16.msra.mxu1 %v13169_v18 }
 0x2d2   :  { %3229 = vmatprep.subr.bf16.mxu0 %v13175_v10  ;;  %3270 = vmatprep.subr.bf16.mxu1 %v13177_v34 }
 0x2d5   :  { %3230 = vmatpush1.bf16.msra.mxu0 %v13179_v60  ;;  %3271 = vmatpush1.bf16.msra.mxu1 %v13181_v63 }
 0x2d6   :  { %3231 = vmatprep.subr.bf16.mxu0 %v13187_v25  ;;  %3272 = vmatprep.subr.bf16.mxu1 %v13189_v1 }
 0x2d9   :  { %3232 = vmatpush1.bf16.msra.mxu0 %v13191_v35  ;;  %3273 = vmatpush1.bf16.msra.mxu1 %v13193_v5 }
 0x2da   :  { %3233 = vmatprep.subr.bf16.mxu0 %v13199_v28  ;;  %3274 = vmatprep.subr.bf16.mxu1 %v13201_v29 }
 0x2dd   :  { %3234 = vmatpush1.bf16.msra.mxu0 %v13203_v11  ;;  %3275 = vmatpush1.bf16.msra.mxu1 %v13205_v19 }
 0x2de   :  { %3235 = vmatprep.subr.bf16.mxu0 %v13211_v24  ;;  %3276 = vmatprep.subr.bf16.mxu1 %v13213_v21  ;;  %v15052_v24 = vld [vmem:[#allocation53_spill] sm:$0xff] }
 0x2df   :  { %v15053_v21 = vld [vmem:[#allocation77_spill] sm:$0xff] }
 0x2e0   :  { %15081 = vst [vmem:[#allocation77_spill] sm:$0xff] %v13632_v49 }
 0x2e1   :  { %3236 = vmatpush1.bf16.msra.mxu0 %v13215_v43  ;;  %3277 = vmatpush1.bf16.msra.mxu1 %v13217_v7  ;;  %v1012_v43 = vadd.f32 %v15053_v21, %v15052_v24  ;;  %v15054_v7 = vld [vmem:[#allocation75_spill] sm:$0xff] }
 0x2e2   :  { %3237 = vmatprep.subr.bf16.mxu0 %v13223_v20  ;;  %3278 = vmatprep.subr.bf16.mxu1 %v13225_v9  ;;  %v13493_v21 = vld [vmem:[#allocation12 + $0xac] ss:$16 sps:$4 sm:$0xff]  }
 0x2e5   :  { %3238 = vmatpush1.bf16.msra.mxu0 %v13227_v54  ;;  %3279 = vmatpush1.bf16.msra.mxu1 %v13229_v22  ;;  %v15049_v22 = vld [vmem:[#allocation31_spill] sm:$0xff] }
 0x2e6   :  { %3239 = vmatprep.subr.bf16.mxu0 %v13235_v15  ;;  %3280 = vmatprep.subr.bf16.mxu1 %v13237_v59  ;;  %v15050_v59 = vld [vmem:[#allocation30_spill] sm:$0xff] }
 0x2e9   :  { %3240 = vmatpush1.bf16.msra.mxu0 %v13239_v55  ;;  %3281 = vmatpush1.bf16.msra.mxu1 %v13241_v56 }
 0x2ea   :  { %3535 = vmatprep.subr.bf16.mxu0 %v13247_v50  ;;  %3576 = vmatprep.subr.bf16.mxu1 %v13249_v37  ;;  %v15051_v50 = vld [vmem:[#allocation32_spill] sm:$0xff] }
 0x36c   :  { %v2639_v36 = vpop.f32.mrf.mxu0  ;;  %v2680_v16 = vpop.f32.mrf.mxu1 }
 0x36d   :  { %v2687_v32 = vadd.f32 %v2639_v36, %v12955_v33  ;;  %v2689_v55 = vadd.f32 %v2680_v16, %v15050_v59  ;;  %v15056_v59 = vld [vmem:[#allocation54_spill] sm:$0xff] }
 0x36e   :  { %v2641_v14 = vpop.f32.mrf.mxu0  ;;  %v2682_v54 = vpop.f32.mrf.mxu1 }
 0x36f   :  { %v2692_v6 = vmul.f32 0.5, %v2687_v32  ;;  %v2688_v47 = vadd.f32 %v2641_v14, %v15049_v22  ;;  %v2690_v37 = vadd.f32 %v2682_v54, %v15051_v50 }
 0x370   :  { %v2643_v15 = vpop.f32.mrf.mxu0  ;;  %v2684_v48 = vpop.f32.mrf.mxu1 }
 0x371   :  { %12175 = vtanh.f32 %v2692_v6  ;;  %v2696_v2 = vmul.f32 0.5, %v2688_v47  ;;  %v2701_v10 = vmul.f32 0.5, %v2690_v37 }
 0x372   :  { %v2644_v56 = vpop.f32.mrf.mxu0  ;;  %v2685_v18 = vpop.f32.mrf.mxu1 }
 0x373   :  { %12177 = vtanh.f32 %v2696_v2 }
 0x374   :  { %12179 = vtanh.f32 %v2689_v55  ;;  %v15057_v55 = vld [vmem:[#allocation78_spill] sm:$0xff] }
 0x375   :  { %12181 = vtanh.f32 %v2701_v10  ;;  %v1085_v2 = vadd.f32 %v15057_v55, %v15056_v59  ;;  %v13551_v55 = vld [vmem:[#allocation12 + $0x4] ss:$16 sps:$4 sm:$0xff]  }
 0x37e   :  { %v12176_v34 = vpop.eup %12175 }
 0x37f   :  { %v2694_v33 = vmul.f32 0.5, %v12176_v34 }
 0x380   :  { %v12178_v60 = vpop.eup %12177 }
 0x381   :  { %v2695_v63 = vadd.f32 0.5, %v2694_v33  ;;  %v2698_v25 = vmul.f32 0.5, %v12178_v60  ;;  %v12180_v1 = vpop.eup %12179 }
 0x382   :  { %v12182_v9 = vpop.eup %12181 }
 0x383   :  { %v2699_v35 = vadd.f32 0.5, %v2698_v25  ;;  %v2706_v5 = vmul.f32 %v12180_v1, %v2695_v63  ;;  %v2703_v14 = vmul.f32 0.5, %v12182_v9  ;;  %v13505_v9 = vld [vmem:[#allocation12 + $0x8c] ss:$16 sps:$4 sm:$0xff]  }
 0x385   :  { %v2705_v28 = vmul.f32 %v2699_v35, %v13260_v53  ;;  %v15055_v53 = vld [vmem:[#allocation76_spill] sm:$0xff]  ;;  %v2704_v15 = vadd.f32 0.5, %v2703_v14 }
 0x386   :  { %v13527_v14 = vld [vmem:[#allocation12 + $0x44] ss:$16 sps:$4 sm:$0xff]  }
 0x387   :  { %v13412_v29 = vadd.f32 %v2706_v5, %v2705_v28  ;;  %v13483_v28 = vld [vmem:[#allocation12 + $0xc0] ss:$16 sps:$4 sm:$0xff]  }
 0x389   :  { %12183 = vtanh.f32 %v13412_v29 }
 0x38c   :  { %v2949_v11 = vpop.f32.mrf.mxu0  ;;  %v2990_v19 = vpop.f32.mrf.mxu1 }
 0x38d   :  { %v2997_v20 = vadd.f32 %v2949_v11, %v15054_v7  ;;  %v2999_v54 = vadd.f32 %v2990_v19, %v15055_v53  ;;  %v13485_v11 = vld [vmem:[#allocation12 + $0xc8] ss:$16 sps:$4 sm:$0xff]   ;;  %v13491_v19 = vld [vmem:[#allocation12 + $0xa4] ss:$16 sps:$4 sm:$0xff]   ;;  %v13529_v53 = vld [vmem:[#allocation12 + $0x4c] ss:$16 sps:$4 sm:$0xff]  }
 0x38e   :  { %v2951_v42 = vpop.f32.mrf.mxu0  ;;  %v2992_v46 = vpop.f32.mrf.mxu1  ;;  %v13497_v7 = vld [vmem:[#allocation12 + $0xa8] ss:$16 sps:$4 sm:$0xff]  }
 0x38f   :  { %v3002_v61 = vmul.f32 0.5, %v2997_v20  ;;  %v2998_v36 = vadd.f32 %v2951_v42, %v1012_v43  ;;  %v3000_v18 = vadd.f32 %v2992_v46, %v1085_v2  ;;  %v13495_v43 = vld [vmem:[#allocation12 + $0xa0] ss:$16 sps:$4 sm:$0xff]   ;;  %v13503_v20 = vld [vmem:[#allocation12 + $0x84] ss:$16 sps:$4 sm:$0xff]  }
 0x390   :  { %v2953_v16 = vpop.f32.mrf.mxu0  ;;  %v2994_v32 = vpop.f32.mrf.mxu1  ;;  %v13507_v42 = vld [vmem:[#allocation12 + $0x80] ss:$16 sps:$4 sm:$0xff]   ;;  %v13509_v46 = vld [vmem:[#allocation12 + $0x88] ss:$16 sps:$4 sm:$0xff]   ;;  %v13553_v2 = vld [vmem:[#allocation12 + $0xc] ss:$16 sps:$4 sm:$0xff]  }
 0x391   :  { %12185 = vtanh.f32 %v3002_v61  ;;  %v3006_v6 = vmul.f32 0.5, %v2998_v36  ;;  %v3011_v37 = vmul.f32 0.5, %v3000_v18  ;;  %v13515_v61 = vld [vmem:[#allocation12 + $0x64] ss:$16 sps:$4 sm:$0xff]   ;;  %v13517_v36 = vld [vmem:[#allocation12 + $0x6c] ss:$16 sps:$4 sm:$0xff]  }
 0x392   :  { %v2954_v22 = vpop.f32.mrf.mxu0  ;;  %v2995_v47 = vpop.f32.mrf.mxu1  ;;  %v13519_v16 = vld [vmem:[#allocation12 + $0x60] ss:$16 sps:$4 sm:$0xff]   ;;  %v13521_v32 = vld [vmem:[#allocation12 + $0x68] ss:$16 sps:$4 sm:$0xff]  }
 0x393   :  { %12187 = vtanh.f32 %v3006_v6  ;;  %v13533_v6 = vld [vmem:[#allocation12 + $0x48] ss:$16 sps:$4 sm:$0xff]   ;;  %v13539_v22 = vld [vmem:[#allocation12 + $0x24] ss:$16 sps:$4 sm:$0xff]   ;;  %v13541_v47 = vld [vmem:[#allocation12 + $0x2c] ss:$16 sps:$4 sm:$0xff]  }
 0x394   :  { %12189 = vtanh.f32 %v2999_v54  ;;  %v13531_v54 = vld [vmem:[#allocation12 + $0x40] ss:$16 sps:$4 sm:$0xff]  }
 0x395   :  { %12191 = vtanh.f32 %v3011_v37  ;;  %v13555_v18 = vld [vmem:[#allocation12] ss:$16 sps:$4 sm:$0xff]   ;;  %v13563_v37 = vld [vmem:[#allocation14 + $0xe4] ss:$16 sps:$4 sm:$0xff]  }
 0x396   :  { %v12184_v48 = vpop.eup %12183 }
 0x397   :  { %v13421_v56 = vmul.f32 %v12184_v48, %v2704_v15  ;;  %v13543_v15 = vld [vmem:[#allocation12 + $0x20] ss:$16 sps:$4 sm:$0xff]   ;;  %v13545_v48 = vld [vmem:[#allocation12 + $0x28] ss:$16 sps:$4 sm:$0xff]  }
 0x399   :  { %15058 = vst [vmem:[#allocation31_spill] sm:$0xff] %v13421_v56  ;;  %v3032_v50 = vpack.c.bf16 %v13421_v56, %v13421_v56 }
 0x39b   :  { %3258 = vmatmul.mubr.bf16.vlgmr.msra.gmra.mxu0 %v3032_v50  ;;  %3299 = vmatmul.mubr.bf16.vlgmr.msra.gmra.mxu1 %v3032_v50  ;;  %v13557_v50 = vld [vmem:[#allocation12 + $0x8] ss:$16 sps:$4 sm:$0xff]  }
 0x39c   :  { %3536 = vmatpush1.bf16.msra.mxu0 %v13268_v57  ;;  %3577 = vmatpush1.bf16.msra.mxu1 %v13270_v23 }
 0x39d   :  { %3537 = vmatprep.subr.bf16.mxu0 %v13275_v30  ;;  %3578 = vmatprep.subr.bf16.mxu1 %v13277_v3 }
 0x39e   :  { %v12186_v10 = vpop.eup %12185  ;;  %3567 = vmatprep.mubr.bf16.mxu0 %v15036_v44  ;;  %3608 = vmatprep.mubr.bf16.mxu1 %v15036_v44 }
 0x39f   :  { %v3004_v34 = vmul.f32 0.5, %v12186_v10  ;;  %v13565_v10 = vld [vmem:[#allocation14 + $0xec] ss:$16 sps:$4 sm:$0xff]  }
 0x3a0   :  { %v12188_v33 = vpop.eup %12187  ;;  %3538 = vmatpush1.bf16.msra.mxu0 %v13281_v41  ;;  %3579 = vmatpush1.bf16.msra.mxu1 %v13283_v26  ;;  %v15059_v26 = vld [vmem:[#allocation82_spill] sm:$0xff] }
 0x3a1   :  { %v3005_v60 = vadd.f32 0.5, %v3004_v34  ;;  %v3008_v57 = vmul.f32 0.5, %v12188_v33  ;;  %3539 = vmatprep.subr.bf16.mxu0 %v13287_v12  ;;  %3580 = vmatprep.subr.bf16.mxu1 %v13289_v38  ;;  %v12190_v23 = vpop.eup %12189  ;;  %v15060_v12 = vld [vmem:[#allocation83_spill] sm:$0xff]  ;;  %v15061_v38 = vld [vmem:[#allocation84_spill] sm:$0xff] }
 0x3a3   :  { %v3009_v30 = vadd.f32 0.5, %v3008_v57  ;;  %v3016_v3 = vmul.f32 %v12190_v23, %v3005_v60  ;;  %v15069_v60 = vld [vmem:[#allocation28_spill] sm:$0xff]  ;;  %v15070_v57 = vld [vmem:[#allocation34_spill] sm:$0xff] }
 0x3a4   :  { %3540 = vmatpush1.bf16.msra.mxu0 %v13295_v39  ;;  %3581 = vmatpush1.bf16.msra.mxu1 %v13297_v62  ;;  %v15062_v39 = vld [vmem:[#allocation85_spill] sm:$0xff]  ;;  %v15063_v62 = vld [vmem:[#allocation86_spill] sm:$0xff]  ;;  %v856_v23 = vadd.f32 %v15070_v57, %v15069_v60 }
 0x3a5   :  { %v3015_v63 = vmul.f32 %v3009_v30, %v13318_v40  ;;  %3541 = vmatprep.subr.bf16.mxu0 %v13301_v13  ;;  %3582 = vmatprep.subr.bf16.mxu1 %v13303_v51  ;;  %v12192_v13 = vpop.eup %12191  ;;  %v15064_v51 = vld [vmem:[#allocation87_spill] sm:$0xff]  ;;  %v15066_v40 = vld [vmem:[#allocation89_spill] sm:$0xff] }
 0x3a6   :  { %v15071_v30 = vld [vmem:[#allocation33_spill] sm:$0xff] }
 0x3a7   :  { %v13440_v41 = vadd.f32 %v3016_v3, %v3015_v63 }
 0x3a8   :  { %3542 = vmatpush1.bf16.msra.mxu0 %v13307_v45  ;;  %3583 = vmatpush1.bf16.msra.mxu1 %v13309_v58  ;;  %v15065_v45 = vld [vmem:[#allocation88_spill] sm:$0xff]  ;;  %v3013_v58 = vmul.f32 0.5, %v12192_v13  ;;  %v15072_v13 = vld [vmem:[#allocation35_spill] sm:$0xff] }
 0x3a9   :  { %12193 = vtanh.f32 %v13440_v41  ;;  %3543 = vmatprep.subr.bf16.mxu0 %v13314_v31  ;;  %3584 = vmatprep.subr.bf16.mxu1 %v15059_v26  ;;  %v15067_v31 = vld [vmem:[#allocation90_spill] sm:$0xff] }
 0x3aa   :  { %v3014_v25 = vadd.f32 0.5, %v3013_v58 }
 0x3ac   :  { %3544 = vmatpush1.bf16.msra.mxu0 %v15060_v12  ;;  %3585 = vmatpush1.bf16.msra.mxu1 %v15061_v38 }
 0x3ad   :  { %3545 = vmatprep.subr.bf16.mxu0 %v15062_v39  ;;  %3586 = vmatprep.subr.bf16.mxu1 %v15063_v62 }
 0x3b0   :  { %3546 = vmatpush1.bf16.msra.mxu0 %v15064_v51  ;;  %3587 = vmatpush1.bf16.msra.mxu1 %v15065_v45 }
 0x3b1   :  { %3547 = vmatprep.subr.bf16.mxu0 %v15066_v40  ;;  %3588 = vmatprep.subr.bf16.mxu1 %v13343_v4  ;;  %v13473_v4 = vld [vmem:[#allocation12 + $0xe8] ss:$16 sps:$4 sm:$0xff]  }
 0x3b4   :  { %3548 = vmatpush1.bf16.msra.mxu0 %v15067_v31  ;;  %3589 = vmatpush1.bf16.msra.mxu1 %v13349_v17  ;;  %v13467_v17 = vld [vmem:[#allocation12 + $0xe4] ss:$16 sps:$4 sm:$0xff]   ;;  %v15073_v31 = vld [vmem:[#allocation29_spill] sm:$0xff] }
 0x3b5   :  { %3549 = vmatprep.subr.bf16.mxu0 %v13353_v0  ;;  %3590 = vmatprep.subr.bf16.mxu1 %v13355_v8  ;;  %v13469_v0 = vld [vmem:[#allocation12 + $0xec] ss:$16 sps:$4 sm:$0xff]   ;;  %v13471_v8 = vld [vmem:[#allocation12 + $0xe0] ss:$16 sps:$4 sm:$0xff]  }
 0x3b6   :  { %v12194_v1 = vpop.eup %12193 }
 0x3b7   :  { %v13459_v35 = vmul.f32 %v12194_v1, %v3014_v25  ;;  %v15074_v25 = vld [vmem:[#allocation36_spill] sm:$0xff] }
 0x3b8   :  { %3550 = vmatpush1.bf16.msra.mxu0 %v13359_v27  ;;  %3591 = vmatpush1.bf16.msra.mxu1 %v13361_v52  ;;  %v13479_v27 = vld [vmem:[#allocation12 + $0xc4] ss:$16 sps:$4 sm:$0xff]   ;;  %v13481_v52 = vld [vmem:[#allocation12 + $0xcc] ss:$16 sps:$4 sm:$0xff]   ;;  %v929_v1 = vadd.f32 %v15074_v25, %v15073_v31 }
 0x3b9   :  { %15068 = vst [vmem:[#allocation30_spill] sm:$0xff] %v13459_v35  ;;  %v3342_v5 = vpack.c.bf16 %v13459_v35, %v13459_v35  ;;  %3842 = vmatprep.subr.bf16.mxu0 %v13467_v17  ;;  %3883 = vmatprep.subr.bf16.mxu1 %v13469_v0  ;;  %v13657_v35 = vld [vmem:[#allocation14 + $0x24] ss:$16 sps:$4 sm:$0xff]   ;;  %v13659_v31 = vld [vmem:[#allocation14 + $0x2c] ss:$16 sps:$4 sm:$0xff]  }
 0x3ba   :  { %15088 = vst [vmem:[#allocation84_spill] sm:$0xff] %v13657_v35 }
 0x3bb   :  { %3568 = vmatmul.mubr.bf16.vlgmr.msra.gmra.mxu0 %v3342_v5  ;;  %3609 = vmatmul.mubr.bf16.vlgmr.msra.gmra.mxu1 %v3342_v5 }
 0x3bc   :  { %3874 = vmatprep.mubr.bf16.mxu0 %v15036_v44  ;;  %3915 = vmatprep.mubr.bf16.mxu1 %v15036_v44 }
 0x3bd   :  { %3843 = vmatpush1.bf16.msra.mxu0 %v13471_v8  ;;  %3884 = vmatpush1.bf16.msra.mxu1 %v13473_v4 }
 0x3be   :  { %3844 = vmatprep.subr.bf16.mxu0 %v13479_v27  ;;  %3885 = vmatprep.subr.bf16.mxu1 %v13481_v52 }
 0x3c1   :  { %3845 = vmatpush1.bf16.msra.mxu0 %v13483_v28  ;;  %3886 = vmatpush1.bf16.msra.mxu1 %v13485_v11 }
 0x3c2   :  { %3846 = vmatprep.subr.bf16.mxu0 %v13491_v19  ;;  %3887 = vmatprep.subr.bf16.mxu1 %v13493_v21 }
 0x3c5   :  { %3847 = vmatpush1.bf16.msra.mxu0 %v13495_v43  ;;  %3888 = vmatpush1.bf16.msra.mxu1 %v13497_v7 }
 0x3c6   :  { %3848 = vmatprep.subr.bf16.mxu0 %v13503_v20  ;;  %3889 = vmatprep.subr.bf16.mxu1 %v13505_v9 }
 0x3c9   :  { %3849 = vmatpush1.bf16.msra.mxu0 %v13507_v42  ;;  %3890 = vmatpush1.bf16.msra.mxu1 %v13509_v46 }
 0x3ca   :  { %3850 = vmatprep.subr.bf16.mxu0 %v13515_v61  ;;  %3891 = vmatprep.subr.bf16.mxu1 %v13517_v36 }
 0x3cd   :  { %3851 = vmatpush1.bf16.msra.mxu0 %v13519_v16  ;;  %3892 = vmatpush1.bf16.msra.mxu1 %v13521_v32 }
 0x3ce   :  { %3852 = vmatprep.subr.bf16.mxu0 %v13527_v14  ;;  %3893 = vmatprep.subr.bf16.mxu1 %v13529_v53 }
 0x3d1   :  { %3853 = vmatpush1.bf16.msra.mxu0 %v13531_v54  ;;  %3894 = vmatpush1.bf16.msra.mxu1 %v13533_v6 }
 0x3d2   :  { %3854 = vmatprep.subr.bf16.mxu0 %v13539_v22  ;;  %3895 = vmatprep.subr.bf16.mxu1 %v13541_v47 }
 0x3d5   :  { %3855 = vmatpush1.bf16.msra.mxu0 %v13543_v15  ;;  %3896 = vmatpush1.bf16.msra.mxu1 %v13545_v48 }
 0x3d6   :  { %3856 = vmatprep.subr.bf16.mxu0 %v13551_v55  ;;  %3897 = vmatprep.subr.bf16.mxu1 %v13553_v2 }
 0x3d9   :  { %3857 = vmatpush1.bf16.msra.mxu0 %v13555_v18  ;;  %3898 = vmatpush1.bf16.msra.mxu1 %v13557_v50 }
 0x3da   :  { %4149 = vmatprep.subr.bf16.mxu0 %v13563_v37  ;;  %4190 = vmatprep.subr.bf16.mxu1 %v13565_v10 }
 0x45b   :  { %v3259_v34 = vpop.f32.mrf.mxu0  ;;  %v3300_v33 = vpop.f32.mrf.mxu1 }
 0x45c   :  { %v3307_v3 = vadd.f32 %v3259_v34, %v15071_v30  ;;  %v3309_v51 = vadd.f32 %v3300_v33, %v15072_v13 }
 0x45d   :  { %v3261_v63 = vpop.f32.mrf.mxu0  ;;  %v3302_v26 = vpop.f32.mrf.mxu1 }
 0x45e   :  { %v3312_v12 = vmul.f32 0.5, %v3307_v3  ;;  %v3308_v38 = vadd.f32 %v3261_v63, %v856_v23  ;;  %v3310_v5 = vadd.f32 %v3302_v26, %v929_v1  ;;  %v15076_v1 = vld [vmem:[#allocation73_spill] sm:$0xff] }
 0x45f   :  { %v3263_v39 = vpop.f32.mrf.mxu0  ;;  %v3304_v62 = vpop.f32.mrf.mxu1 }
 0x460   :  { %12195 = vtanh.f32 %v3312_v12  ;;  %v3316_v45 = vmul.f32 0.5, %v3308_v38  ;;  %v3321_v57 = vmul.f32 0.5, %v3310_v5 }
 0x461   :  { %v3264_v58 = vpop.f32.mrf.mxu0  ;;  %v3305_v40 = vpop.f32.mrf.mxu1 }
 0x462   :  { %12197 = vtanh.f32 %v3316_v45 }
 0x463   :  { %12199 = vtanh.f32 %v3309_v51  ;;  %v15075_v51 = vld [vmem:[#allocation71_spill] sm:$0xff] }
 0x464   :  { %12201 = vtanh.f32 %v3321_v57 }
 0x46d   :  { %v12196_v34 = vpop.eup %12195 }
 0x46e   :  { %v3314_v30 = vmul.f32 0.5, %v12196_v34 }
 0x46f   :  { %v12198_v56 = vpop.eup %12197 }
 0x470   :  { %v3315_v3 = vadd.f32 0.5, %v3314_v30  ;;  %v3318_v23 = vmul.f32 0.5, %v12198_v56  ;;  %v12200_v63 = vpop.eup %12199  ;;  %v15077_v30 = vld [vmem:[#allocation72_spill] sm:$0xff] }
 0x471   :  { %v12202_v45 = vpop.eup %12201 }
 0x472   :  { %v3319_v12 = vadd.f32 0.5, %v3318_v23  ;;  %v3326_v39 = vmul.f32 %v12200_v63, %v3315_v3  ;;  %v3323_v34 = vmul.f32 0.5, %v12202_v45 }
 0x474   :  { %v3325_v33 = vmul.f32 %v3319_v12, %v13412_v29  ;;  %v3324_v12 = vadd.f32 0.5, %v3323_v34 }
 0x476   :  { %v13576_v38 = vadd.f32 %v3326_v39, %v3325_v33 }
 0x478   :  { %12203 = vtanh.f32 %v13576_v38 }
 0x47b   :  { %v3569_v62 = vpop.f32.mrf.mxu0  ;;  %v3610_v13 = vpop.f32.mrf.mxu1 }
 0x47c   :  { %v3617_v26 = vadd.f32 %v3569_v62, %v15075_v51  ;;  %v3619_v29 = vadd.f32 %v3610_v13, %v15077_v30  ;;  %v13584_v62 = vld [vmem:[#allocation14 + $0xe0] ss:$16 sps:$4 sm:$0xff]   ;;  %v13586_v51 = vld [vmem:[#allocation14 + $0xe8] ss:$16 sps:$4 sm:$0xff]   ;;  %v13593_v13 = vld [vmem:[#allocation14 + $0xcc] ss:$16 sps:$4 sm:$0xff]  }
 0x47d   :  { %v3571_v58 = vpop.f32.mrf.mxu0  ;;  %v3612_v40 = vpop.f32.mrf.mxu1 }
 0x47e   :  { %v3622_v25 = vmul.f32 0.5, %v3617_v26  ;;  %v3618_v56 = vadd.f32 %v3571_v58, %v15076_v1  ;;  %v15079_v26 = vld [vmem:[#allocation74_spill] sm:$0xff] }
 0x47f   :  { %v3573_v5 = vpop.f32.mrf.mxu0  ;;  %v3614_v57 = vpop.f32.mrf.mxu1  ;;  %v3620_v58 = vadd.f32 %v3612_v40, %v15079_v26  ;;  %v13597_v1 = vld [vmem:[#allocation14 + $0xc0] ss:$16 sps:$4 sm:$0xff]   ;;  %v13603_v40 = vld [vmem:[#allocation14 + $0xa4] ss:$16 sps:$4 sm:$0xff]   ;;  %v13619_v26 = vld [vmem:[#allocation14 + $0x8c] ss:$16 sps:$4 sm:$0xff]  }
 0x480   :  { %12205 = vtanh.f32 %v3622_v25  ;;  %v3626_v3 = vmul.f32 0.5, %v3618_v56  ;;  %v13591_v25 = vld [vmem:[#allocation14 + $0xc4] ss:$16 sps:$4 sm:$0xff]   ;;  %v13599_v56 = vld [vmem:[#allocation14 + $0xc8] ss:$16 sps:$4 sm:$0xff]  }
 0x481   :  { %v3574_v23 = vpop.f32.mrf.mxu0  ;;  %v3615_v63 = vpop.f32.mrf.mxu1  ;;  %v3631_v5 = vmul.f32 0.5, %v3620_v58  ;;  %v13605_v57 = vld [vmem:[#allocation14 + $0xac] ss:$16 sps:$4 sm:$0xff]  }
 0x482   :  { %12207 = vtanh.f32 %v3626_v3  ;;  %v13611_v3 = vld [vmem:[#allocation14 + $0xa0] ss:$16 sps:$4 sm:$0xff]   ;;  %v13613_v23 = vld [vmem:[#allocation14 + $0xa8] ss:$16 sps:$4 sm:$0xff]  }
 0x483   :  { %12209 = vtanh.f32 %v3619_v29 }
 0x484   :  { %12211 = vtanh.f32 %v3631_v5 }
 0x485   :  { %v12204_v39 = vpop.eup %12203 }
 0x486   :  { %v13582_v33 = vmul.f32 %v12204_v39, %v3324_v12  ;;  %v13617_v39 = vld [vmem:[#allocation14 + $0x84] ss:$16 sps:$4 sm:$0xff]  }
 0x488   :  { %15078 = vst [vmem:[#allocation32_spill] sm:$0xff] %v13582_v33  ;;  %v3649_v45 = vpack.c.bf16 %v13582_v33, %v13582_v33  ;;  %v13623_v33 = vld [vmem:[#allocation14 + $0x80] ss:$16 sps:$4 sm:$0xff]  }
 0x48a   :  { %3875 = vmatmul.mubr.bf16.vlgmr.msra.gmra.mxu0 %v3649_v45  ;;  %3916 = vmatmul.mubr.bf16.vlgmr.msra.gmra.mxu1 %v3649_v45 }
 0x48b   :  { %4150 = vmatpush1.bf16.msra.mxu0 %v13584_v62  ;;  %4191 = vmatpush1.bf16.msra.mxu1 %v13586_v51 }
 0x48c   :  { %4151 = vmatprep.subr.bf16.mxu0 %v13591_v25  ;;  %4192 = vmatprep.subr.bf16.mxu1 %v13593_v13 }
 0x48d   :  { %v12206_v34 = vpop.eup %12205  ;;  %4181 = vmatprep.mubr.bf16.mxu0 %v15036_v44  ;;  %4222 = vmatprep.mubr.bf16.mxu1 %v15036_v44 }
 0x48e   :  { %v3624_v30 = vmul.f32 0.5, %v12206_v34 }
 0x48f   :  { %v12208_v29 = vpop.eup %12207  ;;  %4152 = vmatpush1.bf16.msra.mxu0 %v13597_v1  ;;  %4193 = vmatpush1.bf16.msra.mxu1 %v13599_v56 }
 0x490   :  { %v3625_v63 = vadd.f32 0.5, %v3624_v30  ;;  %v3628_v12 = vmul.f32 0.5, %v12208_v29  ;;  %4153 = vmatprep.subr.bf16.mxu0 %v13603_v40  ;;  %4194 = vmatprep.subr.bf16.mxu1 %v13605_v57  ;;  %v12210_v58 = vpop.eup %12209  ;;  %v13625_v30 = vld [vmem:[#allocation14 + $0x88] ss:$16 sps:$4 sm:$0xff]   ;;  %v13630_v29 = vld [vmem:[#allocation14 + $0x64] ss:$16 sps:$4 sm:$0xff]  }
 0x491   :  { %15080 = vst [vmem:[#allocation53_spill] sm:$0xff] %v13630_v29  ;;  %v12212_v60 = vpop.eup %12211 }
 0x492   :  { %v3629_v45 = vadd.f32 0.5, %v3628_v12  ;;  %v3636_v34 = vmul.f32 %v12210_v58, %v3625_v63  ;;  %v13638_v63 = vld [vmem:[#allocation14 + $0x60] ss:$16 sps:$4 sm:$0xff]   ;;  %v13640_v58 = vld [vmem:[#allocation14 + $0x68] ss:$16 sps:$4 sm:$0xff]  }
 0x493   :  { %4154 = vmatpush1.bf16.msra.mxu0 %v13611_v3  ;;  %4195 = vmatpush1.bf16.msra.mxu1 %v13613_v23  ;;  %15082 = vst [vmem:[#allocation75_spill] sm:$0xff] %v13638_v63  ;;  %15083 = vst [vmem:[#allocation76_spill] sm:$0xff] %v13640_v58 }
 0x494   :  { %v3635_v5 = vmul.f32 %v3629_v45, %v13440_v41  ;;  %4155 = vmatprep.subr.bf16.mxu0 %v13617_v39  ;;  %4196 = vmatprep.subr.bf16.mxu1 %v13619_v26  ;;  %v13645_v41 = vld [vmem:[#allocation14 + $0x44] ss:$16 sps:$4 sm:$0xff]   ;;  %v13647_v45 = vld [vmem:[#allocation14 + $0x4c] ss:$16 sps:$4 sm:$0xff]  }
 0x495   :  { %15084 = vst [vmem:[#allocation54_spill] sm:$0xff] %v13645_v41  ;;  %15085 = vst [vmem:[#allocation78_spill] sm:$0xff] %v13647_v45 }
 0x496   :  { %v13634_v12 = vadd.f32 %v3636_v34, %v3635_v5  ;;  %v13651_v34 = vld [vmem:[#allocation14 + $0x40] ss:$16 sps:$4 sm:$0xff]   ;;  %v13653_v5 = vld [vmem:[#allocation14 + $0x48] ss:$16 sps:$4 sm:$0xff]  }
 0x497   :  { %4156 = vmatpush1.bf16.msra.mxu0 %v13623_v33  ;;  %4197 = vmatpush1.bf16.msra.mxu1 %v13625_v30  ;;  %15086 = vst [vmem:[#allocation82_spill] sm:$0xff] %v13651_v34  ;;  %15087 = vst [vmem:[#allocation83_spill] sm:$0xff] %v13653_v5 }
 0x498   :  { %12213 = vtanh.f32 %v13634_v12  ;;  %4157 = vmatprep.subr.bf16.mxu0 %v13630_v29  ;;  %4198 = vmatprep.subr.bf16.mxu1 %v13632_v49  ;;  %v3633_v49 = vmul.f32 0.5, %v12212_v60 }
 0x49a   :  { %v3634_v29 = vadd.f32 0.5, %v3633_v49 }
 0x49b   :  { %4158 = vmatpush1.bf16.msra.mxu0 %v13638_v63  ;;  %4199 = vmatpush1.bf16.msra.mxu1 %v13640_v58  ;;  %v13663_v63 = vld [vmem:[#allocation14 + $0x20] ss:$16 sps:$4 sm:$0xff]   ;;  %v13665_v58 = vld [vmem:[#allocation14 + $0x28] ss:$16 sps:$4 sm:$0xff]  }
 0x49c   :  { %4159 = vmatprep.subr.bf16.mxu0 %v13645_v41  ;;  %4200 = vmatprep.subr.bf16.mxu1 %v13647_v45  ;;  %15089 = vst [vmem:[#allocation85_spill] sm:$0xff] %v13663_v63  ;;  %v13669_v41 = vld [vmem:[#allocation14 + $0x4] ss:$16 sps:$4 sm:$0xff]   ;;  %v13671_v45 = vld [vmem:[#allocation14 + $0xc] ss:$16 sps:$4 sm:$0xff]  }
 0x49f   :  { %4160 = vmatpush1.bf16.msra.mxu0 %v13651_v34  ;;  %4201 = vmatpush1.bf16.msra.mxu1 %v13653_v5  ;;  %v13675_v34 = vld [vmem:[#allocation14] ss:$16 sps:$4 sm:$0xff]   ;;  %v13677_v5 = vld [vmem:[#allocation14 + $0x8] ss:$16 sps:$4 sm:$0xff]  }
 0x4a0   :  { %4161 = vmatprep.subr.bf16.mxu0 %v13657_v35  ;;  %4202 = vmatprep.subr.bf16.mxu1 %v13659_v31 }
 0x4a3   :  { %4162 = vmatpush1.bf16.msra.mxu0 %v13663_v63  ;;  %4203 = vmatpush1.bf16.msra.mxu1 %v13665_v58 }
 0x4a4   :  { %4163 = vmatprep.subr.bf16.mxu0 %v13669_v41  ;;  %4204 = vmatprep.subr.bf16.mxu1 %v13671_v45 }
 0x4a5   :  { %v12214_v60 = vpop.eup %12213 }
 0x4a6   :  { %v13681_v35 = vmul.f32 %v12214_v60, %v3634_v29 }
 0x4a7   :  { %4164 = vmatpush1.bf16.msra.mxu0 %v13675_v34  ;;  %4205 = vmatpush1.bf16.msra.mxu1 %v13677_v5 }
 0x4a8   :  { %15090 = vst [vmem:[#allocation86_spill] sm:$0xff] %v13681_v35  ;;  %v3956_v63 = vpack.c.bf16 %v13681_v35, %v13681_v35  ;;  %4456 = vmatprep.subr.bf16.mxu0 %v13467_v17  ;;  %4497 = vmatprep.subr.bf16.mxu1 %v13469_v0  ;;  %v15091_v0 = vld [vmem:[#allocation37_spill] sm:$0xff] }
 0x4a9   :  { %v13948_v35 = vld [vmem:[#allocation14 + $0x6c] ss:$16 sps:$4 sm:$0xff]  }
 0x4aa   :  { %4182 = vmatmul.mubr.bf16.vlgmr.msra.gmra.mxu0 %v3956_v63  ;;  %4223 = vmatmul.mubr.bf16.vlgmr.msra.gmra.mxu1 %v3956_v63  ;;  %15123 = vst [vmem:[#allocation34_spill] sm:$0xff] %v13948_v35 }
 0x4ab   :  { %4457 = vmatpush1.bf16.msra.mxu0 %v13471_v8  ;;  %4498 = vmatpush1.bf16.msra.mxu1 %v13473_v4 }
 0x4ac   :  { %4458 = vmatprep.subr.bf16.mxu0 %v13479_v27  ;;  %4499 = vmatprep.subr.bf16.mxu1 %v13481_v52 }
 0x4ad   :  { %4488 = vmatprep.mubr.bf16.mxu0 %v15036_v44  ;;  %4529 = vmatprep.mubr.bf16.mxu1 %v15036_v44 }
 0x4af   :  { %4459 = vmatpush1.bf16.msra.mxu0 %v13483_v28  ;;  %4500 = vmatpush1.bf16.msra.mxu1 %v13485_v11  ;;  %v15092_v28 = vld [vmem:[#allocation39_spill] sm:$0xff] }
 0x4b0   :  { %4460 = vmatprep.subr.bf16.mxu0 %v13491_v19  ;;  %4501 = vmatprep.subr.bf16.mxu1 %v13493_v21 }
 0x4b3   :  { %4461 = vmatpush1.bf16.msra.mxu0 %v13495_v43  ;;  %4502 = vmatpush1.bf16.msra.mxu1 %v13497_v7  ;;  %v15093_v43 = vld [vmem:[#allocation38_spill] sm:$0xff] }
 0x4b4   :  { %4462 = vmatprep.subr.bf16.mxu0 %v13503_v20  ;;  %4503 = vmatprep.subr.bf16.mxu1 %v13505_v9 }
 0x4b7   :  { %4463 = vmatpush1.bf16.msra.mxu0 %v13507_v42  ;;  %4504 = vmatpush1.bf16.msra.mxu1 %v13509_v46  ;;  %v15094_v46 = vld [vmem:[#allocation40_spill] sm:$0xff] }
 0x4b8   :  { %4464 = vmatprep.subr.bf16.mxu0 %v13515_v61  ;;  %4505 = vmatprep.subr.bf16.mxu1 %v13517_v36 }
 0x4bb   :  { %4465 = vmatpush1.bf16.msra.mxu0 %v13519_v16  ;;  %4506 = vmatpush1.bf16.msra.mxu1 %v13521_v32 }
 0x4bc   :  { %4466 = vmatprep.subr.bf16.mxu0 %v13527_v14  ;;  %4507 = vmatprep.subr.bf16.mxu1 %v13529_v53 }
 0x4bf   :  { %4467 = vmatpush1.bf16.msra.mxu0 %v13531_v54  ;;  %4508 = vmatpush1.bf16.msra.mxu1 %v13533_v6 }
 0x4c0   :  { %4468 = vmatprep.subr.bf16.mxu0 %v13539_v22  ;;  %4509 = vmatprep.subr.bf16.mxu1 %v13541_v47 }
 0x4c3   :  { %4469 = vmatpush1.bf16.msra.mxu0 %v13543_v15  ;;  %4510 = vmatpush1.bf16.msra.mxu1 %v13545_v48 }
 0x4c4   :  { %4470 = vmatprep.subr.bf16.mxu0 %v13551_v55  ;;  %4511 = vmatprep.subr.bf16.mxu1 %v13553_v2 }
 0x4c7   :  { %4471 = vmatpush1.bf16.msra.mxu0 %v13555_v18  ;;  %4512 = vmatpush1.bf16.msra.mxu1 %v13557_v50  ;;  %v15095_v18 = vld [vmem:[#allocation69_spill] sm:$0xff] }
 0x4c8   :  { %4763 = vmatprep.subr.bf16.mxu0 %v13563_v37  ;;  %4804 = vmatprep.subr.bf16.mxu1 %v13565_v10  ;;  %v1002_v50 = vadd.f32 %v15095_v18, %v15052_v24  ;;  %v15096_v37 = vld [vmem:[#allocation67_spill] sm:$0xff]  ;;  %v13807_v18 = vld [vmem:[#allocation12 + $0xa4] ss:$16 sps:$4 sm:$0xff]  }
 0x54a   :  { %v3876_v49 = vpop.f32.mrf.mxu0  ;;  %v3917_v17 = vpop.f32.mrf.mxu1 }
 0x54b   :  { %v3924_v8 = vadd.f32 %v3876_v49, %v15091_v0  ;;  %v3926_v7 = vadd.f32 %v3917_v17, %v15093_v43  ;;  %v15098_v43 = vld [vmem:[#allocation70_spill] sm:$0xff] }
 0x54c   :  { %v3878_v4 = vpop.f32.mrf.mxu0  ;;  %v3919_v27 = vpop.f32.mrf.mxu1 }
 0x54d   :  { %v3929_v52 = vmul.f32 0.5, %v3924_v8  ;;  %v3925_v11 = vadd.f32 %v3878_v4, %v15092_v28  ;;  %v3927_v61 = vadd.f32 %v3919_v27, %v15094_v46 }
 0x54e   :  { %v3880_v19 = vpop.f32.mrf.mxu0  ;;  %v3921_v21 = vpop.f32.mrf.mxu1 }
 0x54f   :  { %12215 = vtanh.f32 %v3929_v52  ;;  %v3933_v20 = vmul.f32 0.5, %v3925_v11  ;;  %v3938_v36 = vmul.f32 0.5, %v3927_v61 }
 0x550   :  { %v3881_v9 = vpop.f32.mrf.mxu0  ;;  %v3922_v42 = vpop.f32.mrf.mxu1 }
 0x551   :  { %12217 = vtanh.f32 %v3933_v20 }
 0x552   :  { %12219 = vtanh.f32 %v3926_v7  ;;  %v1075_v7 = vadd.f32 %v15098_v43, %v15056_v59  ;;  %v13861_v43 = vld [vmem:[#allocation12 + $0x28] ss:$16 sps:$4 sm:$0xff]  }
 0x553   :  { %12221 = vtanh.f32 %v3938_v36 }
 0x55c   :  { %v12216_v16 = vpop.eup %12215 }
 0x55d   :  { %v3931_v32 = vmul.f32 0.5, %v12216_v16 }
 0x55e   :  { %v12218_v14 = vpop.eup %12217 }
 0x55f   :  { %v3932_v53 = vadd.f32 0.5, %v3931_v32  ;;  %v3935_v54 = vmul.f32 0.5, %v12218_v14  ;;  %v12220_v6 = vpop.eup %12219 }
 0x560   :  { %v12222_v29 = vpop.eup %12221 }
 0x561   :  { %v3936_v22 = vadd.f32 0.5, %v3935_v54  ;;  %v3943_v47 = vmul.f32 %v12220_v6, %v3932_v53  ;;  %v3940_v4 = vmul.f32 0.5, %v12222_v29  ;;  %v15108_v53 = vld [vmem:[#allocation84_spill] sm:$0xff]  ;;  %v15109_v54 = vld [vmem:[#allocation85_spill] sm:$0xff] }
 0x562   :  { %v13819_v29 = vld [vmem:[#allocation12 + $0x84] ss:$16 sps:$4 sm:$0xff]  }
 0x563   :  { %v3942_v15 = vmul.f32 %v3936_v22, %v13576_v38  ;;  %v15097_v38 = vld [vmem:[#allocation68_spill] sm:$0xff]  ;;  %v3941_v19 = vadd.f32 0.5, %v3940_v4  ;;  %v13837_v4 = vld [vmem:[#allocation12 + $0x68] ss:$16 sps:$4 sm:$0xff]  }
 0x565   :  { %v13728_v48 = vadd.f32 %v3943_v47, %v3942_v15 }
 0x567   :  { %12223 = vtanh.f32 %v13728_v48 }
 0x56a   :  { %v4183_v55 = vpop.f32.mrf.mxu0  ;;  %v4224_v2 = vpop.f32.mrf.mxu1 }
 0x56b   :  { %v4231_v10 = vadd.f32 %v4183_v55, %v15096_v37  ;;  %v4233_v27 = vadd.f32 %v4224_v2, %v15097_v38  ;;  %v13799_v55 = vld [vmem:[#allocation12 + $0xc0] ss:$16 sps:$4 sm:$0xff]   ;;  %v13801_v2 = vld [vmem:[#allocation12 + $0xc8] ss:$16 sps:$4 sm:$0xff]   ;;  %v13843_v38 = vld [vmem:[#allocation12 + $0x44] ss:$16 sps:$4 sm:$0xff]  }
 0x56c   :  { %v4185_v63 = vpop.f32.mrf.mxu0  ;;  %v4226_v60 = vpop.f32.mrf.mxu1  ;;  %v13811_v37 = vld [vmem:[#allocation12 + $0xa0] ss:$16 sps:$4 sm:$0xff]  }
 0x56d   :  { %v4236_v49 = vmul.f32 0.5, %v4231_v10  ;;  %v4232_v17 = vadd.f32 %v4185_v63, %v1002_v50  ;;  %v4234_v9 = vadd.f32 %v4226_v60, %v1075_v7  ;;  %v13809_v50 = vld [vmem:[#allocation12 + $0xac] ss:$16 sps:$4 sm:$0xff]   ;;  %v13813_v10 = vld [vmem:[#allocation12 + $0xa8] ss:$16 sps:$4 sm:$0xff]  }
 0x56e   :  { %v4187_v0 = vpop.f32.mrf.mxu0  ;;  %v4228_v8 = vpop.f32.mrf.mxu1  ;;  %v13821_v63 = vld [vmem:[#allocation12 + $0x8c] ss:$16 sps:$4 sm:$0xff]   ;;  %v13823_v60 = vld [vmem:[#allocation12 + $0x80] ss:$16 sps:$4 sm:$0xff]   ;;  %v13867_v7 = vld [vmem:[#allocation12 + $0x4] ss:$16 sps:$4 sm:$0xff]  }
 0x56f   :  { %12225 = vtanh.f32 %v4236_v49  ;;  %v4240_v52 = vmul.f32 0.5, %v4232_v17  ;;  %v4245_v46 = vmul.f32 0.5, %v4234_v9  ;;  %v13825_v49 = vld [vmem:[#allocation12 + $0x88] ss:$16 sps:$4 sm:$0xff]   ;;  %v13831_v17 = vld [vmem:[#allocation12 + $0x64] ss:$16 sps:$4 sm:$0xff]  }
 0x570   :  { %v4188_v28 = vpop.f32.mrf.mxu0  ;;  %v4229_v11 = vpop.f32.mrf.mxu1  ;;  %v13833_v0 = vld [vmem:[#allocation12 + $0x6c] ss:$16 sps:$4 sm:$0xff]   ;;  %v13835_v8 = vld [vmem:[#allocation12 + $0x60] ss:$16 sps:$4 sm:$0xff]  }
 0x571   :  { %12227 = vtanh.f32 %v4240_v52  ;;  %v13847_v52 = vld [vmem:[#allocation12 + $0x40] ss:$16 sps:$4 sm:$0xff]   ;;  %v13849_v28 = vld [vmem:[#allocation12 + $0x48] ss:$16 sps:$4 sm:$0xff]   ;;  %v13855_v11 = vld [vmem:[#allocation12 + $0x24] ss:$16 sps:$4 sm:$0xff]  }
 0x572   :  { %12229 = vtanh.f32 %v4233_v27  ;;  %v13845_v27 = vld [vmem:[#allocation12 + $0x4c] ss:$16 sps:$4 sm:$0xff]  }
 0x573   :  { %12231 = vtanh.f32 %v4245_v46  ;;  %v13869_v9 = vld [vmem:[#allocation12 + $0xc] ss:$16 sps:$4 sm:$0xff]   ;;  %v13873_v46 = vld [vmem:[#allocation12 + $0x8] ss:$16 sps:$4 sm:$0xff]  }
 0x574   :  { %v12224_v21 = vpop.eup %12223 }
 0x575   :  { %v13737_v20 = vmul.f32 %v12224_v21, %v3941_v19  ;;  %v13857_v19 = vld [vmem:[#allocation12 + $0x2c] ss:$16 sps:$4 sm:$0xff]   ;;  %v13859_v21 = vld [vmem:[#allocation12 + $0x20] ss:$16 sps:$4 sm:$0xff]  }
 0x577   :  { %15099 = vst [vmem:[#allocation87_spill] sm:$0xff] %v13737_v20  ;;  %v4263_v42 = vpack.c.bf16 %v13737_v20, %v13737_v20 }
 0x579   :  { %4489 = vmatmul.mubr.bf16.vlgmr.msra.gmra.mxu0 %v4263_v42  ;;  %4530 = vmatmul.mubr.bf16.vlgmr.msra.gmra.mxu1 %v4263_v42  ;;  %v13871_v42 = vld [vmem:[#allocation12] ss:$16 sps:$4 sm:$0xff]  }
 0x57a   :  { %4764 = vmatpush1.bf16.msra.mxu0 %v13584_v62  ;;  %4805 = vmatpush1.bf16.msra.mxu1 %v13586_v51 }
 0x57b   :  { %4765 = vmatprep.subr.bf16.mxu0 %v13591_v25  ;;  %4806 = vmatprep.subr.bf16.mxu1 %v13593_v13 }
 0x57c   :  { %v12226_v61 = vpop.eup %12225  ;;  %4795 = vmatprep.mubr.bf16.mxu0 %v15036_v44  ;;  %4836 = vmatprep.mubr.bf16.mxu1 %v15036_v44 }
 0x57d   :  { %v4238_v36 = vmul.f32 0.5, %v12226_v61  ;;  %v13879_v61 = vld [vmem:[#allocation14 + $0xe4] ss:$16 sps:$4 sm:$0xff]  }
 0x57e   :  { %v12228_v16 = vpop.eup %12227  ;;  %4766 = vmatpush1.bf16.msra.mxu0 %v13597_v1  ;;  %4807 = vmatpush1.bf16.msra.mxu1 %v13599_v56  ;;  %v15100_v56 = vld [vmem:[#allocation53_spill] sm:$0xff] }
 0x57f   :  { %v4239_v32 = vadd.f32 0.5, %v4238_v36  ;;  %v4242_v62 = vmul.f32 0.5, %v12228_v16  ;;  %4767 = vmatprep.subr.bf16.mxu0 %v13603_v40  ;;  %4808 = vmatprep.subr.bf16.mxu1 %v13605_v57  ;;  %v12230_v51 = vpop.eup %12229  ;;  %v15101_v40 = vld [vmem:[#allocation77_spill] sm:$0xff]  ;;  %v15102_v57 = vld [vmem:[#allocation75_spill] sm:$0xff] }
 0x580   :  { %v13881_v36 = vld [vmem:[#allocation14 + $0xec] ss:$16 sps:$4 sm:$0xff]  }
 0x581   :  { %v4243_v25 = vadd.f32 0.5, %v4242_v62  ;;  %v4250_v13 = vmul.f32 %v12230_v51, %v4239_v32  ;;  %v15111_v62 = vld [vmem:[#allocation28_spill] sm:$0xff]  ;;  %v15112_v51 = vld [vmem:[#allocation42_spill] sm:$0xff] }
 0x582   :  { %4768 = vmatpush1.bf16.msra.mxu0 %v13611_v3  ;;  %4809 = vmatpush1.bf16.msra.mxu1 %v13613_v23  ;;  %v15103_v3 = vld [vmem:[#allocation76_spill] sm:$0xff]  ;;  %v15104_v23 = vld [vmem:[#allocation54_spill] sm:$0xff] }
 0x583   :  { %v4249_v14 = vmul.f32 %v4243_v25, %v13634_v12  ;;  %4769 = vmatprep.subr.bf16.mxu0 %v13617_v39  ;;  %4810 = vmatprep.subr.bf16.mxu1 %v13619_v26  ;;  %v15105_v39 = vld [vmem:[#allocation78_spill] sm:$0xff]  ;;  %v12232_v26 = vpop.eup %12231  ;;  %v866_v25 = vadd.f32 %v15112_v51, %v15111_v62 }
 0x584   :  { %v15106_v12 = vld [vmem:[#allocation82_spill] sm:$0xff] }
 0x585   :  { %v13756_v1 = vadd.f32 %v4250_v13, %v4249_v14  ;;  %v15113_v13 = vld [vmem:[#allocation41_spill] sm:$0xff] }
 0x586   :  { %4770 = vmatpush1.bf16.msra.mxu0 %v13623_v33  ;;  %4811 = vmatpush1.bf16.msra.mxu1 %v13625_v30  ;;  %v15107_v33 = vld [vmem:[#allocation83_spill] sm:$0xff]  ;;  %v4247_v30 = vmul.f32 0.5, %v12232_v26 }
 0x587   :  { %12233 = vtanh.f32 %v13756_v1  ;;  %4771 = vmatprep.subr.bf16.mxu0 %v15100_v56  ;;  %4812 = vmatprep.subr.bf16.mxu1 %v15101_v40  ;;  %v15114_v26 = vld [vmem:[#allocation43_spill] sm:$0xff] }
 0x588   :  { %v4248_v6 = vadd.f32 0.5, %v4247_v30 }
 0x58a   :  { %4772 = vmatpush1.bf16.msra.mxu0 %v15102_v57  ;;  %4813 = vmatpush1.bf16.msra.mxu1 %v15103_v3 }
 0x58b   :  { %4773 = vmatprep.subr.bf16.mxu0 %v15104_v23  ;;  %4814 = vmatprep.subr.bf16.mxu1 %v15105_v39 }
 0x58e   :  { %4774 = vmatpush1.bf16.msra.mxu0 %v15106_v12  ;;  %4815 = vmatpush1.bf16.msra.mxu1 %v15107_v33 }
 0x58f   :  { %4775 = vmatprep.subr.bf16.mxu0 %v15108_v53  ;;  %4816 = vmatprep.subr.bf16.mxu1 %v13659_v31  ;;  %v13783_v31 = vld [vmem:[#allocation12 + $0xe4] ss:$16 sps:$4 sm:$0xff]  }
 0x592   :  { %4776 = vmatpush1.bf16.msra.mxu0 %v15109_v54  ;;  %4817 = vmatpush1.bf16.msra.mxu1 %v13665_v58  ;;  %v13785_v58 = vld [vmem:[#allocation12 + $0xec] ss:$16 sps:$4 sm:$0xff]  }
 0x593   :  { %4777 = vmatprep.subr.bf16.mxu0 %v13669_v41  ;;  %4818 = vmatprep.subr.bf16.mxu1 %v13671_v45  ;;  %v13787_v41 = vld [vmem:[#allocation12 + $0xe0] ss:$16 sps:$4 sm:$0xff]   ;;  %v13789_v45 = vld [vmem:[#allocation12 + $0xe8] ss:$16 sps:$4 sm:$0xff]  }
 0x594   :  { %v12234_v22 = vpop.eup %12233  ;;  %v15115_v54 = vld [vmem:[#allocation29_spill] sm:$0xff] }
 0x595   :  { %v13775_v47 = vmul.f32 %v12234_v22, %v4248_v6  ;;  %v15116_v6 = vld [vmem:[#allocation44_spill] sm:$0xff] }
 0x596   :  { %4778 = vmatpush1.bf16.msra.mxu0 %v13675_v34  ;;  %4819 = vmatpush1.bf16.msra.mxu1 %v13677_v5  ;;  %v13795_v34 = vld [vmem:[#allocation12 + $0xc4] ss:$16 sps:$4 sm:$0xff]   ;;  %v13797_v5 = vld [vmem:[#allocation12 + $0xcc] ss:$16 sps:$4 sm:$0xff]   ;;  %v939_v22 = vadd.f32 %v15116_v6, %v15115_v54 }
 0x597   :  { %15110 = vst [vmem:[#allocation88_spill] sm:$0xff] %v13775_v47  ;;  %v4570_v15 = vpack.c.bf16 %v13775_v47, %v13775_v47  ;;  %5070 = vmatprep.subr.bf16.mxu0 %v13783_v31  ;;  %5111 = vmatprep.subr.bf16.mxu1 %v13785_v58  ;;  %v13973_v47 = vld [vmem:[#allocation14 + $0x24] ss:$16 sps:$4 sm:$0xff]   ;;  %v13975_v54 = vld [vmem:[#allocation14 + $0x2c] ss:$16 sps:$4 sm:$0xff]  }
 0x598   :  { %15130 = vst [vmem:[#allocation74_spill] sm:$0xff] %v13973_v47 }
 0x599   :  { %4796 = vmatmul.mubr.bf16.vlgmr.msra.gmra.mxu0 %v4570_v15  ;;  %4837 = vmatmul.mubr.bf16.vlgmr.msra.gmra.mxu1 %v4570_v15 }
 0x59a   :  { %5102 = vmatprep.mubr.bf16.mxu0 %v15036_v44  ;;  %5143 = vmatprep.mubr.bf16.mxu1 %v15036_v44 }
 0x59b   :  { %5071 = vmatpush1.bf16.msra.mxu0 %v13787_v41  ;;  %5112 = vmatpush1.bf16.msra.mxu1 %v13789_v45 }
 0x59c   :  { %5072 = vmatprep.subr.bf16.mxu0 %v13795_v34  ;;  %5113 = vmatprep.subr.bf16.mxu1 %v13797_v5 }
 0x59f   :  { %5073 = vmatpush1.bf16.msra.mxu0 %v13799_v55  ;;  %5114 = vmatpush1.bf16.msra.mxu1 %v13801_v2 }
 0x5a0   :  { %5074 = vmatprep.subr.bf16.mxu0 %v13807_v18  ;;  %5115 = vmatprep.subr.bf16.mxu1 %v13809_v50 }
 0x5a3   :  { %5075 = vmatpush1.bf16.msra.mxu0 %v13811_v37  ;;  %5116 = vmatpush1.bf16.msra.mxu1 %v13813_v10 }
 0x5a4   :  { %5076 = vmatprep.subr.bf16.mxu0 %v13819_v29  ;;  %5117 = vmatprep.subr.bf16.mxu1 %v13821_v63 }
 0x5a7   :  { %5077 = vmatpush1.bf16.msra.mxu0 %v13823_v60  ;;  %5118 = vmatpush1.bf16.msra.mxu1 %v13825_v49 }
 0x5a8   :  { %5078 = vmatprep.subr.bf16.mxu0 %v13831_v17  ;;  %5119 = vmatprep.subr.bf16.mxu1 %v13833_v0 }
 0x5ab   :  { %5079 = vmatpush1.bf16.msra.mxu0 %v13835_v8  ;;  %5120 = vmatpush1.bf16.msra.mxu1 %v13837_v4 }
 0x5ac   :  { %5080 = vmatprep.subr.bf16.mxu0 %v13843_v38  ;;  %5121 = vmatprep.subr.bf16.mxu1 %v13845_v27 }
 0x5af   :  { %5081 = vmatpush1.bf16.msra.mxu0 %v13847_v52  ;;  %5122 = vmatpush1.bf16.msra.mxu1 %v13849_v28 }
 0x5b0   :  { %5082 = vmatprep.subr.bf16.mxu0 %v13855_v11  ;;  %5123 = vmatprep.subr.bf16.mxu1 %v13857_v19 }
 0x5b3   :  { %5083 = vmatpush1.bf16.msra.mxu0 %v13859_v21  ;;  %5124 = vmatpush1.bf16.msra.mxu1 %v13861_v43 }
 0x5b4   :  { %5084 = vmatprep.subr.bf16.mxu0 %v13867_v7  ;;  %5125 = vmatprep.subr.bf16.mxu1 %v13869_v9 }
 0x5b7   :  { %5085 = vmatpush1.bf16.msra.mxu0 %v13871_v42  ;;  %5126 = vmatpush1.bf16.msra.mxu1 %v13873_v46 }
 0x5b8   :  { %5377 = vmatprep.subr.bf16.mxu0 %v13879_v61  ;;  %5418 = vmatprep.subr.bf16.mxu1 %v13881_v36 }
 0x639   :  { %v4490_v16 = vpop.f32.mrf.mxu0  ;;  %v4531_v32 = vpop.f32.mrf.mxu1 }
 0x63a   :  { %v4538_v14 = vadd.f32 %v4490_v16, %v15113_v13  ;;  %v4540_v12 = vadd.f32 %v4531_v32, %v15114_v26 }
 0x63b   :  { %v4492_v56 = vpop.f32.mrf.mxu0  ;;  %v4533_v40 = vpop.f32.mrf.mxu1 }
 0x63c   :  { %v4543_v57 = vmul.f32 0.5, %v4538_v14  ;;  %v4539_v3 = vadd.f32 %v4492_v56, %v866_v25  ;;  %v4541_v15 = vadd.f32 %v4533_v40, %v939_v22  ;;  %v15118_v22 = vld [vmem:[#allocation65_spill] sm:$0xff] }
 0x63d   :  { %v4494_v23 = vpop.f32.mrf.mxu0  ;;  %v4535_v39 = vpop.f32.mrf.mxu1 }
 0x63e   :  { %12235 = vtanh.f32 %v4543_v57  ;;  %v4547_v33 = vmul.f32 0.5, %v4539_v3  ;;  %v4552_v51 = vmul.f32 0.5, %v4541_v15 }
 0x63f   :  { %v4495_v30 = vpop.f32.mrf.mxu0  ;;  %v4536_v53 = vpop.f32.mrf.mxu1 }
 0x640   :  { %12237 = vtanh.f32 %v4547_v33 }
 0x641   :  { %12239 = vtanh.f32 %v4540_v12  ;;  %v15117_v12 = vld [vmem:[#allocation63_spill] sm:$0xff] }
 0x642   :  { %12241 = vtanh.f32 %v4552_v51 }
 0x64b   :  { %v12236_v16 = vpop.eup %12235 }
 0x64c   :  { %v4545_v13 = vmul.f32 0.5, %v12236_v16 }
 0x64d   :  { %v12238_v20 = vpop.eup %12237 }
 0x64e   :  { %v4546_v14 = vadd.f32 0.5, %v4545_v13  ;;  %v4549_v25 = vmul.f32 0.5, %v12238_v20  ;;  %v12240_v56 = vpop.eup %12239  ;;  %v15119_v13 = vld [vmem:[#allocation64_spill] sm:$0xff] }
 0x64f   :  { %v12242_v33 = vpop.eup %12241 }
 0x650   :  { %v4550_v57 = vadd.f32 0.5, %v4549_v25  ;;  %v4557_v23 = vmul.f32 %v12240_v56, %v4546_v14  ;;  %v4554_v16 = vmul.f32 0.5, %v12242_v33 }
 0x652   :  { %v4556_v32 = vmul.f32 %v4550_v57, %v13728_v48  ;;  %v4555_v57 = vadd.f32 0.5, %v4554_v16 }
 0x654   :  { %v13892_v3 = vadd.f32 %v4557_v23, %v4556_v32 }
 0x656   :  { %12243 = vtanh.f32 %v13892_v3 }
 0x659   :  { %v4797_v39 = vpop.f32.mrf.mxu0  ;;  %v4838_v26 = vpop.f32.mrf.mxu1 }
 0x65a   :  { %v4845_v40 = vadd.f32 %v4797_v39, %v15117_v12  ;;  %v4847_v48 = vadd.f32 %v4838_v26, %v15119_v13  ;;  %v13900_v39 = vld [vmem:[#allocation14 + $0xe0] ss:$16 sps:$4 sm:$0xff]   ;;  %v13902_v12 = vld [vmem:[#allocation14 + $0xe8] ss:$16 sps:$4 sm:$0xff]   ;;  %v13909_v26 = vld [vmem:[#allocation14 + $0xcc] ss:$16 sps:$4 sm:$0xff]  }
 0x65b   :  { %v4799_v30 = vpop.f32.mrf.mxu0  ;;  %v4840_v53 = vpop.f32.mrf.mxu1 }
 0x65c   :  { %v4850_v6 = vmul.f32 0.5, %v4845_v40  ;;  %v4846_v20 = vadd.f32 %v4799_v30, %v15118_v22  ;;  %v15121_v40 = vld [vmem:[#allocation66_spill] sm:$0xff] }
 0x65d   :  { %v4801_v15 = vpop.f32.mrf.mxu0  ;;  %v4842_v51 = vpop.f32.mrf.mxu1  ;;  %v4848_v30 = vadd.f32 %v4840_v53, %v15121_v40  ;;  %v13913_v22 = vld [vmem:[#allocation14 + $0xc0] ss:$16 sps:$4 sm:$0xff]   ;;  %v13919_v53 = vld [vmem:[#allocation14 + $0xa4] ss:$16 sps:$4 sm:$0xff]   ;;  %v13935_v40 = vld [vmem:[#allocation14 + $0x8c] ss:$16 sps:$4 sm:$0xff]  }
 0x65e   :  { %12245 = vtanh.f32 %v4850_v6  ;;  %v4854_v14 = vmul.f32 0.5, %v4846_v20  ;;  %v13907_v6 = vld [vmem:[#allocation14 + $0xc4] ss:$16 sps:$4 sm:$0xff]   ;;  %v13915_v20 = vld [vmem:[#allocation14 + $0xc8] ss:$16 sps:$4 sm:$0xff]  }
 0x65f   :  { %v4802_v25 = vpop.f32.mrf.mxu0  ;;  %v4843_v56 = vpop.f32.mrf.mxu1  ;;  %v4859_v15 = vmul.f32 0.5, %v4848_v30  ;;  %v13921_v51 = vld [vmem:[#allocation14 + $0xac] ss:$16 sps:$4 sm:$0xff]  }
 0x660   :  { %12247 = vtanh.f32 %v4854_v14  ;;  %v13927_v14 = vld [vmem:[#allocation14 + $0xa0] ss:$16 sps:$4 sm:$0xff]   ;;  %v13929_v25 = vld [vmem:[#allocation14 + $0xa8] ss:$16 sps:$4 sm:$0xff]  }
 0x661   :  { %12249 = vtanh.f32 %v4847_v48 }
 0x662   :  { %12251 = vtanh.f32 %v4859_v15 }
 0x663   :  { %v12244_v23 = vpop.eup %12243 }
 0x664   :  { %v13898_v32 = vmul.f32 %v12244_v23, %v4555_v57  ;;  %v13933_v23 = vld [vmem:[#allocation14 + $0x84] ss:$16 sps:$4 sm:$0xff]  }
 0x666   :  { %15120 = vst [vmem:[#allocation89_spill] sm:$0xff] %v13898_v32  ;;  %v4877_v33 = vpack.c.bf16 %v13898_v32, %v13898_v32  ;;  %v13939_v32 = vld [vmem:[#allocation14 + $0x80] ss:$16 sps:$4 sm:$0xff]  }
 0x668   :  { %5103 = vmatmul.mubr.bf16.vlgmr.msra.gmra.mxu0 %v4877_v33  ;;  %5144 = vmatmul.mubr.bf16.vlgmr.msra.gmra.mxu1 %v4877_v33 }
 0x669   :  { %5378 = vmatpush1.bf16.msra.mxu0 %v13900_v39  ;;  %5419 = vmatpush1.bf16.msra.mxu1 %v13902_v12 }
 0x66a   :  { %5379 = vmatprep.subr.bf16.mxu0 %v13907_v6  ;;  %5420 = vmatprep.subr.bf16.mxu1 %v13909_v26 }
 0x66b   :  { %v12246_v16 = vpop.eup %12245  ;;  %5409 = vmatprep.mubr.bf16.mxu0 %v15036_v44  ;;  %5450 = vmatprep.mubr.bf16.mxu1 %v15036_v44 }
 0x66c   :  { %v4852_v13 = vmul.f32 0.5, %v12246_v16 }
 0x66d   :  { %v12248_v48 = vpop.eup %12247  ;;  %5380 = vmatpush1.bf16.msra.mxu0 %v13913_v22  ;;  %5421 = vmatpush1.bf16.msra.mxu1 %v13915_v20 }
 0x66e   :  { %v4853_v56 = vadd.f32 0.5, %v4852_v13  ;;  %v4856_v57 = vmul.f32 0.5, %v12248_v48  ;;  %5381 = vmatprep.subr.bf16.mxu0 %v13919_v53  ;;  %5422 = vmatprep.subr.bf16.mxu1 %v13921_v51  ;;  %v12250_v30 = vpop.eup %12249  ;;  %v13941_v13 = vld [vmem:[#allocation14 + $0x88] ss:$16 sps:$4 sm:$0xff]   ;;  %v13946_v48 = vld [vmem:[#allocation14 + $0x64] ss:$16 sps:$4 sm:$0xff]  }
 0x66f   :  { %15122 = vst [vmem:[#allocation90_spill] sm:$0xff] %v13946_v48  ;;  %v12252_v62 = vpop.eup %12251 }
 0x670   :  { %v4857_v33 = vadd.f32 0.5, %v4856_v57  ;;  %v4864_v16 = vmul.f32 %v12250_v30, %v4853_v56  ;;  %v13954_v56 = vld [vmem:[#allocation14 + $0x60] ss:$16 sps:$4 sm:$0xff]   ;;  %v13956_v30 = vld [vmem:[#allocation14 + $0x68] ss:$16 sps:$4 sm:$0xff]  }
 0x671   :  { %5382 = vmatpush1.bf16.msra.mxu0 %v13927_v14  ;;  %5423 = vmatpush1.bf16.msra.mxu1 %v13929_v25  ;;  %15124 = vst [vmem:[#allocation33_spill] sm:$0xff] %v13954_v56  ;;  %15125 = vst [vmem:[#allocation35_spill] sm:$0xff] %v13956_v30 }
 0x672   :  { %v4863_v15 = vmul.f32 %v4857_v33, %v13756_v1  ;;  %5383 = vmatprep.subr.bf16.mxu0 %v13933_v23  ;;  %5424 = vmatprep.subr.bf16.mxu1 %v13935_v40  ;;  %v13961_v1 = vld [vmem:[#allocation14 + $0x44] ss:$16 sps:$4 sm:$0xff]   ;;  %v13963_v33 = vld [vmem:[#allocation14 + $0x4c] ss:$16 sps:$4 sm:$0xff]  }
 0x673   :  { %15126 = vst [vmem:[#allocation36_spill] sm:$0xff] %v13961_v1  ;;  %15127 = vst [vmem:[#allocation71_spill] sm:$0xff] %v13963_v33 }
 0x674   :  { %v13950_v57 = vadd.f32 %v4864_v16, %v4863_v15  ;;  %v13967_v16 = vld [vmem:[#allocation14 + $0x40] ss:$16 sps:$4 sm:$0xff]   ;;  %v13969_v15 = vld [vmem:[#allocation14 + $0x48] ss:$16 sps:$4 sm:$0xff]  }
 0x675   :  { %5384 = vmatpush1.bf16.msra.mxu0 %v13939_v32  ;;  %5425 = vmatpush1.bf16.msra.mxu1 %v13941_v13  ;;  %15128 = vst [vmem:[#allocation73_spill] sm:$0xff] %v13967_v16  ;;  %15129 = vst [vmem:[#allocation72_spill] sm:$0xff] %v13969_v15 }
 0x676   :  { %12253 = vtanh.f32 %v13950_v57  ;;  %5385 = vmatprep.subr.bf16.mxu0 %v13946_v48  ;;  %5426 = vmatprep.subr.bf16.mxu1 %v13948_v35  ;;  %v4861_v35 = vmul.f32 0.5, %v12252_v62 }
 0x678   :  { %v4862_v48 = vadd.f32 0.5, %v4861_v35 }
 0x679   :  { %5386 = vmatpush1.bf16.msra.mxu0 %v13954_v56  ;;  %5427 = vmatpush1.bf16.msra.mxu1 %v13956_v30  ;;  %v13979_v56 = vld [vmem:[#allocation14 + $0x20] ss:$16 sps:$4 sm:$0xff]   ;;  %v13981_v30 = vld [vmem:[#allocation14 + $0x28] ss:$16 sps:$4 sm:$0xff]  }
 0x67a   :  { %5387 = vmatprep.subr.bf16.mxu0 %v13961_v1  ;;  %5428 = vmatprep.subr.bf16.mxu1 %v13963_v33  ;;  %15131 = vst [vmem:[#allocation37_spill] sm:$0xff] %v13979_v56  ;;  %v13985_v1 = vld [vmem:[#allocation14 + $0x4] ss:$16 sps:$4 sm:$0xff]   ;;  %v13987_v33 = vld [vmem:[#allocation14 + $0xc] ss:$16 sps:$4 sm:$0xff]  }
 0x67d   :  { %5388 = vmatpush1.bf16.msra.mxu0 %v13967_v16  ;;  %5429 = vmatpush1.bf16.msra.mxu1 %v13969_v15  ;;  %v13991_v16 = vld [vmem:[#allocation14] ss:$16 sps:$4 sm:$0xff]   ;;  %v13993_v15 = vld [vmem:[#allocation14 + $0x8] ss:$16 sps:$4 sm:$0xff]  }
 0x67e   :  { %5389 = vmatprep.subr.bf16.mxu0 %v13973_v47  ;;  %5430 = vmatprep.subr.bf16.mxu1 %v13975_v54 }
 0x681   :  { %5390 = vmatpush1.bf16.msra.mxu0 %v13979_v56  ;;  %5431 = vmatpush1.bf16.msra.mxu1 %v13981_v30 }
 0x682   :  { %5391 = vmatprep.subr.bf16.mxu0 %v13985_v1  ;;  %5432 = vmatprep.subr.bf16.mxu1 %v13987_v33 }
 0x683   :  { %v12254_v62 = vpop.eup %12253 }
 0x684   :  { %v13997_v47 = vmul.f32 %v12254_v62, %v4862_v48 }
 0x685   :  { %5392 = vmatpush1.bf16.msra.mxu0 %v13991_v16  ;;  %5433 = vmatpush1.bf16.msra.mxu1 %v13993_v15 }
 0x686   :  { %v5184_v56 = vpack.c.bf16 %v13997_v47, %v13997_v47  ;;  %5684 = vmatprep.subr.bf16.mxu0 %v13783_v31  ;;  %5725 = vmatprep.subr.bf16.mxu1 %v13785_v58  ;;  %v15132_v58 = vld [vmem:[#allocation45_spill] sm:$0xff] }
 0x688   :  { %5410 = vmatmul.mubr.bf16.vlgmr.msra.gmra.mxu0 %v5184_v56  ;;  %5451 = vmatmul.mubr.bf16.vlgmr.msra.gmra.mxu1 %v5184_v56 }
 0x689   :  { %5685 = vmatpush1.bf16.msra.mxu0 %v13787_v41  ;;  %5726 = vmatpush1.bf16.msra.mxu1 %v13789_v45 }
 0x68a   :  { %5686 = vmatprep.subr.bf16.mxu0 %v13795_v34  ;;  %5727 = vmatprep.subr.bf16.mxu1 %v13797_v5 }
 0x68b   :  { %5716 = vmatprep.mubr.bf16.mxu0 %v15036_v44  ;;  %5757 = vmatprep.mubr.bf16.mxu1 %v15036_v44 }
 0x68d   :  { %5687 = vmatpush1.bf16.msra.mxu0 %v13799_v55  ;;  %5728 = vmatpush1.bf16.msra.mxu1 %v13801_v2  ;;  %v15133_v55 = vld [vmem:[#allocation47_spill] sm:$0xff] }
 0x68e   :  { %5688 = vmatprep.subr.bf16.mxu0 %v13807_v18  ;;  %5729 = vmatprep.subr.bf16.mxu1 %v13809_v50 }
 0x691   :  { %5689 = vmatpush1.bf16.msra.mxu0 %v13811_v37  ;;  %5730 = vmatpush1.bf16.msra.mxu1 %v13813_v10  ;;  %v15134_v37 = vld [vmem:[#allocation46_spill] sm:$0xff] }
 0x692   :  { %5690 = vmatprep.subr.bf16.mxu0 %v13819_v29  ;;  %5731 = vmatprep.subr.bf16.mxu1 %v13821_v63 }
 0x695   :  { %5691 = vmatpush1.bf16.msra.mxu0 %v13823_v60  ;;  %5732 = vmatpush1.bf16.msra.mxu1 %v13825_v49  ;;  %v15135_v49 = vld [vmem:[#allocation48_spill] sm:$0xff] }
 0x696   :  { %5692 = vmatprep.subr.bf16.mxu0 %v13831_v17  ;;  %5733 = vmatprep.subr.bf16.mxu1 %v13833_v0 }
 0x699   :  { %5693 = vmatpush1.bf16.msra.mxu0 %v13835_v8  ;;  %5734 = vmatpush1.bf16.msra.mxu1 %v13837_v4 }
 0x69a   :  { %5694 = vmatprep.subr.bf16.mxu0 %v13843_v38  ;;  %5735 = vmatprep.subr.bf16.mxu1 %v13845_v27 }
 0x69d   :  { %5695 = vmatpush1.bf16.msra.mxu0 %v13847_v52  ;;  %5736 = vmatpush1.bf16.msra.mxu1 %v13849_v28 }
 0x69e   :  { %5696 = vmatprep.subr.bf16.mxu0 %v13855_v11  ;;  %5737 = vmatprep.subr.bf16.mxu1 %v13857_v19 }
 0x6a1   :  { %5697 = vmatpush1.bf16.msra.mxu0 %v13859_v21  ;;  %5738 = vmatpush1.bf16.msra.mxu1 %v13861_v43 }
 0x6a2   :  { %5698 = vmatprep.subr.bf16.mxu0 %v13867_v7  ;;  %5739 = vmatprep.subr.bf16.mxu1 %v13869_v9 }
 0x6a5   :  { %5699 = vmatpush1.bf16.msra.mxu0 %v13871_v42  ;;  %5740 = vmatpush1.bf16.msra.mxu1 %v13873_v46  ;;  %v15136_v42 = vld [vmem:[#allocation61_spill] sm:$0xff] }
 0x6a6   :  { %5991 = vmatprep.subr.bf16.mxu0 %v13879_v61  ;;  %6032 = vmatprep.subr.bf16.mxu1 %v13881_v36  ;;  %v992_v46 = vadd.f32 %v15136_v42, %v15052_v24  ;;  %v15137_v61 = vld [vmem:[#allocation59_spill] sm:$0xff]  ;;  %v11812_v42 = vld [vmem:[#allocation15 + $0x1a0] ss:$16 sps:$4 sm:$0xff]  }
 0x728   :  { %v5104_v35 = vpop.f32.mrf.mxu0  ;;  %v5145_v31 = vpop.f32.mrf.mxu1 }
 0x729   :  { %v5152_v41 = vadd.f32 %v5104_v35, %v15132_v58  ;;  %v5154_v10 = vadd.f32 %v5145_v31, %v15134_v37 }
 0x72a   :  { %v5106_v45 = vpop.f32.mrf.mxu0  ;;  %v5147_v34 = vpop.f32.mrf.mxu1 }
 0x72b   :  { %v5157_v5 = vmul.f32 0.5, %v5152_v41  ;;  %v5153_v2 = vadd.f32 %v5106_v45, %v15133_v55  ;;  %v5155_v17 = vadd.f32 %v5147_v34, %v15135_v49 }
 0x72c   :  { %v5108_v18 = vpop.f32.mrf.mxu0  ;;  %v5149_v50 = vpop.f32.mrf.mxu1 }
 0x72d   :  { %12255 = vtanh.f32 %v5157_v5  ;;  %v5161_v29 = vmul.f32 0.5, %v5153_v2  ;;  %v5166_v0 = vmul.f32 0.5, %v5155_v17  ;;  %v15139_v50 = vld [vmem:[#allocation62_spill] sm:$0xff] }
 0x72e   :  { %v5109_v63 = vpop.f32.mrf.mxu0  ;;  %v5150_v60 = vpop.f32.mrf.mxu1  ;;  %v1065_v37 = vadd.f32 %v15139_v50, %v15056_v59  ;;  %v11847_v50 = vld [vmem:[#allocation15 + $0x10c] ss:$16 sps:$4 sm:$0xff]  }
 0x72f   :  { %12257 = vtanh.f32 %v5161_v29 }
 0x730   :  { %12259 = vtanh.f32 %v5154_v10 }
 0x731   :  { %12261 = vtanh.f32 %v5166_v0 }
 0x73a   :  { %v12256_v8 = vpop.eup %12255 }
 0x73b   :  { %v5159_v4 = vmul.f32 0.5, %v12256_v8 }
 0x73c   :  { %v12258_v38 = vpop.eup %12257 }
 0x73d   :  { %v5160_v27 = vadd.f32 0.5, %v5159_v4  ;;  %v5163_v52 = vmul.f32 0.5, %v12258_v38  ;;  %v12260_v28 = vpop.eup %12259  ;;  %v15148_v4 = vld [vmem:[#allocation74_spill] sm:$0xff]  ;;  %v15149_v38 = vld [vmem:[#allocation37_spill] sm:$0xff] }
 0x73e   :  { %v12262_v48 = vpop.eup %12261 }
 0x73f   :  { %v5164_v11 = vadd.f32 0.5, %v5163_v52  ;;  %v5171_v19 = vmul.f32 %v12260_v28, %v5160_v27  ;;  %v5168_v45 = vmul.f32 0.5, %v12262_v48  ;;  %v11818_v48 = vld [vmem:[#allocation15 + $0x180] ss:$16 sps:$4 sm:$0xff]  }
 0x741   :  { %v5170_v21 = vmul.f32 %v5164_v11, %v13892_v3  ;;  %v15138_v3 = vld [vmem:[#allocation60_spill] sm:$0xff]  ;;  %v5169_v18 = vadd.f32 0.5, %v5168_v45  ;;  %v11835_v45 = vld [vmem:[#allocation15 + $0x14c] ss:$16 sps:$4 sm:$0xff]  }
 0x743   :  { %v14044_v43 = vadd.f32 %v5171_v19, %v5170_v21  ;;  %v11811_v19 = vld [vmem:[#allocation15 + $0x1cc] ss:$16 sps:$4 sm:$0xff]   ;;  %v11809_v21 = vld [vmem:[#allocation15 + $0x1c8] ss:$16 sps:$4 sm:$0xff]  }
 0x745   :  { %12263 = vtanh.f32 %v14044_v43 }
 0x748   :  { %v5411_v7 = vpop.f32.mrf.mxu0  ;;  %v5452_v9 = vpop.f32.mrf.mxu1 }
 0x749   :  { %v5459_v36 = vadd.f32 %v5411_v7, %v15137_v61  ;;  %v5461_v34 = vadd.f32 %v5452_v9, %v15138_v3  ;;  %v11814_v7 = vld [vmem:[#allocation15 + $0x1a4] ss:$16 sps:$4 sm:$0xff]   ;;  %v11817_v9 = vld [vmem:[#allocation15 + $0x1ac] ss:$16 sps:$4 sm:$0xff]   ;;  %v11830_v3 = vld [vmem:[#allocation15 + $0x140] ss:$16 sps:$4 sm:$0xff]  }
 0x74a   :  { %v5413_v56 = vpop.f32.mrf.mxu0  ;;  %v5454_v62 = vpop.f32.mrf.mxu1  ;;  %v11820_v61 = vld [vmem:[#allocation15 + $0x184] ss:$16 sps:$4 sm:$0xff]  }
 0x74b   :  { %v5464_v35 = vmul.f32 0.5, %v5459_v36  ;;  %v5460_v31 = vadd.f32 %v5413_v56, %v992_v46  ;;  %v5462_v29 = vadd.f32 %v5454_v62, %v1065_v37  ;;  %v11815_v46 = vld [vmem:[#allocation15 + $0x1a8] ss:$16 sps:$4 sm:$0xff]   ;;  %v11823_v36 = vld [vmem:[#allocation15 + $0x18c] ss:$16 sps:$4 sm:$0xff]  }
 0x74c   :  { %v5415_v58 = vpop.f32.mrf.mxu0  ;;  %v5456_v41 = vpop.f32.mrf.mxu1  ;;  %v11821_v56 = vld [vmem:[#allocation15 + $0x188] ss:$16 sps:$4 sm:$0xff]   ;;  %v11826_v62 = vld [vmem:[#allocation15 + $0x164] ss:$16 sps:$4 sm:$0xff]   ;;  %v11842_v37 = vld [vmem:[#allocation15 + $0x100] ss:$16 sps:$4 sm:$0xff]  }
 0x74d   :  { %12265 = vtanh.f32 %v5464_v35  ;;  %v5468_v5 = vmul.f32 0.5, %v5460_v31  ;;  %v5473_v60 = vmul.f32 0.5, %v5462_v29  ;;  %v11829_v35 = vld [vmem:[#allocation15 + $0x16c] ss:$16 sps:$4 sm:$0xff]   ;;  %v11824_v31 = vld [vmem:[#allocation15 + $0x160] ss:$16 sps:$4 sm:$0xff]  }
 0x74e   :  { %v5416_v55 = vpop.f32.mrf.mxu0  ;;  %v5457_v2 = vpop.f32.mrf.mxu1  ;;  %v11827_v58 = vld [vmem:[#allocation15 + $0x168] ss:$16 sps:$4 sm:$0xff]   ;;  %v11832_v41 = vld [vmem:[#allocation15 + $0x144] ss:$16 sps:$4 sm:$0xff]  }
 0x74f   :  { %12267 = vtanh.f32 %v5468_v5  ;;  %v11838_v5 = vld [vmem:[#allocation15 + $0x124] ss:$16 sps:$4 sm:$0xff]   ;;  %v11841_v55 = vld [vmem:[#allocation15 + $0x12c] ss:$16 sps:$4 sm:$0xff]   ;;  %v11836_v2 = vld [vmem:[#allocation15 + $0x120] ss:$16 sps:$4 sm:$0xff]  }
 0x750   :  { %12269 = vtanh.f32 %v5461_v34  ;;  %v11833_v34 = vld [vmem:[#allocation15 + $0x148] ss:$16 sps:$4 sm:$0xff]  }
 0x751   :  { %12271 = vtanh.f32 %v5473_v60  ;;  %v11845_v29 = vld [vmem:[#allocation15 + $0x108] ss:$16 sps:$4 sm:$0xff]   ;;  %v11853_v60 = vld [vmem:[#allocation15 + $0xec] ss:$16 sps:$4 sm:$0xff]  }
 0x752   :  { %v12264_v24 = vpop.eup %12263 }
 0x753   :  { %v14053_v10 = vmul.f32 %v12264_v24, %v5169_v18  ;;  %v11839_v18 = vld [vmem:[#allocation15 + $0x128] ss:$16 sps:$4 sm:$0xff]   ;;  %v11844_v24 = vld [vmem:[#allocation15 + $0x104] ss:$16 sps:$4 sm:$0xff]  }
 0x755   :  { %v5491_v63 = vpack.c.bf16 %v14053_v10, %v14053_v10 }
 0x757   :  { %5717 = vmatmul.mubr.bf16.vlgmr.msra.gmra.mxu0 %v5491_v63  ;;  %5758 = vmatmul.mubr.bf16.vlgmr.msra.gmra.mxu1 %v5491_v63  ;;  %v11850_v63 = vld [vmem:[#allocation15 + $0xe4] ss:$16 sps:$4 sm:$0xff]  }
 0x758   :  { %5992 = vmatpush1.bf16.msra.mxu0 %v13900_v39  ;;  %6033 = vmatpush1.bf16.msra.mxu1 %v13902_v12 }
 0x759   :  { %5993 = vmatprep.subr.bf16.mxu0 %v13907_v6  ;;  %6034 = vmatprep.subr.bf16.mxu1 %v13909_v26 }
 0x75a   :  { %v12266_v49 = vpop.eup %12265  ;;  %6023 = vmatprep.mubr.bf16.mxu0 %v15036_v44  ;;  %6064 = vmatprep.mubr.bf16.mxu1 %v15036_v44 }
 0x75b   :  { %v5466_v59 = vmul.f32 0.5, %v12266_v49 }
 0x75c   :  { %v12268_v17 = vpop.eup %12267  ;;  %5994 = vmatpush1.bf16.msra.mxu0 %v13913_v22  ;;  %6035 = vmatpush1.bf16.msra.mxu1 %v13915_v20  ;;  %v15140_v20 = vld [vmem:[#allocation90_spill] sm:$0xff] }
 0x75d   :  { %v5467_v0 = vadd.f32 0.5, %v5466_v59  ;;  %v5470_v39 = vmul.f32 0.5, %v12268_v17  ;;  %5995 = vmatprep.subr.bf16.mxu0 %v13919_v53  ;;  %6036 = vmatprep.subr.bf16.mxu1 %v13921_v51  ;;  %v12270_v12 = vpop.eup %12269  ;;  %v15141_v53 = vld [vmem:[#allocation34_spill] sm:$0xff]  ;;  %v15142_v51 = vld [vmem:[#allocation33_spill] sm:$0xff]  ;;  %v15150_v17 = vld [vmem:[#allocation28_spill] sm:$0xff] }
 0x75f   :  { %v5471_v6 = vadd.f32 0.5, %v5470_v39  ;;  %v5478_v26 = vmul.f32 %v12270_v12, %v5467_v0  ;;  %v15151_v0 = vld [vmem:[#allocation52_spill] sm:$0xff]  ;;  %v15152_v12 = vld [vmem:[#allocation29_spill] sm:$0xff] }
 0x760   :  { %5996 = vmatpush1.bf16.msra.mxu0 %v13927_v14  ;;  %6037 = vmatpush1.bf16.msra.mxu1 %v13929_v25  ;;  %v15143_v14 = vld [vmem:[#allocation35_spill] sm:$0xff]  ;;  %v15144_v25 = vld [vmem:[#allocation36_spill] sm:$0xff]  ;;  %v876_v39 = vadd.f32 %v15151_v0, %v15150_v17 }
 0x761   :  { %v5477_v8 = vmul.f32 %v5471_v6, %v13950_v57  ;;  %5997 = vmatprep.subr.bf16.mxu0 %v13933_v23  ;;  %6038 = vmatprep.subr.bf16.mxu1 %v13935_v40  ;;  %v15145_v23 = vld [vmem:[#allocation71_spill] sm:$0xff]  ;;  %v12272_v40 = vpop.eup %12271  ;;  %v15146_v57 = vld [vmem:[#allocation73_spill] sm:$0xff] }
 0x762   :  { %v15153_v6 = vld [vmem:[#allocation51_spill] sm:$0xff] }
 0x763   :  { %v14072_v22 = vadd.f32 %v5478_v26, %v5477_v8  ;;  %v949_v26 = vadd.f32 %v15153_v6, %v15152_v12  ;;  %v15154_v8 = vld [vmem:[#allocation49_spill] sm:$0xff] }
 0x764   :  { %5998 = vmatpush1.bf16.msra.mxu0 %v13939_v32  ;;  %6039 = vmatpush1.bf16.msra.mxu1 %v13941_v13  ;;  %v15147_v32 = vld [vmem:[#allocation72_spill] sm:$0xff]  ;;  %v5475_v13 = vmul.f32 0.5, %v12272_v40 }
 0x765   :  { %12273 = vtanh.f32 %v14072_v22  ;;  %5999 = vmatprep.subr.bf16.mxu0 %v15140_v20  ;;  %6040 = vmatprep.subr.bf16.mxu1 %v15141_v53  ;;  %v15155_v53 = vld [vmem:[#allocation50_spill] sm:$0xff] }
 0x766   :  { %v5476_v27 = vadd.f32 0.5, %v5475_v13 }
 0x768   :  { %6000 = vmatpush1.bf16.msra.mxu0 %v15142_v51  ;;  %6041 = vmatpush1.bf16.msra.mxu1 %v15143_v14 }
 0x769   :  { %6001 = vmatprep.subr.bf16.mxu0 %v15144_v25  ;;  %6042 = vmatprep.subr.bf16.mxu1 %v15145_v23 }
 0x76c   :  { %6002 = vmatpush1.bf16.msra.mxu0 %v15146_v57  ;;  %6043 = vmatpush1.bf16.msra.mxu1 %v15147_v32 }
 0x76d   :  { %6003 = vmatprep.subr.bf16.mxu0 %v15148_v4  ;;  %6044 = vmatprep.subr.bf16.mxu1 %v13975_v54  ;;  %v11802_v54 = vld [vmem:[#allocation15 + $0x1e4] ss:$16 sps:$4 sm:$0xff]  }
 0x770   :  { %6004 = vmatpush1.bf16.msra.mxu0 %v15149_v38  ;;  %6045 = vmatpush1.bf16.msra.mxu1 %v13981_v30  ;;  %v11805_v30 = vld [vmem:[#allocation15 + $0x1ec] ss:$16 sps:$4 sm:$0xff]  }
 0x771   :  { %6005 = vmatprep.subr.bf16.mxu0 %v13985_v1  ;;  %6046 = vmatprep.subr.bf16.mxu1 %v13987_v33  ;;  %v11800_v1 = vld [vmem:[#allocation15 + $0x1e0] ss:$16 sps:$4 sm:$0xff]   ;;  %v11803_v33 = vld [vmem:[#allocation15 + $0x1e8] ss:$16 sps:$4 sm:$0xff]  }
 0x772   :  { %v12274_v52 = vpop.eup %12273 }
 0x773   :  { %v14091_v28 = vmul.f32 %v12274_v52, %v5476_v27 }
 0x774   :  { %6006 = vmatpush1.bf16.msra.mxu0 %v13991_v16  ;;  %6047 = vmatpush1.bf16.msra.mxu1 %v13993_v15  ;;  %v11808_v16 = vld [vmem:[#allocation15 + $0x1c4] ss:$16 sps:$4 sm:$0xff]   ;;  %v11806_v15 = vld [vmem:[#allocation15 + $0x1c0] ss:$16 sps:$4 sm:$0xff]  }
 0x775   :  { %v5798_v11 = vpack.c.bf16 %v14091_v28, %v14091_v28  ;;  %6347 = vmatprep.subr.bf16.mxu0 %v11802_v54  ;;  %6420 = vmatprep.subr.bf16.mxu1 %v11805_v30 }
 0x777   :  { %6024 = vmatmul.mubr.bf16.vlgmr.msra.gmra.mxu0 %v5798_v11  ;;  %6065 = vmatmul.mubr.bf16.vlgmr.msra.gmra.mxu1 %v5798_v11 }
 0x778   :  { %6379 = vmatprep.mubr.bf16.mxu0 %v15036_v44  ;;  %6452 = vmatprep.mubr.bf16.mxu1 %v15036_v44 }
 0x779   :  { %6348 = vmatpush1.bf16.msra.mxu0 %v11800_v1  ;;  %6421 = vmatpush1.bf16.msra.mxu1 %v11803_v33 }
 0x77a   :  { %6349 = vmatprep.subr.bf16.mxu0 %v11808_v16  ;;  %6422 = vmatprep.subr.bf16.mxu1 %v11811_v19 }
 0x77d   :  { %6350 = vmatpush1.bf16.msra.mxu0 %v11806_v15  ;;  %6423 = vmatpush1.bf16.msra.mxu1 %v11809_v21 }
 0x77e   :  { %6351 = vmatprep.subr.bf16.mxu0 %v11814_v7  ;;  %6424 = vmatprep.subr.bf16.mxu1 %v11817_v9 }
 0x781   :  { %6352 = vmatpush1.bf16.msra.mxu0 %v11812_v42  ;;  %6425 = vmatpush1.bf16.msra.mxu1 %v11815_v46  ;;  %v15156_v46 = vld [vmem:[#allocation55_spill] sm:$0xff] }
 0x782   :  { %6353 = vmatprep.subr.bf16.mxu0 %v11820_v61  ;;  %6426 = vmatprep.subr.bf16.mxu1 %v11823_v36 }
 0x785   :  { %6354 = vmatpush1.bf16.msra.mxu0 %v11818_v48  ;;  %6427 = vmatpush1.bf16.msra.mxu1 %v11821_v56 }
 0x786   :  { %6355 = vmatprep.subr.bf16.mxu0 %v11826_v62  ;;  %6428 = vmatprep.subr.bf16.mxu1 %v11829_v35  ;;  %v15157_v35 = vld [vmem:[#allocation57_spill] sm:$0xff] }
 0x789   :  { %6356 = vmatpush1.bf16.msra.mxu0 %v11824_v31  ;;  %6429 = vmatpush1.bf16.msra.mxu1 %v11827_v58 }
 0x78a   :  { %6357 = vmatprep.subr.bf16.mxu0 %v11832_v41  ;;  %6430 = vmatprep.subr.bf16.mxu1 %v11835_v45 }
 0x78d   :  { %6358 = vmatpush1.bf16.msra.mxu0 %v11830_v3  ;;  %6431 = vmatpush1.bf16.msra.mxu1 %v11833_v34  ;;  %v15158_v3 = vld [vmem:[#allocation56_spill] sm:$0xff] }
 0x78e   :  { %6359 = vmatprep.subr.bf16.mxu0 %v11838_v5  ;;  %6432 = vmatprep.subr.bf16.mxu1 %v11841_v55 }
 0x791   :  { %6360 = vmatpush1.bf16.msra.mxu0 %v11836_v2  ;;  %6433 = vmatpush1.bf16.msra.mxu1 %v11839_v18 }
 0x792   :  { %6361 = vmatprep.subr.bf16.mxu0 %v11844_v24  ;;  %6434 = vmatprep.subr.bf16.mxu1 %v11847_v50  ;;  %v15159_v50 = vld [vmem:[#allocation58_spill] sm:$0xff] }
 0x795   :  { %6362 = vmatpush1.bf16.msra.mxu0 %v11842_v37  ;;  %6435 = vmatpush1.bf16.msra.mxu1 %v11845_v29 }
 0x796   :  { %6653 = vmatprep.subr.bf16.mxu0 %v11850_v63  ;;  %6726 = vmatprep.subr.bf16.mxu1 %v11853_v60 }
 0x817   :  { %v5718_v49 = vpop.f32.mrf.mxu0  ;;  %v5759_v59 = vpop.f32.mrf.mxu1 }
 0x818   :  { %v5766_v20 = vadd.f32 %v5718_v49, %v15154_v8  ;;  %v5768_v51 = vadd.f32 %v5759_v59, %v15155_v53 }
 0x819   :  { %v5720_v14 = vpop.f32.mrf.mxu0  ;;  %v5761_v25 = vpop.f32.mrf.mxu1 }
 0x81a   :  { %v5771_v23 = vmul.f32 0.5, %v5766_v20  ;;  %v5767_v40 = vadd.f32 %v5720_v14, %v876_v39  ;;  %v5769_v57 = vadd.f32 %v5761_v25, %v949_v26  ;;  %v11848_v25 = vld [vmem:[#allocation15 + $0xe0] ss:$16 sps:$4 sm:$0xff]  }
 0x81b   :  { %v5722_v32 = vpop.f32.mrf.mxu0  ;;  %v5763_v13 = vpop.f32.mrf.mxu1 }
 0x81c   :  { %12275 = vtanh.f32 %v5771_v23  ;;  %v5775_v4 = vmul.f32 0.5, %v5767_v40  ;;  %v5780_v52 = vmul.f32 0.5, %v5769_v57  ;;  %v11851_v23 = vld [vmem:[#allocation15 + $0xe8] ss:$16 sps:$4 sm:$0xff]   ;;  %v11856_v57 = vld [vmem:[#allocation15 + $0xc4] ss:$16 sps:$4 sm:$0xff]  }
 0x81d   :  { %v5723_v38 = vpop.f32.mrf.mxu0  ;;  %v5764_v27 = vpop.f32.mrf.mxu1  ;;  %v11859_v32 = vld [vmem:[#allocation15 + $0xcc] ss:$16 sps:$4 sm:$0xff]   ;;  %v11854_v13 = vld [vmem:[#allocation15 + $0xc0] ss:$16 sps:$4 sm:$0xff]  }
 0x81e   :  { %12277 = vtanh.f32 %v5775_v4  ;;  %v11857_v4 = vld [vmem:[#allocation15 + $0xc8] ss:$16 sps:$4 sm:$0xff]   ;;  %v11865_v38 = vld [vmem:[#allocation15 + $0xac] ss:$16 sps:$4 sm:$0xff]   ;;  %v11860_v27 = vld [vmem:[#allocation15 + $0xa0] ss:$16 sps:$4 sm:$0xff]  }
 0x81f   :  { %12279 = vtanh.f32 %v5768_v51 }
 0x820   :  { %12281 = vtanh.f32 %v5780_v52  ;;  %v15160_v52 = vld [vmem:[#allocation88_spill] sm:$0xff] }
 0x829   :  { %v12276_v11 = vpop.eup %12275 }
 0x82a   :  { %v5773_v54 = vmul.f32 0.5, %v12276_v11  ;;  %v6120_v11 = vpack.c.bf16 %v15160_v52, %v13997_v47  ;;  %v11872_v47 = vld [vmem:[#allocation15 + $0x60] ss:$16 sps:$4 sm:$0xff]   ;;  %v14212_v52 = vld [vmem:[#allocation17 + $0x24] ss:$16 sps:$4 sm:$0xff]  }
 0x82b   :  { %v12278_v30 = vpop.eup %12277  ;;  %15185 = vst [vmem:[#allocation83_spill] sm:$0xff] %v14212_v52 }
 0x82c   :  { %v5774_v1 = vadd.f32 0.5, %v5773_v54  ;;  %v5777_v33 = vmul.f32 0.5, %v12278_v30  ;;  %v12280_v16 = vpop.eup %12279  ;;  %v11868_v54 = vld [vmem:[#allocation15 + $0x84] ss:$16 sps:$4 sm:$0xff]   ;;  %v11871_v30 = vld [vmem:[#allocation15 + $0x8c] ss:$16 sps:$4 sm:$0xff]  }
 0x82d   :  { %v12282_v36 = vpop.eup %12281 }
 0x82e   :  { %v5778_v19 = vadd.f32 0.5, %v5777_v33  ;;  %v5785_v15 = vmul.f32 %v12280_v16, %v5774_v1  ;;  %v5782_v45 = vmul.f32 0.5, %v12282_v36  ;;  %v11866_v1 = vld [vmem:[#allocation15 + $0x80] ss:$16 sps:$4 sm:$0xff]   ;;  %v11869_v33 = vld [vmem:[#allocation15 + $0x88] ss:$16 sps:$4 sm:$0xff]  }
 0x82f   :  { %v11874_v16 = vld [vmem:[#allocation15 + $0x64] ss:$16 sps:$4 sm:$0xff]   ;;  %v11881_v36 = vld [vmem:[#allocation15 + $0x48] ss:$16 sps:$4 sm:$0xff]  }
 0x830   :  { %v5784_v21 = vmul.f32 %v5778_v19, %v14044_v43  ;;  %v5783_v2 = vadd.f32 0.5, %v5782_v45  ;;  %v11877_v19 = vld [vmem:[#allocation15 + $0x6c] ss:$16 sps:$4 sm:$0xff]   ;;  %v11892_v45 = vld [vmem:[#allocation15 + $0x4] ss:$16 sps:$4 sm:$0xff]  }
 0x832   :  { %v5786_v7 = vadd.f32 %v5785_v15, %v5784_v21  ;;  %v11875_v15 = vld [vmem:[#allocation15 + $0x68] ss:$16 sps:$4 sm:$0xff]   ;;  %v15161_v21 = vld [vmem:[#allocation86_spill] sm:$0xff] }
 0x834   :  { %12283 = vtanh.f32 %v5786_v7  ;;  %v15162_v7 = vld [vmem:[#allocation30_spill] sm:$0xff] }
 0x837   :  { %v6025_v9 = vpop.f32.mrf.mxu0  ;;  %v6066_v42 = vpop.f32.mrf.mxu1 }
 0x838   :  { %v6073_v61 = vadd.f32 %v6025_v9, %v15156_v46  ;;  %v6075_v34 = vadd.f32 %v6066_v42, %v15158_v3  ;;  %v6121_v9 = vpack.c.bf16 %v15162_v7, %v15161_v21  ;;  %v11880_v42 = vld [vmem:[#allocation15 + $0x44] ss:$16 sps:$4 sm:$0xff]   ;;  %v11883_v46 = vld [vmem:[#allocation15 + $0x4c] ss:$16 sps:$4 sm:$0xff]  }
 0x839   :  { %v6027_v48 = vpop.f32.mrf.mxu0  ;;  %v6068_v56 = vpop.f32.mrf.mxu1  ;;  %v11895_v3 = vld [vmem:[#allocation15 + $0xc] ss:$16 sps:$4 sm:$0xff]  }
 0x83a   :  { %v6078_v62 = vmul.f32 0.5, %v6073_v61  ;;  %v6074_v31 = vadd.f32 %v6027_v48, %v15157_v35  ;;  %v6076_v37 = vadd.f32 %v6068_v56, %v15159_v50  ;;  %v11878_v61 = vld [vmem:[#allocation15 + $0x40] ss:$16 sps:$4 sm:$0xff]   ;;  %v11886_v48 = vld [vmem:[#allocation15 + $0x24] ss:$16 sps:$4 sm:$0xff]   ;;  %v15166_v50 = vld [vmem:[#allocation79_spill] sm:$0xff] }
 0x83b   :  { %v6029_v58 = vpop.f32.mrf.mxu0  ;;  %v6070_v41 = vpop.f32.mrf.mxu1  ;;  %v11889_v56 = vld [vmem:[#allocation15 + $0x2c] ss:$16 sps:$4 sm:$0xff]   ;;  %v11887_v35 = vld [vmem:[#allocation15 + $0x28] ss:$16 sps:$4 sm:$0xff]  }
 0x83c   :  { %12285 = vtanh.f32 %v6078_v62  ;;  %v6082_v5 = vmul.f32 0.5, %v6074_v31  ;;  %v6087_v29 = vmul.f32 0.5, %v6076_v37  ;;  %v11884_v62 = vld [vmem:[#allocation15 + $0x20] ss:$16 sps:$4 sm:$0xff]   ;;  %v15163_v31 = vld [vmem:[#allocation91_spill] sm:$0xff]  ;;  %v15167_v37 = vld [vmem:[#allocation81_spill] sm:$0xff] }
 0x83d   :  { %v6030_v43 = vpop.f32.mrf.mxu0  ;;  %v6071_v55 = vpop.f32.mrf.mxu1  ;;  %v15164_v58 = vld [vmem:[#allocation80_spill] sm:$0xff] }
 0x83e   :  { %12287 = vtanh.f32 %v6082_v5  ;;  %v14126_v41 = vpack.c.bf16 %v15164_v58, %v15163_v31  ;;  %v11893_v5 = vld [vmem:[#allocation15 + $0x8] ss:$16 sps:$4 sm:$0xff]   ;;  %v14130_v43 = vld [vmem:[#allocation17 + $0xe4] ss:$16 sps:$4 sm:$0xff]   ;;  %v14132_v55 = vld [vmem:[#allocation17 + $0xec] ss:$16 sps:$4 sm:$0xff]  }
 0x83f   :  { %12289 = vtanh.f32 %v6075_v34  ;;  %v11890_v34 = vld [vmem:[#allocation15] ss:$16 sps:$4 sm:$0xff]  }
 0x840   :  { %12291 = vtanh.f32 %v6087_v29  ;;  %15165 = vst [vmem:[#allocation39_spill] sm:$0xff] %v14126_v41  ;;  %v6107_v29 = vpack.c.bf16 %v15167_v37, %v15166_v50 }
 0x841   :  { %v12284_v18 = vpop.eup %12283 }
 0x842   :  { %v14109_v24 = vmul.f32 %v12284_v18, %v5783_v2  ;;  %v14136_v2 = vld [vmem:[#allocation17 + $0xe0] ss:$16 sps:$4 sm:$0xff]   ;;  %v14138_v18 = vld [vmem:[#allocation17 + $0xe8] ss:$16 sps:$4 sm:$0xff]  }
 0x849   :  { %v12286_v63 = vpop.eup %12285 }
 0x84a   :  { %v6080_v60 = vmul.f32 0.5, %v12286_v63  ;;  %v14144_v63 = vld [vmem:[#allocation17 + $0xc4] ss:$16 sps:$4 sm:$0xff]  }
 0x84b   :  { %v12288_v49 = vpop.eup %12287 }
 0x84c   :  { %v6081_v59 = vadd.f32 0.5, %v6080_v60  ;;  %v6084_v17 = vmul.f32 0.5, %v12288_v49  ;;  %v12290_v0 = vpop.eup %12289  ;;  %v14146_v60 = vld [vmem:[#allocation17 + $0xcc] ss:$16 sps:$4 sm:$0xff]   ;;  %v14150_v49 = vld [vmem:[#allocation17 + $0xc0] ss:$16 sps:$4 sm:$0xff]  }
 0x84d   :  { %v12292_v8 = vpop.eup %12291 }
 0x84e   :  { %v6085_v39 = vadd.f32 0.5, %v6084_v17  ;;  %v6092_v12 = vmul.f32 %v12290_v0, %v6081_v59  ;;  %v6089_v20 = vmul.f32 0.5, %v12292_v8  ;;  %v14152_v59 = vld [vmem:[#allocation17 + $0xc8] ss:$16 sps:$4 sm:$0xff]   ;;  %v14156_v17 = vld [vmem:[#allocation17 + $0xa4] ss:$16 sps:$4 sm:$0xff]  }
 0x84f   :  { %v14158_v0 = vld [vmem:[#allocation17 + $0xac] ss:$16 sps:$4 sm:$0xff]  }
 0x850   :  { %v6091_v6 = vmul.f32 %v6085_v39, %v14072_v22  ;;  %v6090_v53 = vadd.f32 0.5, %v6089_v20  ;;  %v11862_v22 = vld [vmem:[#allocation15 + $0xa4] ss:$16 sps:$4 sm:$0xff]   ;;  %v14164_v39 = vld [vmem:[#allocation17 + $0xa0] ss:$16 sps:$4 sm:$0xff]  }
 0x851   :  { %v14172_v20 = vld [vmem:[#allocation17 + $0x84] ss:$16 sps:$4 sm:$0xff]  }
 0x852   :  { %v6093_v26 = vadd.f32 %v6092_v12, %v6091_v6  ;;  %v14166_v12 = vld [vmem:[#allocation17 + $0xa8] ss:$16 sps:$4 sm:$0xff]   ;;  %15171 = vst [vmem:[#allocation40_spill] sm:$0xff] %v14172_v20 }
 0x853   :  { %15168 = vst [vmem:[#allocation38_spill] sm:$0xff] %v14166_v12  ;;  %v15169_v6 = vld [vmem:[#allocation31_spill] sm:$0xff] }
 0x854   :  { %12293 = vtanh.f32 %v6093_v26  ;;  %v15170_v26 = vld [vmem:[#allocation32_spill] sm:$0xff] }
 0x855   :  { %v6108_v8 = vpack.c.bf16 %v15170_v26, %v15169_v6 }
 0x861   :  { %v12294_v51 = vpop.eup %12293 }
 0x862   :  { %v6095_v14 = vmul.f32 %v12294_v51, %v6090_v53  ;;  %v14174_v53 = vld [vmem:[#allocation17 + $0x8c] ss:$16 sps:$4 sm:$0xff]   ;;  %v14178_v51 = vld [vmem:[#allocation17 + $0x80] ss:$16 sps:$4 sm:$0xff]  }
 0x863   :  { %15172 = vst [vmem:[#allocation69_spill] sm:$0xff] %v14174_v53  ;;  %15173 = vst [vmem:[#allocation67_spill] sm:$0xff] %v14178_v51 }
 0x864   :  { %v6119_v40 = vpack.c.bf16 %v14091_v28, %v6095_v14  ;;  %v11863_v28 = vld [vmem:[#allocation15 + $0xa8] ss:$16 sps:$4 sm:$0xff]  }
 0x865   :  { %v14180_v14 = vld [vmem:[#allocation17 + $0x88] ss:$16 sps:$4 sm:$0xff]  }
 0x866   :  { %6380 = vmatmul.mubr.bf16.vlgmr.msra.gmra.mxu0 %v6119_v40  ;;  %6453 = vmatmul.mubr.bf16.vlgmr.msra.gmra.mxu1 %v6119_v40  ;;  %15174 = vst [vmem:[#allocation68_spill] sm:$0xff] %v14180_v14  ;;  %v14192_v40 = vld [vmem:[#allocation17 + $0x60] ss:$16 sps:$4 sm:$0xff]  }
 0x867   :  { %6654 = vmatpush1.bf16.msra.mxu0 %v11848_v25  ;;  %6727 = vmatpush1.bf16.msra.mxu1 %v11851_v23  ;;  %v14184_v25 = vld [vmem:[#allocation17 + $0x64] ss:$16 sps:$4 sm:$0xff]   ;;  %v14186_v23 = vld [vmem:[#allocation17 + $0x6c] ss:$16 sps:$4 sm:$0xff]   ;;  %15177 = vst [vmem:[#allocation77_spill] sm:$0xff] %v14192_v40 }
 0x868   :  { %6655 = vmatprep.subr.bf16.mxu0 %v11856_v57  ;;  %6728 = vmatprep.subr.bf16.mxu1 %v11859_v32  ;;  %15175 = vst [vmem:[#allocation70_spill] sm:$0xff] %v14184_v25  ;;  %15176 = vst [vmem:[#allocation53_spill] sm:$0xff] %v14186_v23  ;;  %v14194_v57 = vld [vmem:[#allocation17 + $0x68] ss:$16 sps:$4 sm:$0xff]  }
 0x869   :  { %6389 = vmatprep.mubr.bf16.mxu0 %v15036_v44  ;;  %6462 = vmatprep.mubr.bf16.mxu1 %v15036_v44  ;;  %15178 = vst [vmem:[#allocation75_spill] sm:$0xff] %v14194_v57  ;;  %v15179_v32 = vld [vmem:[#allocation87_spill] sm:$0xff] }
 0x86b   :  { %6656 = vmatpush1.bf16.msra.mxu0 %v11854_v13  ;;  %6729 = vmatpush1.bf16.msra.mxu1 %v11857_v4  ;;  %v15180_v13 = vld [vmem:[#allocation89_spill] sm:$0xff] }
 0x86c   :  { %6657 = vmatprep.subr.bf16.mxu0 %v11862_v22  ;;  %6730 = vmatprep.subr.bf16.mxu1 %v11865_v38  ;;  %v6109_v4 = vpack.c.bf16 %v15180_v13, %v15179_v32  ;;  %v14200_v22 = vld [vmem:[#allocation17 + $0x44] ss:$16 sps:$4 sm:$0xff]   ;;  %v14202_v38 = vld [vmem:[#allocation17 + $0x4c] ss:$16 sps:$4 sm:$0xff]  }
 0x86d   :  { %15181 = vst [vmem:[#allocation76_spill] sm:$0xff] %v14200_v22  ;;  %15182 = vst [vmem:[#allocation54_spill] sm:$0xff] %v14202_v38 }
 0x86e   :  { %6390 = vmatmul.mubr.bf16.gmra.mxu0 %v6120_v11  ;;  %6463 = vmatmul.mubr.bf16.gmra.mxu1 %v6120_v11  ;;  %v14214_v11 = vld [vmem:[#allocation17 + $0x2c] ss:$16 sps:$4 sm:$0xff]  }
 0x86f   :  { %6658 = vmatpush1.bf16.msra.mxu0 %v11860_v27  ;;  %6731 = vmatpush1.bf16.msra.mxu1 %v11863_v28  ;;  %v14206_v27 = vld [vmem:[#allocation17 + $0x40] ss:$16 sps:$4 sm:$0xff]   ;;  %v14208_v28 = vld [vmem:[#allocation17 + $0x48] ss:$16 sps:$4 sm:$0xff]   ;;  %15186 = vst [vmem:[#allocation84_spill] sm:$0xff] %v14214_v11 }
 0x870   :  { %6659 = vmatprep.subr.bf16.mxu0 %v11868_v54  ;;  %6732 = vmatprep.subr.bf16.mxu1 %v11871_v30  ;;  %15183 = vst [vmem:[#allocation78_spill] sm:$0xff] %v14206_v27  ;;  %15184 = vst [vmem:[#allocation82_spill] sm:$0xff] %v14208_v28  ;;  %v14220_v54 = vld [vmem:[#allocation17 + $0x20] ss:$16 sps:$4 sm:$0xff]   ;;  %v14222_v30 = vld [vmem:[#allocation17 + $0x28] ss:$16 sps:$4 sm:$0xff]  }
 0x871   :  { %6399 = vmatprep.mubr.bf16.mxu0 %v15036_v44  ;;  %6472 = vmatprep.mubr.bf16.mxu1 %v15036_v44  ;;  %15187 = vst [vmem:[#allocation85_spill] sm:$0xff] %v14220_v54  ;;  %15188 = vst [vmem:[#allocation42_spill] sm:$0xff] %v14222_v30 }
 0x873   :  { %6660 = vmatpush1.bf16.msra.mxu0 %v11866_v1  ;;  %6733 = vmatpush1.bf16.msra.mxu1 %v11869_v33  ;;  %v14227_v1 = vpack.c.bf16 %v14109_v24, %v14053_v10  ;;  %v14230_v33 = vld [vmem:[#allocation17 + $0x4] ss:$16 sps:$4 sm:$0xff]   ;;  %v15194_v10 = vmov 0.0|0.0  }
 0x874   :  { %6661 = vmatprep.subr.bf16.mxu0 %v11874_v16  ;;  %6734 = vmatprep.subr.bf16.mxu1 %v11877_v19  ;;  %15190 = vst [vmem:[#allocation43_spill] sm:$0xff] %v14230_v33  ;;  %v14232_v16 = vld [vmem:[#allocation17 + $0xc] ss:$16 sps:$4 sm:$0xff]   ;;  %v14238_v19 = vld [vmem:[#allocation17] ss:$16 sps:$4 sm:$0xff]  }
 0x875   :  { %15189 = vst [vmem:[#allocation41_spill] sm:$0xff] %v14227_v1  ;;  %15191 = vst [vmem:[#allocation44_spill] sm:$0xff] %v14232_v16 }
 0x876   :  { %6400 = vmatmul.mubr.bf16.gmra.mxu0 %v6121_v9  ;;  %6473 = vmatmul.mubr.bf16.gmra.mxu1 %v6121_v9  ;;  %15192 = vst [vmem:[#allocation63_spill] sm:$0xff] %v14238_v19 }
 0x877   :  { %6662 = vmatpush1.bf16.msra.mxu0 %v11872_v47  ;;  %6735 = vmatpush1.bf16.msra.mxu1 %v11875_v15  ;;  %v14240_v47 = vld [vmem:[#allocation17 + $0x8] ss:$16 sps:$4 sm:$0xff]  }
 0x878   :  { %6663 = vmatprep.subr.bf16.mxu0 %v11880_v42  ;;  %6736 = vmatprep.subr.bf16.mxu1 %v11883_v46  ;;  %15193 = vst [vmem:[#allocation65_spill] sm:$0xff] %v14240_v47 }
 0x879   :  { %6409 = vmatprep.mubr.bf16.mxu0 %v15036_v44  ;;  %6482 = vmatprep.mubr.bf16.mxu1 %v15036_v44 }
 0x87b   :  { %6664 = vmatpush1.bf16.msra.mxu0 %v11878_v61  ;;  %6737 = vmatpush1.bf16.msra.mxu1 %v11881_v36 }
 0x87c   :  { %6665 = vmatprep.subr.bf16.mxu0 %v11886_v48  ;;  %6738 = vmatprep.subr.bf16.mxu1 %v11889_v56 }
 0x87e   :  { %6410 = vmatmul.mubr.bf16.gmra.mxu0 %v14126_v41  ;;  %6483 = vmatmul.mubr.bf16.gmra.mxu1 %v14126_v41 }
 0x87f   :  { %6666 = vmatpush1.bf16.msra.mxu0 %v11884_v62  ;;  %6739 = vmatpush1.bf16.msra.mxu1 %v11887_v35 }
 0x880   :  { %6667 = vmatprep.subr.bf16.mxu0 %v11892_v45  ;;  %6740 = vmatprep.subr.bf16.mxu1 %v11895_v3 }
 0x881   :  { %6685 = vmatprep.mubr.bf16.mxu0 %v15036_v44  ;;  %6758 = vmatprep.mubr.bf16.mxu1 %v15036_v44 }
 0x883   :  { %6668 = vmatpush1.bf16.msra.mxu0 %v11890_v34  ;;  %6741 = vmatpush1.bf16.msra.mxu1 %v11893_v5 }
 0x884   :  { %7088 = vmatprep.subr.bf16.mxu0 %v14130_v43  ;;  %7129 = vmatprep.subr.bf16.mxu1 %v14132_v55 }
 0x886   :  { %6686 = vmatmul.mubr.bf16.vlgmr.msra.gmra.mxu0 %v6107_v29  ;;  %6759 = vmatmul.mubr.bf16.vlgmr.msra.gmra.mxu1 %v6107_v29 }
 0x887   :  { %7089 = vmatpush1.bf16.msra.mxu0 %v14136_v2  ;;  %7130 = vmatpush1.bf16.msra.mxu1 %v14138_v18 }
 0x888   :  { %7090 = vmatprep.subr.bf16.mxu0 %v14144_v63  ;;  %7131 = vmatprep.subr.bf16.mxu1 %v14146_v60 }
 0x889   :  { %6695 = vmatprep.mubr.bf16.mxu0 %v15036_v44  ;;  %6768 = vmatprep.mubr.bf16.mxu1 %v15036_v44 }
 0x88b   :  { %7091 = vmatpush1.bf16.msra.mxu0 %v14150_v49  ;;  %7132 = vmatpush1.bf16.msra.mxu1 %v14152_v59 }
 0x88c   :  { %7092 = vmatprep.subr.bf16.mxu0 %v14156_v17  ;;  %7133 = vmatprep.subr.bf16.mxu1 %v14158_v0 }
 0x88e   :  { %6696 = vmatmul.mubr.bf16.gmra.mxu0 %v6108_v8  ;;  %6769 = vmatmul.mubr.bf16.gmra.mxu1 %v6108_v8 }
 0x88f   :  { %7093 = vmatpush1.bf16.msra.mxu0 %v14164_v39  ;;  %7134 = vmatpush1.bf16.msra.mxu1 %v14166_v12 }
 0x890   :  { %7094 = vmatprep.subr.bf16.mxu0 %v14172_v20  ;;  %7135 = vmatprep.subr.bf16.mxu1 %v14174_v53 }
 0x891   :  { %6705 = vmatprep.mubr.bf16.mxu0 %v15036_v44  ;;  %6778 = vmatprep.mubr.bf16.mxu1 %v15036_v44 }
 0x893   :  { %7095 = vmatpush1.bf16.msra.mxu0 %v14178_v51  ;;  %7136 = vmatpush1.bf16.msra.mxu1 %v14180_v14 }
 0x894   :  { %7096 = vmatprep.subr.bf16.mxu0 %v14184_v25  ;;  %7137 = vmatprep.subr.bf16.mxu1 %v14186_v23 }
 0x896   :  { %6706 = vmatmul.mubr.bf16.gmra.mxu0 %v6109_v4  ;;  %6779 = vmatmul.mubr.bf16.gmra.mxu1 %v6109_v4 }
 0x897   :  { %7097 = vmatpush1.bf16.msra.mxu0 %v14192_v40  ;;  %7138 = vmatpush1.bf16.msra.mxu1 %v14194_v57 }
 0x898   :  { %7098 = vmatprep.subr.bf16.mxu0 %v14200_v22  ;;  %7139 = vmatprep.subr.bf16.mxu1 %v14202_v38 }
 0x899   :  { %6715 = vmatprep.mubr.bf16.mxu0 %v15036_v44  ;;  %6788 = vmatprep.mubr.bf16.mxu1 %v15036_v44 }
 0x89b   :  { %7099 = vmatpush1.bf16.msra.mxu0 %v14206_v27  ;;  %7140 = vmatpush1.bf16.msra.mxu1 %v14208_v28 }
 0x89c   :  { %7100 = vmatprep.subr.bf16.mxu0 %v14212_v52  ;;  %7141 = vmatprep.subr.bf16.mxu1 %v14214_v11 }
 0x89e   :  { %6716 = vmatmul.mubr.bf16.gmra.mxu0 %v14227_v1  ;;  %6789 = vmatmul.mubr.bf16.gmra.mxu1 %v14227_v1 }
 0x89f   :  { %7101 = vmatpush1.bf16.msra.mxu0 %v14220_v54  ;;  %7142 = vmatpush1.bf16.msra.mxu1 %v14222_v30 }
 0x8a0   :  { %7102 = vmatprep.subr.bf16.mxu0 %v14230_v33  ;;  %7143 = vmatprep.subr.bf16.mxu1 %v14232_v16 }
 0x8a1   :  { %7120 = vmatprep.mubr.bf16.mxu0 %v15036_v44  ;;  %7161 = vmatprep.mubr.bf16.mxu1 %v15036_v44 }
 0x8a3   :  { %7103 = vmatpush1.bf16.msra.mxu0 %v14238_v19  ;;  %7144 = vmatpush1.bf16.msra.mxu1 %v14240_v47 }
 0x8a4   :  { %7396 = vmatprep.subr.bf16.mxu0 %v14130_v43  ;;  %7437 = vmatprep.subr.bf16.mxu1 %v14132_v55 }
 0x8a6   :  { %7121 = vmatmul.mubr.bf16.vlgmr.msra.gmra.mxu0 %v15194_v10  ;;  %7162 = vmatmul.mubr.bf16.vlgmr.msra.gmra.mxu1 %v15194_v10 }
 0x8a7   :  { %7397 = vmatpush1.bf16.msra.mxu0 %v14136_v2  ;;  %7438 = vmatpush1.bf16.msra.mxu1 %v14138_v18 }
 0x8a8   :  { %7398 = vmatprep.subr.bf16.mxu0 %v14144_v63  ;;  %7439 = vmatprep.subr.bf16.mxu1 %v14146_v60 }
 0x8a9   :  { %7428 = vmatprep.mubr.bf16.mxu0 %v15036_v44  ;;  %7469 = vmatprep.mubr.bf16.mxu1 %v15036_v44 }
 0x8ab   :  { %7399 = vmatpush1.bf16.msra.mxu0 %v14150_v49  ;;  %7440 = vmatpush1.bf16.msra.mxu1 %v14152_v59 }
 0x8ac   :  { %7400 = vmatprep.subr.bf16.mxu0 %v14156_v17  ;;  %7441 = vmatprep.subr.bf16.mxu1 %v14158_v0 }
 0x8af   :  { %7401 = vmatpush1.bf16.msra.mxu0 %v14164_v39  ;;  %7442 = vmatpush1.bf16.msra.mxu1 %v14166_v12 }
 0x8b0   :  { %7402 = vmatprep.subr.bf16.mxu0 %v14172_v20  ;;  %7443 = vmatprep.subr.bf16.mxu1 %v14174_v53 }
 0x8b3   :  { %7403 = vmatpush1.bf16.msra.mxu0 %v14178_v51  ;;  %7444 = vmatpush1.bf16.msra.mxu1 %v14180_v14  ;;  %v15198_v14 = vld [vmem:[#allocation27_spill] sm:$0xff] }
 0x8b4   :  { %7404 = vmatprep.subr.bf16.mxu0 %v14184_v25  ;;  %7445 = vmatprep.subr.bf16.mxu1 %v14186_v23  ;;  %v15197_v23 = vld [vmem:[#allocation26_spill] sm:$0xff] }
 0x8b7   :  { %7405 = vmatpush1.bf16.msra.mxu0 %v14192_v40  ;;  %7446 = vmatpush1.bf16.msra.mxu1 %v14194_v57 }
 0x8b8   :  { %7406 = vmatprep.subr.bf16.mxu0 %v14200_v22  ;;  %7447 = vmatprep.subr.bf16.mxu1 %v14202_v38  ;;  %v15196_v38 = vld [vmem:[#allocation24_spill] sm:$0xff] }
 0x8bb   :  { %7407 = vmatpush1.bf16.msra.mxu0 %v14206_v27  ;;  %7448 = vmatpush1.bf16.msra.mxu1 %v14208_v28  ;;  %v15195_v28 = vld [vmem:[#allocation25_spill] sm:$0xff] }
 0x8bc   :  { %7408 = vmatprep.subr.bf16.mxu0 %v14212_v52  ;;  %7449 = vmatprep.subr.bf16.mxu1 %v14214_v11 }
 0x8bf   :  { %7409 = vmatpush1.bf16.msra.mxu0 %v14220_v54  ;;  %7450 = vmatpush1.bf16.msra.mxu1 %v14222_v30 }
 0x8c0   :  { %7410 = vmatprep.subr.bf16.mxu0 %v14230_v33  ;;  %7451 = vmatprep.subr.bf16.mxu1 %v14232_v16  ;;  %v6799_v33 = vld [vmem:[%s14875_s7] sm:$0xf] }
 0x8c1   :  { %v14334_v27 = vrot.slane %v6799_v33, %v15195_v28  ;;  %v14337_v22 = vrot.slane %v6799_v33, %v15196_v38  ;;  %v14340_v25 = vrot.slane %v6799_v33, %v15197_v23  ;;  %v14343_v51 = vrot.slane %v6799_v33, %v15198_v14 }
 0x8c3   :  { %7411 = vmatpush1.bf16.msra.mxu0 %v14238_v19  ;;  %7452 = vmatpush1.bf16.msra.mxu1 %v14240_v47 }
 0x8c4   :  { %7704 = vmatprep.subr.bf16.mxu0 %v14130_v43  ;;  %7745 = vmatprep.subr.bf16.mxu1 %v14132_v55 }
 0x926   :  { %v14286_v24 = vpop.f32.mrf.mxu0  ;;  %v14288_v15 = vpop.f32.mrf.mxu1 }
 0x928   :  { %v14290_v21 = vpop.f32.mrf.mxu0  ;;  %v14292_v7 = vpop.f32.mrf.mxu1 }
 0x92a   :  { %v6385_v9 = vpop.f32.mrf.mxu0  ;;  %v6458_v42 = vpop.f32.mrf.mxu1 }
 0x92c   :  { %v6387_v46 = vpop.f32.mrf.mxu0  ;;  %v6460_v61 = vpop.f32.mrf.mxu1 }
 0x92e   :  { %v6391_v36 = vpop.f32.mrf.mxu0  ;;  %v6464_v48 = vpop.f32.mrf.mxu1 }
 0x930   :  { %v6393_v56 = vpop.f32.mrf.mxu0  ;;  %v6466_v62 = vpop.f32.mrf.mxu1 }
 0x932   :  { %v6395_v35 = vpop.f32.mrf.mxu0  ;;  %v6468_v31 = vpop.f32.mrf.mxu1 }
 0x934   :  { %v6397_v58 = vpop.f32.mrf.mxu0  ;;  %v6470_v45 = vpop.f32.mrf.mxu1 }
 0x936   :  { %v6401_v3 = vpop.f32.mrf.mxu0  ;;  %v6474_v34 = vpop.f32.mrf.mxu1 }
 0x938   :  { %v14294_v5 = vpop.f32.mrf.mxu0  ;;  %v14296_v43 = vpop.f32.mrf.mxu1 }
 0x93a   :  { %v14298_v55 = vpop.f32.mrf.mxu0  ;;  %v14300_v50 = vpop.f32.mrf.mxu1 }
 0x93c   :  { %v14302_v37 = vpop.f32.mrf.mxu0  ;;  %v14304_v29 = vpop.f32.mrf.mxu1 }
 0x93e   :  { %v14306_v6 = vpop.f32.mrf.mxu0  ;;  %v14308_v26 = vpop.f32.mrf.mxu1 }
 0x940   :  { %v14310_v8 = vpop.f32.mrf.mxu0  ;;  %v14312_v32 = vpop.f32.mrf.mxu1 }
 0x942   :  { %v14314_v13 = vpop.f32.mrf.mxu0  ;;  %v14316_v4 = vpop.f32.mrf.mxu1 }
 0x944   :  { %v14318_v10 = vpop.f32.mrf.mxu0  ;;  %v14320_v1 = vpop.f32.mrf.mxu1 }
 0x946   :  { %v14322_v41 = vpop.f32.mrf.mxu0  ;;  %v14324_v47 = vpop.f32.mrf.mxu1 }
 0x948   :  { %v14326_v19 = vpop.f32.mrf.mxu0  ;;  %v14328_v16 = vpop.f32.mrf.mxu1 }
 0x94a   :  { %v6691_v30 = vpop.f32.mrf.mxu0  ;;  %v6764_v54 = vpop.f32.mrf.mxu1 }
 0x94b   :  { %v6692_v11 = vadd.f32 %v6691_v30, %v6385_v9  ;;  %v6765_v52 = vadd.f32 %v6764_v54, %v6458_v42 }
 0x94c   :  { %v6693_v57 = vpop.f32.mrf.mxu0  ;;  %v6766_v40 = vpop.f32.mrf.mxu1 }
 0x94d   :  { %v6694_v53 = vadd.f32 %v6693_v57, %v6387_v46  ;;  %v6767_v20 = vadd.f32 %v6766_v40, %v6460_v61  ;;  %v14346_v12 = vadd.f32 %v14334_v27, %v6692_v11  ;;  %v14349_v54 = vadd.f32 %v14337_v22, %v6765_v52 }
 0x94e   :  { %v6697_v30 = vpop.f32.mrf.mxu0  ;;  %v6770_v9 = vpop.f32.mrf.mxu1 }
 0x94f   :  { %v6698_v42 = vadd.f32 %v6697_v30, %v6391_v36  ;;  %v6771_v38 = vadd.f32 %v6770_v9, %v6464_v48  ;;  %v14352_v28 = vadd.f32 %v14340_v25, %v6694_v53  ;;  %v14355_v23 = vadd.f32 %v14343_v51, %v6767_v20 }
 0x950   :  { %v6699_v33 = vpop.f32.mrf.mxu0  ;;  %v6772_v14 = vpop.f32.mrf.mxu1 }
 0x951   :  { %v6700_v57 = vadd.f32 %v6699_v33, %v6393_v56  ;;  %v6773_v40 = vadd.f32 %v6772_v14, %v6466_v62  ;;  %v14358_v11 = vadd.f32 %v14334_v27, %v6698_v42  ;;  %v14361_v52 = vadd.f32 %v14337_v22, %v6771_v38 }
 0x952   :  { %v6701_v46 = vpop.f32.mrf.mxu0  ;;  %v6774_v61 = vpop.f32.mrf.mxu1 }
 0x953   :  { %v6702_v36 = vadd.f32 %v6701_v46, %v6395_v35  ;;  %v6775_v48 = vadd.f32 %v6774_v61, %v6468_v31  ;;  %v14364_v53 = vadd.f32 %v14340_v25, %v6700_v57  ;;  %v14367_v20 = vadd.f32 %v14343_v51, %v6773_v40 }
 0x954   :  { %v6703_v30 = vpop.f32.mrf.mxu0  ;;  %v6776_v9 = vpop.f32.mrf.mxu1 }
 0x955   :  { %v6704_v56 = vadd.f32 %v6703_v30, %v6397_v58  ;;  %v6777_v14 = vadd.f32 %v6776_v9, %v6470_v45  ;;  %v14370_v62 = vadd.f32 %v14334_v27, %v6702_v36  ;;  %v14373_v38 = vadd.f32 %v14337_v22, %v6775_v48 }
 0x956   :  { %v6707_v42 = vpop.f32.mrf.mxu0  ;;  %v6780_v33 = vpop.f32.mrf.mxu1 }
 0x957   :  { %v6708_v35 = vadd.f32 %v6707_v42, %v6401_v3  ;;  %v6781_v31 = vadd.f32 %v6780_v33, %v6474_v34  ;;  %v14376_v57 = vadd.f32 %v14340_v25, %v6704_v56  ;;  %v14379_v40 = vadd.f32 %v14343_v51, %v6777_v14 }
 0x958   :  { %v6709_v46 = vpop.f32.mrf.mxu0  ;;  %v6782_v61 = vpop.f32.mrf.mxu1 }
 0x959   :  { %v6710_v58 = vadd.f32 %v6709_v46, %v14294_v5  ;;  %v6783_v45 = vadd.f32 %v6782_v61, %v14296_v43  ;;  %v14384_v36 = vadd.f32 %v14334_v27, %v6708_v35  ;;  %v14387_v48 = vadd.f32 %v14337_v22, %v6781_v31 }
 0x95a   :  { %v6711_v3 = vpop.f32.mrf.mxu0  ;;  %v6784_v34 = vpop.f32.mrf.mxu1 }
 0x95b   :  { %v6712_v30 = vadd.f32 %v6711_v3, %v14298_v55  ;;  %v6785_v9 = vadd.f32 %v6784_v34, %v14300_v50  ;;  %v14392_v56 = vadd.f32 %v14340_v25, %v6710_v58  ;;  %v14395_v14 = vadd.f32 %v14343_v51, %v6783_v45 }
 0x95c   :  { %v6713_v5 = vpop.f32.mrf.mxu0  ;;  %v6786_v43 = vpop.f32.mrf.mxu1 }
 0x95d   :  { %v6714_v42 = vadd.f32 %v6713_v5, %v14302_v37  ;;  %v6787_v33 = vadd.f32 %v6786_v43, %v14304_v29  ;;  %v14400_v35 = vadd.f32 %v14334_v27, %v6712_v30  ;;  %v14403_v31 = vadd.f32 %v14337_v22, %v6785_v9 }
 0x95e   :  { %v6717_v55 = vpop.f32.mrf.mxu0  ;;  %v6790_v50 = vpop.f32.mrf.mxu1  ;;  %v6688_v37 = vadd.f32 %v14322_v41, %v14286_v24 }
 0x95f   :  { %v6718_v46 = vadd.f32 %v6717_v55, %v14306_v6  ;;  %v6791_v61 = vadd.f32 %v6790_v50, %v14308_v26  ;;  %v14408_v58 = vadd.f32 %v14340_v25, %v6714_v42  ;;  %v14411_v45 = vadd.f32 %v14343_v51, %v6787_v33 }
 0x960   :  { %v6719_v29 = vpop.f32.mrf.mxu0  ;;  %v6792_v3 = vpop.f32.mrf.mxu1  ;;  %v6690_v26 = vadd.f32 %v14326_v19, %v14290_v21  ;;  %v6821_v55 = vadd.f32 %v14334_v27, %v6688_v37 }
 0x961   :  { %v6720_v34 = vadd.f32 %v6719_v29, %v14310_v8  ;;  %v6793_v30 = vadd.f32 %v6792_v3, %v14312_v32  ;;  %v14418_v9 = vadd.f32 %v14334_v27, %v6718_v46  ;;  %v14421_v6 = vadd.f32 %v14337_v22, %v6791_v61 }
 0x962   :  { %v6721_v5 = vpop.f32.mrf.mxu0  ;;  %v6794_v43 = vpop.f32.mrf.mxu1  ;;  %v6822_v3 = vadd.f32 %v14340_v25, %v6690_v26  ;;  %v6763_v26 = vadd.f32 %v14328_v16, %v14292_v7 }
 0x963   :  { %15199 = vst [vmem:[#allocation64_spill] sm:$0xff] %v14421_v6  ;;  %v6722_v42 = vadd.f32 %v6721_v5, %v14314_v13  ;;  %v6795_v41 = vadd.f32 %v6794_v43, %v14316_v4  ;;  %v14428_v24 = vadd.f32 %v14340_v25, %v6720_v34  ;;  %v14431_v8 = vadd.f32 %v14343_v51, %v6793_v30 }
 0x964   :  { %v6723_v32 = vpop.f32.mrf.mxu0  ;;  %v6796_v33 = vpop.f32.mrf.mxu1  ;;  %v6761_v4 = vadd.f32 %v14324_v47, %v14288_v15 }
 0x965   :  { %15200 = vst [vmem:[#allocation66_spill] sm:$0xff] %v14428_v24  ;;  %15201 = vst [vmem:[#allocation45_spill] sm:$0xff] %v14431_v8  ;;  %v6724_v50 = vadd.f32 %v6723_v32, %v14318_v10  ;;  %v6797_v19 = vadd.f32 %v6796_v33, %v14320_v1  ;;  %v14437_v21 = vadd.f32 %v14334_v27, %v6722_v42 }
 0x966   :  { %v14440_v13 = vadd.f32 %v14337_v22, %v6795_v41  ;;  %v7122_v46 = vpop.f32.mrf.mxu0  ;;  %v7163_v61 = vpop.f32.mrf.mxu1  ;;  %v6823_v47 = vadd.f32 %v14337_v22, %v6761_v4  ;;  %v6824_v32 = vadd.f32 %v14343_v51, %v6763_v26  ;;  %v15220_v26 = vld [vmem:[#allocation84_spill] sm:$0xff] }
 0x967   :  { %15202 = vst [vmem:[#allocation47_spill] sm:$0xff] %v14437_v21  ;;  %v7170_v29 = vadd.f32 %v7122_v46, %v6821_v55  ;;  %v14446_v37 = vadd.f32 %v14340_v25, %v6724_v50  ;;  %v14449_v10 = vadd.f32 %v14343_v51, %v6797_v19 }
 0x968   :  { %15203 = vst [vmem:[#allocation46_spill] sm:$0xff] %v14440_v13  ;;  %v7124_v1 = vpop.f32.mrf.mxu0  ;;  %v7165_v27 = vpop.f32.mrf.mxu1  ;;  %v7172_v25 = vadd.f32 %v7163_v61, %v6823_v47  ;;  %v15211_v47 = vld [vmem:[#allocation70_spill] sm:$0xff] }
 0x969   :  { %15204 = vst [vmem:[#allocation48_spill] sm:$0xff] %v14446_v37  ;;  %15205 = vst [vmem:[#allocation61_spill] sm:$0xff] %v14449_v10  ;;  %v7175_v34 = vmul.f32 0.5, %v7170_v29  ;;  %v7171_v30 = vadd.f32 %v7124_v1, %v6822_v3  ;;  %v7173_v33 = vadd.f32 %v7165_v27, %v6824_v32  ;;  %v15222_v32 = vld [vmem:[#allocation42_spill] sm:$0xff] }
 0x96a   :  { %v7126_v5 = vpop.f32.mrf.mxu0  ;;  %v7167_v43 = vpop.f32.mrf.mxu1 }
 0x96b   :  { %12295 = vtanh.f32 %v7175_v34  ;;  %v7179_v15 = vmul.f32 0.5, %v7171_v30  ;;  %v7184_v55 = vmul.f32 0.5, %v7173_v33  ;;  %v15210_v43 = vld [vmem:[#allocation68_spill] sm:$0xff]  ;;  %v15223_v33 = vld [vmem:[#allocation43_spill] sm:$0xff] }
 0x96c   :  { %v7127_v42 = vpop.f32.mrf.mxu0  ;;  %v7168_v41 = vpop.f32.mrf.mxu1 }
 0x96d   :  { %12297 = vtanh.f32 %v7179_v15  ;;  %v15217_v15 = vld [vmem:[#allocation78_spill] sm:$0xff]  ;;  %v15219_v41 = vld [vmem:[#allocation83_spill] sm:$0xff] }
 0x96e   :  { %12299 = vtanh.f32 %v7172_v25  ;;  %v15218_v42 = vld [vmem:[#allocation82_spill] sm:$0xff]  ;;  %v15221_v25 = vld [vmem:[#allocation85_spill] sm:$0xff] }
 0x96f   :  { %12301 = vtanh.f32 %v7184_v55  ;;  %v15224_v55 = vld [vmem:[#allocation44_spill] sm:$0xff] }
 0x978   :  { %v12296_v50 = vpop.eup %12295 }
 0x979   :  { %v7177_v19 = vmul.f32 0.5, %v12296_v50  ;;  %v15225_v50 = vld [vmem:[#allocation63_spill] sm:$0xff] }
 0x97a   :  { %v12298_v46 = vpop.eup %12297 }
 0x97b   :  { %v7178_v29 = vadd.f32 0.5, %v7177_v19  ;;  %v7181_v3 = vmul.f32 0.5, %v12298_v46  ;;  %v12300_v4 = vpop.eup %12299  ;;  %v15226_v19 = vld [vmem:[#allocation65_spill] sm:$0xff] }
 0x97c   :  { %v12302_v16 = vpop.eup %12301 }
 0x97d   :  { %v7182_v22 = vadd.f32 0.5, %v7181_v3  ;;  %v7189_v34 = vmul.f32 %v12300_v4, %v7178_v29  ;;  %v7186_v7 = vmul.f32 0.5, %v12302_v16 }
 0x97f   :  { %v7188_v1 = vmul.f32 0.0, %v7182_v22  ;;  %v7187_v61 = vadd.f32 0.5, %v7186_v7 }
 0x981   :  { %v14455_v30 = vadd.f32 %v7189_v34, %v7188_v1 }
 0x983   :  { %12303 = vtanh.f32 %v14455_v30 }
 0x990   :  { %v12304_v51 = vpop.eup %12303 }
 0x991   :  { %v7192_v27 = vmul.f32 %v12304_v51, %v7187_v61 }
 0x993   :  { %v7203_v5 = vpack.c.bf16 %v7192_v27, %v7192_v27 }
 0x995   :  { %7429 = vmatmul.mubr.bf16.vlgmr.msra.gmra.mxu0 %v7203_v5  ;;  %7470 = vmatmul.mubr.bf16.vlgmr.msra.gmra.mxu1 %v7203_v5 }
 0x996   :  { %7705 = vmatpush1.bf16.msra.mxu0 %v14136_v2  ;;  %7746 = vmatpush1.bf16.msra.mxu1 %v14138_v18  ;;  %v15206_v2 = vld [vmem:[#allocation38_spill] sm:$0xff]  ;;  %v15207_v18 = vld [vmem:[#allocation40_spill] sm:$0xff] }
 0x997   :  { %7706 = vmatprep.subr.bf16.mxu0 %v14144_v63  ;;  %7747 = vmatprep.subr.bf16.mxu1 %v14146_v60  ;;  %v15208_v63 = vld [vmem:[#allocation69_spill] sm:$0xff]  ;;  %v15209_v60 = vld [vmem:[#allocation67_spill] sm:$0xff] }
 0x998   :  { %7736 = vmatprep.mubr.bf16.mxu0 %v15036_v44  ;;  %7777 = vmatprep.mubr.bf16.mxu1 %v15036_v44 }
 0x99a   :  { %7707 = vmatpush1.bf16.msra.mxu0 %v14150_v49  ;;  %7748 = vmatpush1.bf16.msra.mxu1 %v14152_v59  ;;  %v15212_v49 = vld [vmem:[#allocation53_spill] sm:$0xff] }
 0x99b   :  { %7708 = vmatprep.subr.bf16.mxu0 %v14156_v17  ;;  %7749 = vmatprep.subr.bf16.mxu1 %v14158_v0  ;;  %v15213_v59 = vld [vmem:[#allocation77_spill] sm:$0xff]  ;;  %v15214_v17 = vld [vmem:[#allocation75_spill] sm:$0xff]  ;;  %v15215_v0 = vld [vmem:[#allocation76_spill] sm:$0xff] }
 0x99e   :  { %7709 = vmatpush1.bf16.msra.mxu0 %v14164_v39  ;;  %7750 = vmatpush1.bf16.msra.mxu1 %v15206_v2  ;;  %v15216_v39 = vld [vmem:[#allocation54_spill] sm:$0xff] }
 0x99f   :  { %7710 = vmatprep.subr.bf16.mxu0 %v15207_v18  ;;  %7751 = vmatprep.subr.bf16.mxu1 %v15208_v63 }
 0x9a2   :  { %7711 = vmatpush1.bf16.msra.mxu0 %v15209_v60  ;;  %7752 = vmatpush1.bf16.msra.mxu1 %v15210_v43 }
 0x9a3   :  { %7712 = vmatprep.subr.bf16.mxu0 %v15211_v47  ;;  %7753 = vmatprep.subr.bf16.mxu1 %v15212_v49 }
 0x9a6   :  { %7713 = vmatpush1.bf16.msra.mxu0 %v15213_v59  ;;  %7754 = vmatpush1.bf16.msra.mxu1 %v15214_v17 }
 0x9a7   :  { %7714 = vmatprep.subr.bf16.mxu0 %v15215_v0  ;;  %7755 = vmatprep.subr.bf16.mxu1 %v15216_v39 }
 0x9aa   :  { %7715 = vmatpush1.bf16.msra.mxu0 %v15217_v15  ;;  %7756 = vmatpush1.bf16.msra.mxu1 %v15218_v42 }
 0x9ab   :  { %7716 = vmatprep.subr.bf16.mxu0 %v15219_v41  ;;  %7757 = vmatprep.subr.bf16.mxu1 %v15220_v26 }
 0x9ae   :  { %7717 = vmatpush1.bf16.msra.mxu0 %v15221_v25  ;;  %7758 = vmatpush1.bf16.msra.mxu1 %v15222_v32 }
 0x9af   :  { %7718 = vmatprep.subr.bf16.mxu0 %v15223_v33  ;;  %7759 = vmatprep.subr.bf16.mxu1 %v15224_v55 }
 0x9b2   :  { %7719 = vmatpush1.bf16.msra.mxu0 %v15225_v50  ;;  %7760 = vmatpush1.bf16.msra.mxu1 %v15226_v19 }
 0xa55   :  { %v7430_v46 = vpop.f32.mrf.mxu0  ;;  %v7471_v29 = vpop.f32.mrf.mxu1 }
 0xa56   :  { %v7478_v3 = vadd.f32 %v7430_v46, %v14346_v12  ;;  %v7480_v61 = vadd.f32 %v7471_v29, %v14349_v54 }
 0xa57   :  { %v7432_v22 = vpop.f32.mrf.mxu0  ;;  %v7473_v4 = vpop.f32.mrf.mxu1 }
 0xa58   :  { %v7483_v1 = vmul.f32 0.5, %v7478_v3  ;;  %v7479_v34 = vadd.f32 %v7432_v22, %v14352_v28  ;;  %v7481_v2 = vadd.f32 %v7473_v4, %v14355_v23 }
 0xa59   :  { %v7434_v16 = vpop.f32.mrf.mxu0  ;;  %v7475_v7 = vpop.f32.mrf.mxu1 }
 0xa5a   :  { %12305 = vtanh.f32 %v7483_v1  ;;  %v7487_v51 = vmul.f32 0.5, %v7479_v34  ;;  %v7492_v18 = vmul.f32 0.5, %v7481_v2  ;;  %v14500_v16 = vld [vmem:[#allocation17 + $0xe4] ss:$16 sps:$4 sm:$0xff]   ;;  %v14502_v7 = vld [vmem:[#allocation17 + $0xec] ss:$16 sps:$4 sm:$0xff]  }
 0xa5b   :  { %v7435_v27 = vpop.f32.mrf.mxu0  ;;  %v7476_v5 = vpop.f32.mrf.mxu1  ;;  %8012 = vmatprep.subr.bf16.mxu0 %v14500_v16  ;;  %8053 = vmatprep.subr.bf16.mxu1 %v14502_v7  ;;  %v14518_v2 = vld [vmem:[#allocation17 + $0xc8] ss:$16 sps:$4 sm:$0xff]  }
 0xa5c   :  { %12307 = vtanh.f32 %v7487_v51  ;;  %v14512_v51 = vld [vmem:[#allocation17 + $0xc4] ss:$16 sps:$4 sm:$0xff]   ;;  %v14514_v27 = vld [vmem:[#allocation17 + $0xcc] ss:$16 sps:$4 sm:$0xff]   ;;  %v14516_v5 = vld [vmem:[#allocation17 + $0xc0] ss:$16 sps:$4 sm:$0xff]  }
 0xa5d   :  { %12309 = vtanh.f32 %v7480_v61  ;;  %v14506_v61 = vld [vmem:[#allocation17 + $0xe8] ss:$16 sps:$4 sm:$0xff]  }
 0xa5e   :  { %12311 = vtanh.f32 %v7492_v18  ;;  %v14524_v18 = vld [vmem:[#allocation17 + $0xa4] ss:$16 sps:$4 sm:$0xff]  }
 0xa67   :  { %v12306_v63 = vpop.eup %12305 }
 0xa68   :  { %v7485_v12 = vmul.f32 0.5, %v12306_v63  ;;  %v14526_v63 = vld [vmem:[#allocation17 + $0xac] ss:$16 sps:$4 sm:$0xff]  }
 0xa69   :  { %v12308_v60 = vpop.eup %12307 }
 0xa6a   :  { %v7486_v43 = vadd.f32 0.5, %v7485_v12  ;;  %v7489_v47 = vmul.f32 0.5, %v12308_v60  ;;  %v12310_v28 = vpop.eup %12309  ;;  %v14528_v12 = vld [vmem:[#allocation17 + $0xa0] ss:$16 sps:$4 sm:$0xff]   ;;  %v14530_v60 = vld [vmem:[#allocation17 + $0xa8] ss:$16 sps:$4 sm:$0xff]  }
 0xa6b   :  { %v12312_v29 = vpop.eup %12311 }
 0xa6c   :  { %v7490_v59 = vadd.f32 0.5, %v7489_v47  ;;  %v7497_v46 = vmul.f32 %v12310_v28, %v7486_v43  ;;  %v7494_v22 = vmul.f32 0.5, %v12312_v29  ;;  %v14536_v43 = vld [vmem:[#allocation17 + $0x84] ss:$16 sps:$4 sm:$0xff]   ;;  %v14538_v47 = vld [vmem:[#allocation17 + $0x8c] ss:$16 sps:$4 sm:$0xff]  }
 0xa6d   :  { %v14540_v28 = vld [vmem:[#allocation17 + $0x80] ss:$16 sps:$4 sm:$0xff]  }
 0xa6e   :  { %v7496_v3 = vmul.f32 %v7490_v59, %v14455_v30  ;;  %v7495_v1 = vadd.f32 0.5, %v7494_v22  ;;  %v14504_v30 = vld [vmem:[#allocation17 + $0xe0] ss:$16 sps:$4 sm:$0xff]   ;;  %v14542_v59 = vld [vmem:[#allocation17 + $0x88] ss:$16 sps:$4 sm:$0xff]  }
 0xa70   :  { %v14495_v54 = vadd.f32 %v7497_v46, %v7496_v3  ;;  %v14548_v46 = vld [vmem:[#allocation17 + $0x64] ss:$16 sps:$4 sm:$0xff]   ;;  %v14551_v3 = vld [vmem:[#allocation17 + $0x60] ss:$16 sps:$4 sm:$0xff]  }
 0xa72   :  { %12313 = vtanh.f32 %v14495_v54 }
 0xa7f   :  { %v12314_v23 = vpop.eup %12313 }
 0xa80   :  { %v7500_v4 = vmul.f32 %v12314_v23, %v7495_v1 }
 0xa82   :  { %v7511_v34 = vpack.c.bf16 %v7500_v4, %v7500_v4 }
 0xa84   :  { %7737 = vmatmul.mubr.bf16.vlgmr.msra.gmra.mxu0 %v7511_v34  ;;  %7778 = vmatmul.mubr.bf16.vlgmr.msra.gmra.mxu1 %v7511_v34 }
 0xa85   :  { %8044 = vmatprep.mubr.bf16.mxu0 %v15036_v44  ;;  %8085 = vmatprep.mubr.bf16.mxu1 %v15036_v44 }
 0xa86   :  { %8013 = vmatpush1.bf16.msra.mxu0 %v14504_v30  ;;  %8054 = vmatpush1.bf16.msra.mxu1 %v14506_v61 }
 0xa87   :  { %8014 = vmatprep.subr.bf16.mxu0 %v14512_v51  ;;  %8055 = vmatprep.subr.bf16.mxu1 %v14514_v27 }
 0xa8a   :  { %8015 = vmatpush1.bf16.msra.mxu0 %v14516_v5  ;;  %8056 = vmatpush1.bf16.msra.mxu1 %v14518_v2 }
 0xa8b   :  { %8016 = vmatprep.subr.bf16.mxu0 %v14524_v18  ;;  %8057 = vmatprep.subr.bf16.mxu1 %v14526_v63 }
 0xa8e   :  { %8017 = vmatpush1.bf16.msra.mxu0 %v14528_v12  ;;  %8058 = vmatpush1.bf16.msra.mxu1 %v14530_v60 }
 0xa8f   :  { %8018 = vmatprep.subr.bf16.mxu0 %v14536_v43  ;;  %8059 = vmatprep.subr.bf16.mxu1 %v14538_v47 }
 0xa92   :  { %8019 = vmatpush1.bf16.msra.mxu0 %v14540_v28  ;;  %8060 = vmatpush1.bf16.msra.mxu1 %v14542_v59 }
 0xa93   :  { %8061 = vmatprep.subr.bf16.mxu1 %v15212_v49  ;;  %8020 = vmatprep.subr.bf16.mxu0 %v14548_v46 }
 0xa96   :  { %8021 = vmatpush1.bf16.msra.mxu0 %v14551_v3  ;;  %8062 = vmatpush1.bf16.msra.mxu1 %v15214_v17 }
 0xa97   :  { %8022 = vmatprep.subr.bf16.mxu0 %v15215_v0  ;;  %8063 = vmatprep.subr.bf16.mxu1 %v15216_v39 }
 0xa9a   :  { %8023 = vmatpush1.bf16.msra.mxu0 %v15217_v15  ;;  %8064 = vmatpush1.bf16.msra.mxu1 %v15218_v42 }
 0xa9b   :  { %8024 = vmatprep.subr.bf16.mxu0 %v15219_v41  ;;  %8065 = vmatprep.subr.bf16.mxu1 %v15220_v26 }
 0xa9e   :  { %8025 = vmatpush1.bf16.msra.mxu0 %v15221_v25  ;;  %8066 = vmatpush1.bf16.msra.mxu1 %v15222_v32 }
 0xa9f   :  { %8026 = vmatprep.subr.bf16.mxu0 %v15223_v33  ;;  %8067 = vmatprep.subr.bf16.mxu1 %v15224_v55 }
 0xaa2   :  { %8027 = vmatpush1.bf16.msra.mxu0 %v15225_v50  ;;  %8068 = vmatpush1.bf16.msra.mxu1 %v15226_v19 }
 0xaa3   :  { %8320 = vmatprep.subr.bf16.mxu0 %v14500_v16  ;;  %8361 = vmatprep.subr.bf16.mxu1 %v14502_v7 }
 0xb44   :  { %v7738_v49 = vpop.f32.mrf.mxu0  ;;  %v7779_v17 = vpop.f32.mrf.mxu1 }
 0xb45   :  { %v7786_v0 = vadd.f32 %v7738_v49, %v14358_v11  ;;  %v7788_v32 = vadd.f32 %v7779_v17, %v14361_v52 }
 0xb46   :  { %v7740_v39 = vpop.f32.mrf.mxu0  ;;  %v7781_v15 = vpop.f32.mrf.mxu1 }
 0xb47   :  { %v7791_v42 = vmul.f32 0.5, %v7786_v0  ;;  %v7787_v41 = vadd.f32 %v7740_v39, %v14364_v53  ;;  %v7789_v19 = vadd.f32 %v7781_v15, %v14367_v20 }
 0xb48   :  { %v7742_v26 = vpop.f32.mrf.mxu0  ;;  %v7783_v25 = vpop.f32.mrf.mxu1 }
 0xb49   :  { %12315 = vtanh.f32 %v7791_v42  ;;  %v7795_v33 = vmul.f32 0.5, %v7787_v41  ;;  %v7800_v29 = vmul.f32 0.5, %v7789_v19  ;;  %v14598_v26 = vld [vmem:[#allocation17 + $0x68] ss:$16 sps:$4 sm:$0xff]   ;;  %v14602_v25 = vld [vmem:[#allocation17 + $0x44] ss:$16 sps:$4 sm:$0xff]  }
 0xb4a   :  { %v7743_v55 = vpop.f32.mrf.mxu0  ;;  %v7784_v50 = vpop.f32.mrf.mxu1  ;;  %v14616_v19 = vld [vmem:[#allocation17 + $0x2c] ss:$16 sps:$4 sm:$0xff]  }
 0xb4b   :  { %12317 = vtanh.f32 %v7795_v33  ;;  %v14606_v33 = vld [vmem:[#allocation17 + $0x40] ss:$16 sps:$4 sm:$0xff]   ;;  %v14608_v55 = vld [vmem:[#allocation17 + $0x48] ss:$16 sps:$4 sm:$0xff]   ;;  %v14614_v50 = vld [vmem:[#allocation17 + $0x24] ss:$16 sps:$4 sm:$0xff]  }
 0xb4c   :  { %12319 = vtanh.f32 %v7788_v32  ;;  %v14604_v32 = vld [vmem:[#allocation17 + $0x4c] ss:$16 sps:$4 sm:$0xff]  }
 0xb4d   :  { %12321 = vtanh.f32 %v7800_v29  ;;  %v14618_v29 = vld [vmem:[#allocation17 + $0x20] ss:$16 sps:$4 sm:$0xff]  }
 0xb56   :  { %v12316_v22 = vpop.eup %12315 }
 0xb57   :  { %v7793_v11 = vmul.f32 0.5, %v12316_v22  ;;  %v14620_v22 = vld [vmem:[#allocation17 + $0x28] ss:$16 sps:$4 sm:$0xff]  }
 0xb58   :  { %v12318_v1 = vpop.eup %12317 }
 0xb59   :  { %v7794_v23 = vadd.f32 0.5, %v7793_v11  ;;  %v7797_v4 = vmul.f32 0.5, %v12318_v1  ;;  %v12320_v53 = vpop.eup %12319  ;;  %v14626_v11 = vld [vmem:[#allocation17 + $0x4] ss:$16 sps:$4 sm:$0xff]   ;;  %v14628_v1 = vld [vmem:[#allocation17 + $0xc] ss:$16 sps:$4 sm:$0xff]  }
 0xb5a   :  { %v12322_v17 = vpop.eup %12321 }
 0xb5b   :  { %v7798_v34 = vadd.f32 0.5, %v7797_v4  ;;  %v7805_v49 = vmul.f32 %v12320_v53, %v7794_v23  ;;  %v7802_v39 = vmul.f32 0.5, %v12322_v17  ;;  %v14630_v23 = vld [vmem:[#allocation17] ss:$16 sps:$4 sm:$0xff]   ;;  %v14632_v4 = vld [vmem:[#allocation17 + $0x8] ss:$16 sps:$4 sm:$0xff]  }
 0xb5d   :  { %v7804_v0 = vmul.f32 %v7798_v34, %v14495_v54  ;;  %v7803_v42 = vadd.f32 0.5, %v7802_v39  ;;  %v14596_v54 = vld [vmem:[#allocation17 + $0x6c] ss:$16 sps:$4 sm:$0xff]  }
 0xb5f   :  { %v14575_v52 = vadd.f32 %v7805_v49, %v7804_v0 }
 0xb61   :  { %12323 = vtanh.f32 %v14575_v52 }
 0xb6e   :  { %v12324_v20 = vpop.eup %12323 }
 0xb6f   :  { %v7808_v15 = vmul.f32 %v12324_v20, %v7803_v42 }
 0xb71   :  { %v7819_v41 = vpack.c.bf16 %v7808_v15, %v7808_v15 }
 0xb73   :  { %8045 = vmatmul.mubr.bf16.vlgmr.msra.gmra.mxu0 %v7819_v41  ;;  %8086 = vmatmul.mubr.bf16.vlgmr.msra.gmra.mxu1 %v7819_v41 }
 0xb74   :  { %8321 = vmatpush1.bf16.msra.mxu0 %v14504_v30  ;;  %8362 = vmatpush1.bf16.msra.mxu1 %v14506_v61 }
 0xb75   :  { %8322 = vmatprep.subr.bf16.mxu0 %v14512_v51  ;;  %8363 = vmatprep.subr.bf16.mxu1 %v14514_v27 }
 0xb76   :  { %8352 = vmatprep.mubr.bf16.mxu0 %v15036_v44  ;;  %8393 = vmatprep.mubr.bf16.mxu1 %v15036_v44 }
 0xb78   :  { %8323 = vmatpush1.bf16.msra.mxu0 %v14516_v5  ;;  %8364 = vmatpush1.bf16.msra.mxu1 %v14518_v2 }
 0xb79   :  { %8324 = vmatprep.subr.bf16.mxu0 %v14524_v18  ;;  %8365 = vmatprep.subr.bf16.mxu1 %v14526_v63 }
 0xb7c   :  { %8325 = vmatpush1.bf16.msra.mxu0 %v14528_v12  ;;  %8366 = vmatpush1.bf16.msra.mxu1 %v14530_v60 }
 0xb7d   :  { %8326 = vmatprep.subr.bf16.mxu0 %v14536_v43  ;;  %8367 = vmatprep.subr.bf16.mxu1 %v14538_v47 }
 0xb80   :  { %8327 = vmatpush1.bf16.msra.mxu0 %v14540_v28  ;;  %8368 = vmatpush1.bf16.msra.mxu1 %v14542_v59 }
 0xb81   :  { %8328 = vmatprep.subr.bf16.mxu0 %v14548_v46  ;;  %8369 = vmatprep.subr.bf16.mxu1 %v14596_v54 }
 0xb84   :  { %8329 = vmatpush1.bf16.msra.mxu0 %v14551_v3  ;;  %8370 = vmatpush1.bf16.msra.mxu1 %v14598_v26 }
 0xb85   :  { %8330 = vmatprep.subr.bf16.mxu0 %v14602_v25  ;;  %8371 = vmatprep.subr.bf16.mxu1 %v14604_v32 }
 0xb88   :  { %8331 = vmatpush1.bf16.msra.mxu0 %v14606_v33  ;;  %8372 = vmatpush1.bf16.msra.mxu1 %v14608_v55 }
 0xb89   :  { %8332 = vmatprep.subr.bf16.mxu0 %v14614_v50  ;;  %8373 = vmatprep.subr.bf16.mxu1 %v14616_v19 }
 0xb8c   :  { %8333 = vmatpush1.bf16.msra.mxu0 %v14618_v29  ;;  %8374 = vmatpush1.bf16.msra.mxu1 %v14620_v22 }
 0xb8d   :  { %8334 = vmatprep.subr.bf16.mxu0 %v14626_v11  ;;  %8375 = vmatprep.subr.bf16.mxu1 %v14628_v1 }
 0xb90   :  { %8335 = vmatpush1.bf16.msra.mxu0 %v14630_v23  ;;  %8376 = vmatpush1.bf16.msra.mxu1 %v14632_v4 }
 0xb91   :  { %8628 = vmatprep.subr.bf16.mxu0 %v14500_v16  ;;  %8669 = vmatprep.subr.bf16.mxu1 %v14502_v7 }
 0xc33   :  { %v8046_v53 = vpop.f32.mrf.mxu0  ;;  %v8087_v34 = vpop.f32.mrf.mxu1 }
 0xc34   :  { %v8094_v49 = vadd.f32 %v8046_v53, %v14370_v62  ;;  %v8096_v41 = vadd.f32 %v8087_v34, %v14373_v38 }
 0xc35   :  { %v8048_v0 = vpop.f32.mrf.mxu0  ;;  %v8089_v17 = vpop.f32.mrf.mxu1 }
 0xc36   :  { %v8099_v39 = vmul.f32 0.5, %v8094_v49  ;;  %v8095_v42 = vadd.f32 %v8048_v0, %v14376_v57  ;;  %v8097_v21 = vadd.f32 %v8089_v17, %v14379_v40 }
 0xc37   :  { %v8050_v20 = vpop.f32.mrf.mxu0  ;;  %v8091_v15 = vpop.f32.mrf.mxu1 }
 0xc38   :  { %12325 = vtanh.f32 %v8099_v39  ;;  %v8103_v10 = vmul.f32 0.5, %v8095_v42  ;;  %v8108_v8 = vmul.f32 0.5, %v8097_v21 }
 0xc39   :  { %v8051_v13 = vpop.f32.mrf.mxu0  ;;  %v8092_v37 = vpop.f32.mrf.mxu1 }
 0xc3a   :  { %12327 = vtanh.f32 %v8103_v10 }
 0xc3b   :  { %12329 = vtanh.f32 %v8096_v41 }
 0xc3c   :  { %12331 = vtanh.f32 %v8108_v8 }
 0xc45   :  { %v12326_v6 = vpop.eup %12325 }
 0xc46   :  { %v8101_v62 = vmul.f32 0.5, %v12326_v6 }
 0xc47   :  { %v12328_v53 = vpop.eup %12327 }
 0xc48   :  { %v8102_v24 = vadd.f32 0.5, %v8101_v62  ;;  %v8105_v49 = vmul.f32 0.5, %v12328_v53  ;;  %v12330_v57 = vpop.eup %12329 }
 0xc49   :  { %v12332_v13 = vpop.eup %12331 }
 0xc4a   :  { %v8106_v0 = vadd.f32 0.5, %v8105_v49  ;;  %v8113_v20 = vmul.f32 %v12330_v57, %v8102_v24  ;;  %v8110_v37 = vmul.f32 0.5, %v12332_v13 }
 0xc4c   :  { %v8112_v39 = vmul.f32 %v8106_v0, %v14575_v52  ;;  %v8111_v10 = vadd.f32 0.5, %v8110_v37 }
 0xc4e   :  { %v14645_v38 = vadd.f32 %v8113_v20, %v8112_v39 }
 0xc50   :  { %12333 = vtanh.f32 %v14645_v38 }
 0xc5d   :  { %v12334_v40 = vpop.eup %12333 }
 0xc5e   :  { %v8116_v21 = vmul.f32 %v12334_v40, %v8111_v10 }
 0xc60   :  { %v8127_v34 = vpack.c.bf16 %v8116_v21, %v8116_v21 }
 0xc62   :  { %8353 = vmatmul.mubr.bf16.vlgmr.msra.gmra.mxu0 %v8127_v34  ;;  %8394 = vmatmul.mubr.bf16.vlgmr.msra.gmra.mxu1 %v8127_v34 }
 0xc63   :  { %8629 = vmatpush1.bf16.msra.mxu0 %v14504_v30  ;;  %8670 = vmatpush1.bf16.msra.mxu1 %v14506_v61 }
 0xc64   :  { %8630 = vmatprep.subr.bf16.mxu0 %v14512_v51  ;;  %8671 = vmatprep.subr.bf16.mxu1 %v14514_v27 }
 0xc65   :  { %8660 = vmatprep.mubr.bf16.mxu0 %v15036_v44  ;;  %8701 = vmatprep.mubr.bf16.mxu1 %v15036_v44 }
 0xc67   :  { %8631 = vmatpush1.bf16.msra.mxu0 %v14516_v5  ;;  %8672 = vmatpush1.bf16.msra.mxu1 %v14518_v2 }
 0xc68   :  { %8632 = vmatprep.subr.bf16.mxu0 %v14524_v18  ;;  %8673 = vmatprep.subr.bf16.mxu1 %v14526_v63 }
 0xc6b   :  { %8633 = vmatpush1.bf16.msra.mxu0 %v14528_v12  ;;  %8674 = vmatpush1.bf16.msra.mxu1 %v14530_v60 }
 0xc6c   :  { %8634 = vmatprep.subr.bf16.mxu0 %v14536_v43  ;;  %8675 = vmatprep.subr.bf16.mxu1 %v14538_v47 }
 0xc6f   :  { %8635 = vmatpush1.bf16.msra.mxu0 %v14540_v28  ;;  %8676 = vmatpush1.bf16.msra.mxu1 %v14542_v59 }
 0xc70   :  { %8636 = vmatprep.subr.bf16.mxu0 %v14548_v46  ;;  %8677 = vmatprep.subr.bf16.mxu1 %v14596_v54 }
 0xc73   :  { %8637 = vmatpush1.bf16.msra.mxu0 %v14551_v3  ;;  %8678 = vmatpush1.bf16.msra.mxu1 %v14598_v26 }
 0xc74   :  { %8638 = vmatprep.subr.bf16.mxu0 %v14602_v25  ;;  %8679 = vmatprep.subr.bf16.mxu1 %v14604_v32 }
 0xc77   :  { %8639 = vmatpush1.bf16.msra.mxu0 %v14606_v33  ;;  %8680 = vmatpush1.bf16.msra.mxu1 %v14608_v55 }
 0xc78   :  { %8640 = vmatprep.subr.bf16.mxu0 %v14614_v50  ;;  %8681 = vmatprep.subr.bf16.mxu1 %v14616_v19 }
 0xc7b   :  { %8641 = vmatpush1.bf16.msra.mxu0 %v14618_v29  ;;  %8682 = vmatpush1.bf16.msra.mxu1 %v14620_v22 }
 0xc7c   :  { %8642 = vmatprep.subr.bf16.mxu0 %v14626_v11  ;;  %8683 = vmatprep.subr.bf16.mxu1 %v14628_v1 }
 0xc7f   :  { %8643 = vmatpush1.bf16.msra.mxu0 %v14630_v23  ;;  %8684 = vmatpush1.bf16.msra.mxu1 %v14632_v4 }
 0xc80   :  { %8936 = vmatprep.subr.bf16.mxu0 %v14500_v16  ;;  %8977 = vmatprep.subr.bf16.mxu1 %v14502_v7 }
 0xd22   :  { %v8354_v6 = vpop.f32.mrf.mxu0  ;;  %v8395_v24 = vpop.f32.mrf.mxu1 }
 0xd23   :  { %v8402_v8 = vadd.f32 %v8354_v6, %v14384_v36  ;;  %v8404_v53 = vadd.f32 %v8395_v24, %v14387_v48 }
 0xd24   :  { %v8356_v52 = vpop.f32.mrf.mxu0  ;;  %v8397_v17 = vpop.f32.mrf.mxu1 }
 0xd25   :  { %v8407_v42 = vmul.f32 0.5, %v8402_v8  ;;  %v8403_v15 = vadd.f32 %v8356_v52, %v14392_v56  ;;  %v8405_v16 = vadd.f32 %v8397_v17, %v14395_v14 }
 0xd26   :  { %v8358_v41 = vpop.f32.mrf.mxu0  ;;  %v8399_v62 = vpop.f32.mrf.mxu1 }
 0xd27   :  { %12335 = vtanh.f32 %v8407_v42  ;;  %v8411_v49 = vmul.f32 0.5, %v8403_v15  ;;  %v8416_v7 = vmul.f32 0.5, %v8405_v16 }
 0xd28   :  { %v8359_v57 = vpop.f32.mrf.mxu0  ;;  %v8400_v0 = vpop.f32.mrf.mxu1 }
 0xd29   :  { %12337 = vtanh.f32 %v8411_v49 }
 0xd2a   :  { %12339 = vtanh.f32 %v8404_v53 }
 0xd2b   :  { %12341 = vtanh.f32 %v8416_v7  ;;  %v11994_v7 = vld [vmem:[#allocation17 + $0xe4] ss:$16 sps:$4 sm:$0xff]  }
 0xd34   :  { %v12336_v20 = vpop.eup %12335 }
 0xd35   :  { %v8409_v36 = vmul.f32 0.5, %v12336_v20  ;;  %v11997_v20 = vld [vmem:[#allocation17 + $0xec] ss:$16 sps:$4 sm:$0xff]  }
 0xd36   :  { %v12338_v39 = vpop.eup %12337 }
 0xd37   :  { %v8410_v13 = vadd.f32 0.5, %v8409_v36  ;;  %v8413_v37 = vmul.f32 0.5, %v12338_v39  ;;  %v12340_v56 = vpop.eup %12339  ;;  %v11992_v36 = vld [vmem:[#allocation17 + $0xe0] ss:$16 sps:$4 sm:$0xff]   ;;  %v11995_v39 = vld [vmem:[#allocation17 + $0xe8] ss:$16 sps:$4 sm:$0xff]  }
 0xd38   :  { %v12342_v34 = vpop.eup %12341 }
 0xd39   :  { %v8414_v10 = vadd.f32 0.5, %v8413_v37  ;;  %v8421_v40 = vmul.f32 %v12340_v56, %v8410_v13  ;;  %v8418_v6 = vmul.f32 0.5, %v12342_v34  ;;  %v12000_v13 = vld [vmem:[#allocation17 + $0xc4] ss:$16 sps:$4 sm:$0xff]   ;;  %v12003_v37 = vld [vmem:[#allocation17 + $0xcc] ss:$16 sps:$4 sm:$0xff]  }
 0xd3a   :  { %v11998_v56 = vld [vmem:[#allocation17 + $0xc0] ss:$16 sps:$4 sm:$0xff]   ;;  %v12007_v34 = vld [vmem:[#allocation17 + $0xa8] ss:$16 sps:$4 sm:$0xff]  }
 0xd3b   :  { %v8420_v21 = vmul.f32 %v8414_v10, %v14645_v38  ;;  %v8419_v24 = vadd.f32 0.5, %v8418_v6  ;;  %v12001_v10 = vld [vmem:[#allocation17 + $0xc8] ss:$16 sps:$4 sm:$0xff]   ;;  %v12012_v6 = vld [vmem:[#allocation17 + $0x84] ss:$16 sps:$4 sm:$0xff]  }
 0xd3d   :  { %v14687_v48 = vadd.f32 %v8421_v40, %v8420_v21  ;;  %v12006_v40 = vld [vmem:[#allocation17 + $0xa4] ss:$16 sps:$4 sm:$0xff]   ;;  %v12009_v21 = vld [vmem:[#allocation17 + $0xac] ss:$16 sps:$4 sm:$0xff]  }
 0xd3f   :  { %12343 = vtanh.f32 %v14687_v48 }
 0xd4c   :  { %v12344_v14 = vpop.eup %12343 }
 0xd4d   :  { %v8424_v8 = vmul.f32 %v12344_v14, %v8419_v24  ;;  %v12015_v24 = vld [vmem:[#allocation17 + $0x8c] ss:$16 sps:$4 sm:$0xff]   ;;  %v12010_v14 = vld [vmem:[#allocation17 + $0x80] ss:$16 sps:$4 sm:$0xff]  }
 0xd4f   :  { %v8435_v52 = vpack.c.bf16 %v8424_v8, %v8424_v8  ;;  %v12013_v8 = vld [vmem:[#allocation17 + $0x88] ss:$16 sps:$4 sm:$0xff]  }
 0xd51   :  { %8661 = vmatmul.mubr.bf16.vlgmr.msra.gmra.mxu0 %v8435_v52  ;;  %8702 = vmatmul.mubr.bf16.vlgmr.msra.gmra.mxu1 %v8435_v52  ;;  %v12018_v52 = vld [vmem:[#allocation17 + $0x64] ss:$16 sps:$4 sm:$0xff]  }
 0xd52   :  { %8937 = vmatpush1.bf16.msra.mxu0 %v14504_v30  ;;  %8978 = vmatpush1.bf16.msra.mxu1 %v14506_v61 }
 0xd53   :  { %8938 = vmatprep.subr.bf16.mxu0 %v14512_v51  ;;  %8979 = vmatprep.subr.bf16.mxu1 %v14514_v27 }
 0xd54   :  { %8968 = vmatprep.mubr.bf16.mxu0 %v15036_v44  ;;  %9009 = vmatprep.mubr.bf16.mxu1 %v15036_v44 }
 0xd56   :  { %8939 = vmatpush1.bf16.msra.mxu0 %v14516_v5  ;;  %8980 = vmatpush1.bf16.msra.mxu1 %v14518_v2 }
 0xd57   :  { %8940 = vmatprep.subr.bf16.mxu0 %v14524_v18  ;;  %8981 = vmatprep.subr.bf16.mxu1 %v14526_v63 }
 0xd5a   :  { %8941 = vmatpush1.bf16.msra.mxu0 %v14528_v12  ;;  %8982 = vmatpush1.bf16.msra.mxu1 %v14530_v60 }
 0xd5b   :  { %8942 = vmatprep.subr.bf16.mxu0 %v14536_v43  ;;  %8983 = vmatprep.subr.bf16.mxu1 %v14538_v47 }
 0xd5e   :  { %8943 = vmatpush1.bf16.msra.mxu0 %v14540_v28  ;;  %8984 = vmatpush1.bf16.msra.mxu1 %v14542_v59 }
 0xd5f   :  { %8944 = vmatprep.subr.bf16.mxu0 %v14548_v46  ;;  %8985 = vmatprep.subr.bf16.mxu1 %v14596_v54 }
 0xd62   :  { %8945 = vmatpush1.bf16.msra.mxu0 %v14551_v3  ;;  %8986 = vmatpush1.bf16.msra.mxu1 %v14598_v26 }
 0xd63   :  { %8946 = vmatprep.subr.bf16.mxu0 %v14602_v25  ;;  %8987 = vmatprep.subr.bf16.mxu1 %v14604_v32 }
 0xd66   :  { %8947 = vmatpush1.bf16.msra.mxu0 %v14606_v33  ;;  %8988 = vmatpush1.bf16.msra.mxu1 %v14608_v55 }
 0xd67   :  { %8948 = vmatprep.subr.bf16.mxu0 %v14614_v50  ;;  %8989 = vmatprep.subr.bf16.mxu1 %v14616_v19 }
 0xd6a   :  { %8949 = vmatpush1.bf16.msra.mxu0 %v14618_v29  ;;  %8990 = vmatpush1.bf16.msra.mxu1 %v14620_v22 }
 0xd6b   :  { %8950 = vmatprep.subr.bf16.mxu0 %v14626_v11  ;;  %8991 = vmatprep.subr.bf16.mxu1 %v14628_v1 }
 0xd6e   :  { %8951 = vmatpush1.bf16.msra.mxu0 %v14630_v23  ;;  %8992 = vmatpush1.bf16.msra.mxu1 %v14632_v4 }
 0xd6f   :  { %9244 = vmatprep.subr.bf16.mxu0 %v11994_v7  ;;  %9285 = vmatprep.subr.bf16.mxu1 %v11997_v20  ;;  %v12034_v7 = vld [vmem:[#allocation18 + $0x1a8] ss:$16 sps:$4 sm:$0xff]   ;;  %v12039_v20 = vld [vmem:[#allocation18 + $0x184] ss:$16 sps:$4 sm:$0xff]  }
 0xe11   :  { %v8662_v30 = vpop.f32.mrf.mxu0  ;;  %v8703_v61 = vpop.f32.mrf.mxu1 }
 0xe12   :  { %v8710_v51 = vadd.f32 %v8662_v30, %v14400_v35  ;;  %v8712_v60 = vadd.f32 %v8703_v61, %v14403_v31  ;;  %v12016_v30 = vld [vmem:[#allocation17 + $0x60] ss:$16 sps:$4 sm:$0xff]  }
 0xe13   :  { %v8664_v27 = vpop.f32.mrf.mxu0  ;;  %v8705_v5 = vpop.f32.mrf.mxu1 }
 0xe14   :  { %v8715_v2 = vmul.f32 0.5, %v8710_v51  ;;  %v8711_v18 = vadd.f32 %v8664_v27, %v14408_v58  ;;  %v8713_v59 = vadd.f32 %v8705_v5, %v14411_v45  ;;  %v15229_v5 = vld [vmem:[#allocation45_spill] sm:$0xff] }
 0xe15   :  { %v8666_v63 = vpop.f32.mrf.mxu0  ;;  %v8707_v12 = vpop.f32.mrf.mxu1 }
 0xe16   :  { %12345 = vtanh.f32 %v8715_v2  ;;  %v8719_v43 = vmul.f32 0.5, %v8711_v18  ;;  %v8724_v46 = vmul.f32 0.5, %v8713_v59 }
 0xe17   :  { %v8667_v47 = vpop.f32.mrf.mxu0  ;;  %v8708_v28 = vpop.f32.mrf.mxu1 }
 0xe18   :  { %12347 = vtanh.f32 %v8719_v43 }
 0xe19   :  { %12349 = vtanh.f32 %v8712_v60 }
 0xe1a   :  { %12351 = vtanh.f32 %v8724_v46 }
 0xe23   :  { %v12346_v3 = vpop.eup %12345 }
 0xe24   :  { %v8717_v35 = vmul.f32 0.5, %v12346_v3 }
 0xe25   :  { %v12348_v38 = vpop.eup %12347 }
 0xe26   :  { %v8718_v17 = vadd.f32 0.5, %v8717_v35  ;;  %v8721_v42 = vmul.f32 0.5, %v12348_v38  ;;  %v12350_v58 = vpop.eup %12349 }
 0xe27   :  { %v12352_v53 = vpop.eup %12351 }
 0xe28   :  { %v8722_v15 = vadd.f32 0.5, %v8721_v42  ;;  %v8729_v41 = vmul.f32 %v12350_v58, %v8718_v17  ;;  %v8726_v49 = vmul.f32 0.5, %v12352_v53  ;;  %v12027_v53 = vld [vmem:[#allocation18 + $0x1c4] ss:$16 sps:$4 sm:$0xff]  }
 0xe2a   :  { %v8728_v62 = vmul.f32 %v8722_v15, %v14687_v48  ;;  %v8727_v57 = vadd.f32 0.5, %v8726_v49  ;;  %v12004_v48 = vld [vmem:[#allocation17 + $0xa0] ss:$16 sps:$4 sm:$0xff]   ;;  %v12030_v49 = vld [vmem:[#allocation18 + $0x1cc] ss:$16 sps:$4 sm:$0xff]  }
 0xe2b   :  { %v12019_v15 = vld [vmem:[#allocation18 + $0x1e0] ss:$16 sps:$4 sm:$0xff]  }
 0xe2c   :  { %v14727_v31 = vadd.f32 %v8729_v41, %v8728_v62  ;;  %v12022_v41 = vld [vmem:[#allocation18 + $0x1e8] ss:$16 sps:$4 sm:$0xff]  }
 0xe2e   :  { %12353 = vtanh.f32 %v14727_v31 }
 0xe3b   :  { %v12354_v45 = vpop.eup %12353 }
 0xe3c   :  { %v8732_v0 = vmul.f32 %v12354_v45, %v8727_v57  ;;  %v12025_v57 = vld [vmem:[#allocation18 + $0x1c0] ss:$16 sps:$4 sm:$0xff]   ;;  %v12033_v45 = vld [vmem:[#allocation18 + $0x1a4] ss:$16 sps:$4 sm:$0xff]  }
 0xe3e   :  { %v8743_v16 = vpack.c.bf16 %v8732_v0, %v8732_v0  ;;  %v12036_v0 = vld [vmem:[#allocation18 + $0x1ac] ss:$16 sps:$4 sm:$0xff]  }
 0xe40   :  { %8969 = vmatmul.mubr.bf16.vlgmr.msra.gmra.mxu0 %v8743_v16  ;;  %9010 = vmatmul.mubr.bf16.vlgmr.msra.gmra.mxu1 %v8743_v16  ;;  %v12031_v16 = vld [vmem:[#allocation18 + $0x1a0] ss:$16 sps:$4 sm:$0xff]  }
 0xe41   :  { %9276 = vmatprep.mubr.bf16.mxu0 %v15036_v44  ;;  %9317 = vmatprep.mubr.bf16.mxu1 %v15036_v44 }
 0xe42   :  { %9245 = vmatpush1.bf16.msra.mxu0 %v11992_v36  ;;  %9286 = vmatpush1.bf16.msra.mxu1 %v11995_v39  ;;  %v12042_v36 = vld [vmem:[#allocation18 + $0x18c] ss:$16 sps:$4 sm:$0xff]   ;;  %v12037_v39 = vld [vmem:[#allocation18 + $0x180] ss:$16 sps:$4 sm:$0xff]  }
 0xe43   :  { %9246 = vmatprep.subr.bf16.mxu0 %v12000_v13  ;;  %9287 = vmatprep.subr.bf16.mxu1 %v12003_v37  ;;  %v12040_v13 = vld [vmem:[#allocation18 + $0x188] ss:$16 sps:$4 sm:$0xff]   ;;  %v12045_v37 = vld [vmem:[#allocation18 + $0x164] ss:$16 sps:$4 sm:$0xff]  }
 0xe46   :  { %9247 = vmatpush1.bf16.msra.mxu0 %v11998_v56  ;;  %9288 = vmatpush1.bf16.msra.mxu1 %v12001_v10  ;;  %v12048_v56 = vld [vmem:[#allocation18 + $0x16c] ss:$16 sps:$4 sm:$0xff]   ;;  %v12043_v10 = vld [vmem:[#allocation18 + $0x160] ss:$16 sps:$4 sm:$0xff]  }
 0xe47   :  { %9248 = vmatprep.subr.bf16.mxu0 %v12006_v40  ;;  %9289 = vmatprep.subr.bf16.mxu1 %v12009_v21  ;;  %v12046_v40 = vld [vmem:[#allocation18 + $0x168] ss:$16 sps:$4 sm:$0xff]   ;;  %v12051_v21 = vld [vmem:[#allocation18 + $0x144] ss:$16 sps:$4 sm:$0xff]  }
 0xe4a   :  { %9249 = vmatpush1.bf16.msra.mxu0 %v12004_v48  ;;  %9290 = vmatpush1.bf16.msra.mxu1 %v12007_v34  ;;  %v12054_v48 = vld [vmem:[#allocation18 + $0x14c] ss:$16 sps:$4 sm:$0xff]   ;;  %v12049_v34 = vld [vmem:[#allocation18 + $0x140] ss:$16 sps:$4 sm:$0xff]  }
 0xe4b   :  { %9250 = vmatprep.subr.bf16.mxu0 %v12012_v6  ;;  %9291 = vmatprep.subr.bf16.mxu1 %v12015_v24  ;;  %v12052_v6 = vld [vmem:[#allocation18 + $0x148] ss:$16 sps:$4 sm:$0xff]   ;;  %v12057_v24 = vld [vmem:[#allocation18 + $0x124] ss:$16 sps:$4 sm:$0xff]  }
 0xe4e   :  { %9251 = vmatpush1.bf16.msra.mxu0 %v12010_v14  ;;  %9292 = vmatpush1.bf16.msra.mxu1 %v12013_v8  ;;  %v12060_v14 = vld [vmem:[#allocation18 + $0x12c] ss:$16 sps:$4 sm:$0xff]   ;;  %v12055_v8 = vld [vmem:[#allocation18 + $0x120] ss:$16 sps:$4 sm:$0xff]  }
 0xe4f   :  { %9293 = vmatprep.subr.bf16.mxu1 %v14596_v54  ;;  %9252 = vmatprep.subr.bf16.mxu0 %v12018_v52  ;;  %v12021_v54 = vld [vmem:[#allocation18 + $0x1e4] ss:$16 sps:$4 sm:$0xff]   ;;  %v12058_v52 = vld [vmem:[#allocation18 + $0x128] ss:$16 sps:$4 sm:$0xff]  }
 0xe52   :  { %9253 = vmatpush1.bf16.msra.mxu0 %v12016_v30  ;;  %9294 = vmatpush1.bf16.msra.mxu1 %v14598_v26  ;;  %v12024_v26 = vld [vmem:[#allocation18 + $0x1ec] ss:$16 sps:$4 sm:$0xff]   ;;  %v12063_v30 = vld [vmem:[#allocation18 + $0x104] ss:$16 sps:$4 sm:$0xff]  }
 0xe53   :  { %9254 = vmatprep.subr.bf16.mxu0 %v14602_v25  ;;  %9295 = vmatprep.subr.bf16.mxu1 %v14604_v32 }
 0xe56   :  { %9255 = vmatpush1.bf16.msra.mxu0 %v14606_v33  ;;  %9296 = vmatpush1.bf16.msra.mxu1 %v14608_v55 }
 0xe57   :  { %9256 = vmatprep.subr.bf16.mxu0 %v14614_v50  ;;  %9297 = vmatprep.subr.bf16.mxu1 %v14616_v19 }
 0xe5a   :  { %9257 = vmatpush1.bf16.msra.mxu0 %v14618_v29  ;;  %9298 = vmatpush1.bf16.msra.mxu1 %v14620_v22  ;;  %v15227_v29 = vld [vmem:[#allocation66_spill] sm:$0xff] }
 0xe5b   :  { %9258 = vmatprep.subr.bf16.mxu0 %v14626_v11  ;;  %9299 = vmatprep.subr.bf16.mxu1 %v14628_v1  ;;  %v15228_v1 = vld [vmem:[#allocation64_spill] sm:$0xff] }
 0xe5e   :  { %9259 = vmatpush1.bf16.msra.mxu0 %v14630_v23  ;;  %9300 = vmatpush1.bf16.msra.mxu1 %v14632_v4 }
 0xe5f   :  { %9579 = vmatprep.subr.bf16.mxu0 %v12021_v54  ;;  %9620 = vmatprep.subr.bf16.mxu1 %v12024_v26  ;;  %v12066_v54 = vld [vmem:[#allocation18 + $0x10c] ss:$16 sps:$4 sm:$0xff]   ;;  %v12061_v26 = vld [vmem:[#allocation18 + $0x100] ss:$16 sps:$4 sm:$0xff]  }
 0xf00   :  { %v8970_v25 = vpop.f32.mrf.mxu0  ;;  %v9011_v32 = vpop.f32.mrf.mxu1 }
 0xf01   :  { %v9018_v33 = vadd.f32 %v8970_v25, %v14418_v9  ;;  %v9020_v23 = vadd.f32 %v9011_v32, %v15228_v1  ;;  %v12064_v25 = vld [vmem:[#allocation18 + $0x108] ss:$16 sps:$4 sm:$0xff]   ;;  %v12069_v32 = vld [vmem:[#allocation18 + $0xe4] ss:$16 sps:$4 sm:$0xff]  }
 0xf02   :  { %v8972_v55 = vpop.f32.mrf.mxu0  ;;  %v9013_v50 = vpop.f32.mrf.mxu1  ;;  %v12076_v1 = vld [vmem:[#allocation18 + $0xc8] ss:$16 sps:$4 sm:$0xff]  }
 0xf03   :  { %v9023_v19 = vmul.f32 0.5, %v9018_v33  ;;  %v9019_v22 = vadd.f32 %v8972_v55, %v15227_v29  ;;  %v9021_v2 = vadd.f32 %v9013_v50, %v15229_v5  ;;  %v12072_v33 = vld [vmem:[#allocation18 + $0xec] ss:$16 sps:$4 sm:$0xff]   ;;  %v12067_v55 = vld [vmem:[#allocation18 + $0xe0] ss:$16 sps:$4 sm:$0xff]  }
 0xf04   :  { %v8974_v11 = vpop.f32.mrf.mxu0  ;;  %v9015_v61 = vpop.f32.mrf.mxu1  ;;  %v12070_v50 = vld [vmem:[#allocation18 + $0xe8] ss:$16 sps:$4 sm:$0xff]   ;;  %v12087_v5 = vld [vmem:[#allocation18 + $0x84] ss:$16 sps:$4 sm:$0xff]  }
 0xf05   :  { %12355 = vtanh.f32 %v9023_v19  ;;  %v9027_v51 = vmul.f32 0.5, %v9019_v22  ;;  %v9032_v18 = vmul.f32 0.5, %v9021_v2  ;;  %v15230_v19 = vld [vmem:[#allocation39_spill] sm:$0xff]  ;;  %v12075_v22 = vld [vmem:[#allocation18 + $0xc4] ss:$16 sps:$4 sm:$0xff]  }
 0xf06   :  { %v8975_v4 = vpop.f32.mrf.mxu0  ;;  %v9016_v27 = vpop.f32.mrf.mxu1  ;;  %v9417_v29 = vrot.slane %v15230_v19, 4  ;;  %v12078_v11 = vld [vmem:[#allocation18 + $0xcc] ss:$16 sps:$4 sm:$0xff]   ;;  %v12073_v61 = vld [vmem:[#allocation18 + $0xc0] ss:$16 sps:$4 sm:$0xff]  }
 0xf07   :  { %12357 = vtanh.f32 %v9027_v51  ;;  %v12084_v51 = vld [vmem:[#allocation18 + $0xac] ss:$16 sps:$4 sm:$0xff]   ;;  %v12079_v4 = vld [vmem:[#allocation18 + $0xa0] ss:$16 sps:$4 sm:$0xff]   ;;  %v12082_v27 = vld [vmem:[#allocation18 + $0xa8] ss:$16 sps:$4 sm:$0xff]  }
 0xf08   :  { %12359 = vtanh.f32 %v9020_v23  ;;  %v12081_v23 = vld [vmem:[#allocation18 + $0xa4] ss:$16 sps:$4 sm:$0xff]   ;;  %v12090_v2 = vld [vmem:[#allocation18 + $0x8c] ss:$16 sps:$4 sm:$0xff]  }
 0xf09   :  { %12361 = vtanh.f32 %v9032_v18  ;;  %v12085_v18 = vld [vmem:[#allocation18 + $0x80] ss:$16 sps:$4 sm:$0xff]  }
 0xf12   :  { %v12356_v63 = vpop.eup %12355 }
 0xf13   :  { %v9025_v9 = vmul.f32 0.5, %v12356_v63  ;;  %v12088_v63 = vld [vmem:[#allocation18 + $0x88] ss:$16 sps:$4 sm:$0xff]  }
 0xf14   :  { %v12358_v12 = vpop.eup %12357 }
 0xf15   :  { %v9026_v60 = vadd.f32 0.5, %v9025_v9  ;;  %v9029_v43 = vmul.f32 0.5, %v12358_v12  ;;  %v12360_v47 = vpop.eup %12359  ;;  %v12093_v9 = vld [vmem:[#allocation18 + $0x64] ss:$16 sps:$4 sm:$0xff]   ;;  %v12096_v12 = vld [vmem:[#allocation18 + $0x6c] ss:$16 sps:$4 sm:$0xff]  }
 0xf16   :  { %v12362_v35 = vpop.eup %12361 }
 0xf17   :  { %v9030_v28 = vadd.f32 0.5, %v9029_v43  ;;  %v9037_v59 = vmul.f32 %v12360_v47, %v9026_v60  ;;  %v9034_v38 = vmul.f32 0.5, %v12362_v35  ;;  %v12091_v60 = vld [vmem:[#allocation18 + $0x60] ss:$16 sps:$4 sm:$0xff]   ;;  %v12099_v43 = vld [vmem:[#allocation18 + $0x44] ss:$16 sps:$4 sm:$0xff]  }
 0xf18   :  { %v12102_v47 = vld [vmem:[#allocation18 + $0x4c] ss:$16 sps:$4 sm:$0xff]  }
 0xf19   :  { %v9036_v46 = vmul.f32 %v9030_v28, %v14727_v31  ;;  %v9035_v17 = vadd.f32 0.5, %v9034_v38  ;;  %v12028_v31 = vld [vmem:[#allocation18 + $0x1c8] ss:$16 sps:$4 sm:$0xff]   ;;  %v12097_v28 = vld [vmem:[#allocation18 + $0x40] ss:$16 sps:$4 sm:$0xff]  }
 0xf1a   :  { %v12108_v35 = vld [vmem:[#allocation18 + $0x2c] ss:$16 sps:$4 sm:$0xff]   ;;  %v12103_v38 = vld [vmem:[#allocation18 + $0x20] ss:$16 sps:$4 sm:$0xff]  }
 0xf1b   :  { %v14751_v3 = vadd.f32 %v9037_v59, %v9036_v46  ;;  %v12100_v59 = vld [vmem:[#allocation18 + $0x48] ss:$16 sps:$4 sm:$0xff]   ;;  %v12105_v46 = vld [vmem:[#allocation18 + $0x24] ss:$16 sps:$4 sm:$0xff]  }
 0xf1d   :  { %12363 = vtanh.f32 %v14751_v3 }
 0xf2a   :  { %v12364_v42 = vpop.eup %12363 }
 0xf2b   :  { %v9040_v58 = vmul.f32 %v12364_v42, %v9035_v17  ;;  %v12106_v17 = vld [vmem:[#allocation18 + $0x28] ss:$16 sps:$4 sm:$0xff]   ;;  %v12111_v42 = vld [vmem:[#allocation18 + $0x4] ss:$16 sps:$4 sm:$0xff]  }
 0xf2d   :  { %v9051_v62 = vpack.c.bf16 %v9040_v58, %v9040_v58  ;;  %v12114_v58 = vld [vmem:[#allocation18 + $0xc] ss:$16 sps:$4 sm:$0xff]  }
 0xf2f   :  { %9277 = vmatmul.mubr.bf16.vlgmr.msra.gmra.mxu0 %v9051_v62  ;;  %9318 = vmatmul.mubr.bf16.vlgmr.msra.gmra.mxu1 %v9051_v62  ;;  %v15231_v62 = vld [vmem:[#allocation41_spill] sm:$0xff] }
 0xf30   :  { %9580 = vmatpush1.bf16.msra.mxu0 %v12019_v15  ;;  %9621 = vmatpush1.bf16.msra.mxu1 %v12022_v41  ;;  %v12109_v15 = vld [vmem:[#allocation18] ss:$16 sps:$4 sm:$0xff]   ;;  %v12112_v41 = vld [vmem:[#allocation18 + $0x8] ss:$16 sps:$4 sm:$0xff]  }
 0xf31   :  { %9581 = vmatprep.subr.bf16.mxu0 %v12027_v53  ;;  %9622 = vmatprep.subr.bf16.mxu1 %v12030_v49  ;;  %v9662_v53 = vrot.slane %v15231_v62, 4  ;;  %v12115_v49 = vld [vmem:[%s14878_s10 + $0x38] sm:$0xff]  }
 0xf32   :  { %9611 = vmatprep.mubr.bf16.mxu0 %v15036_v44  ;;  %9652 = vmatprep.mubr.bf16.mxu1 %v15036_v44 }
 0xf34   :  { %9582 = vmatpush1.bf16.msra.mxu0 %v12025_v57  ;;  %9623 = vmatpush1.bf16.msra.mxu1 %v12028_v31  ;;  %v12552_v57 = vmov 0.0   ;;  %v12116_v31 = vld [vmem:[%s14878_s10 + $0x30] sm:$0xff]  }
 0xf35   :  { %9583 = vmatprep.subr.bf16.mxu0 %v12033_v45  ;;  %9624 = vmatprep.subr.bf16.mxu1 %v12036_v0  ;;  %v12117_v45 = vld [vmem:[%s14878_s10 + $0x28] sm:$0xff]   ;;  %v12118_v0 = vld [vmem:[%s14878_s10 + $0x20] sm:$0xff]  }
 0xf38   :  { %9584 = vmatpush1.bf16.msra.mxu0 %v12031_v16  ;;  %9625 = vmatpush1.bf16.msra.mxu1 %v12034_v7  ;;  %v12119_v16 = vld [vmem:[%s14878_s10 + $0x18] sm:$0xff]   ;;  %v12120_v7 = vld [vmem:[%s14878_s10 + $0x10] sm:$0xff]  }
 0xf39   :  { %9585 = vmatprep.subr.bf16.mxu0 %v12039_v20  ;;  %9626 = vmatprep.subr.bf16.mxu1 %v12042_v36  ;;  %v12121_v20 = vld [vmem:[%s14878_s10 + $0x8] sm:$0xff]   ;;  %v12122_v36 = vld [vmem:[%s14878_s10] sm:$0xff]  }
 0xf3c   :  { %9586 = vmatpush1.bf16.msra.mxu0 %v12037_v39  ;;  %9627 = vmatpush1.bf16.msra.mxu1 %v12040_v13  ;;  %v12123_v39 = vld [vmem:[%s14878_s10 + $0x78] sm:$0xff]   ;;  %v12124_v13 = vld [vmem:[%s14878_s10 + $0x70] sm:$0xff]  }
 0xf3d   :  { %9587 = vmatprep.subr.bf16.mxu0 %v12045_v37  ;;  %9628 = vmatprep.subr.bf16.mxu1 %v12048_v56  ;;  %v12125_v37 = vld [vmem:[%s14878_s10 + $0x68] sm:$0xff]   ;;  %v12126_v56 = vld [vmem:[%s14878_s10 + $0x60] sm:$0xff]  }
 0xf40   :  { %9588 = vmatpush1.bf16.msra.mxu0 %v12043_v10  ;;  %9629 = vmatpush1.bf16.msra.mxu1 %v12046_v40  ;;  %v12127_v10 = vld [vmem:[%s14878_s10 + $0x58] sm:$0xff]   ;;  %v12128_v40 = vld [vmem:[%s14878_s10 + $0x50] sm:$0xff]  }
 0xf41   :  { %9589 = vmatprep.subr.bf16.mxu0 %v12051_v21  ;;  %9630 = vmatprep.subr.bf16.mxu1 %v12054_v48  ;;  %v12129_v21 = vld [vmem:[%s14878_s10 + $0x48] sm:$0xff]   ;;  %v12130_v48 = vld [vmem:[%s14878_s10 + $0x40] sm:$0xff]  }
 0xf44   :  { %9590 = vmatpush1.bf16.msra.mxu0 %v12049_v34  ;;  %9631 = vmatpush1.bf16.msra.mxu1 %v12052_v6 }
 0xf45   :  { %9591 = vmatprep.subr.bf16.mxu0 %v12057_v24  ;;  %9632 = vmatprep.subr.bf16.mxu1 %v12060_v14  ;;  %v15232_v24 = vld [vmem:[#allocation47_spill] sm:$0xff] }
 0xf48   :  { %9592 = vmatpush1.bf16.msra.mxu0 %v12055_v8  ;;  %9633 = vmatpush1.bf16.msra.mxu1 %v12058_v52 }
 0xf49   :  { %9593 = vmatprep.subr.bf16.mxu0 %v12063_v30  ;;  %9634 = vmatprep.subr.bf16.mxu1 %v12066_v54  ;;  %v15233_v54 = vld [vmem:[#allocation48_spill] sm:$0xff] }
 0xf4c   :  { %9594 = vmatpush1.bf16.msra.mxu0 %v12061_v26  ;;  %9635 = vmatpush1.bf16.msra.mxu1 %v12064_v25 }
 0xf4d   :  { %9824 = vmatprep.subr.bf16.mxu0 %v12069_v32  ;;  %9865 = vmatprep.subr.bf16.mxu1 %v12072_v33  ;;  %v15234_v33 = vld [vmem:[#allocation46_spill] sm:$0xff] }
 0xf4f   :  { %9612 = vmatmul.mubr.bf16.vlgmr.msra.gmra.mxu0 %v9417_v29  ;;  %9653 = vmatmul.mubr.bf16.vlgmr.msra.gmra.mxu1 %v9417_v29 }
 0xf50   :  { %9825 = vmatpush1.bf16.msra.mxu0 %v12067_v55  ;;  %9866 = vmatpush1.bf16.msra.mxu1 %v12070_v50 }
 0xf51   :  { %9826 = vmatprep.subr.bf16.mxu0 %v12075_v22  ;;  %9867 = vmatprep.subr.bf16.mxu1 %v12078_v11  ;;  %v15235_v22 = vld [vmem:[#allocation61_spill] sm:$0xff] }
 0xf52   :  { %9856 = vmatprep.mubr.bf16.mxu0 %v15036_v44  ;;  %9897 = vmatprep.mubr.bf16.mxu1 %v15036_v44  ;;  %v12094_v44 = vld [vmem:[#allocation18 + $0x68] ss:$16 sps:$4 sm:$0xff]  }
 0xf54   :  { %9827 = vmatpush1.bf16.msra.mxu0 %v12073_v61  ;;  %9868 = vmatpush1.bf16.msra.mxu1 %v12076_v1 }
 0xf55   :  { %9828 = vmatprep.subr.bf16.mxu0 %v12081_v23  ;;  %9869 = vmatprep.subr.bf16.mxu1 %v12084_v51 }
 0xf58   :  { %9829 = vmatpush1.bf16.msra.mxu0 %v12079_v4  ;;  %9870 = vmatpush1.bf16.msra.mxu1 %v12082_v27 }
 0xf59   :  { %9830 = vmatprep.subr.bf16.mxu0 %v12087_v5  ;;  %9871 = vmatprep.subr.bf16.mxu1 %v12090_v2 }
 0xf5c   :  { %9831 = vmatpush1.bf16.msra.mxu0 %v12085_v18  ;;  %9872 = vmatpush1.bf16.msra.mxu1 %v12088_v63 }
 0xf5d   :  { %9832 = vmatprep.subr.bf16.mxu0 %v12093_v9  ;;  %9873 = vmatprep.subr.bf16.mxu1 %v12096_v12 }
 0xf60   :  { %9833 = vmatpush1.bf16.msra.mxu0 %v12091_v60  ;;  %9874 = vmatpush1.bf16.msra.mxu1 %v12094_v44 }
 0xf61   :  { %9834 = vmatprep.subr.bf16.mxu0 %v12099_v43  ;;  %9875 = vmatprep.subr.bf16.mxu1 %v12102_v47 }
 0xf64   :  { %9835 = vmatpush1.bf16.msra.mxu0 %v12097_v28  ;;  %9876 = vmatpush1.bf16.msra.mxu1 %v12100_v59 }
 0xf65   :  { %9836 = vmatprep.subr.bf16.mxu0 %v12105_v46  ;;  %9877 = vmatprep.subr.bf16.mxu1 %v12108_v35 }
 0xf68   :  { %9837 = vmatpush1.bf16.msra.mxu0 %v12103_v38  ;;  %9878 = vmatpush1.bf16.msra.mxu1 %v12106_v17 }
 0xf69   :  { %9838 = vmatprep.subr.bf16.mxu0 %v12111_v42  ;;  %9879 = vmatprep.subr.bf16.mxu1 %v12114_v58 }
 0xf6c   :  { %9839 = vmatpush1.bf16.msra.mxu0 %v12109_v15  ;;  %9880 = vmatpush1.bf16.msra.mxu1 %v12112_v41  ;;  %v15236_v41 = vld [vmem:[#allocation25_spill] sm:$0xff] }
 0xf6d   :  { %11358 = vmatprep.subr.bf16.mxu1 %v12552_v57  ;;  %11338 = vmatprep.subr.bf16.mxu0 %v12552_v57 }
 0xf6f   :  { %9857 = vmatmul.mubr.bf16.vlgmr.msra.gmra.mxu0 %v9662_v53  ;;  %9898 = vmatmul.mubr.bf16.vlgmr.msra.gmra.mxu1 %v9662_v53 }
 0xf70   :  { %11359 = vmatpush3.bf16.msra.mxu1 %v12115_v49  ;;  %11374 = vmatprep.mubr.msk.bf16.mxu1 %vm12553_vm1, %v12552_v57 }
 0xf71   :  { %11360 = vmatprep.subr.bf16.mxu1 %v12552_v57  ;;  %11354 = vmatprep.mubr.msk.bf16.mxu0 %vm12553_vm1, %v12552_v57 }
 0xf72   :  { %11339 = vmatpush3.bf16.msra.mxu0 %v12123_v39 }
 0xf73   :  { %11340 = vmatprep.subr.bf16.mxu0 %v12552_v57 }
 0xf74   :  { %11361 = vmatpush3.bf16.msra.mxu1 %v12116_v31 }
 0xf75   :  { %11362 = vmatprep.subr.bf16.mxu1 %v12552_v57 }
 0xf76   :  { %11341 = vmatpush3.bf16.msra.mxu0 %v12124_v13 }
 0xf77   :  { %11342 = vmatprep.subr.bf16.mxu0 %v12552_v57 }
 0xf78   :  { %11363 = vmatpush3.bf16.msra.mxu1 %v12117_v45  ;;  %v15237_v45 = vld [vmem:[#allocation26_spill] sm:$0xff] }
 0xf79   :  { %11364 = vmatprep.subr.bf16.mxu1 %v12552_v57 }
 0xf7a   :  { %11343 = vmatpush3.bf16.msra.mxu0 %v12125_v37 }
 0xf7b   :  { %11344 = vmatprep.subr.bf16.mxu0 %v12552_v57 }
 0xf7c   :  { %11365 = vmatpush3.bf16.msra.mxu1 %v12118_v0 }
 0xf7d   :  { %11366 = vmatprep.subr.bf16.mxu1 %v12552_v57 }
 0xf7e   :  { %11345 = vmatpush3.bf16.msra.mxu0 %v12126_v56 }
 0xf7f   :  { %11346 = vmatprep.subr.bf16.mxu0 %v12552_v57 }
 0xf80   :  { %11367 = vmatpush3.bf16.msra.mxu1 %v12119_v16 }
 0xf81   :  { %11368 = vmatprep.subr.bf16.mxu1 %v12552_v57 }
 0xf82   :  { %11347 = vmatpush3.bf16.msra.mxu0 %v12127_v10  ;;  %v15238_v10 = vld [vmem:[#allocation24_spill] sm:$0xff] }
 0xf83   :  { %11348 = vmatprep.subr.bf16.mxu0 %v12552_v57 }
 0xf84   :  { %11369 = vmatpush3.bf16.msra.mxu1 %v12120_v7 }
 0xf85   :  { %11370 = vmatprep.subr.bf16.mxu1 %v12552_v57 }
 0xf86   :  { %11349 = vmatpush3.bf16.msra.mxu0 %v12128_v40 }
 0xf87   :  { %11350 = vmatprep.subr.bf16.mxu0 %v12552_v57 }
 0xf88   :  { %11371 = vmatpush3.bf16.msra.mxu1 %v12121_v20 }
 0xf89   :  { %11372 = vmatprep.subr.bf16.mxu1 %v12552_v57 }
 0xf8a   :  { %11351 = vmatpush3.bf16.msra.mxu0 %v12129_v21 }
 0xf8b   :  { %11352 = vmatprep.subr.bf16.mxu0 %v12552_v57 }
 0xf8c   :  { %11373 = vmatpush3.bf16.msra.mxu1 %v12122_v36 }
 0xf8e   :  { %11353 = vmatpush3.bf16.msra.mxu0 %v12130_v48 }
 0xf8f   :  { %11378 = vmatprep.subr.bf16.mxu0 %v12552_v57 }
 0xfef   :  { %v9278_v34 = vpop.f32.mrf.mxu0  ;;  %v9319_v6 = vpop.f32.mrf.mxu1 }
 0xff0   :  { %v9326_v14 = vadd.f32 %v9278_v34, %v15232_v24  ;;  %v9328_v55 = vadd.f32 %v9319_v6, %v15234_v33 }
 0xff1   :  { %v9280_v8 = vpop.f32.mrf.mxu0  ;;  %v9321_v52 = vpop.f32.mrf.mxu1 }
 0xff2   :  { %v9331_v30 = vmul.f32 0.5, %v9326_v14  ;;  %v9327_v26 = vadd.f32 %v9280_v8, %v15233_v54  ;;  %v9329_v11 = vadd.f32 %v9321_v52, %v15235_v22  ;;  %v15239_v8 = vld [vmem:[#allocation27_spill] sm:$0xff] }
 0xff3   :  { %v9282_v25 = vpop.f32.mrf.mxu0  ;;  %v9323_v32 = vpop.f32.mrf.mxu1 }
 0xff4   :  { %12365 = vtanh.f32 %v9331_v30  ;;  %v9335_v50 = vmul.f32 0.5, %v9327_v26  ;;  %v9340_v61 = vmul.f32 0.5, %v9329_v11 }
 0xff5   :  { %v9283_v19 = vpop.f32.mrf.mxu0  ;;  %v9324_v29 = vpop.f32.mrf.mxu1 }
 0xff6   :  { %12367 = vtanh.f32 %v9335_v50 }
 0xff7   :  { %12369 = vtanh.f32 %v9328_v55 }
 0xff8   :  { %12371 = vtanh.f32 %v9340_v61 }
0x1001   :  { %v12366_v1 = vpop.eup %12365 }
0x1002   :  { %v9333_v23 = vmul.f32 0.5, %v12366_v1 }
0x1003   :  { %v12368_v51 = vpop.eup %12367 }
0x1004   :  { %v9334_v4 = vadd.f32 0.5, %v9333_v23  ;;  %v9337_v27 = vmul.f32 0.5, %v12368_v51  ;;  %v12370_v5 = vpop.eup %12369 }
0x1005   :  { %v12372_v44 = vpop.eup %12371 }
0x1006   :  { %v9338_v2 = vadd.f32 0.5, %v9337_v27  ;;  %v9345_v18 = vmul.f32 %v12370_v5, %v9334_v4  ;;  %v9342_v46 = vmul.f32 0.5, %v12372_v44  ;;  %v12131_v5 = vld [vmem:[%s14880_s12 + $0x18] sm:$0xff]  }
0x1008   :  { %v9344_v63 = vmul.f32 %v9338_v2, %v14751_v3  ;;  %v9343_v17 = vadd.f32 0.5, %v9342_v46  ;;  %v9906_v3 = vld [vmem:[%s14877_s9] sm:$0xf]  ;;  %v12132_v2 = vld [vmem:[%s14880_s12 + $0x10] sm:$0xff]  }
0x1009   :  { %v9911_v62 = vrot.slane %v9906_v3, %v15236_v41  ;;  %v9915_v0 = vrot.slane %v9906_v3, %v15237_v45  ;;  %v9919_v40 = vrot.slane %v9906_v3, %v15238_v10  ;;  %v9923_v52 = vrot.slane %v9906_v3, %v15239_v8 }
0x100a   :  { %v9346_v9 = vadd.f32 %v9345_v18, %v9344_v63  ;;  %v12133_v18 = vld [vmem:[%s14880_s12 + $0x8] sm:$0xff]   ;;  %v12134_v63 = vld [vmem:[%s14880_s12] sm:$0xff]  }
0x100c   :  { %12373 = vtanh.f32 %v9346_v9 }
0x100f   :  { %v9613_v12 = vpop.f32.mrf.mxu0  ;;  %v9654_v60 = vpop.f32.mrf.mxu1 }
0x1011   :  { %v9615_v43 = vpop.f32.mrf.mxu0  ;;  %v9656_v47 = vpop.f32.mrf.mxu1 }
0x1013   :  { %v9617_v28 = vpop.f32.mrf.mxu0  ;;  %v9658_v59 = vpop.f32.mrf.mxu1 }
0x1015   :  { %v9618_v35 = vpop.f32.mrf.mxu0  ;;  %v9659_v38 = vpop.f32.mrf.mxu1 }
0x1019   :  { %v12374_v42 = vpop.eup %12373 }
0x101a   :  { %v9348_v58 = vmul.f32 %v12374_v42, %v9343_v17  ;;  %v11309_v42 = vld [vmem:[%s14881_s13] ss:$0 sm:$0xff] }
0x101c   :  { %v9950_v15 = vpack.c.bf16 %v9348_v58, %v9348_v58 }
0x101e   :  { %11375 = vmatmul.mubr.bf16.vlgmr.msra.gmra.mxu1 %v9950_v15 }
0x102f   :  { %v9858_v53 = vpop.f32.mrf.mxu0  ;;  %v9899_v49 = vpop.f32.mrf.mxu1 }
0x1030   :  { %v9859_v31 = vadd.f32 %v9858_v53, %v9613_v12  ;;  %v9900_v56 = vadd.f32 %v9899_v49, %v9654_v60 }
0x1031   :  { %v9860_v16 = vpop.f32.mrf.mxu0  ;;  %v9901_v7 = vpop.f32.mrf.mxu1 }
0x1032   :  { %v9928_v20 = vadd.f32 %v9911_v62, %v9859_v31  ;;  %v9861_v36 = vadd.f32 %v9860_v16, %v9615_v43  ;;  %v9930_v24 = vadd.f32 %v9919_v40, %v9900_v56  ;;  %v9902_v14 = vadd.f32 %v9901_v7, %v9656_v47  ;;  %v11308_v47 = vld [vmem:[%s14879_s11] ss:$0 sm:$0xff] }
0x1033   :  { %v9862_v39 = vpop.f32.mrf.mxu0  ;;  %v9903_v13 = vpop.f32.mrf.mxu1 }
0x1034   :  { %v9932_v37 = vmul.f32 0.5, %v9928_v20  ;;  %v9929_v21 = vadd.f32 %v9915_v0, %v9861_v36  ;;  %v9931_v30 = vadd.f32 %v9923_v52, %v9902_v14 }
0x1035   :  { %v9863_v48 = vpop.f32.mrf.mxu0  ;;  %v9904_v34 = vpop.f32.mrf.mxu1 }
0x1036   :  { %12375 = vtanh.f32 %v9932_v37  ;;  %v9936_v6 = vmul.f32 0.5, %v9929_v21  ;;  %v9941_v54 = vmul.f32 0.5, %v9931_v30 }
0x1038   :  { %12377 = vtanh.f32 %v9936_v6 }
0x1039   :  { %12379 = vtanh.f32 %v9930_v24 }
0x103a   :  { %12381 = vtanh.f32 %v9941_v54 }
0x1043   :  { %v12376_v26 = vpop.eup %12375 }
0x1044   :  { %v9934_v25 = vmul.f32 0.5, %v12376_v26 }
0x1045   :  { %v12378_v32 = vpop.eup %12377 }
0x1046   :  { %v9935_v33 = vadd.f32 0.5, %v9934_v25  ;;  %v9938_v55 = vmul.f32 0.5, %v12378_v32  ;;  %v12380_v19 = vpop.eup %12379 }
0x1047   :  { %v12382_v61 = vpop.eup %12381 }
0x1048   :  { %v9939_v50 = vadd.f32 0.5, %v9938_v55  ;;  %v9946_v22 = vmul.f32 %v12380_v19, %v9935_v33  ;;  %v9943_v1 = vmul.f32 0.5, %v12382_v61 }
0x104a   :  { %v9945_v29 = vmul.f32 0.0, %v9939_v50  ;;  %v9944_v23 = vadd.f32 0.5, %v9943_v1 }
0x104c   :  { %v9947_v11 = vadd.f32 %v9946_v22, %v9945_v29 }
0x104e   :  { %12383 = vtanh.f32 %v9947_v11 }
0x105b   :  { %v12384_v51 = vpop.eup %12383 }
0x105c   :  { %v9949_v4 = vmul.f32 %v12384_v51, %v9944_v23 }
0x105e   :  { %v9967_v27 = vpack.c.bf16 %v9949_v4, %v9949_v4 }
0x1060   :  { %11355 = vmatmul.mubr.bf16.vlgmr.msra.gmra.mxu0 %v9967_v27 }
0x1061   :  { %11386 = vmatprep.mubr.msk.bf16.mxu0 %vm12553_vm1, %v12552_v57  ;;  %11379 = vmatpush3.bf16.msra.mxu0 %v12131_v5 }
0x1062   :  { %11380 = vmatprep.subr.bf16.mxu0 %v12552_v57 }
0x1065   :  { %11381 = vmatpush3.bf16.msra.mxu0 %v12132_v2 }
0x1066   :  { %11382 = vmatprep.subr.bf16.mxu0 %v12552_v57 }
0x1069   :  { %11383 = vmatpush3.bf16.msra.mxu0 %v12133_v18 }
0x106a   :  { %11384 = vmatprep.subr.bf16.mxu0 %v12552_v57 }
0x106d   :  { %11385 = vmatpush3.bf16.msra.mxu0 %v12134_v63 }
0x10de   :  { %v10154_v9 = vpop.f32.mrf.mxu1 }
0x10e0   :  { %v11376_v12 = vpop.f32.mrf.mxu1 }
0x10e2   :  { %v10157_v60 = vpop.f32.mrf.mxu1 }
0x10e4   :  { %v11377_v44 = vpop.f32.mrf.mxu1 }
0x1120   :  { %v10066_v43 = vpop.f32.mrf.mxu0 }
0x1121   :  { %v10155_v28 = vadd.f32 %v10154_v9, %v10066_v43 }
0x1122   :  { %v11356_v59 = vpop.f32.mrf.mxu0 }
0x1123   :  { %v10167_v46 = vadd.f32 %v11308_v47, %v10155_v28 }
0x1124   :  { %v10069_v35 = vpop.f32.mrf.mxu0 }
0x1125   :  { %v10168_v38 = vmax.f32 %v10167_v46, 0.0 }
0x1126   :  { %v11357_v57 = vpop.f32.mrf.mxu0 }
0x1127   :  { %v10169_v17 = vpack.c.bf16 %v10168_v38, %v10168_v38 }
0x1129   :  { %11387 = vmatmul.mubr.msk.bf16.vlgmr.msra.gmra.mxu0 %vm792_vm0, %v10169_v17 }
0x11e9   :  { %v10246_v58 = vpop.f32.mrf.mxu0 }
0x11ea   :  { %v10247_v15 = vadd.f32 %v11309_v42, %v10246_v58 }
0x11eb   :  { %v11388_v3 = vpop.f32.mrf.mxu0 }
0x11ec   :  { %10253 = vst.msk [vmem:[%s14882_s14] sm:$0xff] %vm10252_vm2, %v10247_v15 }
0x11ed   :  { %v10249_v41 = vpop.f32.mrf.mxu0 }
0x11ef   :  { %v11389_v62 = vpop.f32.mrf.mxu0 }
0x11f0   :  { %10258 = vsyncpa [#allocation11], 1 }
0x11f1   :  { %10259 = vsyncpa [#allocation13], 1 }
0x11f2   :  { %10260 = vsyncpa [#allocation16], 1 }
0x11f3   :  { %10261 = vsyncpa [#allocation19], 1 }

</bundles_post_ra>
